<compile_context>
chip_gen: v5e
topology: v5e:2x2
jax: 0.10.0
libtpu: 0.0.40
codegen_flags: <defaults>
</compile_context>

<pallas_src>
import functools

import jax
import jax.numpy as jnp
from jax.experimental import pallas as pl
from jax.experimental.pallas import tpu as pltpu


# ----------------------------------------------------------------------------
# Chip detection (tiling policy only; everything below is correct on any TPU)
# ----------------------------------------------------------------------------
def _num_tensorcores_per_chip():
    try:
        kind = jax.devices()[0].device_kind.lower()
    except Exception:
        return 1
    # v7x has 2 TensorCores per chip; v5e/v6e have 1.
    return 2 if "v7" in kind else 1


_MULTI_TC = _num_tensorcores_per_chip() > 1


# ----------------------------------------------------------------------------
# Pallas kernel: fused matmul (+ maxpool over phases) + bias + activation
# ----------------------------------------------------------------------------
def _mm_kernel(a_ref, w_ref, b_ref, o_ref, *, act, n_phases):
    """a:(P,tm,K) bf16, w:(K,tn) bf16, b:(1,tn) f32, o:(tm,tn) out_dtype.
    o = act(max_p(a[p] @ w) + b); P=1 -> plain matmul, P=4 -> fused MaxPool2x2
    (max commutes with the shared bias add and the monotone ReLU)."""
    acc = jnp.dot(a_ref[0], w_ref[...], preferred_element_type=jnp.float32)
    for p in range(1, n_phases):
        acc = jnp.maximum(
            acc, jnp.dot(a_ref[p], w_ref[...], preferred_element_type=jnp.float32))
    acc = acc + b_ref[...]            # f32 epilogue (v5e-safe)
    if act == "relu":
        acc = jnp.maximum(acc, 0.0)
    elif act == "sigmoid":
        acc = jax.nn.sigmoid(acc)
    o_ref[...] = acc.astype(o_ref.dtype)


def _plan_tiles(m, n_pad, multi_tc):
    """M/N tile selection.  Single-TC (v5e/v6e): one tile up to 512 rows (grid
    splits are pure overhead).  Multi-TC (v7x): >=2 parallel grid steps; for
    tiny-M layers split N instead so both TensorCores get work.  All tiles are
    tiny (<1 MiB) so the v7x 64 MiB VMEM cap is never a concern here."""
    m16 = ((m + 15) // 16) * 16
    tn = n_pad
    if multi_tc:
        if m16 >= 32:
            tm = min(512, ((pl.cdiv(m16, 2) + 15) // 16) * 16)
        else:
            tm = m16
            if n_pad >= 256 and n_pad % 256 == 0:
                tn = n_pad // 2
    else:
        tm = min(512, m16)
    m_pad = pl.cdiv(m, tm) * tm
    return tm, tn, m_pad


def fused_matmul(a, w, b, *, act="none", out_dtype=jnp.bfloat16):
    """a:(P,M,K) phase-major inputs, w:(K,N), b:(N,). Returns (M,N) out_dtype.
    Lane-dense stores: N is zero-padded to a multiple of 128."""
    P, m, k = a.shape
    n = w.shape[1]

    n_pad = ((n + 127) // 128) * 128
    if n_pad != n:
        w = jnp.pad(w, ((0, 0), (0, n_pad - n)))
        b = jnp.pad(b, (0, n_pad - n))

    tm, tn, m_pad = _plan_tiles(m, n_pad, _MULTI_TC)
    if m_pad != m:
        a = jnp.pad(a, ((0, 0), (0, m_pad - m), (0, 0)))

    a_bf = a if a.dtype == jnp.bfloat16 else a.astype(jnp.bfloat16)
    w_bf = w.astype(jnp.bfloat16)
    b_f32 = b.reshape(1, n_pad).astype(jnp.float32)

    out = pl.pallas_call(
        functools.partial(_mm_kernel, act=act, n_phases=P),
        out_shape=jax.ShapeDtypeStruct((m_pad, n_pad), out_dtype),
        grid=(m_pad // tm, n_pad // tn),
        in_specs=[
            pl.BlockSpec((P, tm, k), lambda i, j: (0, i, 0)),
            pl.BlockSpec((k, tn), lambda i, j: (0, j)),
            pl.BlockSpec((1, tn), lambda i, j: (0, j)),
        ],
        out_specs=pl.BlockSpec((tm, tn), lambda i, j: (i, j)),
        compiler_params=pltpu.CompilerParams(
            dimension_semantics=("parallel", "parallel"),
            vmem_limit_bytes=32 * 1024 * 1024,   # v5e scoped default is only 16 MiB
        ),
    )(a_bf, w_bf, b_f32)

    out = out[:m]
    if n_pad != n:
        out = out[:, :n]
    return out


# ----------------------------------------------------------------------------
# Conv / ConvTranspose lowering (thin XLA layout glue, all math in Pallas)
# ----------------------------------------------------------------------------
def _extract_patches_s2(xp, ho, wo):
    """xp: zero-padded NHWC input (bf16). Returns (N,ho,wo,9*C), taps (ky,kx,c)."""
    parts = []
    for dy in range(3):
        for dx in range(3):
            parts.append(xp[:, dy:dy + 2 * (ho - 1) + 1:2,
                             dx:dx + 2 * (wo - 1) + 1:2, :])
    return jnp.concatenate(parts, axis=-1)


def conv2d_s2p1(x, w, b, *, pool, out_dtype=jnp.bfloat16):
    """nn.Conv2d(Cin,Cout,3,stride=2,padding=1) + ReLU [+ MaxPool2d(2,2)],
    fused into a single pallas_call.  x: NHWC; w:(Cout,Cin,3,3)."""
    n, h, wd, cin = x.shape
    cout = w.shape[0]
    assert h % 2 == 0 and wd % 2 == 0
    ho, wo = h // 2, wd // 2
    if x.dtype != jnp.bfloat16:
        x = x.astype(jnp.bfloat16)
    xp = jnp.pad(x, ((0, 0), (1, 1), (1, 1), (0, 0)))
    k = 9 * cin
    # TODO(synk): the stride-2 9-tap gather stays as thin XLA slicing glue (tiny,
    # bf16); an in-kernel tap gather would need stride-2/-4 VMEM value slices.
    patches = _extract_patches_s2(xp, ho, wo)                  # (n,ho,wo,9cin)
    wm = jnp.transpose(w, (2, 3, 1, 0)).reshape(k, cout)

    if pool:
        assert ho % 2 == 0 and wo % 2 == 0
        hp, wp = ho // 2, wo // 2
        # pool-phase-major: (4, n*hp*wp, K); the kernel maxes over the 4 phases,
        # so the pre-pool conv activation never touches HBM.
        a = patches.reshape(n, hp, 2, wp, 2, k)
        a = jnp.transpose(a, (2, 4, 0, 1, 3, 5)).reshape(4, n * hp * wp, k)
        out = fused_matmul(a, wm, b, act="relu", out_dtype=out_dtype)
        return out.reshape(n, hp, wp, cout)

    a = patches.reshape(1, n * ho * wo, k)
    out = fused_matmul(a, wm, b, act="relu", out_dtype=out_dtype)
    return out.reshape(n, ho, wo, cout)


def conv_transpose2d_s2(x, w, b, act, *, upsample_after=1, out_dtype=jnp.bfloat16):
    """nn.ConvTranspose2d(Cin,Cout,3,stride=2,padding=1,output_padding=1) + act
    via sub-pixel (4 output-phase) decomposition -- no zero-dilated input, all 4
    phases from ONE fused matmul.  Optionally fuses a following
    nn.Upsample(scale_factor=2, mode='nearest') into the phase interleave
    (elementwise act commutes with nearest replication).
    x: NHWC (n,h,w,cin); w:(Cin,Cout,3,3); returns (n, 2*up*h, 2*up*w, cout)."""
    n, h, wd, cin = x.shape
    cout = w.shape[1]
    up = upsample_after
    if x.dtype != jnp.bfloat16:
        x = x.astype(jnp.bfloat16)

    # Shifted input copies S[a][b][oy,ox] = x[oy+a, ox+b] (zero pad bottom/right).
    xp = jnp.pad(x, ((0, 0), (0, 1), (0, 1), (0, 0)))
    taps = [xp[:, a:a + h, bb:bb + wd, :] for a in (0, 1) for bb in (0, 1)]
    A = jnp.concatenate(taps, axis=-1).reshape(1, n * h * wd, 4 * cin)

    # Combined weight (4*Cin, 4*Cout): row blocks = shifts (a,b), column blocks =
    # output phases (qy,qx):
    #   qy=0 -> (i=oy, ky=1) ; qy=1 -> (i=oy, ky=2) and (i=oy+1, ky=0)   (same for x)
    z = jnp.zeros((cin, cout), w.dtype)
    wk = lambda ky, kx: w[:, :, ky, kx]                         # (Cin, Cout)
    col00 = jnp.concatenate([wk(1, 1), z,        z,        z       ], axis=0)
    col01 = jnp.concatenate([wk(1, 2), wk(1, 0), z,        z       ], axis=0)
    col10 = jnp.concatenate([wk(2, 1), z,        wk(0, 1), z       ], axis=0)
    col11 = jnp.concatenate([wk(2, 2), wk(2, 0), wk(0, 2), wk(0, 0)], axis=0)
    w_all = jnp.concatenate([col00, col01, col10, col11], axis=1)  # (4cin,4cout)
    b_all = jnp.tile(b, 4)

    out = fused_matmul(A, w_all, b_all, act=act, out_dtype=out_dtype)  # (M,4cout)

    # TODO(synk): phase interleave + nearest upsample stay as XLA layout glue (now
    # on bf16 data); doing it in-kernel would need in-kernel transposes/reshapes.
    out = out.reshape(n, h, wd, 2, 2, cout)              # (n, oy, ox, qy, qx, c)
    out = jnp.transpose(out, (0, 1, 3, 2, 4, 5))         # (n, oy, qy, ox, qx, c)
    if up > 1:   # fused nearest-neighbor 2x upsample of the deconv output
        out = jnp.broadcast_to(out[:, :, :, None, :, :, None, :],
                               (n, h, 2, up, wd, 2, up, cout))
    return out.reshape(n, 2 * up * h, 2 * up * wd, cout)


# ----------------------------------------------------------------------------
# Parameters (deterministic synthetic init) and forward pass
# ----------------------------------------------------------------------------
def init_params(key):
    ks = jax.random.split(key, 6)

    def conv(k, cout, cin):
        scale = (2.0 / (cin * 9)) ** 0.5
        return (jax.random.normal(k, (cout, cin, 3, 3), jnp.float32) * scale,
                jnp.zeros((cout,), jnp.float32))

    def deconv(k, cin, cout):
        scale = (2.0 / (cin * 9)) ** 0.5
        return (jax.random.normal(k, (cin, cout, 3, 3), jnp.float32) * scale,
                jnp.zeros((cout,), jnp.float32))

    p = {}
    p["e1_w"], p["e1_b"] = conv(ks[0], 64, 3)
    p["e2_w"], p["e2_b"] = conv(ks[1], 128, 64)
    p["e3_w"], p["e3_b"] = conv(ks[2], 256, 128)
    p["d1_w"], p["d1_b"] = deconv(ks[3], 256, 128)
    p["d2_w"], p["d2_b"] = deconv(ks[4], 128, 64)
    p["d3_w"], p["d3_b"] = deconv(ks[5], 64, 3)
    return p


def autoencoder_forward(params, x_nchw):
    n, c, h, w = x_nchw.shape
    assert h % 32 == 0 and w % 32 == 0, "encoder downsamples spatially by 32"

    # NCHW (PyTorch convention) -> NHWC (kernel layout); activations flow bf16.
    x = jnp.transpose(x_nchw, (0, 2, 3, 1)).astype(jnp.bfloat16)

    # --- Encoder --- (each stage = ONE fused pallas_call: conv+ReLU[+maxpool])
    x = conv2d_s2p1(x, params["e1_w"], params["e1_b"], pool=True)
    x = conv2d_s2p1(x, params["e2_w"], params["e2_b"], pool=True)
    latent = conv2d_s2p1(x, params["e3_w"], params["e3_b"], pool=False)

    # --- Decoder --- (ReLU and nearest 2x upsample fused into the deconv calls;
    # intermediate interleave/upsample runs on bf16, final layer stores f32)
    y = conv_transpose2d_s2(latent, params["d1_w"], params["d1_b"], "relu",
                            upsample_after=2)
    y = conv_transpose2d_s2(y, params["d2_w"], params["d2_b"], "relu",
                            upsample_after=2)
    y = conv_transpose2d_s2(y, params["d3_w"], params["d3_b"], "sigmoid",
                            upsample_after=1, out_dtype=jnp.float32)

    # NHWC -> NCHW to match PyTorch output convention
    return jnp.transpose(y, (0, 3, 1, 2))


if __name__ == "__main__":
    key = jax.random.PRNGKey(0)
    k_param, k_x = jax.random.split(key)
    params = init_params(k_param)

    # Input spatial size must be a multiple of 32 (encoder downsamples by 32).
    x = jax.random.normal(k_x, (2, 3, 64, 64), jnp.float32)

    out = jax.jit(autoencoder_forward)(params, x)
    out = jax.block_until_ready(out)

    assert out.shape == (2, 3, 64, 64), out.shape
    assert out.dtype == jnp.float32
    assert bool(jnp.all(jnp.isfinite(out)))
    assert bool(jnp.all((out >= 0.0) & (out <= 1.0)))  # sigmoid output range
    print("KERNEL_OK")
</pallas_src>

<mosaic_0001>
module attributes {stable_mosaic.version = 11 : i64} {
  func.func @_mm_kernel(%arg0: i32, %arg1: i32, %arg2: memref<4x512x27xbf16, #tpu.memory_space<vmem>>, %arg3: memref<27x128xbf16, #tpu.memory_space<vmem>>, %arg4: memref<1x128xf32, #tpu.memory_space<vmem>>, %arg5: memref<512x128xbf16, #tpu.memory_space<vmem>>) attributes {dimension_semantics = [#tpu.dimension_semantics<parallel>, #tpu.dimension_semantics<parallel>], iteration_bounds = array<i64: 1, 1>, scalar_prefetch = 0 : i64, scratch_operands = 0 : i64, tpu.core_type = #tpu.core_type<tc>, window_params = [{transform_indices = @transform_0, window_bounds = array<i64: 4, 512, 27>}, {transform_indices = @transform_1, window_bounds = array<i64: 27, 128>}, {transform_indices = @transform_2, window_bounds = array<i64: 1, 128>}, {transform_indices = @transform_3, window_bounds = array<i64: 512, 128>}]} {
    %c0 = arith.constant 0 : index
    %c0_0 = arith.constant 0 : index
    %c0_1 = arith.constant 0 : index
    %0 = vector.load %arg2[%c0, %c0_0, %c0_1] : memref<4x512x27xbf16, #tpu.memory_space<vmem>>, vector<1x512x27xbf16>
    %1 = vector.shape_cast %0 : vector<1x512x27xbf16> to vector<512x27xbf16>
    %c0_2 = arith.constant 0 : index
    %c0_3 = arith.constant 0 : index
    %2 = vector.load %arg3[%c0_2, %c0_3] : memref<27x128xbf16, #tpu.memory_space<vmem>>, vector<27x128xbf16>
    %cst = arith.constant dense<0.000000e+00> : vector<512x128xf32>
    %3 = tpu.matmul %1, %2, %cst {dimension_numbers = #tpu.dot_dimension_numbers<[1], [0], [0], [1], [0, 0, 1, 1], [], []>} : vector<512x27xbf16>, vector<27x128xbf16>, vector<512x128xf32> -> vector<512x128xf32>
    %c1 = arith.constant 1 : index
    %c0_4 = arith.constant 0 : index
    %c0_5 = arith.constant 0 : index
    %4 = vector.load %arg2[%c1, %c0_4, %c0_5] : memref<4x512x27xbf16, #tpu.memory_space<vmem>>, vector<1x512x27xbf16>
    %5 = vector.shape_cast %4 : vector<1x512x27xbf16> to vector<512x27xbf16>
    %c0_6 = arith.constant 0 : index
    %c0_7 = arith.constant 0 : index
    %6 = vector.load %arg3[%c0_6, %c0_7] : memref<27x128xbf16, #tpu.memory_space<vmem>>, vector<27x128xbf16>
    %cst_8 = arith.constant dense<0.000000e+00> : vector<512x128xf32>
    %7 = tpu.matmul %5, %6, %cst_8 {dimension_numbers = #tpu.dot_dimension_numbers<[1], [0], [0], [1], [0, 0, 1, 1], [], []>} : vector<512x27xbf16>, vector<27x128xbf16>, vector<512x128xf32> -> vector<512x128xf32>
    %8 = arith.maximumf %3, %7 : vector<512x128xf32>
    %c2 = arith.constant 2 : index
    %c0_9 = arith.constant 0 : index
    %c0_10 = arith.constant 0 : index
    %9 = vector.load %arg2[%c2, %c0_9, %c0_10] : memref<4x512x27xbf16, #tpu.memory_space<vmem>>, vector<1x512x27xbf16>
    %10 = vector.shape_cast %9 : vector<1x512x27xbf16> to vector<512x27xbf16>
    %c0_11 = arith.constant 0 : index
    %c0_12 = arith.constant 0 : index
    %11 = vector.load %arg3[%c0_11, %c0_12] : memref<27x128xbf16, #tpu.memory_space<vmem>>, vector<27x128xbf16>
    %cst_13 = arith.constant dense<0.000000e+00> : vector<512x128xf32>
    %12 = tpu.matmul %10, %11, %cst_13 {dimension_numbers = #tpu.dot_dimension_numbers<[1], [0], [0], [1], [0, 0, 1, 1], [], []>} : vector<512x27xbf16>, vector<27x128xbf16>, vector<512x128xf32> -> vector<512x128xf32>
    %13 = arith.maximumf %8, %12 : vector<512x128xf32>
    %c3 = arith.constant 3 : index
    %c0_14 = arith.constant 0 : index
    %c0_15 = arith.constant 0 : index
    %14 = vector.load %arg2[%c3, %c0_14, %c0_15] : memref<4x512x27xbf16, #tpu.memory_space<vmem>>, vector<1x512x27xbf16>
    %15 = vector.shape_cast %14 : vector<1x512x27xbf16> to vector<512x27xbf16>
    %c0_16 = arith.constant 0 : index
    %c0_17 = arith.constant 0 : index
    %16 = vector.load %arg3[%c0_16, %c0_17] : memref<27x128xbf16, #tpu.memory_space<vmem>>, vector<27x128xbf16>
    %cst_18 = arith.constant dense<0.000000e+00> : vector<512x128xf32>
    %17 = tpu.matmul %15, %16, %cst_18 {dimension_numbers = #tpu.dot_dimension_numbers<[1], [0], [0], [1], [0, 0, 1, 1], [], []>} : vector<512x27xbf16>, vector<27x128xbf16>, vector<512x128xf32> -> vector<512x128xf32>
    %18 = arith.maximumf %13, %17 : vector<512x128xf32>
    %c0_19 = arith.constant 0 : index
    %c0_20 = arith.constant 0 : index
    %19 = vector.load %arg4[%c0_19, %c0_20] : memref<1x128xf32, #tpu.memory_space<vmem>>, vector<1x128xf32>
    %20 = vector.broadcast %19 : vector<1x128xf32> to vector<512x128xf32>
    %21 = arith.addf %18, %20 : vector<512x128xf32>
    %cst_21 = arith.constant 0.000000e+00 : f32
    %22 = vector.broadcast %cst_21 : f32 to vector<512x128xf32>
    %23 = arith.maximumf %21, %22 : vector<512x128xf32>
    %24 = arith.truncf %23 : vector<512x128xf32> to vector<512x128xbf16>
    %c0_22 = arith.constant 0 : index
    %c0_23 = arith.constant 0 : index
    %25 = vector.load %arg5[%c0_22, %c0_23] : memref<512x128xbf16, #tpu.memory_space<vmem>>, vector<512x128xbf16>
    tpu.vector_store %arg5[%c0_22, %c0_23], %24 {strides = array<i32>} : memref<512x128xbf16, #tpu.memory_space<vmem>>, vector<512x128xbf16>,
    return
  }
  func.func @transform_0(%arg0: i32, %arg1: i32) -> (i32, i32, i32) {
    %c0_i32 = arith.constant 0 : i32
    %c0_i32_0 = arith.constant 0 : i32
    %c0_i32_1 = arith.constant 0 : i32
    return %c0_i32, %arg0, %c0_i32_0 : i32, i32, i32
  }
  func.func @transform_1(%arg0: i32, %arg1: i32) -> (i32, i32) {
    %c0_i32 = arith.constant 0 : i32
    %c0_i32_0 = arith.constant 0 : i32
    return %c0_i32, %arg1 : i32, i32
  }
  func.func @transform_2(%arg0: i32, %arg1: i32) -> (i32, i32) {
    %c0_i32 = arith.constant 0 : i32
    %c0_i32_0 = arith.constant 0 : i32
    return %c0_i32, %arg1 : i32, i32
  }
  func.func @transform_3(%arg0: i32, %arg1: i32) -> (i32, i32) {
    %c0_i32 = arith.constant 0 : i32
    return %arg0, %arg1 : i32, i32
  }
}

module attributes {stable_mosaic.version = 11 : i64} {
  func.func @_mm_kernel(%arg0: i32, %arg1: i32, %arg2: memref<4x32x576xbf16, #tpu.memory_space<vmem>>, %arg3: memref<576x128xbf16, #tpu.memory_space<vmem>>, %arg4: memref<1x128xf32, #tpu.memory_space<vmem>>, %arg5: memref<32x128xbf16, #tpu.memory_space<vmem>>) attributes {dimension_semantics = [#tpu.dimension_semantics<parallel>, #tpu.dimension_semantics<parallel>], iteration_bounds = array<i64: 1, 1>, scalar_prefetch = 0 : i64, scratch_operands = 0 : i64, tpu.core_type = #tpu.core_type<tc>, window_params = [{transform_indices = @transform_0, window_bounds = array<i64: 4, 32, 576>}, {transform_indices = @transform_1, window_bounds = array<i64: 576, 128>}, {transform_indices = @transform_2, window_bounds = array<i64: 1, 128>}, {transform_indices = @transform_3, window_bounds = array<i64: 32, 128>}]} {
    %c0 = arith.constant 0 : index
    %c0_0 = arith.constant 0 : index
    %c0_1 = arith.constant 0 : index
    %0 = vector.load %arg2[%c0, %c0_0, %c0_1] : memref<4x32x576xbf16, #tpu.memory_space<vmem>>, vector<1x32x576xbf16>
    %1 = vector.shape_cast %0 : vector<1x32x576xbf16> to vector<32x576xbf16>
    %c0_2 = arith.constant 0 : index
    %c0_3 = arith.constant 0 : index
    %2 = vector.load %arg3[%c0_2, %c0_3] : memref<576x128xbf16, #tpu.memory_space<vmem>>, vector<576x128xbf16>
    %cst = arith.constant dense<0.000000e+00> : vector<32x128xf32>
    %3 = tpu.matmul %1, %2, %cst {dimension_numbers = #tpu.dot_dimension_numbers<[1], [0], [0], [1], [0, 0, 1, 1], [], []>} : vector<32x576xbf16>, vector<576x128xbf16>, vector<32x128xf32> -> vector<32x128xf32>
    %c1 = arith.constant 1 : index
    %c0_4 = arith.constant 0 : index
    %c0_5 = arith.constant 0 : index
    %4 = vector.load %arg2[%c1, %c0_4, %c0_5] : memref<4x32x576xbf16, #tpu.memory_space<vmem>>, vector<1x32x576xbf16>
    %5 = vector.shape_cast %4 : vector<1x32x576xbf16> to vector<32x576xbf16>
    %c0_6 = arith.constant 0 : index
    %c0_7 = arith.constant 0 : index
    %6 = vector.load %arg3[%c0_6, %c0_7] : memref<576x128xbf16, #tpu.memory_space<vmem>>, vector<576x128xbf16>
    %cst_8 = arith.constant dense<0.000000e+00> : vector<32x128xf32>
    %7 = tpu.matmul %5, %6, %cst_8 {dimension_numbers = #tpu.dot_dimension_numbers<[1], [0], [0], [1], [0, 0, 1, 1], [], []>} : vector<32x576xbf16>, vector<576x128xbf16>, vector<32x128xf32> -> vector<32x128xf32>
    %8 = arith.maximumf %3, %7 : vector<32x128xf32>
    %c2 = arith.constant 2 : index
    %c0_9 = arith.constant 0 : index
    %c0_10 = arith.constant 0 : index
    %9 = vector.load %arg2[%c2, %c0_9, %c0_10] : memref<4x32x576xbf16, #tpu.memory_space<vmem>>, vector<1x32x576xbf16>
    %10 = vector.shape_cast %9 : vector<1x32x576xbf16> to vector<32x576xbf16>
    %c0_11 = arith.constant 0 : index
    %c0_12 = arith.constant 0 : index
    %11 = vector.load %arg3[%c0_11, %c0_12] : memref<576x128xbf16, #tpu.memory_space<vmem>>, vector<576x128xbf16>
    %cst_13 = arith.constant dense<0.000000e+00> : vector<32x128xf32>
    %12 = tpu.matmul %10, %11, %cst_13 {dimension_numbers = #tpu.dot_dimension_numbers<[1], [0], [0], [1], [0, 0, 1, 1], [], []>} : vector<32x576xbf16>, vector<576x128xbf16>, vector<32x128xf32> -> vector<32x128xf32>
    %13 = arith.maximumf %8, %12 : vector<32x128xf32>
    %c3 = arith.constant 3 : index
    %c0_14 = arith.constant 0 : index
    %c0_15 = arith.constant 0 : index
    %14 = vector.load %arg2[%c3, %c0_14, %c0_15] : memref<4x32x576xbf16, #tpu.memory_space<vmem>>, vector<1x32x576xbf16>
    %15 = vector.shape_cast %14 : vector<1x32x576xbf16> to vector<32x576xbf16>
    %c0_16 = arith.constant 0 : index
    %c0_17 = arith.constant 0 : index
    %16 = vector.load %arg3[%c0_16, %c0_17] : memref<576x128xbf16, #tpu.memory_space<vmem>>, vector<576x128xbf16>
    %cst_18 = arith.constant dense<0.000000e+00> : vector<32x128xf32>
    %17 = tpu.matmul %15, %16, %cst_18 {dimension_numbers = #tpu.dot_dimension_numbers<[1], [0], [0], [1], [0, 0, 1, 1], [], []>} : vector<32x576xbf16>, vector<576x128xbf16>, vector<32x128xf32> -> vector<32x128xf32>
    %18 = arith.maximumf %13, %17 : vector<32x128xf32>
    %c0_19 = arith.constant 0 : index
    %c0_20 = arith.constant 0 : index
    %19 = vector.load %arg4[%c0_19, %c0_20] : memref<1x128xf32, #tpu.memory_space<vmem>>, vector<1x128xf32>
    %20 = vector.broadcast %19 : vector<1x128xf32> to vector<32x128xf32>
    %21 = arith.addf %18, %20 : vector<32x128xf32>
    %cst_21 = arith.constant 0.000000e+00 : f32
    %22 = vector.broadcast %cst_21 : f32 to vector<32x128xf32>
    %23 = arith.maximumf %21, %22 : vector<32x128xf32>
    %24 = arith.truncf %23 : vector<32x128xf32> to vector<32x128xbf16>
    %c0_22 = arith.constant 0 : index
    %c0_23 = arith.constant 0 : index
    %25 = vector.load %arg5[%c0_22, %c0_23] : memref<32x128xbf16, #tpu.memory_space<vmem>>, vector<32x128xbf16>
    tpu.vector_store %arg5[%c0_22, %c0_23], %24 {strides = array<i32>} : memref<32x128xbf16, #tpu.memory_space<vmem>>, vector<32x128xbf16>,
    return
  }
  func.func @transform_0(%arg0: i32, %arg1: i32) -> (i32, i32, i32) {
    %c0_i32 = arith.constant 0 : i32
    %c0_i32_0 = arith.constant 0 : i32
    %c0_i32_1 = arith.constant 0 : i32
    return %c0_i32, %arg0, %c0_i32_0 : i32, i32, i32
  }
  func.func @transform_1(%arg0: i32, %arg1: i32) -> (i32, i32) {
    %c0_i32 = arith.constant 0 : i32
    %c0_i32_0 = arith.constant 0 : i32
    return %c0_i32, %arg1 : i32, i32
  }
  func.func @transform_2(%arg0: i32, %arg1: i32) -> (i32, i32) {
    %c0_i32 = arith.constant 0 : i32
    %c0_i32_0 = arith.constant 0 : i32
    return %c0_i32, %arg1 : i32, i32
  }
  func.func @transform_3(%arg0: i32, %arg1: i32) -> (i32, i32) {
    %c0_i32 = arith.constant 0 : i32
    return %arg0, %arg1 : i32, i32
  }
}

module attributes {stable_mosaic.version = 11 : i64} {
  func.func @_mm_kernel(%arg0: i32, %arg1: i32, %arg2: memref<1x16x1152xbf16, #tpu.memory_space<vmem>>, %arg3: memref<1152x256xbf16, #tpu.memory_space<vmem>>, %arg4: memref<1x256xf32, #tpu.memory_space<vmem>>, %arg5: memref<16x256xbf16, #tpu.memory_space<vmem>>) attributes {dimension_semantics = [#tpu.dimension_semantics<parallel>, #tpu.dimension_semantics<parallel>], iteration_bounds = array<i64: 1, 1>, scalar_prefetch = 0 : i64, scratch_operands = 0 : i64, tpu.core_type = #tpu.core_type<tc>, window_params = [{transform_indices = @transform_0, window_bounds = array<i64: 1, 16, 1152>}, {transform_indices = @transform_1, window_bounds = array<i64: 1152, 256>}, {transform_indices = @transform_2, window_bounds = array<i64: 1, 256>}, {transform_indices = @transform_3, window_bounds = array<i64: 16, 256>}]} {
    %c0 = arith.constant 0 : index
    %c0_0 = arith.constant 0 : index
    %c0_1 = arith.constant 0 : index
    %0 = vector.load %arg2[%c0, %c0_0, %c0_1] : memref<1x16x1152xbf16, #tpu.memory_space<vmem>>, vector<1x16x1152xbf16>
    %1 = vector.shape_cast %0 : vector<1x16x1152xbf16> to vector<16x1152xbf16>
    %c0_2 = arith.constant 0 : index
    %c0_3 = arith.constant 0 : index
    %2 = vector.load %arg3[%c0_2, %c0_3] : memref<1152x256xbf16, #tpu.memory_space<vmem>>, vector<1152x256xbf16>
    %cst = arith.constant dense<0.000000e+00> : vector<16x256xf32>
    %3 = tpu.matmul %1, %2, %cst {dimension_numbers = #tpu.dot_dimension_numbers<[1], [0], [0], [1], [0, 0, 1, 1], [], []>} : vector<16x1152xbf16>, vector<1152x256xbf16>, vector<16x256xf32> -> vector<16x256xf32>
    %c0_4 = arith.constant 0 : index
    %c0_5 = arith.constant 0 : index
    %4 = vector.load %arg4[%c0_4, %c0_5] : memref<1x256xf32, #tpu.memory_space<vmem>>, vector<1x256xf32>
    %5 = vector.broadcast %4 : vector<1x256xf32> to vector<16x256xf32>
    %6 = arith.addf %3, %5 : vector<16x256xf32>
    %cst_6 = arith.constant 0.000000e+00 : f32
    %7 = vector.broadcast %cst_6 : f32 to vector<16x256xf32>
    %8 = arith.maximumf %6, %7 : vector<16x256xf32>
    %9 = arith.truncf %8 : vector<16x256xf32> to vector<16x256xbf16>
    %c0_7 = arith.constant 0 : index
    %c0_8 = arith.constant 0 : index
    %10 = vector.load %arg5[%c0_7, %c0_8] : memref<16x256xbf16, #tpu.memory_space<vmem>>, vector<16x256xbf16>
    tpu.vector_store %arg5[%c0_7, %c0_8], %9 {strides = array<i32>} : memref<16x256xbf16, #tpu.memory_space<vmem>>, vector<16x256xbf16>,
    return
  }
  func.func @transform_0(%arg0: i32, %arg1: i32) -> (i32, i32, i32) {
    %c0_i32 = arith.constant 0 : i32
    %c0_i32_0 = arith.constant 0 : i32
    %c0_i32_1 = arith.constant 0 : i32
    return %c0_i32, %arg0, %c0_i32_0 : i32, i32, i32
  }
  func.func @transform_1(%arg0: i32, %arg1: i32) -> (i32, i32) {
    %c0_i32 = arith.constant 0 : i32
    %c0_i32_0 = arith.constant 0 : i32
    return %c0_i32, %arg1 : i32, i32
  }
  func.func @transform_2(%arg0: i32, %arg1: i32) -> (i32, i32) {
    %c0_i32 = arith.constant 0 : i32
    %c0_i32_0 = arith.constant 0 : i32
    return %c0_i32, %arg1 : i32, i32
  }
  func.func @transform_3(%arg0: i32, %arg1: i32) -> (i32, i32) {
    %c0_i32 = arith.constant 0 : i32
    return %arg0, %arg1 : i32, i32
  }
}

module attributes {stable_mosaic.version = 11 : i64} {
  func.func @_mm_kernel(%arg0: i32, %arg1: i32, %arg2: memref<1x16x1024xbf16, #tpu.memory_space<vmem>>, %arg3: memref<1024x512xbf16, #tpu.memory_space<vmem>>, %arg4: memref<1x512xf32, #tpu.memory_space<vmem>>, %arg5: memref<16x512xbf16, #tpu.memory_space<vmem>>) attributes {dimension_semantics = [#tpu.dimension_semantics<parallel>, #tpu.dimension_semantics<parallel>], iteration_bounds = array<i64: 1, 1>, scalar_prefetch = 0 : i64, scratch_operands = 0 : i64, tpu.core_type = #tpu.core_type<tc>, window_params = [{transform_indices = @transform_0, window_bounds = array<i64: 1, 16, 1024>}, {transform_indices = @transform_1, window_bounds = array<i64: 1024, 512>}, {transform_indices = @transform_2, window_bounds = array<i64: 1, 512>}, {transform_indices = @transform_3, window_bounds = array<i64: 16, 512>}]} {
    %c0 = arith.constant 0 : index
    %c0_0 = arith.constant 0 : index
    %c0_1 = arith.constant 0 : index
    %0 = vector.load %arg2[%c0, %c0_0, %c0_1] : memref<1x16x1024xbf16, #tpu.memory_space<vmem>>, vector<1x16x1024xbf16>
    %1 = vector.shape_cast %0 : vector<1x16x1024xbf16> to vector<16x1024xbf16>
    %c0_2 = arith.constant 0 : index
    %c0_3 = arith.constant 0 : index
    %2 = vector.load %arg3[%c0_2, %c0_3] : memref<1024x512xbf16, #tpu.memory_space<vmem>>, vector<1024x512xbf16>
    %cst = arith.constant dense<0.000000e+00> : vector<16x512xf32>
    %3 = tpu.matmul %1, %2, %cst {dimension_numbers = #tpu.dot_dimension_numbers<[1], [0], [0], [1], [0, 0, 1, 1], [], []>} : vector<16x1024xbf16>, vector<1024x512xbf16>, vector<16x512xf32> -> vector<16x512xf32>
    %c0_4 = arith.constant 0 : index
    %c0_5 = arith.constant 0 : index
    %4 = vector.load %arg4[%c0_4, %c0_5] : memref<1x512xf32, #tpu.memory_space<vmem>>, vector<1x512xf32>
    %5 = vector.broadcast %4 : vector<1x512xf32> to vector<16x512xf32>
    %6 = arith.addf %3, %5 : vector<16x512xf32>
    %cst_6 = arith.constant 0.000000e+00 : f32
    %7 = vector.broadcast %cst_6 : f32 to vector<16x512xf32>
    %8 = arith.maximumf %6, %7 : vector<16x512xf32>
    %9 = arith.truncf %8 : vector<16x512xf32> to vector<16x512xbf16>
    %c0_7 = arith.constant 0 : index
    %c0_8 = arith.constant 0 : index
    %10 = vector.load %arg5[%c0_7, %c0_8] : memref<16x512xbf16, #tpu.memory_space<vmem>>, vector<16x512xbf16>
    tpu.vector_store %arg5[%c0_7, %c0_8], %9 {strides = array<i32>} : memref<16x512xbf16, #tpu.memory_space<vmem>>, vector<16x512xbf16>,
    return
  }
  func.func @transform_0(%arg0: i32, %arg1: i32) -> (i32, i32, i32) {
    %c0_i32 = arith.constant 0 : i32
    %c0_i32_0 = arith.constant 0 : i32
    %c0_i32_1 = arith.constant 0 : i32
    return %c0_i32, %arg0, %c0_i32_0 : i32, i32, i32
  }
  func.func @transform_1(%arg0: i32, %arg1: i32) -> (i32, i32) {
    %c0_i32 = arith.constant 0 : i32
    %c0_i32_0 = arith.constant 0 : i32
    return %c0_i32, %arg1 : i32, i32
  }
  func.func @transform_2(%arg0: i32, %arg1: i32) -> (i32, i32) {
    %c0_i32 = arith.constant 0 : i32
    %c0_i32_0 = arith.constant 0 : i32
    return %c0_i32, %arg1 : i32, i32
  }
  func.func @transform_3(%arg0: i32, %arg1: i32) -> (i32, i32) {
    %c0_i32 = arith.constant 0 : i32
    return %arg0, %arg1 : i32, i32
  }
}

module attributes {stable_mosaic.version = 11 : i64} {
  func.func @_mm_kernel(%arg0: i32, %arg1: i32, %arg2: memref<1x128x512xbf16, #tpu.memory_space<vmem>>, %arg3: memref<512x256xbf16, #tpu.memory_space<vmem>>, %arg4: memref<1x256xf32, #tpu.memory_space<vmem>>, %arg5: memref<128x256xbf16, #tpu.memory_space<vmem>>) attributes {dimension_semantics = [#tpu.dimension_semantics<parallel>, #tpu.dimension_semantics<parallel>], iteration_bounds = array<i64: 1, 1>, scalar_prefetch = 0 : i64, scratch_operands = 0 : i64, tpu.core_type = #tpu.core_type<tc>, window_params = [{transform_indices = @transform_0, window_bounds = array<i64: 1, 128, 512>}, {transform_indices = @transform_1, window_bounds = array<i64: 512, 256>}, {transform_indices = @transform_2, window_bounds = array<i64: 1, 256>}, {transform_indices = @transform_3, window_bounds = array<i64: 128, 256>}]} {
    %c0 = arith.constant 0 : index
    %c0_0 = arith.constant 0 : index
    %c0_1 = arith.constant 0 : index
    %0 = vector.load %arg2[%c0, %c0_0, %c0_1] : memref<1x128x512xbf16, #tpu.memory_space<vmem>>, vector<1x128x512xbf16>
    %1 = vector.shape_cast %0 : vector<1x128x512xbf16> to vector<128x512xbf16>
    %c0_2 = arith.constant 0 : index
    %c0_3 = arith.constant 0 : index
    %2 = vector.load %arg3[%c0_2, %c0_3] : memref<512x256xbf16, #tpu.memory_space<vmem>>, vector<512x256xbf16>
    %cst = arith.constant dense<0.000000e+00> : vector<128x256xf32>
    %3 = tpu.matmul %1, %2, %cst {dimension_numbers = #tpu.dot_dimension_numbers<[1], [0], [0], [1], [0, 0, 1, 1], [], []>} : vector<128x512xbf16>, vector<512x256xbf16>, vector<128x256xf32> -> vector<128x256xf32>
    %c0_4 = arith.constant 0 : index
    %c0_5 = arith.constant 0 : index
    %4 = vector.load %arg4[%c0_4, %c0_5] : memref<1x256xf32, #tpu.memory_space<vmem>>, vector<1x256xf32>
    %5 = vector.broadcast %4 : vector<1x256xf32> to vector<128x256xf32>
    %6 = arith.addf %3, %5 : vector<128x256xf32>
    %cst_6 = arith.constant 0.000000e+00 : f32
    %7 = vector.broadcast %cst_6 : f32 to vector<128x256xf32>
    %8 = arith.maximumf %6, %7 : vector<128x256xf32>
    %9 = arith.truncf %8 : vector<128x256xf32> to vector<128x256xbf16>
    %c0_7 = arith.constant 0 : index
    %c0_8 = arith.constant 0 : index
    %10 = vector.load %arg5[%c0_7, %c0_8] : memref<128x256xbf16, #tpu.memory_space<vmem>>, vector<128x256xbf16>
    tpu.vector_store %arg5[%c0_7, %c0_8], %9 {strides = array<i32>} : memref<128x256xbf16, #tpu.memory_space<vmem>>, vector<128x256xbf16>,
    return
  }
  func.func @transform_0(%arg0: i32, %arg1: i32) -> (i32, i32, i32) {
    %c0_i32 = arith.constant 0 : i32
    %c0_i32_0 = arith.constant 0 : i32
    %c0_i32_1 = arith.constant 0 : i32
    return %c0_i32, %arg0, %c0_i32_0 : i32, i32, i32
  }
  func.func @transform_1(%arg0: i32, %arg1: i32) -> (i32, i32) {
    %c0_i32 = arith.constant 0 : i32
    %c0_i32_0 = arith.constant 0 : i32
    return %c0_i32, %arg1 : i32, i32
  }
  func.func @transform_2(%arg0: i32, %arg1: i32) -> (i32, i32) {
    %c0_i32 = arith.constant 0 : i32
    %c0_i32_0 = arith.constant 0 : i32
    return %c0_i32, %arg1 : i32, i32
  }
  func.func @transform_3(%arg0: i32, %arg1: i32) -> (i32, i32) {
    %c0_i32 = arith.constant 0 : i32
    return %arg0, %arg1 : i32, i32
  }
}

module attributes {stable_mosaic.version = 11 : i64} {
  func.func @_mm_kernel(%arg0: i32, %arg1: i32, %arg2: memref<1x512x256xbf16, #tpu.memory_space<vmem>>, %arg3: memref<256x128xbf16, #tpu.memory_space<vmem>>, %arg4: memref<1x128xf32, #tpu.memory_space<vmem>>, %arg5: memref<512x128xf32, #tpu.memory_space<vmem>>) attributes {dimension_semantics = [#tpu.dimension_semantics<parallel>, #tpu.dimension_semantics<parallel>], iteration_bounds = array<i64: 4, 1>, scalar_prefetch = 0 : i64, scratch_operands = 0 : i64, tpu.core_type = #tpu.core_type<tc>, window_params = [{transform_indices = @transform_0, window_bounds = array<i64: 1, 512, 256>}, {transform_indices = @transform_1, window_bounds = array<i64: 256, 128>}, {transform_indices = @transform_2, window_bounds = array<i64: 1, 128>}, {transform_indices = @transform_3, window_bounds = array<i64: 512, 128>}]} {
    %c0 = arith.constant 0 : index
    %c0_0 = arith.constant 0 : index
    %c0_1 = arith.constant 0 : index
    %0 = vector.load %arg2[%c0, %c0_0, %c0_1] : memref<1x512x256xbf16, #tpu.memory_space<vmem>>, vector<1x512x256xbf16>
    %1 = vector.shape_cast %0 : vector<1x512x256xbf16> to vector<512x256xbf16>
    %c0_2 = arith.constant 0 : index
    %c0_3 = arith.constant 0 : index
    %2 = vector.load %arg3[%c0_2, %c0_3] : memref<256x128xbf16, #tpu.memory_space<vmem>>, vector<256x128xbf16>
    %cst = arith.constant dense<0.000000e+00> : vector<512x128xf32>
    %3 = tpu.matmul %1, %2, %cst {dimension_numbers = #tpu.dot_dimension_numbers<[1], [0], [0], [1], [0, 0, 1, 1], [], []>} : vector<512x256xbf16>, vector<256x128xbf16>, vector<512x128xf32> -> vector<512x128xf32>
    %c0_4 = arith.constant 0 : index
    %c0_5 = arith.constant 0 : index
    %4 = vector.load %arg4[%c0_4, %c0_5] : memref<1x128xf32, #tpu.memory_space<vmem>>, vector<1x128xf32>
    %5 = vector.broadcast %4 : vector<1x128xf32> to vector<512x128xf32>
    %6 = arith.addf %3, %5 : vector<512x128xf32>
    %7 = arith.negf %6 : vector<512x128xf32>
    %8 = math.exp %7 : vector<512x128xf32>
    %cst_6 = arith.constant 1.000000e+00 : f32
    %9 = vector.broadcast %cst_6 : f32 to vector<512x128xf32>
    %10 = arith.addf %9, %8 : vector<512x128xf32>
    %11 = arith.divf %9, %10 : vector<512x128xf32>
    %c0_7 = arith.constant 0 : index
    %c0_8 = arith.constant 0 : index
    %12 = vector.load %arg5[%c0_7, %c0_8] : memref<512x128xf32, #tpu.memory_space<vmem>>, vector<512x128xf32>
    tpu.vector_store %arg5[%c0_7, %c0_8], %11 {strides = array<i32>} : memref<512x128xf32, #tpu.memory_space<vmem>>, vector<512x128xf32>,
    return
  }
  func.func @transform_0(%arg0: i32, %arg1: i32) -> (i32, i32, i32) {
    %c0_i32 = arith.constant 0 : i32
    %c0_i32_0 = arith.constant 0 : i32
    %c0_i32_1 = arith.constant 0 : i32
    return %c0_i32, %arg0, %c0_i32_0 : i32, i32, i32
  }
  func.func @transform_1(%arg0: i32, %arg1: i32) -> (i32, i32) {
    %c0_i32 = arith.constant 0 : i32
    %c0_i32_0 = arith.constant 0 : i32
    return %c0_i32, %arg1 : i32, i32
  }
  func.func @transform_2(%arg0: i32, %arg1: i32) -> (i32, i32) {
    %c0_i32 = arith.constant 0 : i32
    %c0_i32_0 = arith.constant 0 : i32
    return %c0_i32, %arg1 : i32, i32
  }
  func.func @transform_3(%arg0: i32, %arg1: i32) -> (i32, i32) {
    %c0_i32 = arith.constant 0 : i32
    return %arg0, %arg1 : i32, i32
  }
}

</mosaic_0001>

<bundles_post_ra>
// kernel: autoencoder_forward.6
= control target key start
LH: loop header
LB: loop body
LE: loop exit
PB: predicated region body
PF: predicated region fallthrough
CT: control target
= control target key end

     0   :  { %vm351_vm0 = vcmask 1044480   ;;  %vm352_vm1 = vcmask 1045504   ;;  %v3617_v2 = vmov 65535   ;;  %vm254_vm2 = vcmask 220160   ;;  %s4329_s1 = inlined_call_operand.vmem [shape: bf16[27,128], index: 1, kind: input, shape index: {}]   ;;  %s4330_s0 = inlined_call_operand.vmem [shape: bf16[4,512,27], index: 0, kind: input, shape index: {}]   ;;  %s4331_s2 = inlined_call_operand.vmem [shape: f32[1,128], index: 2, kind: input, shape index: {}]   ;;  %s4332_s3 = inlined_call_operand.vmem [shape: bf16[512,128], index: 3, kind: output, shape index: {}]  }
   0x1   :  { %v2587_v0 = vld [vmem:[%s4329_s1 + $0x8] sm:$0xf]  ;;  %v3326_v1 = vld [vmem:[%s4329_s1 + $0x8] sm:$0x30]  ;;  %v353_v3 = vsel %vm351_vm0, 4294967295, %v3617_v2  ;;  %v3325_v7 = vld [vmem:[%s4329_s1] sm:$0xff] }
   0x2   :  { %v2588_v4 = vor.u32 %v3326_v1, %v2587_v0  ;;  %v354_v5 = vsel %vm352_vm1, %v353_v3, 0  ;;  %v3293_v8 = vld [vmem:[%s4330_s0] sm:$0xff]  ;;  %v3294_v12 = vld [vmem:[%s4330_s0 + $0x8] sm:$0xff]  ;;  %v3295_v16 = vld [vmem:[%s4330_s0 + $0x10] sm:$0xff] }
   0x3   :  { %v3327_v9 = vld [vmem:[%s4330_s0 + $0x100] sm:$0xff]  ;;  %v3328_v13 = vld [vmem:[%s4330_s0 + $0x108] sm:$0xff]  ;;  %v3329_v17 = vld [vmem:[%s4330_s0 + $0x110] sm:$0xff] }
   0x4   :  { %v356_v6 = vand.u32 %v2588_v4, %v354_v5  ;;  %v3359_v10 = vld [vmem:[%s4330_s0 + $0x200] sm:$0xff]  ;;  %v3360_v14 = vld [vmem:[%s4330_s0 + $0x208] sm:$0xff]  ;;  %v3361_v18 = vld [vmem:[%s4330_s0 + $0x210] sm:$0xff] }
   0x5   :  { %v3391_v11 = vld [vmem:[%s4330_s0 + $0x300] sm:$0xff]  ;;  %v3392_v15 = vld [vmem:[%s4330_s0 + $0x308] sm:$0xff]  ;;  %v3393_v19 = vld [vmem:[%s4330_s0 + $0x310] sm:$0xff] }
   0x6   :  { %364 = vmatpush.bf16.msra.mxu0 %v356_v6  ;;  %854 = vmatpush.bf16.msra.mxu1 %v356_v6  ;;  %v3296_v20 = vld [vmem:[%s4330_s0 + $0x18] sm:$0xff]  ;;  %v3297_v24 = vld [vmem:[%s4330_s0 + $0x20] sm:$0xff]  ;;  %v3298_v28 = vld [vmem:[%s4330_s0 + $0x28] sm:$0xff] }
   0x7   :  { %1408 = vmatpush.bf16.msra.mxu2 %v356_v6  ;;  %1962 = vmatpush.bf16.msra.mxu3 %v356_v6  ;;  %v3330_v21 = vld [vmem:[%s4330_s0 + $0x118] sm:$0xff]  ;;  %v3331_v25 = vld [vmem:[%s4330_s0 + $0x120] sm:$0xff]  ;;  %v3332_v29 = vld [vmem:[%s4330_s0 + $0x128] sm:$0xff] }
   0x8   :  { %v3362_v22 = vld [vmem:[%s4330_s0 + $0x218] sm:$0xff]  ;;  %v3363_v26 = vld [vmem:[%s4330_s0 + $0x220] sm:$0xff]  ;;  %v3364_v30 = vld [vmem:[%s4330_s0 + $0x228] sm:$0xff] }
   0x9   :  { %v3394_v23 = vld [vmem:[%s4330_s0 + $0x318] sm:$0xff]  ;;  %v3395_v27 = vld [vmem:[%s4330_s0 + $0x320] sm:$0xff]  ;;  %v3396_v31 = vld [vmem:[%s4330_s0 + $0x328] sm:$0xff] }
   0xa   :  { %365 = vmatpush.bf16.msra.mxu0 %v3325_v7  ;;  %855 = vmatpush.bf16.msra.mxu1 %v3325_v7  ;;  %v3299_v32 = vld [vmem:[%s4330_s0 + $0x30] sm:$0xff]  ;;  %v3300_v36 = vld [vmem:[%s4330_s0 + $0x38] sm:$0xff]  ;;  %v3301_v40 = vld [vmem:[%s4330_s0 + $0x40] sm:$0xff] }
   0xb   :  { %1409 = vmatpush.bf16.msra.mxu2 %v3325_v7  ;;  %1963 = vmatpush.bf16.msra.mxu3 %v3325_v7  ;;  %v3333_v33 = vld [vmem:[%s4330_s0 + $0x130] sm:$0xff]  ;;  %v3334_v37 = vld [vmem:[%s4330_s0 + $0x138] sm:$0xff]  ;;  %v3335_v41 = vld [vmem:[%s4330_s0 + $0x140] sm:$0xff] }
   0xc   :  { %v3365_v34 = vld [vmem:[%s4330_s0 + $0x230] sm:$0xff]  ;;  %v3366_v38 = vld [vmem:[%s4330_s0 + $0x238] sm:$0xff]  ;;  %v3367_v44 = vld [vmem:[%s4330_s0 + $0x240] sm:$0xff] }
   0xd   :  { %2589 = vmatmul.msk.bf16.vlgmr.msra.gmra.mxu0 %vm254_vm2, %v3293_v8  ;;  %2813 = vmatmul.msk.bf16.vlgmr.msra.gmra.mxu1 %vm254_vm2, %v3327_v9  ;;  %v3397_v35 = vld [vmem:[%s4330_s0 + $0x330] sm:$0xff]  ;;  %v3398_v39 = vld [vmem:[%s4330_s0 + $0x338] sm:$0xff]  ;;  %v3399_v45 = vld [vmem:[%s4330_s0 + $0x340] sm:$0xff] }
   0xe   :  { %3037 = vmatmul.msk.bf16.vlgmr.msra.gmra.mxu2 %vm254_vm2, %v3359_v10  ;;  %3261 = vmatmul.msk.bf16.vlgmr.msra.gmra.mxu3 %vm254_vm2, %v3391_v11  ;;  %v3794_v53 = vld [vmem:[%s4331_s2] ss:$0 sm:$0xff]  ;;  %v3302_v57 = vld [vmem:[%s4330_s0 + $0x48] sm:$0xff] }
   0xf   :  { %v3336_v58 = vld [vmem:[%s4330_s0 + $0x148] sm:$0xff] }
  0x10   :  { %v3368_v62 = vld [vmem:[%s4330_s0 + $0x248] sm:$0xff] }
  0x11   :  { %v3400_v63 = vld [vmem:[%s4330_s0 + $0x348] sm:$0xff] }
  0x1d   :  { %2590 = vmatmul.msk.bf16.gmra.mxu0 %vm254_vm2, %v3294_v12  ;;  %2814 = vmatmul.msk.bf16.gmra.mxu1 %vm254_vm2, %v3328_v13 }
  0x1e   :  { %3038 = vmatmul.msk.bf16.gmra.mxu2 %vm254_vm2, %v3360_v14  ;;  %3262 = vmatmul.msk.bf16.gmra.mxu3 %vm254_vm2, %v3392_v15 }
  0x2d   :  { %2591 = vmatmul.msk.bf16.gmra.mxu0 %vm254_vm2, %v3295_v16  ;;  %2815 = vmatmul.msk.bf16.gmra.mxu1 %vm254_vm2, %v3329_v17  ;;  %v3303_v16 = vld [vmem:[%s4330_s0 + $0x50] sm:$0xff] }
  0x2e   :  { %3039 = vmatmul.msk.bf16.gmra.mxu2 %vm254_vm2, %v3361_v18  ;;  %3263 = vmatmul.msk.bf16.gmra.mxu3 %vm254_vm2, %v3393_v19  ;;  %v3337_v17 = vld [vmem:[%s4330_s0 + $0x150] sm:$0xff] }
  0x3d   :  { %2592 = vmatmul.msk.bf16.gmra.mxu0 %vm254_vm2, %v3296_v20  ;;  %2816 = vmatmul.msk.bf16.gmra.mxu1 %vm254_vm2, %v3330_v21  ;;  %v3369_v21 = vld [vmem:[%s4330_s0 + $0x250] sm:$0xff] }
  0x3e   :  { %3040 = vmatmul.msk.bf16.gmra.mxu2 %vm254_vm2, %v3362_v22  ;;  %3264 = vmatmul.msk.bf16.gmra.mxu3 %vm254_vm2, %v3394_v23  ;;  %v3401_v22 = vld [vmem:[%s4330_s0 + $0x350] sm:$0xff] }
  0x4d   :  { %2593 = vmatmul.msk.bf16.gmra.mxu0 %vm254_vm2, %v3297_v24  ;;  %2817 = vmatmul.msk.bf16.gmra.mxu1 %vm254_vm2, %v3331_v25 }
  0x4e   :  { %3041 = vmatmul.msk.bf16.gmra.mxu2 %vm254_vm2, %v3363_v26  ;;  %3265 = vmatmul.msk.bf16.gmra.mxu3 %vm254_vm2, %v3395_v27 }
  0x5d   :  { %2594 = vmatmul.msk.bf16.gmra.mxu0 %vm254_vm2, %v3298_v28  ;;  %2818 = vmatmul.msk.bf16.gmra.mxu1 %vm254_vm2, %v3332_v29 }
  0x5e   :  { %3042 = vmatmul.msk.bf16.gmra.mxu2 %vm254_vm2, %v3364_v30  ;;  %3266 = vmatmul.msk.bf16.gmra.mxu3 %vm254_vm2, %v3396_v31 }
  0x6d   :  { %2595 = vmatmul.msk.bf16.gmra.mxu0 %vm254_vm2, %v3299_v32  ;;  %2819 = vmatmul.msk.bf16.gmra.mxu1 %vm254_vm2, %v3333_v33 }
  0x6e   :  { %3043 = vmatmul.msk.bf16.gmra.mxu2 %vm254_vm2, %v3365_v34  ;;  %3267 = vmatmul.msk.bf16.gmra.mxu3 %vm254_vm2, %v3397_v35 }
  0x7d   :  { %2596 = vmatmul.msk.bf16.gmra.mxu0 %vm254_vm2, %v3300_v36  ;;  %2820 = vmatmul.msk.bf16.gmra.mxu1 %vm254_vm2, %v3334_v37 }
  0x7e   :  { %3044 = vmatmul.msk.bf16.gmra.mxu2 %vm254_vm2, %v3366_v38  ;;  %3268 = vmatmul.msk.bf16.gmra.mxu3 %vm254_vm2, %v3398_v39  ;;  %v3304_v39 = vld [vmem:[%s4330_s0 + $0x58] sm:$0xff] }
  0x8a   :  { %v367_v42 = vpop.f32.mrf.mxu0  ;;  %v857_v43 = vpop.f32.mrf.mxu1 }
  0x8b   :  { %v1017_v46 = vmax.f32 %v367_v42, %v857_v43 }
  0x8d   :  { %2597 = vmatmul.msk.bf16.gmra.mxu0 %vm254_vm2, %v3301_v40  ;;  %2821 = vmatmul.msk.bf16.gmra.mxu1 %vm254_vm2, %v3335_v41  ;;  %v3338_v40 = vld [vmem:[%s4330_s0 + $0x158] sm:$0xff] }
  0x8e   :  { %3045 = vmatmul.msk.bf16.gmra.mxu2 %vm254_vm2, %v3367_v44  ;;  %3269 = vmatmul.msk.bf16.gmra.mxu3 %vm254_vm2, %v3399_v45  ;;  %v3370_v44 = vld [vmem:[%s4330_s0 + $0x258] sm:$0xff] }
  0x8f   :  { %v3402_v45 = vld [vmem:[%s4330_s0 + $0x358] sm:$0xff] }
  0x91   :  { %v1411_v47 = vpop.f32.mrf.mxu2  ;;  %v1965_v48 = vpop.f32.mrf.mxu3 }
  0x92   :  { %v369_v49 = vpop.f32.mrf.mxu0  ;;  %v859_v50 = vpop.f32.mrf.mxu1  ;;  %v1571_v51 = vmax.f32 %v1017_v46, %v1411_v47 }
  0x93   :  { %v1018_v54 = vmax.f32 %v369_v49, %v859_v50 }
  0x94   :  { %v2125_v52 = vmax.f32 %v1571_v51, %v1965_v48 }
  0x96   :  { %v2193_v0 = vadd.f32 %v3794_v53, %v2125_v52 }
  0x98   :  { %v2257_v3 = vmax.f32 %v2193_v0, 0.0  ;;  %v3339_v0 = vld [vmem:[%s4330_s0 + $0x160] sm:$0xff] }
  0x99   :  { %v1413_v55 = vpop.f32.mrf.mxu2  ;;  %v1967_v56 = vpop.f32.mrf.mxu3 }
  0x9a   :  { %v1572_v59 = vmax.f32 %v1018_v54, %v1413_v55  ;;  %v372_v60 = vpop.f32.mrf.mxu0  ;;  %v862_v61 = vpop.f32.mrf.mxu1 }
  0x9b   :  { %v1019_v5 = vmax.f32 %v372_v60, %v862_v61 }
  0x9c   :  { %v2126_v1 = vmax.f32 %v1572_v59, %v1967_v56 }
  0x9d   :  { %2598 = vmatmul.msk.bf16.gmra.mxu0 %vm254_vm2, %v3302_v57  ;;  %2822 = vmatmul.msk.bf16.gmra.mxu1 %vm254_vm2, %v3336_v58 }
  0x9e   :  { %v2194_v2 = vadd.f32 %v3794_v53, %v2126_v1  ;;  %3046 = vmatmul.msk.bf16.gmra.mxu2 %vm254_vm2, %v3368_v62  ;;  %3270 = vmatmul.msk.bf16.gmra.mxu3 %vm254_vm2, %v3400_v63  ;;  %v3305_v63 = vld [vmem:[%s4330_s0 + $0x60] sm:$0xff] }
  0xa0   :  { %v2258_v4 = vmax.f32 %v2194_v2, 0.0 }
  0xa1   :  { %v1416_v6 = vpop.f32.mrf.mxu2  ;;  %v1970_v7 = vpop.f32.mrf.mxu3 }
  0xa2   :  { %v3426_v8 = vpack.c.bf16 %v2258_v4, %v2257_v3  ;;  %v374_v9 = vpop.f32.mrf.mxu0  ;;  %v864_v10 = vpop.f32.mrf.mxu1  ;;  %v1573_v11 = vmax.f32 %v1019_v5, %v1416_v6  ;;  %v3371_v4 = vld [vmem:[%s4330_s0 + $0x260] sm:$0xff] }
  0xa3   :  { %v1020_v13 = vmax.f32 %v374_v9, %v864_v10  ;;  %v3403_v5 = vld [vmem:[%s4330_s0 + $0x360] sm:$0xff] }
  0xa4   :  { %3427 = vst [vmem:[%s4332_s3] sm:$0xff] %v3426_v8   ;;  %v2127_v12 = vmax.f32 %v1573_v11, %v1970_v7 }
  0xa6   :  { %v2195_v23 = vadd.f32 %v3794_v53, %v2127_v12 }
  0xa8   :  { %v2259_v26 = vmax.f32 %v2195_v23, 0.0  ;;  %v3340_v23 = vld [vmem:[%s4330_s0 + $0x168] sm:$0xff] }
  0xa9   :  { %v1418_v14 = vpop.f32.mrf.mxu2  ;;  %v1972_v15 = vpop.f32.mrf.mxu3 }
  0xaa   :  { %v1574_v18 = vmax.f32 %v1020_v13, %v1418_v14  ;;  %v377_v19 = vpop.f32.mrf.mxu0  ;;  %v867_v20 = vpop.f32.mrf.mxu1 }
  0xab   :  { %v1021_v28 = vmax.f32 %v377_v19, %v867_v20 }
  0xac   :  { %v2128_v24 = vmax.f32 %v1574_v18, %v1972_v15 }
  0xad   :  { %2599 = vmatmul.msk.bf16.gmra.mxu0 %vm254_vm2, %v3303_v16  ;;  %2823 = vmatmul.msk.bf16.gmra.mxu1 %vm254_vm2, %v3337_v17 }
  0xae   :  { %v2196_v25 = vadd.f32 %v3794_v53, %v2128_v24  ;;  %3047 = vmatmul.msk.bf16.gmra.mxu2 %vm254_vm2, %v3369_v21  ;;  %3271 = vmatmul.msk.bf16.gmra.mxu3 %vm254_vm2, %v3401_v22  ;;  %v3306_v22 = vld [vmem:[%s4330_s0 + $0x68] sm:$0xff] }
  0xb0   :  { %v2260_v27 = vmax.f32 %v2196_v25, 0.0 }
  0xb1   :  { %v1421_v29 = vpop.f32.mrf.mxu2  ;;  %v1975_v30 = vpop.f32.mrf.mxu3 }
  0xb2   :  { %v3431_v31 = vpack.c.bf16 %v2260_v27, %v2259_v26  ;;  %v379_v32 = vpop.f32.mrf.mxu0  ;;  %v869_v33 = vpop.f32.mrf.mxu1  ;;  %v1575_v34 = vmax.f32 %v1021_v28, %v1421_v29  ;;  %v3372_v27 = vld [vmem:[%s4330_s0 + $0x268] sm:$0xff] }
  0xb3   :  { %v1022_v36 = vmax.f32 %v379_v32, %v869_v33  ;;  %v3404_v28 = vld [vmem:[%s4330_s0 + $0x368] sm:$0xff] }
  0xb4   :  { %3583 = vst [vmem:[%s4332_s3 + $0x8] sm:$0xff] %v3431_v31   ;;  %v2129_v35 = vmax.f32 %v1575_v34, %v1975_v30 }
  0xb6   :  { %v2197_v46 = vadd.f32 %v3794_v53, %v2129_v35 }
  0xb8   :  { %v2261_v49 = vmax.f32 %v2197_v46, 0.0  ;;  %v3341_v46 = vld [vmem:[%s4330_s0 + $0x170] sm:$0xff] }
  0xb9   :  { %v1423_v37 = vpop.f32.mrf.mxu2  ;;  %v1977_v38 = vpop.f32.mrf.mxu3 }
  0xba   :  { %v1576_v41 = vmax.f32 %v1022_v36, %v1423_v37  ;;  %v382_v42 = vpop.f32.mrf.mxu0  ;;  %v872_v43 = vpop.f32.mrf.mxu1 }
  0xbb   :  { %v1023_v51 = vmax.f32 %v382_v42, %v872_v43 }
  0xbc   :  { %v2130_v47 = vmax.f32 %v1576_v41, %v1977_v38 }
  0xbd   :  { %2600 = vmatmul.msk.bf16.gmra.mxu0 %vm254_vm2, %v3304_v39  ;;  %2824 = vmatmul.msk.bf16.gmra.mxu1 %vm254_vm2, %v3338_v40 }
  0xbe   :  { %v2198_v48 = vadd.f32 %v3794_v53, %v2130_v47  ;;  %3048 = vmatmul.msk.bf16.gmra.mxu2 %vm254_vm2, %v3370_v44  ;;  %3272 = vmatmul.msk.bf16.gmra.mxu3 %vm254_vm2, %v3402_v45  ;;  %v3307_v45 = vld [vmem:[%s4330_s0 + $0x70] sm:$0xff] }
  0xc0   :  { %v2262_v50 = vmax.f32 %v2198_v48, 0.0 }
  0xc1   :  { %v1426_v52 = vpop.f32.mrf.mxu2  ;;  %v1980_v54 = vpop.f32.mrf.mxu3 }
  0xc2   :  { %v3436_v55 = vpack.c.bf16 %v2262_v50, %v2261_v49  ;;  %v384_v56 = vpop.f32.mrf.mxu0  ;;  %v874_v57 = vpop.f32.mrf.mxu1  ;;  %v1577_v58 = vmax.f32 %v1023_v51, %v1426_v52  ;;  %v3373_v50 = vld [vmem:[%s4330_s0 + $0x270] sm:$0xff] }
  0xc3   :  { %v1024_v60 = vmax.f32 %v384_v56, %v874_v57  ;;  %v3405_v51 = vld [vmem:[%s4330_s0 + $0x370] sm:$0xff] }
  0xc4   :  { %3584 = vst [vmem:[%s4332_s3 + $0x10] sm:$0xff] %v3436_v55   ;;  %v2131_v59 = vmax.f32 %v1577_v58, %v1980_v54 }
  0xc6   :  { %v2199_v6 = vadd.f32 %v3794_v53, %v2131_v59 }
  0xc8   :  { %v2263_v9 = vmax.f32 %v2199_v6, 0.0  ;;  %v3342_v6 = vld [vmem:[%s4330_s0 + $0x178] sm:$0xff] }
  0xc9   :  { %v1428_v61 = vpop.f32.mrf.mxu2  ;;  %v1982_v62 = vpop.f32.mrf.mxu3 }
  0xca   :  { %v1578_v1 = vmax.f32 %v1024_v60, %v1428_v61  ;;  %v387_v2 = vpop.f32.mrf.mxu0  ;;  %v877_v3 = vpop.f32.mrf.mxu1 }
  0xcb   :  { %v1025_v11 = vmax.f32 %v387_v2, %v877_v3 }
  0xcc   :  { %v2132_v7 = vmax.f32 %v1578_v1, %v1982_v62 }
  0xcd   :  { %2601 = vmatmul.msk.bf16.gmra.mxu0 %vm254_vm2, %v3305_v63  ;;  %2825 = vmatmul.msk.bf16.gmra.mxu1 %vm254_vm2, %v3339_v0 }
  0xce   :  { %v2200_v8 = vadd.f32 %v3794_v53, %v2132_v7  ;;  %3049 = vmatmul.msk.bf16.gmra.mxu2 %vm254_vm2, %v3371_v4  ;;  %3273 = vmatmul.msk.bf16.gmra.mxu3 %vm254_vm2, %v3403_v5  ;;  %v3308_v5 = vld [vmem:[%s4330_s0 + $0x78] sm:$0xff] }
  0xd0   :  { %v2264_v10 = vmax.f32 %v2200_v8, 0.0 }
  0xd1   :  { %v1431_v12 = vpop.f32.mrf.mxu2  ;;  %v1985_v13 = vpop.f32.mrf.mxu3 }
  0xd2   :  { %v3441_v14 = vpack.c.bf16 %v2264_v10, %v2263_v9  ;;  %v389_v15 = vpop.f32.mrf.mxu0  ;;  %v879_v16 = vpop.f32.mrf.mxu1  ;;  %v1579_v17 = vmax.f32 %v1025_v11, %v1431_v12  ;;  %v3374_v10 = vld [vmem:[%s4330_s0 + $0x278] sm:$0xff] }
  0xd3   :  { %v1026_v19 = vmax.f32 %v389_v15, %v879_v16  ;;  %v3406_v11 = vld [vmem:[%s4330_s0 + $0x378] sm:$0xff] }
  0xd4   :  { %3585 = vst [vmem:[%s4332_s3 + $0x18] sm:$0xff] %v3441_v14   ;;  %v2133_v18 = vmax.f32 %v1579_v17, %v1985_v13 }
  0xd6   :  { %v2201_v29 = vadd.f32 %v3794_v53, %v2133_v18 }
  0xd8   :  { %v2265_v32 = vmax.f32 %v2201_v29, 0.0  ;;  %v3343_v29 = vld [vmem:[%s4330_s0 + $0x180] sm:$0xff] }
  0xd9   :  { %v1433_v20 = vpop.f32.mrf.mxu2  ;;  %v1987_v21 = vpop.f32.mrf.mxu3 }
  0xda   :  { %v1580_v24 = vmax.f32 %v1026_v19, %v1433_v20  ;;  %v392_v25 = vpop.f32.mrf.mxu0  ;;  %v882_v26 = vpop.f32.mrf.mxu1 }
  0xdb   :  { %v1027_v34 = vmax.f32 %v392_v25, %v882_v26 }
  0xdc   :  { %v2134_v30 = vmax.f32 %v1580_v24, %v1987_v21 }
  0xdd   :  { %2602 = vmatmul.msk.bf16.gmra.mxu0 %vm254_vm2, %v3306_v22  ;;  %2826 = vmatmul.msk.bf16.gmra.mxu1 %vm254_vm2, %v3340_v23 }
  0xde   :  { %v2202_v31 = vadd.f32 %v3794_v53, %v2134_v30  ;;  %3050 = vmatmul.msk.bf16.gmra.mxu2 %vm254_vm2, %v3372_v27  ;;  %3274 = vmatmul.msk.bf16.gmra.mxu3 %vm254_vm2, %v3404_v28  ;;  %v3309_v28 = vld [vmem:[%s4330_s0 + $0x80] sm:$0xff] }
  0xe0   :  { %v2266_v33 = vmax.f32 %v2202_v31, 0.0 }
  0xe1   :  { %v1436_v35 = vpop.f32.mrf.mxu2  ;;  %v1990_v36 = vpop.f32.mrf.mxu3 }
  0xe2   :  { %v3446_v37 = vpack.c.bf16 %v2266_v33, %v2265_v32  ;;  %v394_v38 = vpop.f32.mrf.mxu0  ;;  %v884_v39 = vpop.f32.mrf.mxu1  ;;  %v1581_v40 = vmax.f32 %v1027_v34, %v1436_v35  ;;  %v3375_v33 = vld [vmem:[%s4330_s0 + $0x280] sm:$0xff] }
  0xe3   :  { %v1028_v42 = vmax.f32 %v394_v38, %v884_v39  ;;  %v3407_v34 = vld [vmem:[%s4330_s0 + $0x380] sm:$0xff] }
  0xe4   :  { %3586 = vst [vmem:[%s4332_s3 + $0x20] sm:$0xff] %v3446_v37   ;;  %v2135_v41 = vmax.f32 %v1581_v40, %v1990_v36 }
  0xe6   :  { %v2203_v52 = vadd.f32 %v3794_v53, %v2135_v41 }
  0xe8   :  { %v2267_v56 = vmax.f32 %v2203_v52, 0.0  ;;  %v3344_v52 = vld [vmem:[%s4330_s0 + $0x188] sm:$0xff] }
  0xe9   :  { %v1438_v43 = vpop.f32.mrf.mxu2  ;;  %v1992_v44 = vpop.f32.mrf.mxu3 }
  0xea   :  { %v1582_v47 = vmax.f32 %v1028_v42, %v1438_v43  ;;  %v397_v48 = vpop.f32.mrf.mxu0  ;;  %v887_v49 = vpop.f32.mrf.mxu1 }
  0xeb   :  { %v1029_v58 = vmax.f32 %v397_v48, %v887_v49 }
  0xec   :  { %v2136_v54 = vmax.f32 %v1582_v47, %v1992_v44 }
  0xed   :  { %2603 = vmatmul.msk.bf16.gmra.mxu0 %vm254_vm2, %v3307_v45  ;;  %2827 = vmatmul.msk.bf16.gmra.mxu1 %vm254_vm2, %v3341_v46 }
  0xee   :  { %v2204_v55 = vadd.f32 %v3794_v53, %v2136_v54  ;;  %3051 = vmatmul.msk.bf16.gmra.mxu2 %vm254_vm2, %v3373_v50  ;;  %3275 = vmatmul.msk.bf16.gmra.mxu3 %vm254_vm2, %v3405_v51  ;;  %v3310_v51 = vld [vmem:[%s4330_s0 + $0x88] sm:$0xff] }
  0xf0   :  { %v2268_v57 = vmax.f32 %v2204_v55, 0.0 }
  0xf1   :  { %v1441_v59 = vpop.f32.mrf.mxu2  ;;  %v1995_v60 = vpop.f32.mrf.mxu3 }
  0xf2   :  { %v3451_v61 = vpack.c.bf16 %v2268_v57, %v2267_v56  ;;  %v399_v62 = vpop.f32.mrf.mxu0  ;;  %v889_v63 = vpop.f32.mrf.mxu1  ;;  %v1583_v0 = vmax.f32 %v1029_v58, %v1441_v59  ;;  %v3376_v57 = vld [vmem:[%s4330_s0 + $0x288] sm:$0xff] }
  0xf3   :  { %v1030_v2 = vmax.f32 %v399_v62, %v889_v63  ;;  %v3408_v58 = vld [vmem:[%s4330_s0 + $0x388] sm:$0xff] }
  0xf4   :  { %3587 = vst [vmem:[%s4332_s3 + $0x28] sm:$0xff] %v3451_v61   ;;  %v2137_v1 = vmax.f32 %v1583_v0, %v1995_v60 }
  0xf6   :  { %v2205_v12 = vadd.f32 %v3794_v53, %v2137_v1 }
  0xf8   :  { %v2269_v15 = vmax.f32 %v2205_v12, 0.0  ;;  %v3345_v12 = vld [vmem:[%s4330_s0 + $0x190] sm:$0xff] }
  0xf9   :  { %v1443_v3 = vpop.f32.mrf.mxu2  ;;  %v1997_v4 = vpop.f32.mrf.mxu3 }
  0xfa   :  { %v1584_v7 = vmax.f32 %v1030_v2, %v1443_v3  ;;  %v402_v8 = vpop.f32.mrf.mxu0  ;;  %v892_v9 = vpop.f32.mrf.mxu1 }
  0xfb   :  { %v1031_v17 = vmax.f32 %v402_v8, %v892_v9 }
  0xfc   :  { %v2138_v13 = vmax.f32 %v1584_v7, %v1997_v4 }
  0xfd   :  { %2604 = vmatmul.msk.bf16.gmra.mxu0 %vm254_vm2, %v3308_v5  ;;  %2828 = vmatmul.msk.bf16.gmra.mxu1 %vm254_vm2, %v3342_v6 }
  0xfe   :  { %v2206_v14 = vadd.f32 %v3794_v53, %v2138_v13  ;;  %3052 = vmatmul.msk.bf16.gmra.mxu2 %vm254_vm2, %v3374_v10  ;;  %3276 = vmatmul.msk.bf16.gmra.mxu3 %vm254_vm2, %v3406_v11  ;;  %v3311_v11 = vld [vmem:[%s4330_s0 + $0x90] sm:$0xff] }
 0x100   :  { %v2270_v16 = vmax.f32 %v2206_v14, 0.0 }
 0x101   :  { %v1446_v18 = vpop.f32.mrf.mxu2  ;;  %v2000_v19 = vpop.f32.mrf.mxu3 }
 0x102   :  { %v3456_v20 = vpack.c.bf16 %v2270_v16, %v2269_v15  ;;  %v404_v21 = vpop.f32.mrf.mxu0  ;;  %v894_v22 = vpop.f32.mrf.mxu1  ;;  %v1585_v23 = vmax.f32 %v1031_v17, %v1446_v18  ;;  %v3377_v16 = vld [vmem:[%s4330_s0 + $0x290] sm:$0xff] }
 0x103   :  { %v1032_v25 = vmax.f32 %v404_v21, %v894_v22  ;;  %v3409_v17 = vld [vmem:[%s4330_s0 + $0x390] sm:$0xff] }
 0x104   :  { %3588 = vst [vmem:[%s4332_s3 + $0x30] sm:$0xff] %v3456_v20   ;;  %v2139_v24 = vmax.f32 %v1585_v23, %v2000_v19 }
 0x106   :  { %v2207_v35 = vadd.f32 %v3794_v53, %v2139_v24 }
 0x108   :  { %v2271_v38 = vmax.f32 %v2207_v35, 0.0  ;;  %v3346_v35 = vld [vmem:[%s4330_s0 + $0x198] sm:$0xff] }
 0x109   :  { %v1448_v26 = vpop.f32.mrf.mxu2  ;;  %v2002_v27 = vpop.f32.mrf.mxu3 }
 0x10a   :  { %v1586_v30 = vmax.f32 %v1032_v25, %v1448_v26  ;;  %v407_v31 = vpop.f32.mrf.mxu0  ;;  %v897_v32 = vpop.f32.mrf.mxu1 }
 0x10b   :  { %v1033_v40 = vmax.f32 %v407_v31, %v897_v32 }
 0x10c   :  { %v2140_v36 = vmax.f32 %v1586_v30, %v2002_v27 }
 0x10d   :  { %2605 = vmatmul.msk.bf16.gmra.mxu0 %vm254_vm2, %v3309_v28  ;;  %2829 = vmatmul.msk.bf16.gmra.mxu1 %vm254_vm2, %v3343_v29 }
 0x10e   :  { %v2208_v37 = vadd.f32 %v3794_v53, %v2140_v36  ;;  %3053 = vmatmul.msk.bf16.gmra.mxu2 %vm254_vm2, %v3375_v33  ;;  %3277 = vmatmul.msk.bf16.gmra.mxu3 %vm254_vm2, %v3407_v34  ;;  %v3312_v34 = vld [vmem:[%s4330_s0 + $0x98] sm:$0xff] }
 0x110   :  { %v2272_v39 = vmax.f32 %v2208_v37, 0.0 }
 0x111   :  { %v1451_v41 = vpop.f32.mrf.mxu2  ;;  %v2005_v42 = vpop.f32.mrf.mxu3 }
 0x112   :  { %v3461_v43 = vpack.c.bf16 %v2272_v39, %v2271_v38  ;;  %v409_v44 = vpop.f32.mrf.mxu0  ;;  %v899_v45 = vpop.f32.mrf.mxu1  ;;  %v1587_v46 = vmax.f32 %v1033_v40, %v1451_v41  ;;  %v3378_v39 = vld [vmem:[%s4330_s0 + $0x298] sm:$0xff] }
 0x113   :  { %v1034_v48 = vmax.f32 %v409_v44, %v899_v45  ;;  %v3410_v40 = vld [vmem:[%s4330_s0 + $0x398] sm:$0xff] }
 0x114   :  { %3589 = vst [vmem:[%s4332_s3 + $0x38] sm:$0xff] %v3461_v43   ;;  %v2141_v47 = vmax.f32 %v1587_v46, %v2005_v42 }
 0x116   :  { %v2209_v59 = vadd.f32 %v3794_v53, %v2141_v47 }
 0x118   :  { %v2273_v62 = vmax.f32 %v2209_v59, 0.0  ;;  %v3347_v59 = vld [vmem:[%s4330_s0 + $0x1a0] sm:$0xff] }
 0x119   :  { %v1453_v49 = vpop.f32.mrf.mxu2  ;;  %v2007_v50 = vpop.f32.mrf.mxu3 }
 0x11a   :  { %v1588_v54 = vmax.f32 %v1034_v48, %v1453_v49  ;;  %v412_v55 = vpop.f32.mrf.mxu0  ;;  %v902_v56 = vpop.f32.mrf.mxu1 }
 0x11b   :  { %v1035_v0 = vmax.f32 %v412_v55, %v902_v56 }
 0x11c   :  { %v2142_v60 = vmax.f32 %v1588_v54, %v2007_v50 }
 0x11d   :  { %2606 = vmatmul.msk.bf16.gmra.mxu0 %vm254_vm2, %v3310_v51  ;;  %2830 = vmatmul.msk.bf16.gmra.mxu1 %vm254_vm2, %v3344_v52 }
 0x11e   :  { %v2210_v61 = vadd.f32 %v3794_v53, %v2142_v60  ;;  %3054 = vmatmul.msk.bf16.gmra.mxu2 %vm254_vm2, %v3376_v57  ;;  %3278 = vmatmul.msk.bf16.gmra.mxu3 %vm254_vm2, %v3408_v58  ;;  %v3313_v58 = vld [vmem:[%s4330_s0 + $0xa0] sm:$0xff] }
 0x120   :  { %v2274_v63 = vmax.f32 %v2210_v61, 0.0 }
 0x121   :  { %v1456_v1 = vpop.f32.mrf.mxu2  ;;  %v2010_v2 = vpop.f32.mrf.mxu3 }
 0x122   :  { %v3466_v3 = vpack.c.bf16 %v2274_v63, %v2273_v62  ;;  %v414_v4 = vpop.f32.mrf.mxu0  ;;  %v904_v5 = vpop.f32.mrf.mxu1  ;;  %v1589_v6 = vmax.f32 %v1035_v0, %v1456_v1  ;;  %v3379_v63 = vld [vmem:[%s4330_s0 + $0x2a0] sm:$0xff] }
 0x123   :  { %v1036_v8 = vmax.f32 %v414_v4, %v904_v5  ;;  %v3411_v0 = vld [vmem:[%s4330_s0 + $0x3a0] sm:$0xff] }
 0x124   :  { %3590 = vst [vmem:[%s4332_s3 + $0x40] sm:$0xff] %v3466_v3   ;;  %v2143_v7 = vmax.f32 %v1589_v6, %v2010_v2 }
 0x126   :  { %v2211_v18 = vadd.f32 %v3794_v53, %v2143_v7 }
 0x128   :  { %v2275_v21 = vmax.f32 %v2211_v18, 0.0  ;;  %v3348_v18 = vld [vmem:[%s4330_s0 + $0x1a8] sm:$0xff] }
 0x129   :  { %v1458_v9 = vpop.f32.mrf.mxu2  ;;  %v2012_v10 = vpop.f32.mrf.mxu3 }
 0x12a   :  { %v1590_v13 = vmax.f32 %v1036_v8, %v1458_v9  ;;  %v417_v14 = vpop.f32.mrf.mxu0  ;;  %v907_v15 = vpop.f32.mrf.mxu1 }
 0x12b   :  { %v1037_v23 = vmax.f32 %v417_v14, %v907_v15 }
 0x12c   :  { %v2144_v19 = vmax.f32 %v1590_v13, %v2012_v10 }
 0x12d   :  { %2607 = vmatmul.msk.bf16.gmra.mxu0 %vm254_vm2, %v3311_v11  ;;  %2831 = vmatmul.msk.bf16.gmra.mxu1 %vm254_vm2, %v3345_v12 }
 0x12e   :  { %v2212_v20 = vadd.f32 %v3794_v53, %v2144_v19  ;;  %3055 = vmatmul.msk.bf16.gmra.mxu2 %vm254_vm2, %v3377_v16  ;;  %3279 = vmatmul.msk.bf16.gmra.mxu3 %vm254_vm2, %v3409_v17  ;;  %v3314_v17 = vld [vmem:[%s4330_s0 + $0xa8] sm:$0xff] }
 0x130   :  { %v2276_v22 = vmax.f32 %v2212_v20, 0.0 }
 0x131   :  { %v1461_v24 = vpop.f32.mrf.mxu2  ;;  %v2015_v25 = vpop.f32.mrf.mxu3 }
 0x132   :  { %v3471_v26 = vpack.c.bf16 %v2276_v22, %v2275_v21  ;;  %v419_v27 = vpop.f32.mrf.mxu0  ;;  %v909_v28 = vpop.f32.mrf.mxu1  ;;  %v1591_v29 = vmax.f32 %v1037_v23, %v1461_v24  ;;  %v3380_v22 = vld [vmem:[%s4330_s0 + $0x2a8] sm:$0xff] }
 0x133   :  { %v1038_v31 = vmax.f32 %v419_v27, %v909_v28  ;;  %v3412_v23 = vld [vmem:[%s4330_s0 + $0x3a8] sm:$0xff] }
 0x134   :  { %3591 = vst [vmem:[%s4332_s3 + $0x48] sm:$0xff] %v3471_v26   ;;  %v2145_v30 = vmax.f32 %v1591_v29, %v2015_v25 }
 0x136   :  { %v2213_v41 = vadd.f32 %v3794_v53, %v2145_v30 }
 0x138   :  { %v2277_v44 = vmax.f32 %v2213_v41, 0.0  ;;  %v3349_v41 = vld [vmem:[%s4330_s0 + $0x1b0] sm:$0xff] }
 0x139   :  { %v1463_v32 = vpop.f32.mrf.mxu2  ;;  %v2017_v33 = vpop.f32.mrf.mxu3 }
 0x13a   :  { %v1592_v36 = vmax.f32 %v1038_v31, %v1463_v32  ;;  %v422_v37 = vpop.f32.mrf.mxu0  ;;  %v912_v38 = vpop.f32.mrf.mxu1 }
 0x13b   :  { %v1039_v46 = vmax.f32 %v422_v37, %v912_v38 }
 0x13c   :  { %v2146_v42 = vmax.f32 %v1592_v36, %v2017_v33 }
 0x13d   :  { %2608 = vmatmul.msk.bf16.gmra.mxu0 %vm254_vm2, %v3312_v34  ;;  %2832 = vmatmul.msk.bf16.gmra.mxu1 %vm254_vm2, %v3346_v35 }
 0x13e   :  { %v2214_v43 = vadd.f32 %v3794_v53, %v2146_v42  ;;  %3056 = vmatmul.msk.bf16.gmra.mxu2 %vm254_vm2, %v3378_v39  ;;  %3280 = vmatmul.msk.bf16.gmra.mxu3 %vm254_vm2, %v3410_v40  ;;  %v3315_v40 = vld [vmem:[%s4330_s0 + $0xb0] sm:$0xff] }
 0x140   :  { %v2278_v45 = vmax.f32 %v2214_v43, 0.0 }
 0x141   :  { %v1466_v47 = vpop.f32.mrf.mxu2  ;;  %v2020_v48 = vpop.f32.mrf.mxu3 }
 0x142   :  { %v3476_v49 = vpack.c.bf16 %v2278_v45, %v2277_v44  ;;  %v424_v50 = vpop.f32.mrf.mxu0  ;;  %v914_v51 = vpop.f32.mrf.mxu1  ;;  %v1593_v52 = vmax.f32 %v1039_v46, %v1466_v47  ;;  %v3381_v45 = vld [vmem:[%s4330_s0 + $0x2b0] sm:$0xff] }
 0x143   :  { %v1040_v55 = vmax.f32 %v424_v50, %v914_v51  ;;  %v3413_v46 = vld [vmem:[%s4330_s0 + $0x3b0] sm:$0xff] }
 0x144   :  { %3592 = vst [vmem:[%s4332_s3 + $0x50] sm:$0xff] %v3476_v49   ;;  %v2147_v54 = vmax.f32 %v1593_v52, %v2020_v48 }
 0x146   :  { %v2215_v1 = vadd.f32 %v3794_v53, %v2147_v54 }
 0x148   :  { %v2279_v4 = vmax.f32 %v2215_v1, 0.0  ;;  %v3350_v1 = vld [vmem:[%s4330_s0 + $0x1b8] sm:$0xff] }
 0x149   :  { %v1468_v56 = vpop.f32.mrf.mxu2  ;;  %v2022_v57 = vpop.f32.mrf.mxu3 }
 0x14a   :  { %v1594_v60 = vmax.f32 %v1040_v55, %v1468_v56  ;;  %v427_v61 = vpop.f32.mrf.mxu0  ;;  %v917_v62 = vpop.f32.mrf.mxu1 }
 0x14b   :  { %v1041_v6 = vmax.f32 %v427_v61, %v917_v62 }
 0x14c   :  { %v2148_v2 = vmax.f32 %v1594_v60, %v2022_v57 }
 0x14d   :  { %2609 = vmatmul.msk.bf16.gmra.mxu0 %vm254_vm2, %v3313_v58  ;;  %2833 = vmatmul.msk.bf16.gmra.mxu1 %vm254_vm2, %v3347_v59 }
 0x14e   :  { %v2216_v3 = vadd.f32 %v3794_v53, %v2148_v2  ;;  %3057 = vmatmul.msk.bf16.gmra.mxu2 %vm254_vm2, %v3379_v63  ;;  %3281 = vmatmul.msk.bf16.gmra.mxu3 %vm254_vm2, %v3411_v0  ;;  %v3316_v0 = vld [vmem:[%s4330_s0 + $0xb8] sm:$0xff] }
 0x150   :  { %v2280_v5 = vmax.f32 %v2216_v3, 0.0 }
 0x151   :  { %v1471_v7 = vpop.f32.mrf.mxu2  ;;  %v2025_v8 = vpop.f32.mrf.mxu3 }
 0x152   :  { %v3481_v9 = vpack.c.bf16 %v2280_v5, %v2279_v4  ;;  %v429_v10 = vpop.f32.mrf.mxu0  ;;  %v919_v11 = vpop.f32.mrf.mxu1  ;;  %v1595_v12 = vmax.f32 %v1041_v6, %v1471_v7  ;;  %v3382_v5 = vld [vmem:[%s4330_s0 + $0x2b8] sm:$0xff] }
 0x153   :  { %v1042_v14 = vmax.f32 %v429_v10, %v919_v11  ;;  %v3414_v6 = vld [vmem:[%s4330_s0 + $0x3b8] sm:$0xff] }
 0x154   :  { %3593 = vst [vmem:[%s4332_s3 + $0x58] sm:$0xff] %v3481_v9   ;;  %v2149_v13 = vmax.f32 %v1595_v12, %v2025_v8 }
 0x156   :  { %v2217_v24 = vadd.f32 %v3794_v53, %v2149_v13 }
 0x158   :  { %v2281_v27 = vmax.f32 %v2217_v24, 0.0  ;;  %v3351_v24 = vld [vmem:[%s4330_s0 + $0x1c0] sm:$0xff] }
 0x159   :  { %v1473_v15 = vpop.f32.mrf.mxu2  ;;  %v2027_v16 = vpop.f32.mrf.mxu3 }
 0x15a   :  { %v1596_v19 = vmax.f32 %v1042_v14, %v1473_v15  ;;  %v432_v20 = vpop.f32.mrf.mxu0  ;;  %v922_v21 = vpop.f32.mrf.mxu1 }
 0x15b   :  { %v1043_v29 = vmax.f32 %v432_v20, %v922_v21 }
 0x15c   :  { %v2150_v25 = vmax.f32 %v1596_v19, %v2027_v16 }
 0x15d   :  { %2610 = vmatmul.msk.bf16.gmra.mxu0 %vm254_vm2, %v3314_v17  ;;  %2834 = vmatmul.msk.bf16.gmra.mxu1 %vm254_vm2, %v3348_v18 }
 0x15e   :  { %v2218_v26 = vadd.f32 %v3794_v53, %v2150_v25  ;;  %3058 = vmatmul.msk.bf16.gmra.mxu2 %vm254_vm2, %v3380_v22  ;;  %3282 = vmatmul.msk.bf16.gmra.mxu3 %vm254_vm2, %v3412_v23  ;;  %v3317_v23 = vld [vmem:[%s4330_s0 + $0xc0] sm:$0xff] }
 0x160   :  { %v2282_v28 = vmax.f32 %v2218_v26, 0.0 }
 0x161   :  { %v1476_v30 = vpop.f32.mrf.mxu2  ;;  %v2030_v31 = vpop.f32.mrf.mxu3 }
 0x162   :  { %v3486_v32 = vpack.c.bf16 %v2282_v28, %v2281_v27  ;;  %v434_v33 = vpop.f32.mrf.mxu0  ;;  %v924_v34 = vpop.f32.mrf.mxu1  ;;  %v1597_v35 = vmax.f32 %v1043_v29, %v1476_v30  ;;  %v3383_v28 = vld [vmem:[%s4330_s0 + $0x2c0] sm:$0xff] }
 0x163   :  { %v1044_v37 = vmax.f32 %v434_v33, %v924_v34  ;;  %v3415_v29 = vld [vmem:[%s4330_s0 + $0x3c0] sm:$0xff] }
 0x164   :  { %3594 = vst [vmem:[%s4332_s3 + $0x60] sm:$0xff] %v3486_v32   ;;  %v2151_v36 = vmax.f32 %v1597_v35, %v2030_v31 }
 0x166   :  { %v2219_v47 = vadd.f32 %v3794_v53, %v2151_v36 }
 0x168   :  { %v2283_v50 = vmax.f32 %v2219_v47, 0.0  ;;  %v3352_v47 = vld [vmem:[%s4330_s0 + $0x1c8] sm:$0xff] }
 0x169   :  { %v1478_v38 = vpop.f32.mrf.mxu2  ;;  %v2032_v39 = vpop.f32.mrf.mxu3 }
 0x16a   :  { %v1598_v42 = vmax.f32 %v1044_v37, %v1478_v38  ;;  %v437_v43 = vpop.f32.mrf.mxu0  ;;  %v927_v44 = vpop.f32.mrf.mxu1 }
 0x16b   :  { %v1045_v52 = vmax.f32 %v437_v43, %v927_v44 }
 0x16c   :  { %v2152_v48 = vmax.f32 %v1598_v42, %v2032_v39 }
 0x16d   :  { %2611 = vmatmul.msk.bf16.gmra.mxu0 %vm254_vm2, %v3315_v40  ;;  %2835 = vmatmul.msk.bf16.gmra.mxu1 %vm254_vm2, %v3349_v41 }
 0x16e   :  { %v2220_v49 = vadd.f32 %v3794_v53, %v2152_v48  ;;  %3059 = vmatmul.msk.bf16.gmra.mxu2 %vm254_vm2, %v3381_v45  ;;  %3283 = vmatmul.msk.bf16.gmra.mxu3 %vm254_vm2, %v3413_v46  ;;  %v3318_v46 = vld [vmem:[%s4330_s0 + $0xc8] sm:$0xff] }
 0x170   :  { %v2284_v51 = vmax.f32 %v2220_v49, 0.0 }
 0x171   :  { %v1481_v54 = vpop.f32.mrf.mxu2  ;;  %v2035_v55 = vpop.f32.mrf.mxu3 }
 0x172   :  { %v3491_v56 = vpack.c.bf16 %v2284_v51, %v2283_v50  ;;  %v439_v57 = vpop.f32.mrf.mxu0  ;;  %v929_v58 = vpop.f32.mrf.mxu1  ;;  %v1599_v59 = vmax.f32 %v1045_v52, %v1481_v54  ;;  %v3384_v51 = vld [vmem:[%s4330_s0 + $0x2c8] sm:$0xff] }
 0x173   :  { %v1046_v61 = vmax.f32 %v439_v57, %v929_v58  ;;  %v3416_v52 = vld [vmem:[%s4330_s0 + $0x3c8] sm:$0xff] }
 0x174   :  { %3595 = vst [vmem:[%s4332_s3 + $0x68] sm:$0xff] %v3491_v56   ;;  %v2153_v60 = vmax.f32 %v1599_v59, %v2035_v55 }
 0x176   :  { %v2221_v7 = vadd.f32 %v3794_v53, %v2153_v60 }
 0x178   :  { %v2285_v10 = vmax.f32 %v2221_v7, 0.0  ;;  %v3353_v7 = vld [vmem:[%s4330_s0 + $0x1d0] sm:$0xff] }
 0x179   :  { %v1483_v62 = vpop.f32.mrf.mxu2  ;;  %v2037_v63 = vpop.f32.mrf.mxu3 }
 0x17a   :  { %v1600_v2 = vmax.f32 %v1046_v61, %v1483_v62  ;;  %v442_v3 = vpop.f32.mrf.mxu0  ;;  %v932_v4 = vpop.f32.mrf.mxu1 }
 0x17b   :  { %v1047_v12 = vmax.f32 %v442_v3, %v932_v4 }
 0x17c   :  { %v2154_v8 = vmax.f32 %v1600_v2, %v2037_v63 }
 0x17d   :  { %2612 = vmatmul.msk.bf16.gmra.mxu0 %vm254_vm2, %v3316_v0  ;;  %2836 = vmatmul.msk.bf16.gmra.mxu1 %vm254_vm2, %v3350_v1 }
 0x17e   :  { %v2222_v9 = vadd.f32 %v3794_v53, %v2154_v8  ;;  %3060 = vmatmul.msk.bf16.gmra.mxu2 %vm254_vm2, %v3382_v5  ;;  %3284 = vmatmul.msk.bf16.gmra.mxu3 %vm254_vm2, %v3414_v6  ;;  %v3319_v6 = vld [vmem:[%s4330_s0 + $0xd0] sm:$0xff] }
 0x180   :  { %v2286_v11 = vmax.f32 %v2222_v9, 0.0 }
 0x181   :  { %v1486_v13 = vpop.f32.mrf.mxu2  ;;  %v2040_v14 = vpop.f32.mrf.mxu3 }
 0x182   :  { %v3496_v15 = vpack.c.bf16 %v2286_v11, %v2285_v10  ;;  %v444_v16 = vpop.f32.mrf.mxu0  ;;  %v934_v17 = vpop.f32.mrf.mxu1  ;;  %v1601_v18 = vmax.f32 %v1047_v12, %v1486_v13  ;;  %v3385_v11 = vld [vmem:[%s4330_s0 + $0x2d0] sm:$0xff] }
 0x183   :  { %v1048_v20 = vmax.f32 %v444_v16, %v934_v17  ;;  %v3417_v12 = vld [vmem:[%s4330_s0 + $0x3d0] sm:$0xff] }
 0x184   :  { %3596 = vst [vmem:[%s4332_s3 + $0x70] sm:$0xff] %v3496_v15   ;;  %v2155_v19 = vmax.f32 %v1601_v18, %v2040_v14 }
 0x186   :  { %v2223_v30 = vadd.f32 %v3794_v53, %v2155_v19 }
 0x188   :  { %v2287_v33 = vmax.f32 %v2223_v30, 0.0 }
 0x189   :  { %v1488_v21 = vpop.f32.mrf.mxu2  ;;  %v2042_v22 = vpop.f32.mrf.mxu3 }
 0x18a   :  { %v1602_v25 = vmax.f32 %v1048_v20, %v1488_v21  ;;  %v447_v26 = vpop.f32.mrf.mxu0  ;;  %v937_v27 = vpop.f32.mrf.mxu1 }
 0x18b   :  { %v1049_v35 = vmax.f32 %v447_v26, %v937_v27 }
 0x18c   :  { %v2156_v31 = vmax.f32 %v1602_v25, %v2042_v22 }
 0x18d   :  { %2613 = vmatmul.msk.bf16.gmra.mxu0 %vm254_vm2, %v3317_v23  ;;  %2837 = vmatmul.msk.bf16.gmra.mxu1 %vm254_vm2, %v3351_v24 }
 0x18e   :  { %v2224_v32 = vadd.f32 %v3794_v53, %v2156_v31  ;;  %3061 = vmatmul.msk.bf16.gmra.mxu2 %vm254_vm2, %v3383_v28  ;;  %3285 = vmatmul.msk.bf16.gmra.mxu3 %vm254_vm2, %v3415_v29  ;;  %v3320_v28 = vld [vmem:[%s4330_s0 + $0xd8] sm:$0xff] }
 0x18f   :  { %v3354_v29 = vld [vmem:[%s4330_s0 + $0x1d8] sm:$0xff] }
 0x190   :  { %v2288_v34 = vmax.f32 %v2224_v32, 0.0 }
 0x191   :  { %v1491_v36 = vpop.f32.mrf.mxu2  ;;  %v2045_v37 = vpop.f32.mrf.mxu3 }
 0x192   :  { %v3501_v38 = vpack.c.bf16 %v2288_v34, %v2287_v33  ;;  %v449_v39 = vpop.f32.mrf.mxu0  ;;  %v939_v40 = vpop.f32.mrf.mxu1  ;;  %v1603_v41 = vmax.f32 %v1049_v35, %v1491_v36  ;;  %v3386_v33 = vld [vmem:[%s4330_s0 + $0x2d8] sm:$0xff]  ;;  %v4189_v35 = vld [vmem:[%s4331_s2] ss:$0 sm:$0xff] }
 0x193   :  { %v1050_v43 = vmax.f32 %v449_v39, %v939_v40  ;;  %v3418_v34 = vld [vmem:[%s4330_s0 + $0x3d8] sm:$0xff] }
 0x194   :  { %3597 = vst [vmem:[%s4332_s3 + $0x78] sm:$0xff] %v3501_v38   ;;  %v2157_v42 = vmax.f32 %v1603_v41, %v2045_v37 }
 0x196   :  { %v2225_v54 = vadd.f32 %v3794_v53, %v2157_v42 }
 0x198   :  { %v2289_v57 = vmax.f32 %v2225_v54, 0.0  ;;  %v3355_v54 = vld [vmem:[%s4330_s0 + $0x1e0] sm:$0xff] }
 0x199   :  { %v1493_v44 = vpop.f32.mrf.mxu2  ;;  %v2047_v45 = vpop.f32.mrf.mxu3 }
 0x19a   :  { %v1604_v48 = vmax.f32 %v1050_v43, %v1493_v44  ;;  %v452_v49 = vpop.f32.mrf.mxu0  ;;  %v942_v50 = vpop.f32.mrf.mxu1 }
 0x19b   :  { %v1051_v59 = vmax.f32 %v452_v49, %v942_v50 }
 0x19c   :  { %v2158_v55 = vmax.f32 %v1604_v48, %v2047_v45 }
 0x19d   :  { %2614 = vmatmul.msk.bf16.gmra.mxu0 %vm254_vm2, %v3318_v46  ;;  %2838 = vmatmul.msk.bf16.gmra.mxu1 %vm254_vm2, %v3352_v47 }
 0x19e   :  { %v2226_v56 = vadd.f32 %v3794_v53, %v2158_v55  ;;  %3062 = vmatmul.msk.bf16.gmra.mxu2 %vm254_vm2, %v3384_v51  ;;  %3286 = vmatmul.msk.bf16.gmra.mxu3 %vm254_vm2, %v3416_v52  ;;  %v3321_v52 = vld [vmem:[%s4330_s0 + $0xe0] sm:$0xff] }
 0x1a0   :  { %v2290_v58 = vmax.f32 %v2226_v56, 0.0 }
 0x1a1   :  { %v1496_v60 = vpop.f32.mrf.mxu2  ;;  %v2050_v61 = vpop.f32.mrf.mxu3 }
 0x1a2   :  { %v3506_v62 = vpack.c.bf16 %v2290_v58, %v2289_v57  ;;  %v454_v63 = vpop.f32.mrf.mxu0  ;;  %v944_v0 = vpop.f32.mrf.mxu1  ;;  %v1605_v1 = vmax.f32 %v1051_v59, %v1496_v60  ;;  %v3387_v58 = vld [vmem:[%s4330_s0 + $0x2e0] sm:$0xff] }
 0x1a3   :  { %v1052_v3 = vmax.f32 %v454_v63, %v944_v0  ;;  %v3419_v59 = vld [vmem:[%s4330_s0 + $0x3e0] sm:$0xff] }
 0x1a4   :  { %3598 = vst [vmem:[%s4332_s3 + $0x80] sm:$0xff] %v3506_v62   ;;  %v2159_v2 = vmax.f32 %v1605_v1, %v2050_v61 }
 0x1a6   :  { %v2227_v13 = vadd.f32 %v3794_v53, %v2159_v2 }
 0x1a8   :  { %v2291_v16 = vmax.f32 %v2227_v13, 0.0  ;;  %v3356_v13 = vld [vmem:[%s4330_s0 + $0x1e8] sm:$0xff] }
 0x1a9   :  { %v1498_v4 = vpop.f32.mrf.mxu2  ;;  %v2052_v5 = vpop.f32.mrf.mxu3 }
 0x1aa   :  { %v1606_v8 = vmax.f32 %v1052_v3, %v1498_v4  ;;  %v457_v9 = vpop.f32.mrf.mxu0  ;;  %v947_v10 = vpop.f32.mrf.mxu1 }
 0x1ab   :  { %v1053_v18 = vmax.f32 %v457_v9, %v947_v10 }
 0x1ac   :  { %v2160_v14 = vmax.f32 %v1606_v8, %v2052_v5 }
 0x1ad   :  { %2615 = vmatmul.msk.bf16.gmra.mxu0 %vm254_vm2, %v3319_v6  ;;  %2839 = vmatmul.msk.bf16.gmra.mxu1 %vm254_vm2, %v3353_v7 }
 0x1ae   :  { %v2228_v15 = vadd.f32 %v3794_v53, %v2160_v14  ;;  %3063 = vmatmul.msk.bf16.gmra.mxu2 %vm254_vm2, %v3385_v11  ;;  %3287 = vmatmul.msk.bf16.gmra.mxu3 %vm254_vm2, %v3417_v12  ;;  %v3322_v12 = vld [vmem:[%s4330_s0 + $0xe8] sm:$0xff] }
 0x1b0   :  { %v2292_v17 = vmax.f32 %v2228_v15, 0.0 }
 0x1b1   :  { %v1501_v19 = vpop.f32.mrf.mxu2  ;;  %v2055_v20 = vpop.f32.mrf.mxu3 }
 0x1b2   :  { %v3511_v21 = vpack.c.bf16 %v2292_v17, %v2291_v16  ;;  %v459_v22 = vpop.f32.mrf.mxu0  ;;  %v949_v23 = vpop.f32.mrf.mxu1  ;;  %v1607_v24 = vmax.f32 %v1053_v18, %v1501_v19  ;;  %v3388_v17 = vld [vmem:[%s4330_s0 + $0x2e8] sm:$0xff] }
 0x1b3   :  { %v1054_v26 = vmax.f32 %v459_v22, %v949_v23  ;;  %v3420_v18 = vld [vmem:[%s4330_s0 + $0x3e8] sm:$0xff] }
 0x1b4   :  { %3599 = vst [vmem:[%s4332_s3 + $0x88] sm:$0xff] %v3511_v21   ;;  %v2161_v25 = vmax.f32 %v1607_v24, %v2055_v20 }
 0x1b6   :  { %v2229_v36 = vadd.f32 %v4189_v35, %v2161_v25 }
 0x1b8   :  { %v2293_v39 = vmax.f32 %v2229_v36, 0.0  ;;  %v3357_v36 = vld [vmem:[%s4330_s0 + $0x1f0] sm:$0xff] }
 0x1b9   :  { %v1503_v53 = vpop.f32.mrf.mxu2  ;;  %v2057_v27 = vpop.f32.mrf.mxu3 }
 0x1ba   :  { %v1608_v30 = vmax.f32 %v1054_v26, %v1503_v53  ;;  %v462_v31 = vpop.f32.mrf.mxu0  ;;  %v952_v32 = vpop.f32.mrf.mxu1 }
 0x1bb   :  { %v1055_v41 = vmax.f32 %v462_v31, %v952_v32 }
 0x1bc   :  { %v2162_v37 = vmax.f32 %v1608_v30, %v2057_v27 }
 0x1bd   :  { %2616 = vmatmul.msk.bf16.gmra.mxu0 %vm254_vm2, %v3320_v28  ;;  %2840 = vmatmul.msk.bf16.gmra.mxu1 %vm254_vm2, %v3354_v29 }
 0x1be   :  { %v2230_v38 = vadd.f32 %v4189_v35, %v2162_v37  ;;  %3064 = vmatmul.msk.bf16.gmra.mxu2 %vm254_vm2, %v3386_v33  ;;  %3288 = vmatmul.msk.bf16.gmra.mxu3 %vm254_vm2, %v3418_v34  ;;  %v3323_v34 = vld [vmem:[%s4330_s0 + $0xf0] sm:$0xff] }
 0x1c0   :  { %v2294_v40 = vmax.f32 %v2230_v38, 0.0 }
 0x1c1   :  { %v1506_v42 = vpop.f32.mrf.mxu2  ;;  %v2060_v43 = vpop.f32.mrf.mxu3 }
 0x1c2   :  { %v3516_v44 = vpack.c.bf16 %v2294_v40, %v2293_v39  ;;  %v464_v45 = vpop.f32.mrf.mxu0  ;;  %v954_v46 = vpop.f32.mrf.mxu1  ;;  %v1609_v47 = vmax.f32 %v1055_v41, %v1506_v42  ;;  %v3389_v40 = vld [vmem:[%s4330_s0 + $0x2f0] sm:$0xff] }
 0x1c3   :  { %v1056_v49 = vmax.f32 %v464_v45, %v954_v46  ;;  %v3421_v41 = vld [vmem:[%s4330_s0 + $0x3f0] sm:$0xff] }
 0x1c4   :  { %3600 = vst [vmem:[%s4332_s3 + $0x90] sm:$0xff] %v3516_v44   ;;  %v2163_v48 = vmax.f32 %v1609_v47, %v2060_v43 }
 0x1c6   :  { %v2231_v60 = vadd.f32 %v4189_v35, %v2163_v48 }
 0x1c8   :  { %v2295_v63 = vmax.f32 %v2231_v60, 0.0  ;;  %v3358_v60 = vld [vmem:[%s4330_s0 + $0x1f8] sm:$0xff] }
 0x1c9   :  { %v1508_v50 = vpop.f32.mrf.mxu2  ;;  %v2062_v51 = vpop.f32.mrf.mxu3 }
 0x1ca   :  { %v1610_v55 = vmax.f32 %v1056_v49, %v1508_v50  ;;  %v467_v56 = vpop.f32.mrf.mxu0  ;;  %v957_v57 = vpop.f32.mrf.mxu1 }
 0x1cb   :  { %v1057_v1 = vmax.f32 %v467_v56, %v957_v57 }
 0x1cc   :  { %v2164_v61 = vmax.f32 %v1610_v55, %v2062_v51 }
 0x1cd   :  { %2617 = vmatmul.msk.bf16.gmra.mxu0 %vm254_vm2, %v3321_v52  ;;  %2841 = vmatmul.msk.bf16.gmra.mxu1 %vm254_vm2, %v3355_v54 }
 0x1ce   :  { %v2232_v62 = vadd.f32 %v4189_v35, %v2164_v61  ;;  %3065 = vmatmul.msk.bf16.gmra.mxu2 %vm254_vm2, %v3387_v58  ;;  %3289 = vmatmul.msk.bf16.gmra.mxu3 %vm254_vm2, %v3419_v59  ;;  %v3324_v59 = vld [vmem:[%s4330_s0 + $0xf8] sm:$0xff] }
 0x1d0   :  { %v2296_v0 = vmax.f32 %v2232_v62, 0.0 }
 0x1d1   :  { %v1511_v2 = vpop.f32.mrf.mxu2  ;;  %v2065_v3 = vpop.f32.mrf.mxu3 }
 0x1d2   :  { %v3521_v4 = vpack.c.bf16 %v2296_v0, %v2295_v63  ;;  %v469_v5 = vpop.f32.mrf.mxu0  ;;  %v959_v6 = vpop.f32.mrf.mxu1  ;;  %v1611_v7 = vmax.f32 %v1057_v1, %v1511_v2  ;;  %v3390_v0 = vld [vmem:[%s4330_s0 + $0x2f8] sm:$0xff] }
 0x1d3   :  { %v1058_v9 = vmax.f32 %v469_v5, %v959_v6  ;;  %v3422_v1 = vld [vmem:[%s4330_s0 + $0x3f8] sm:$0xff] }
 0x1d4   :  { %3601 = vst [vmem:[%s4332_s3 + $0x98] sm:$0xff] %v3521_v4   ;;  %v2165_v8 = vmax.f32 %v1611_v7, %v2065_v3 }
 0x1d6   :  { %v2233_v19 = vadd.f32 %v4189_v35, %v2165_v8 }
 0x1d8   :  { %v2297_v22 = vmax.f32 %v2233_v19, 0.0 }
 0x1d9   :  { %v1513_v10 = vpop.f32.mrf.mxu2  ;;  %v2067_v11 = vpop.f32.mrf.mxu3 }
 0x1da   :  { %v1612_v14 = vmax.f32 %v1058_v9, %v1513_v10  ;;  %v472_v15 = vpop.f32.mrf.mxu0  ;;  %v962_v16 = vpop.f32.mrf.mxu1 }
 0x1db   :  { %v1059_v24 = vmax.f32 %v472_v15, %v962_v16 }
 0x1dc   :  { %v2166_v20 = vmax.f32 %v1612_v14, %v2067_v11 }
 0x1dd   :  { %2618 = vmatmul.msk.bf16.gmra.mxu0 %vm254_vm2, %v3322_v12  ;;  %2842 = vmatmul.msk.bf16.gmra.mxu1 %vm254_vm2, %v3356_v13 }
 0x1de   :  { %v2234_v21 = vadd.f32 %v4189_v35, %v2166_v20  ;;  %3066 = vmatmul.msk.bf16.gmra.mxu2 %vm254_vm2, %v3388_v17  ;;  %3290 = vmatmul.msk.bf16.gmra.mxu3 %vm254_vm2, %v3420_v18 }
 0x1e0   :  { %v2298_v23 = vmax.f32 %v2234_v21, 0.0 }
 0x1e1   :  { %v1516_v25 = vpop.f32.mrf.mxu2  ;;  %v2070_v26 = vpop.f32.mrf.mxu3 }
 0x1e2   :  { %v3526_v53 = vpack.c.bf16 %v2298_v23, %v2297_v22  ;;  %v474_v27 = vpop.f32.mrf.mxu0  ;;  %v964_v28 = vpop.f32.mrf.mxu1  ;;  %v1613_v29 = vmax.f32 %v1059_v24, %v1516_v25 }
 0x1e3   :  { %v1060_v31 = vmax.f32 %v474_v27, %v964_v28 }
 0x1e4   :  { %3602 = vst [vmem:[%s4332_s3 + $0xa0] sm:$0xff] %v3526_v53   ;;  %v2167_v30 = vmax.f32 %v1613_v29, %v2070_v26 }
 0x1e6   :  { %v2235_v42 = vadd.f32 %v4189_v35, %v2167_v30 }
 0x1e8   :  { %v2299_v45 = vmax.f32 %v2235_v42, 0.0 }
 0x1e9   :  { %v1518_v32 = vpop.f32.mrf.mxu2  ;;  %v2072_v33 = vpop.f32.mrf.mxu3 }
 0x1ea   :  { %v1614_v37 = vmax.f32 %v1060_v31, %v1518_v32  ;;  %v477_v38 = vpop.f32.mrf.mxu0  ;;  %v967_v39 = vpop.f32.mrf.mxu1 }
 0x1eb   :  { %v1061_v47 = vmax.f32 %v477_v38, %v967_v39 }
 0x1ec   :  { %v2168_v43 = vmax.f32 %v1614_v37, %v2072_v33 }
 0x1ed   :  { %2619 = vmatmul.msk.bf16.gmra.mxu0 %vm254_vm2, %v3323_v34  ;;  %2843 = vmatmul.msk.bf16.gmra.mxu1 %vm254_vm2, %v3357_v36 }
 0x1ee   :  { %v2236_v44 = vadd.f32 %v4189_v35, %v2168_v43  ;;  %3067 = vmatmul.msk.bf16.gmra.mxu2 %vm254_vm2, %v3389_v40  ;;  %3291 = vmatmul.msk.bf16.gmra.mxu3 %vm254_vm2, %v3421_v41 }
 0x1f0   :  { %v2300_v46 = vmax.f32 %v2236_v44, 0.0 }
 0x1f1   :  { %v1521_v48 = vpop.f32.mrf.mxu2  ;;  %v2075_v49 = vpop.f32.mrf.mxu3 }
 0x1f2   :  { %v3531_v50 = vpack.c.bf16 %v2300_v46, %v2299_v45  ;;  %v479_v51 = vpop.f32.mrf.mxu0  ;;  %v969_v52 = vpop.f32.mrf.mxu1  ;;  %v1615_v54 = vmax.f32 %v1061_v47, %v1521_v48 }
 0x1f3   :  { %v1062_v56 = vmax.f32 %v479_v51, %v969_v52 }
 0x1f4   :  { %3603 = vst [vmem:[%s4332_s3 + $0xa8] sm:$0xff] %v3531_v50   ;;  %v2169_v55 = vmax.f32 %v1615_v54, %v2075_v49 }
 0x1f6   :  { %v2237_v2 = vadd.f32 %v4189_v35, %v2169_v55 }
 0x1f8   :  { %v2301_v5 = vmax.f32 %v2237_v2, 0.0 }
 0x1f9   :  { %v1523_v57 = vpop.f32.mrf.mxu2  ;;  %v2077_v58 = vpop.f32.mrf.mxu3 }
 0x1fa   :  { %v1616_v61 = vmax.f32 %v1062_v56, %v1523_v57  ;;  %v482_v62 = vpop.f32.mrf.mxu0  ;;  %v972_v63 = vpop.f32.mrf.mxu1 }
 0x1fb   :  { %v1063_v7 = vmax.f32 %v482_v62, %v972_v63 }
 0x1fc   :  { %v2170_v3 = vmax.f32 %v1616_v61, %v2077_v58 }
 0x1fd   :  { %2620 = vmatmul.msk.bf16.gmra.mxu0 %vm254_vm2, %v3324_v59  ;;  %2844 = vmatmul.msk.bf16.gmra.mxu1 %vm254_vm2, %v3358_v60 }
 0x1fe   :  { %v2238_v4 = vadd.f32 %v4189_v35, %v2170_v3  ;;  %3068 = vmatmul.msk.bf16.gmra.mxu2 %vm254_vm2, %v3390_v0  ;;  %3292 = vmatmul.msk.bf16.gmra.mxu3 %vm254_vm2, %v3422_v1 }
 0x200   :  { %v2302_v6 = vmax.f32 %v2238_v4, 0.0 }
 0x201   :  { %v1526_v8 = vpop.f32.mrf.mxu2  ;;  %v2080_v9 = vpop.f32.mrf.mxu3 }
 0x202   :  { %v3536_v10 = vpack.c.bf16 %v2302_v6, %v2301_v5  ;;  %v484_v11 = vpop.f32.mrf.mxu0  ;;  %v974_v12 = vpop.f32.mrf.mxu1  ;;  %v1617_v13 = vmax.f32 %v1063_v7, %v1526_v8 }
 0x203   :  { %v1064_v15 = vmax.f32 %v484_v11, %v974_v12 }
 0x204   :  { %3604 = vst [vmem:[%s4332_s3 + $0xb0] sm:$0xff] %v3536_v10   ;;  %v2171_v14 = vmax.f32 %v1617_v13, %v2080_v9 }
 0x206   :  { %v2239_v21 = vadd.f32 %v4189_v35, %v2171_v14 }
 0x208   :  { %v2303_v24 = vmax.f32 %v2239_v21, 0.0 }
 0x209   :  { %v1528_v16 = vpop.f32.mrf.mxu2  ;;  %v2082_v17 = vpop.f32.mrf.mxu3 }
 0x20a   :  { %v1618_v18 = vmax.f32 %v1064_v15, %v1528_v16  ;;  %v487_v19 = vpop.f32.mrf.mxu0  ;;  %v977_v20 = vpop.f32.mrf.mxu1 }
 0x20b   :  { %v1065_v26 = vmax.f32 %v487_v19, %v977_v20 }
 0x20c   :  { %v2172_v22 = vmax.f32 %v1618_v18, %v2082_v17 }
 0x20e   :  { %v2240_v23 = vadd.f32 %v4189_v35, %v2172_v22 }
 0x210   :  { %v2304_v25 = vmax.f32 %v2240_v23, 0.0 }
 0x211   :  { %v1531_v53 = vpop.f32.mrf.mxu2  ;;  %v2085_v27 = vpop.f32.mrf.mxu3 }
 0x212   :  { %v3541_v28 = vpack.c.bf16 %v2304_v25, %v2303_v24  ;;  %v489_v29 = vpop.f32.mrf.mxu0  ;;  %v979_v30 = vpop.f32.mrf.mxu1  ;;  %v1619_v31 = vmax.f32 %v1065_v26, %v1531_v53 }
 0x213   :  { %v1066_v33 = vmax.f32 %v489_v29, %v979_v30 }
 0x214   :  { %3605 = vst [vmem:[%s4332_s3 + $0xb8] sm:$0xff] %v3541_v28   ;;  %v2173_v32 = vmax.f32 %v1619_v31, %v2085_v27 }
 0x216   :  { %v2241_v40 = vadd.f32 %v4189_v35, %v2173_v32 }
 0x218   :  { %v2305_v43 = vmax.f32 %v2241_v40, 0.0 }
 0x219   :  { %v1533_v34 = vpop.f32.mrf.mxu2  ;;  %v2087_v36 = vpop.f32.mrf.mxu3 }
 0x21a   :  { %v1620_v37 = vmax.f32 %v1066_v33, %v1533_v34  ;;  %v492_v38 = vpop.f32.mrf.mxu0  ;;  %v982_v39 = vpop.f32.mrf.mxu1 }
 0x21b   :  { %v1067_v45 = vmax.f32 %v492_v38, %v982_v39 }
 0x21c   :  { %v2174_v41 = vmax.f32 %v1620_v37, %v2087_v36 }
 0x21e   :  { %v2242_v42 = vadd.f32 %v4189_v35, %v2174_v41 }
 0x220   :  { %v2306_v44 = vmax.f32 %v2242_v42, 0.0 }
 0x221   :  { %v1536_v46 = vpop.f32.mrf.mxu2  ;;  %v2090_v47 = vpop.f32.mrf.mxu3 }
 0x222   :  { %v3546_v48 = vpack.c.bf16 %v2306_v44, %v2305_v43  ;;  %v494_v49 = vpop.f32.mrf.mxu0  ;;  %v984_v50 = vpop.f32.mrf.mxu1  ;;  %v1621_v51 = vmax.f32 %v1067_v45, %v1536_v46 }
 0x223   :  { %v1068_v54 = vmax.f32 %v494_v49, %v984_v50 }
 0x224   :  { %3606 = vst [vmem:[%s4332_s3 + $0xc0] sm:$0xff] %v3546_v48   ;;  %v2175_v52 = vmax.f32 %v1621_v51, %v2090_v47 }
 0x226   :  { %v2243_v60 = vadd.f32 %v4189_v35, %v2175_v52 }
 0x228   :  { %v2307_v63 = vmax.f32 %v2243_v60, 0.0 }
 0x229   :  { %v1538_v55 = vpop.f32.mrf.mxu2  ;;  %v2092_v56 = vpop.f32.mrf.mxu3 }
 0x22a   :  { %v1622_v57 = vmax.f32 %v1068_v54, %v1538_v55  ;;  %v497_v58 = vpop.f32.mrf.mxu0  ;;  %v987_v59 = vpop.f32.mrf.mxu1 }
 0x22b   :  { %v1069_v1 = vmax.f32 %v497_v58, %v987_v59 }
 0x22c   :  { %v2176_v61 = vmax.f32 %v1622_v57, %v2092_v56 }
 0x22e   :  { %v2244_v62 = vadd.f32 %v4189_v35, %v2176_v61 }
 0x230   :  { %v2308_v0 = vmax.f32 %v2244_v62, 0.0 }
 0x231   :  { %v1541_v2 = vpop.f32.mrf.mxu2  ;;  %v2095_v3 = vpop.f32.mrf.mxu3 }
 0x232   :  { %v3551_v4 = vpack.c.bf16 %v2308_v0, %v2307_v63  ;;  %v499_v5 = vpop.f32.mrf.mxu0  ;;  %v989_v6 = vpop.f32.mrf.mxu1  ;;  %v1623_v7 = vmax.f32 %v1069_v1, %v1541_v2 }
 0x233   :  { %v1070_v9 = vmax.f32 %v499_v5, %v989_v6 }
 0x234   :  { %3607 = vst [vmem:[%s4332_s3 + $0xc8] sm:$0xff] %v3551_v4   ;;  %v2177_v8 = vmax.f32 %v1623_v7, %v2095_v3 }
 0x236   :  { %v2245_v15 = vadd.f32 %v4189_v35, %v2177_v8 }
 0x238   :  { %v2309_v18 = vmax.f32 %v2245_v15, 0.0 }
 0x239   :  { %v1543_v10 = vpop.f32.mrf.mxu2  ;;  %v2097_v11 = vpop.f32.mrf.mxu3 }
 0x23a   :  { %v1624_v12 = vmax.f32 %v1070_v9, %v1543_v10  ;;  %v502_v13 = vpop.f32.mrf.mxu0  ;;  %v992_v14 = vpop.f32.mrf.mxu1 }
 0x23b   :  { %v1071_v20 = vmax.f32 %v502_v13, %v992_v14 }
 0x23c   :  { %v2178_v16 = vmax.f32 %v1624_v12, %v2097_v11 }
 0x23e   :  { %v2246_v17 = vadd.f32 %v4189_v35, %v2178_v16 }
 0x240   :  { %v2310_v19 = vmax.f32 %v2246_v17, 0.0 }
 0x241   :  { %v1546_v21 = vpop.f32.mrf.mxu2  ;;  %v2100_v22 = vpop.f32.mrf.mxu3 }
 0x242   :  { %v3556_v23 = vpack.c.bf16 %v2310_v19, %v2309_v18  ;;  %v504_v24 = vpop.f32.mrf.mxu0  ;;  %v994_v25 = vpop.f32.mrf.mxu1  ;;  %v1625_v26 = vmax.f32 %v1071_v20, %v1546_v21 }
 0x243   :  { %v1072_v27 = vmax.f32 %v504_v24, %v994_v25 }
 0x244   :  { %3608 = vst [vmem:[%s4332_s3 + $0xd0] sm:$0xff] %v3556_v23   ;;  %v2179_v53 = vmax.f32 %v1625_v26, %v2100_v22 }
 0x246   :  { %v2247_v33 = vadd.f32 %v4189_v35, %v2179_v53 }
 0x248   :  { %v2311_v37 = vmax.f32 %v2247_v33, 0.0 }
 0x249   :  { %v1548_v28 = vpop.f32.mrf.mxu2  ;;  %v2102_v29 = vpop.f32.mrf.mxu3 }
 0x24a   :  { %v1626_v30 = vmax.f32 %v1072_v27, %v1548_v28  ;;  %v507_v31 = vpop.f32.mrf.mxu0  ;;  %v997_v32 = vpop.f32.mrf.mxu1 }
 0x24b   :  { %v1073_v39 = vmax.f32 %v507_v31, %v997_v32 }
 0x24c   :  { %v2180_v34 = vmax.f32 %v1626_v30, %v2102_v29 }
 0x24e   :  { %v2248_v36 = vadd.f32 %v4189_v35, %v2180_v34 }
 0x250   :  { %v2312_v38 = vmax.f32 %v2248_v36, 0.0 }
 0x251   :  { %v1551_v40 = vpop.f32.mrf.mxu2  ;;  %v2105_v41 = vpop.f32.mrf.mxu3 }
 0x252   :  { %v3561_v42 = vpack.c.bf16 %v2312_v38, %v2311_v37  ;;  %v509_v43 = vpop.f32.mrf.mxu0  ;;  %v999_v44 = vpop.f32.mrf.mxu1  ;;  %v1627_v45 = vmax.f32 %v1073_v39, %v1551_v40 }
 0x253   :  { %v1074_v47 = vmax.f32 %v509_v43, %v999_v44 }
 0x254   :  { %3609 = vst [vmem:[%s4332_s3 + $0xd8] sm:$0xff] %v3561_v42   ;;  %v2181_v46 = vmax.f32 %v1627_v45, %v2105_v41 }
 0x256   :  { %v2249_v54 = vadd.f32 %v4189_v35, %v2181_v46 }
 0x258   :  { %v2313_v57 = vmax.f32 %v2249_v54, 0.0 }
 0x259   :  { %v1553_v48 = vpop.f32.mrf.mxu2  ;;  %v2107_v49 = vpop.f32.mrf.mxu3 }
 0x25a   :  { %v1628_v50 = vmax.f32 %v1074_v47, %v1553_v48  ;;  %v512_v51 = vpop.f32.mrf.mxu0  ;;  %v1002_v52 = vpop.f32.mrf.mxu1 }
 0x25b   :  { %v1075_v59 = vmax.f32 %v512_v51, %v1002_v52 }
 0x25c   :  { %v2182_v55 = vmax.f32 %v1628_v50, %v2107_v49 }
 0x25e   :  { %v2250_v56 = vadd.f32 %v4189_v35, %v2182_v55 }
 0x260   :  { %v2314_v58 = vmax.f32 %v2250_v56, 0.0 }
 0x261   :  { %v1556_v60 = vpop.f32.mrf.mxu2  ;;  %v2110_v61 = vpop.f32.mrf.mxu3 }
 0x262   :  { %v3566_v62 = vpack.c.bf16 %v2314_v58, %v2313_v57  ;;  %v514_v63 = vpop.f32.mrf.mxu0  ;;  %v1004_v0 = vpop.f32.mrf.mxu1  ;;  %v1629_v1 = vmax.f32 %v1075_v59, %v1556_v60 }
 0x263   :  { %v1076_v3 = vmax.f32 %v514_v63, %v1004_v0 }
 0x264   :  { %3610 = vst [vmem:[%s4332_s3 + $0xe0] sm:$0xff] %v3566_v62   ;;  %v2183_v2 = vmax.f32 %v1629_v1, %v2110_v61 }
 0x266   :  { %v2251_v9 = vadd.f32 %v4189_v35, %v2183_v2 }
 0x268   :  { %v2315_v12 = vmax.f32 %v2251_v9, 0.0 }
 0x269   :  { %v1558_v4 = vpop.f32.mrf.mxu2  ;;  %v2112_v5 = vpop.f32.mrf.mxu3 }
 0x26a   :  { %v1630_v6 = vmax.f32 %v1076_v3, %v1558_v4  ;;  %v517_v7 = vpop.f32.mrf.mxu0  ;;  %v1007_v8 = vpop.f32.mrf.mxu1 }
 0x26b   :  { %v1077_v14 = vmax.f32 %v517_v7, %v1007_v8 }
 0x26c   :  { %v2184_v10 = vmax.f32 %v1630_v6, %v2112_v5 }
 0x26e   :  { %v2252_v11 = vadd.f32 %v4189_v35, %v2184_v10 }
 0x270   :  { %v2316_v13 = vmax.f32 %v2252_v11, 0.0 }
 0x271   :  { %v1561_v15 = vpop.f32.mrf.mxu2  ;;  %v2115_v16 = vpop.f32.mrf.mxu3 }
 0x272   :  { %v3571_v17 = vpack.c.bf16 %v2316_v13, %v2315_v12  ;;  %v519_v18 = vpop.f32.mrf.mxu0  ;;  %v1009_v19 = vpop.f32.mrf.mxu1  ;;  %v1631_v20 = vmax.f32 %v1077_v14, %v1561_v15 }
 0x273   :  { %v1078_v22 = vmax.f32 %v519_v18, %v1009_v19 }
 0x274   :  { %3611 = vst [vmem:[%s4332_s3 + $0xe8] sm:$0xff] %v3571_v17   ;;  %v2185_v21 = vmax.f32 %v1631_v20, %v2115_v16 }
 0x276   :  { %v2253_v27 = vadd.f32 %v4189_v35, %v2185_v21 }
 0x278   :  { %v2317_v30 = vmax.f32 %v2253_v27, 0.0 }
 0x279   :  { %v1563_v23 = vpop.f32.mrf.mxu2  ;;  %v2117_v24 = vpop.f32.mrf.mxu3 }
 0x27a   :  { %v1632_v25 = vmax.f32 %v1078_v22, %v1563_v23  ;;  %v522_v26 = vpop.f32.mrf.mxu0  ;;  %v1012_v53 = vpop.f32.mrf.mxu1 }
 0x27b   :  { %v1079_v32 = vmax.f32 %v522_v26, %v1012_v53 }
 0x27c   :  { %v2186_v28 = vmax.f32 %v1632_v25, %v2117_v24 }
 0x27e   :  { %v2254_v29 = vadd.f32 %v4189_v35, %v2186_v28 }
 0x280   :  { %v2318_v31 = vmax.f32 %v2254_v29, 0.0 }
 0x281   :  { %v1566_v33 = vpop.f32.mrf.mxu2  ;;  %v2120_v34 = vpop.f32.mrf.mxu3 }
 0x282   :  { %v3576_v36 = vpack.c.bf16 %v2318_v31, %v2317_v30  ;;  %v1633_v37 = vmax.f32 %v1079_v32, %v1566_v33  ;;  %v524_v38 = vpop.f32.mrf.mxu0  ;;  %v1014_v39 = vpop.f32.mrf.mxu1 }
 0x283   :  { %v1080_v41 = vmax.f32 %v524_v38, %v1014_v39 }
 0x284   :  { %3612 = vst [vmem:[%s4332_s3 + $0xf0] sm:$0xff] %v3576_v36   ;;  %v2187_v40 = vmax.f32 %v1633_v37, %v2120_v34 }
 0x286   :  { %v2255_v45 = vadd.f32 %v4189_v35, %v2187_v40 }
 0x288   :  { %v2319_v48 = vmax.f32 %v2255_v45, 0.0 }
 0x289   :  { %v1568_v42 = vpop.f32.mrf.mxu2  ;;  %v2122_v44 = vpop.f32.mrf.mxu3 }
 0x28a   :  { %v1634_v43 = vmax.f32 %v1080_v41, %v1568_v42 }
 0x28c   :  { %v2188_v46 = vmax.f32 %v1634_v43, %v2122_v44 }
 0x28e   :  { %v2256_v47 = vadd.f32 %v4189_v35, %v2188_v46 }
 0x290   :  { %v2320_v49 = vmax.f32 %v2256_v47, 0.0 }
 0x292   :  { %v3581_v50 = vpack.c.bf16 %v2320_v49, %v2319_v48 }
 0x294   :  { %3613 = vst [vmem:[%s4332_s3 + $0xf8] sm:$0xff] %v3581_v50  }

// kernel: autoencoder_forward.7
= control target key start
LH: loop header
LB: loop body
LE: loop exit
PB: predicated region body
PF: predicated region fallthrough
CT: control target
= control target key end

     0   :  { %vm365_vm0 = vcmask 523264   ;;  %s2056_s1 = inlined_call_operand.vmem [shape: bf16[576,128], index: 1, kind: input, shape index: {}]   ;;  %s2057_s0 = inlined_call_operand.vmem [shape: bf16[4,32,576], index: 0, kind: input, shape index: {}]   ;;  %s2058_s2 = inlined_call_operand.vmem [shape: f32[1,128], index: 2, kind: input, shape index: {}]   ;;  %s2059_s3 = inlined_call_operand.vmem [shape: bf16[32,128], index: 3, kind: output, shape index: {}]  }
   0x1   :  { %v1454_v0 = vld [vmem:[%s2056_s1 + $0x38] sm:$0xff]  ;;  %v1476_v4 = vld [vmem:[%s2056_s1 + $0x30] sm:$0xff]  ;;  %v1500_v8 = vld [vmem:[%s2056_s1 + $0x28] sm:$0xff] }
   0x2   :  { %v1459_v1 = vld [vmem:[%s2056_s1 + $0x78] sm:$0xff]  ;;  %372 = vmatpush.bf16.msra.mxu0 %v1454_v0  ;;  %v1481_v5 = vld [vmem:[%s2056_s1 + $0x70] sm:$0xff]  ;;  %v1505_v9 = vld [vmem:[%s2056_s1 + $0x68] sm:$0xff] }
   0x3   :  { %v1464_v2 = vld [vmem:[%s2056_s1 + $0xb8] sm:$0xff]  ;;  %391 = vmatpush.bf16.msra.mxu1 %v1459_v1  ;;  %v1488_v6 = vld [vmem:[%s2056_s1 + $0xb0] sm:$0xff]  ;;  %v1512_v10 = vld [vmem:[%s2056_s1 + $0xa8] sm:$0xff] }
   0x4   :  { %v1469_v3 = vld [vmem:[%s2056_s1 + $0xf8] sm:$0xff]  ;;  %410 = vmatpush.bf16.msra.mxu2 %v1464_v2  ;;  %v1493_v7 = vld [vmem:[%s2056_s1 + $0xf0] sm:$0xff]  ;;  %v1517_v11 = vld [vmem:[%s2056_s1 + $0xe8] sm:$0xff] }
   0x5   :  { %429 = vmatpush.bf16.msra.mxu3 %v1469_v3  ;;  %v1524_v12 = vld [vmem:[%s2056_s1 + $0x20] sm:$0xff]  ;;  %v1548_v16 = vld [vmem:[%s2056_s1 + $0x18] sm:$0xff]  ;;  %v1572_v20 = vld [vmem:[%s2056_s1 + $0x10] sm:$0xff] }
   0x6   :  { %373 = vmatpush.bf16.msra.mxu0 %v1476_v4  ;;  %v1529_v13 = vld [vmem:[%s2056_s1 + $0x60] sm:$0xff]  ;;  %v1553_v17 = vld [vmem:[%s2056_s1 + $0x58] sm:$0xff]  ;;  %v1577_v21 = vld [vmem:[%s2056_s1 + $0x50] sm:$0xff] }
   0x7   :  { %392 = vmatpush.bf16.msra.mxu1 %v1481_v5  ;;  %v1536_v14 = vld [vmem:[%s2056_s1 + $0xa0] sm:$0xff]  ;;  %v1560_v18 = vld [vmem:[%s2056_s1 + $0x98] sm:$0xff]  ;;  %v1584_v22 = vld [vmem:[%s2056_s1 + $0x90] sm:$0xff] }
   0x8   :  { %411 = vmatpush.bf16.msra.mxu2 %v1488_v6  ;;  %v1541_v15 = vld [vmem:[%s2056_s1 + $0xe0] sm:$0xff]  ;;  %v1565_v19 = vld [vmem:[%s2056_s1 + $0xd8] sm:$0xff]  ;;  %v1589_v23 = vld [vmem:[%s2056_s1 + $0xd0] sm:$0xff] }
   0x9   :  { %430 = vmatpush.bf16.msra.mxu3 %v1493_v7  ;;  %v1596_v24 = vld [vmem:[%s2056_s1 + $0x8] sm:$0xff]  ;;  %v1618_v28 = vld [vmem:[%s2056_s1] sm:$0xff]  ;;  %v1345_v33 = vld [vmem:[%s2057_s0 + $0x10] sm:$0xf0] }
   0xa   :  { %374 = vmatpush.bf16.msra.mxu0 %v1500_v8  ;;  %v1601_v25 = vld [vmem:[%s2056_s1 + $0x48] sm:$0xff]  ;;  %v1623_v29 = vld [vmem:[%s2056_s1 + $0x40] sm:$0xff]  ;;  %v999_v35 = vld [vmem:[%s2057_s0 + $0x14] sm:$0xf0] }
   0xb   :  { %393 = vmatpush.bf16.msra.mxu1 %v1505_v9  ;;  %v1608_v26 = vld [vmem:[%s2056_s1 + $0x88] sm:$0xff]  ;;  %v1628_v30 = vld [vmem:[%s2056_s1 + $0x80] sm:$0xff]  ;;  %v1346_v37 = vld [vmem:[%s2057_s0 + $0x18] sm:$0xf0] }
   0xc   :  { %412 = vmatpush.bf16.msra.mxu2 %v1512_v10  ;;  %v1613_v27 = vld [vmem:[%s2056_s1 + $0xc8] sm:$0xff]  ;;  %v1633_v31 = vld [vmem:[%s2056_s1 + $0xc0] sm:$0xff]  ;;  %v1670_v44 = vld [vmem:[%s2056_s1 + $0x118] sm:$0xff] }
   0xd   :  { %431 = vmatpush.bf16.msra.mxu3 %v1517_v11  ;;  %v997_v32 = vld [vmem:[%s2057_s0] sm:$0xf]  ;;  %v1343_v34 = vld [vmem:[%s2057_s0 + $0x4] sm:$0xf]  ;;  %v1005_v36 = vld [vmem:[%s2057_s0 + $0x8] sm:$0xf] }
   0xe   :  { %375 = vmatpush.bf16.msra.mxu0 %v1524_v12  ;;  %v1344_v38 = vld [vmem:[%s2057_s0 + $0xc] sm:$0xf]  ;;  %v1007_v39 = vld [vmem:[%s2057_s0 + $0x1c] sm:$0xf0]  ;;  %v998_v40 = vor.u32 %v1345_v33, %v997_v32  ;;  %v1002_v41 = vor.u32 %v1343_v34, %v999_v35  ;;  %v1006_v42 = vor.u32 %v1346_v37, %v1005_v36  ;;  %v1679_v45 = vld [vmem:[%s2056_s1 + $0x110] sm:$0xff] }
   0xf   :  { %394 = vmatpush.bf16.msra.mxu1 %v1529_v13  ;;  %v1010_v43 = vor.u32 %v1344_v38, %v1007_v39  ;;  %v1688_v46 = vld [vmem:[%s2056_s1 + $0x108] sm:$0xff]  ;;  %v1350_v48 = vld [vmem:[%s2057_s0 + $0x38] sm:$0xf0]  ;;  %v1019_v50 = vld [vmem:[%s2057_s0 + $0x3c] sm:$0xf0] }
  0x10   :  { %413 = vmatpush.bf16.msra.mxu2 %v1536_v14  ;;  %v1017_v47 = vld [vmem:[%s2057_s0 + $0x28] sm:$0xf]  ;;  %v1348_v49 = vld [vmem:[%s2057_s0 + $0x2c] sm:$0xf]  ;;  %v1025_v51 = vld [vmem:[%s2057_s0 + $0x30] sm:$0xf] }
  0x11   :  { %432 = vmatpush.bf16.msra.mxu3 %v1541_v15  ;;  %v1351_v52 = vld [vmem:[%s2057_s0 + $0x40] sm:$0xf0]  ;;  %v1349_v53 = vld [vmem:[%s2057_s0 + $0x34] sm:$0xf]  ;;  %v1027_v54 = vld [vmem:[%s2057_s0 + $0x44] sm:$0xf0]  ;;  %v1018_v56 = vor.u32 %v1350_v48, %v1017_v47  ;;  %v1022_v57 = vor.u32 %v1348_v49, %v1019_v50 }
  0x12   :  { %376 = vmatpush.bf16.msra.mxu0 %v1548_v16  ;;  %v1721_v55 = vld [vmem:[%s2056_s1 + $0x100] sm:$0xff]  ;;  %v1026_v58 = vor.u32 %v1351_v52, %v1025_v51  ;;  %v1030_v59 = vor.u32 %v1349_v53, %v1027_v54  ;;  %v1013_v60 = vld [vmem:[%s2057_s0 + $0x10] sm:$0xf]  ;;  %v1389_v32 = vld [vmem:[%s2057_s0 + $0x54] sm:$0xf] }
  0x13   :  { %395 = vmatpush.bf16.msra.mxu1 %v1553_v17  ;;  %v1347_v61 = vld [vmem:[%s2057_s0 + $0x20] sm:$0xf0]  ;;  %v1195_v62 = vld [vmem:[%s2057_s0 + $0x50] sm:$0xf]  ;;  %v1197_v33 = vld [vmem:[%s2057_s0 + $0x64] sm:$0xf0] }
  0x14   :  { %414 = vmatpush.bf16.msra.mxu2 %v1560_v18  ;;  %v1391_v63 = vld [vmem:[%s2057_s0 + $0x60] sm:$0xf0]  ;;  %v1203_v34 = vld [vmem:[%s2057_s0 + $0x58] sm:$0xf]  ;;  %v1392_v35 = vld [vmem:[%s2057_s0 + $0x68] sm:$0xf0]  ;;  %v1014_v36 = vor.u32 %v1347_v61, %v1013_v60  ;;  %v1200_v38 = vor.u32 %v1389_v32, %v1197_v33 }
  0x15   :  { %433 = vmatpush.bf16.msra.mxu3 %v1565_v19  ;;  %v1196_v37 = vor.u32 %v1391_v63, %v1195_v62  ;;  %v1204_v39 = vor.u32 %v1392_v35, %v1203_v34  ;;  %v1394_v47 = vld [vmem:[%s2057_s0 + $0x7c] sm:$0xf]  ;;  %v1217_v48 = vld [vmem:[%s2057_s0 + $0x8c] sm:$0xf0]  ;;  %v1223_v49 = vld [vmem:[%s2057_s0 + $0x80] sm:$0xf] }
  0x16   :  { %377 = vmatpush.bf16.msra.mxu0 %v1572_v20  ;;  %v1397_v50 = vld [vmem:[%s2057_s0 + $0x90] sm:$0xf0]  ;;  %v1220_v53 = vor.u32 %v1394_v47, %v1217_v48  ;;  %v1249_v60 = vld [vmem:[%s2057_s0 + $0xa0] sm:$0xf]  ;;  %v1399_v62 = vld [vmem:[%s2057_s0 + $0xa4] sm:$0xf] }
  0x17   :  { %396 = vmatpush.bf16.msra.mxu1 %v1577_v21  ;;  %v1224_v54 = vor.u32 %v1397_v50, %v1223_v49  ;;  %v1401_v61 = vld [vmem:[%s2057_s0 + $0xb0] sm:$0xf0]  ;;  %v1251_v63 = vld [vmem:[%s2057_s0 + $0xb4] sm:$0xf0] }
  0x18   :  { %415 = vmatpush.bf16.msra.mxu2 %v1584_v22  ;;  %v1250_v34 = vor.u32 %v1401_v61, %v1249_v60  ;;  %v1254_v35 = vor.u32 %v1399_v62, %v1251_v63  ;;  %v1414_v62 = vld [vmem:[%s2057_s0 + $0x11c] sm:$0xf]  ;;  %v1325_v63 = vld [vmem:[%s2057_s0 + $0x12c] sm:$0xf0] }
  0x19   :  { %434 = vmatpush.bf16.msra.mxu3 %v1589_v23 }
  0x1a   :  { %378 = vmatpush.bf16.msra.mxu0 %v1596_v24 }
  0x1b   :  { %397 = vmatpush.bf16.msra.mxu1 %v1601_v25 }
  0x1c   :  { %416 = vmatpush.bf16.msra.mxu2 %v1608_v26 }
  0x1d   :  { %435 = vmatpush.bf16.msra.mxu3 %v1613_v27 }
  0x1e   :  { %379 = vmatpush.bf16.msra.mxu0 %v1618_v28 }
  0x1f   :  { %398 = vmatpush.bf16.msra.mxu1 %v1623_v29 }
  0x20   :  { %417 = vmatpush.bf16.msra.mxu2 %v1628_v30 }
  0x21   :  { %436 = vmatpush.bf16.msra.mxu3 %v1633_v31  ;;  %380 = vmatmul.bf16.vlgmr.msra.gmra.mxu0 %v998_v40  ;;  %v1033_v40 = vld [vmem:[%s2057_s0 + $0x38] sm:$0xf] }
  0x22   :  { %399 = vmatmul.bf16.vlgmr.msra.gmra.mxu1 %v1002_v41  ;;  %452 = vmatpush.bf16.msrb.mxu0 %v1670_v44  ;;  %v1352_v41 = vld [vmem:[%s2057_s0 + $0x48] sm:$0xf0] }
  0x23   :  { %536 = vmatpush.bf16.msrb.mxu1 %v1454_v0  ;;  %418 = vmatmul.bf16.vlgmr.msra.gmra.mxu2 %v1006_v42  ;;  %v1215_v42 = vld [vmem:[%s2057_s0 + $0x78] sm:$0xf]  ;;  %v1034_v51 = vor.u32 %v1352_v41, %v1033_v40 }
  0x24   :  { %555 = vmatpush.bf16.msrb.mxu2 %v1459_v1  ;;  %437 = vmatmul.bf16.vlgmr.msra.gmra.mxu3 %v1010_v43  ;;  %v1396_v43 = vld [vmem:[%s2057_s0 + $0x88] sm:$0xf0] }
  0x25   :  { %574 = vmatpush.bf16.msrb.mxu3 %v1464_v2  ;;  %v1216_v52 = vor.u32 %v1396_v43, %v1215_v42  ;;  %v1413_v43 = vld [vmem:[%s2057_s0 + $0x110] sm:$0xf0] }
  0x26   :  { %453 = vmatpush.bf16.msrb.mxu0 %v1679_v45 }
  0x27   :  { %537 = vmatpush.bf16.msrb.mxu1 %v1476_v4 }
  0x28   :  { %556 = vmatpush.bf16.msrb.mxu2 %v1481_v5 }
  0x29   :  { %575 = vmatpush.bf16.msrb.mxu3 %v1488_v6 }
  0x2a   :  { %454 = vmatpush.bf16.msrb.mxu0 %v1688_v46 }
  0x2b   :  { %538 = vmatpush.bf16.msrb.mxu1 %v1500_v8 }
  0x2c   :  { %557 = vmatpush.bf16.msrb.mxu2 %v1505_v9 }
  0x2d   :  { %576 = vmatpush.bf16.msrb.mxu3 %v1512_v10 }
  0x2e   :  { %455 = vmatpush.bf16.msrb.mxu0 %v1721_v55 }
  0x2f   :  { %539 = vmatpush.bf16.msrb.mxu1 %v1524_v12 }
  0x30   :  { %558 = vmatpush.bf16.msrb.mxu2 %v1529_v13 }
  0x31   :  { %577 = vmatpush.bf16.msrb.mxu3 %v1536_v14  ;;  %385 = vmatmul.bf16.gmra.mxu0 %v1018_v56  ;;  %v1390_v56 = vld [vmem:[%s2057_s0 + $0x5c] sm:$0xf] }
  0x32   :  { %404 = vmatmul.bf16.gmra.mxu1 %v1022_v57  ;;  %593 = vmatpush.bf16.msra.mxu0 %v1469_v3  ;;  %v1205_v57 = vld [vmem:[%s2057_s0 + $0x6c] sm:$0xf0] }
  0x33   :  { %540 = vmatpush.bf16.msrb.mxu1 %v1548_v16  ;;  %423 = vmatmul.bf16.gmra.mxu2 %v1026_v58  ;;  %v1211_v58 = vld [vmem:[%s2057_s0 + $0x60] sm:$0xf]  ;;  %v1208_v32 = vor.u32 %v1390_v56, %v1205_v57 }
  0x34   :  { %559 = vmatpush.bf16.msrb.mxu2 %v1553_v17  ;;  %442 = vmatmul.bf16.gmra.mxu3 %v1030_v59  ;;  %v1393_v59 = vld [vmem:[%s2057_s0 + $0x70] sm:$0xf0] }
  0x35   :  { %578 = vmatpush.bf16.msrb.mxu3 %v1560_v18  ;;  %v1212_v33 = vor.u32 %v1393_v59, %v1211_v58 }
  0x36   :  { %594 = vmatpush.bf16.msra.mxu0 %v1493_v7 }
  0x37   :  { %541 = vmatpush.bf16.msrb.mxu1 %v1572_v20 }
  0x38   :  { %560 = vmatpush.bf16.msrb.mxu2 %v1577_v21 }
  0x39   :  { %579 = vmatpush.bf16.msrb.mxu3 %v1584_v22 }
  0x3a   :  { %595 = vmatpush.bf16.msra.mxu0 %v1517_v11 }
  0x3b   :  { %542 = vmatpush.bf16.msrb.mxu1 %v1596_v24 }
  0x3c   :  { %561 = vmatpush.bf16.msrb.mxu2 %v1601_v25 }
  0x3d   :  { %580 = vmatpush.bf16.msrb.mxu3 %v1608_v26 }
  0x3e   :  { %596 = vmatpush.bf16.msra.mxu0 %v1541_v15 }
  0x3f   :  { %543 = vmatpush.bf16.msrb.mxu1 %v1618_v28 }
  0x40   :  { %562 = vmatpush.bf16.msrb.mxu2 %v1623_v29 }
  0x41   :  { %581 = vmatpush.bf16.msrb.mxu3 %v1628_v30  ;;  %1179 = vmatmul.msk.bf16.vlgmr.msrb.gmra.mxu0 %vm365_vm0, %v1014_v36  ;;  %v1398_v36 = vld [vmem:[%s2057_s0 + $0x98] sm:$0xf0] }
  0x42   :  { %544 = vmatmul.bf16.vlgmr.msrb.gmra.mxu1 %v1196_v37  ;;  %597 = vmatpush.bf16.msra.mxu0 %v1565_v19  ;;  %v1269_v37 = vld [vmem:[%s2057_s0 + $0xc8] sm:$0xf] }
  0x43   :  { %616 = vmatpush.bf16.msra.mxu1 %v1670_v44  ;;  %563 = vmatmul.bf16.vlgmr.msrb.gmra.mxu2 %v1200_v38  ;;  %v1406_v38 = vld [vmem:[%s2057_s0 + $0xd8] sm:$0xf0] }
  0x44   :  { %704 = vmatpush.bf16.msra.mxu2 %v1454_v0  ;;  %582 = vmatmul.bf16.vlgmr.msrb.gmra.mxu3 %v1204_v39  ;;  %v1271_v39 = vld [vmem:[%s2057_s0 + $0xdc] sm:$0xf0] }
  0x45   :  { %723 = vmatpush.bf16.msra.mxu3 %v1459_v1 }
  0x46   :  { %598 = vmatpush.bf16.msra.mxu0 %v1589_v23 }
  0x47   :  { %617 = vmatpush.bf16.msra.mxu1 %v1679_v45 }
  0x48   :  { %705 = vmatpush.bf16.msra.mxu2 %v1476_v4 }
  0x49   :  { %724 = vmatpush.bf16.msra.mxu3 %v1481_v5 }
  0x4a   :  { %599 = vmatpush.bf16.msra.mxu0 %v1613_v27 }
  0x4b   :  { %618 = vmatpush.bf16.msra.mxu1 %v1688_v46 }
  0x4c   :  { %706 = vmatpush.bf16.msra.mxu2 %v1500_v8 }
  0x4d   :  { %725 = vmatpush.bf16.msra.mxu3 %v1505_v9 }
  0x4e   :  { %600 = vmatpush.bf16.msra.mxu0 %v1633_v31 }
  0x4f   :  { %619 = vmatpush.bf16.msra.mxu1 %v1721_v55 }
  0x50   :  { %707 = vmatpush.bf16.msra.mxu2 %v1524_v12 }
  0x51   :  { %726 = vmatpush.bf16.msra.mxu3 %v1529_v13  ;;  %1180 = vmatmul.msk.bf16.gmra.mxu0 %vm365_vm0, %v1034_v51 }
  0x52   :  { %549 = vmatmul.bf16.gmra.mxu1 %v1216_v52  ;;  %742 = vmatpush.bf16.msrb.mxu0 %v1464_v2 }
  0x53   :  { %761 = vmatpush.bf16.msrb.mxu1 %v1469_v3  ;;  %568 = vmatmul.bf16.gmra.mxu2 %v1220_v53 }
  0x54   :  { %708 = vmatpush.bf16.msra.mxu2 %v1548_v16  ;;  %587 = vmatmul.bf16.gmra.mxu3 %v1224_v54 }
  0x55   :  { %727 = vmatpush.bf16.msra.mxu3 %v1553_v17 }
  0x56   :  { %743 = vmatpush.bf16.msrb.mxu0 %v1488_v6 }
  0x57   :  { %762 = vmatpush.bf16.msrb.mxu1 %v1493_v7 }
  0x58   :  { %709 = vmatpush.bf16.msra.mxu2 %v1572_v20 }
  0x59   :  { %728 = vmatpush.bf16.msra.mxu3 %v1577_v21 }
  0x5a   :  { %744 = vmatpush.bf16.msrb.mxu0 %v1512_v10 }
  0x5b   :  { %763 = vmatpush.bf16.msrb.mxu1 %v1517_v11 }
  0x5c   :  { %710 = vmatpush.bf16.msra.mxu2 %v1596_v24 }
  0x5d   :  { %729 = vmatpush.bf16.msra.mxu3 %v1601_v25 }
  0x5e   :  { %745 = vmatpush.bf16.msrb.mxu0 %v1536_v14 }
  0x5f   :  { %764 = vmatpush.bf16.msrb.mxu1 %v1541_v15 }
  0x60   :  { %711 = vmatpush.bf16.msra.mxu2 %v1618_v28 }
  0x61   :  { %730 = vmatpush.bf16.msra.mxu3 %v1623_v29  ;;  %601 = vmatmul.bf16.vlgmr.msra.gmra.mxu0 %v1208_v32  ;;  %v1331_v32 = vld [vmem:[%s2057_s0 + $0x120] sm:$0xf] }
  0x62   :  { %1233 = vmatmul.msk.bf16.vlgmr.msra.gmra.mxu1 %vm365_vm0, %v1212_v33  ;;  %746 = vmatpush.bf16.msrb.mxu0 %v1560_v18  ;;  %v1417_v33 = vld [vmem:[%s2057_s0 + $0x130] sm:$0xf0] }
  0x63   :  { %712 = vmatmul.bf16.vlgmr.msra.gmra.mxu2 %v1250_v34  ;;  %765 = vmatpush.bf16.msrb.mxu1 %v1565_v19  ;;  %v1415_v34 = vld [vmem:[%s2057_s0 + $0x124] sm:$0xf] }
  0x64   :  { %784 = vmatpush.bf16.msrb.mxu2 %v1670_v44  ;;  %731 = vmatmul.bf16.vlgmr.msra.gmra.mxu3 %v1254_v35  ;;  %v1333_v35 = vld [vmem:[%s2057_s0 + $0x134] sm:$0xf0] }
  0x65   :  { %872 = vmatpush.bf16.msrb.mxu3 %v1454_v0  ;;  %v1395_v0 = vld [vmem:[%s2057_s0 + $0x84] sm:$0xf] }
  0x66   :  { %747 = vmatpush.bf16.msrb.mxu0 %v1584_v22 }
  0x67   :  { %766 = vmatpush.bf16.msrb.mxu1 %v1589_v23 }
  0x68   :  { %785 = vmatpush.bf16.msrb.mxu2 %v1679_v45 }
  0x69   :  { %873 = vmatpush.bf16.msrb.mxu3 %v1476_v4  ;;  %v1225_v4 = vld [vmem:[%s2057_s0 + $0x94] sm:$0xf0] }
  0x6a   :  { %748 = vmatpush.bf16.msrb.mxu0 %v1608_v26  ;;  %v1228_v40 = vor.u32 %v1395_v0, %v1225_v4  ;;  %v1339_v0 = vld [vmem:[%s2057_s0 + $0x128] sm:$0xf]  ;;  %v1418_v4 = vld [vmem:[%s2057_s0 + $0x138] sm:$0xf0] }
  0x6b   :  { %767 = vmatpush.bf16.msrb.mxu1 %v1613_v27 }
  0x6c   :  { %786 = vmatpush.bf16.msrb.mxu2 %v1688_v46 }
  0x6d   :  { %874 = vmatpush.bf16.msrb.mxu3 %v1500_v8  ;;  %v1231_v8 = vld [vmem:[%s2057_s0 + $0x88] sm:$0xf] }
  0x6e   :  { %v1232_v41 = vor.u32 %v1398_v36, %v1231_v8  ;;  %749 = vmatpush.bf16.msrb.mxu0 %v1628_v30 }
  0x6f   :  { %768 = vmatpush.bf16.msrb.mxu1 %v1633_v31 }
  0x70   :  { %787 = vmatpush.bf16.msrb.mxu2 %v1721_v55 }
  0x71   :  { %875 = vmatpush.bf16.msrb.mxu3 %v1524_v12  ;;  %v1270_v12 = vor.u32 %v1406_v38, %v1269_v37  ;;  %606 = vmatmul.bf16.gmra.mxu0 %v1228_v40  ;;  %v1328_v37 = vor.u32 %v1414_v62, %v1325_v63  ;;  %v1332_v38 = vor.u32 %v1417_v33, %v1331_v32 }
  0x72   :  { %891 = vmatpush.bf16.msra.mxu0 %v1459_v1  ;;  %1234 = vmatmul.msk.bf16.gmra.mxu1 %vm365_vm0, %v1232_v41  ;;  %v1257_v1 = vld [vmem:[%s2057_s0 + $0xa8] sm:$0xf]  ;;  %v1336_v41 = vor.u32 %v1415_v34, %v1333_v35 }
  0x73   :  { %717 = vmatmul.bf16.gmra.mxu2 %v1270_v12  ;;  %910 = vmatpush.bf16.msra.mxu1 %v1464_v2  ;;  %v1402_v2 = vld [vmem:[%s2057_s0 + $0xb8] sm:$0xf0]  ;;  %v1340_v12 = vor.u32 %v1418_v4, %v1339_v0 }
  0x74   :  { %929 = vmatpush.bf16.msra.mxu2 %v1469_v3  ;;  %v1404_v3 = vld [vmem:[%s2057_s0 + $0xcc] sm:$0xf] }
  0x75   :  { %v1274_v42 = vor.u32 %v1404_v3, %v1271_v39  ;;  %876 = vmatpush.bf16.msrb.mxu3 %v1548_v16  ;;  %v1258_v16 = vor.u32 %v1402_v2, %v1257_v1 }
  0x76   :  { %892 = vmatpush.bf16.msra.mxu0 %v1481_v5  ;;  %v1400_v5 = vld [vmem:[%s2057_s0 + $0xac] sm:$0xf] }
  0x77   :  { %736 = vmatmul.bf16.gmra.mxu3 %v1274_v42  ;;  %911 = vmatpush.bf16.msra.mxu1 %v1488_v6  ;;  %v1259_v6 = vld [vmem:[%s2057_s0 + $0xbc] sm:$0xf0] }
  0x78   :  { %930 = vmatpush.bf16.msra.mxu2 %v1493_v7  ;;  %v1265_v7 = vld [vmem:[%s2057_s0 + $0xb0] sm:$0xf] }
  0x79   :  { %877 = vmatpush.bf16.msrb.mxu3 %v1572_v20  ;;  %v1262_v20 = vor.u32 %v1400_v5, %v1259_v6 }
  0x7a   :  { %893 = vmatpush.bf16.msra.mxu0 %v1505_v9  ;;  %v1403_v9 = vld [vmem:[%s2057_s0 + $0xc0] sm:$0xf0] }
  0x7b   :  { %912 = vmatpush.bf16.msra.mxu1 %v1512_v10  ;;  %v1277_v10 = vld [vmem:[%s2057_s0 + $0xd0] sm:$0xf] }
  0x7c   :  { %931 = vmatpush.bf16.msra.mxu2 %v1517_v11  ;;  %v1303_v11 = vld [vmem:[%s2057_s0 + $0xf0] sm:$0xf] }
  0x7d   :  { %878 = vmatpush.bf16.msrb.mxu3 %v1596_v24  ;;  %v1266_v24 = vor.u32 %v1403_v9, %v1265_v7 }
  0x7e   :  { %894 = vmatpush.bf16.msra.mxu0 %v1529_v13  ;;  %v1407_v13 = vld [vmem:[%s2057_s0 + $0xe0] sm:$0xf0] }
  0x7f   :  { %913 = vmatpush.bf16.msra.mxu1 %v1536_v14  ;;  %v1405_v14 = vld [vmem:[%s2057_s0 + $0xd4] sm:$0xf] }
  0x80   :  { %932 = vmatpush.bf16.msra.mxu2 %v1541_v15  ;;  %v1411_v15 = vld [vmem:[%s2057_s0 + $0x100] sm:$0xf0] }
  0x81   :  { %879 = vmatpush.bf16.msrb.mxu3 %v1618_v28  ;;  %v1304_v28 = vor.u32 %v1411_v15, %v1303_v11  ;;  %750 = vmatmul.bf16.vlgmr.msrb.gmra.mxu0 %v1258_v16 }
  0x82   :  { %895 = vmatpush.bf16.msra.mxu0 %v1553_v17  ;;  %769 = vmatmul.bf16.vlgmr.msrb.gmra.mxu1 %v1262_v20  ;;  %v1279_v17 = vld [vmem:[%s2057_s0 + $0xe4] sm:$0xf0] }
  0x83   :  { %1287 = vmatmul.msk.bf16.vlgmr.msrb.gmra.mxu2 %vm365_vm0, %v1266_v24  ;;  %914 = vmatpush.bf16.msra.mxu1 %v1560_v18  ;;  %v1285_v18 = vld [vmem:[%s2057_s0 + $0xd8] sm:$0xf] }
  0x84   :  { %933 = vmatpush.bf16.msra.mxu2 %v1565_v19  ;;  %v1408_v19 = vld [vmem:[%s2057_s0 + $0xe8] sm:$0xf0] }
  0x85   :  { %952 = vmatpush.bf16.msra.mxu3 %v1670_v44 }
  0x86   :  { %896 = vmatpush.bf16.msra.mxu0 %v1577_v21  ;;  %v1323_v21 = vld [vmem:[%s2057_s0 + $0x118] sm:$0xf] }
  0x87   :  { %880 = vmatmul.bf16.vlgmr.msrb.gmra.mxu3 %v1304_v28  ;;  %915 = vmatpush.bf16.msra.mxu1 %v1584_v22  ;;  %v1416_v22 = vld [vmem:[%s2057_s0 + $0x128] sm:$0xf0] }
  0x88   :  { %934 = vmatpush.bf16.msra.mxu2 %v1589_v23  ;;  %v1278_v23 = vor.u32 %v1407_v13, %v1277_v10  ;;  %v1324_v44 = vor.u32 %v1416_v22, %v1323_v21 }
  0x89   :  { %953 = vmatpush.bf16.msra.mxu3 %v1679_v45  ;;  %v1409_v45 = vld [vmem:[%s2057_s0 + $0xf4] sm:$0xf] }
  0x8a   :  { %897 = vmatpush.bf16.msra.mxu0 %v1601_v25  ;;  %v1282_v25 = vor.u32 %v1405_v14, %v1279_v17 }
  0x8b   :  { %916 = vmatpush.bf16.msra.mxu1 %v1608_v26  ;;  %v1305_v26 = vld [vmem:[%s2057_s0 + $0x104] sm:$0xf0] }
  0x8c   :  { %935 = vmatpush.bf16.msra.mxu2 %v1613_v27  ;;  %v1286_v27 = vor.u32 %v1408_v19, %v1285_v18  ;;  %v1308_v47 = vor.u32 %v1409_v45, %v1305_v26 }
  0x8d   :  { %954 = vmatpush.bf16.msra.mxu3 %v1688_v46  ;;  %v1313_v46 = vld [vmem:[%s2057_s0 + $0x10c] sm:$0xf0] }
  0x8e   :  { %898 = vmatpush.bf16.msra.mxu0 %v1623_v29  ;;  %v1311_v29 = vld [vmem:[%s2057_s0 + $0xf8] sm:$0xf] }
  0x8f   :  { %917 = vmatpush.bf16.msra.mxu1 %v1628_v30  ;;  %v1412_v30 = vld [vmem:[%s2057_s0 + $0x108] sm:$0xf0] }
  0x90   :  { %936 = vmatpush.bf16.msra.mxu2 %v1633_v31  ;;  %v1410_v31 = vld [vmem:[%s2057_s0 + $0xfc] sm:$0xf]  ;;  %v1312_v48 = vor.u32 %v1412_v30, %v1311_v29 }
  0x91   :  { %955 = vmatpush.bf16.msra.mxu3 %v1721_v55  ;;  %755 = vmatmul.bf16.gmra.mxu0 %v1278_v23  ;;  %v1319_v55 = vld [vmem:[%s2057_s0 + $0x100] sm:$0xf]  ;;  %v1316_v51 = vor.u32 %v1410_v31, %v1313_v46 }
  0x92   :  { %774 = vmatmul.bf16.gmra.mxu1 %v1282_v25  ;;  %v1320_v52 = vor.u32 %v1413_v43, %v1319_v55 }
  0x93   :  { %1288 = vmatmul.msk.bf16.gmra.mxu2 %vm365_vm0, %v1286_v27 }
  0x97   :  { %885 = vmatmul.bf16.gmra.mxu3 %v1324_v44 }
  0x9e   :  { %v381_v49 = vpop.f32.mrf.mxu0 }
  0x9f   :  { %v400_v50 = vpop.f32.mrf.mxu1 }
  0xa0   :  { %v401_v53 = vadd.f32 %v400_v50, %v381_v49 }
  0xa1   :  { %899 = vmatmul.bf16.vlgmr.msra.gmra.mxu0 %v1308_v47 }
  0xa2   :  { %918 = vmatmul.bf16.vlgmr.msra.gmra.mxu1 %v1312_v48 }
  0xa3   :  { %937 = vmatmul.bf16.vlgmr.msra.gmra.mxu2 %v1316_v51 }
  0xa6   :  { %v419_v54 = vpop.f32.mrf.mxu2  ;;  %v383_v58 = vpop.f32.mrf.mxu0 }
  0xa7   :  { %1341 = vmatmul.msk.bf16.vlgmr.msra.gmra.mxu3 %vm365_vm0, %v1320_v52  ;;  %v438_v56 = vpop.f32.mrf.mxu3  ;;  %v420_v57 = vadd.f32 %v419_v54, %v401_v53  ;;  %v402_v59 = vpop.f32.mrf.mxu1 }
  0xa8   :  { %v403_v60 = vadd.f32 %v402_v59, %v383_v58 }
  0xa9   :  { %v439_v61 = vadd.f32 %v438_v56, %v420_v57 }
  0xae   :  { %v421_v8 = vpop.f32.mrf.mxu2  ;;  %v386_v39 = vpop.f32.mrf.mxu0 }
  0xaf   :  { %v440_v36 = vpop.f32.mrf.mxu3  ;;  %v422_v3 = vadd.f32 %v421_v8, %v403_v60  ;;  %v405_v40 = vpop.f32.mrf.mxu1 }
  0xb0   :  { %v406_v42 = vadd.f32 %v405_v40, %v386_v39 }
  0xb1   :  { %v441_v1 = vadd.f32 %v440_v36, %v422_v3  ;;  %904 = vmatmul.bf16.gmra.mxu0 %v1328_v37 }
  0xb2   :  { %923 = vmatmul.bf16.gmra.mxu1 %v1332_v38 }
  0xb3   :  { %942 = vmatmul.bf16.gmra.mxu2 %v1336_v41 }
  0xb6   :  { %v424_v2 = vpop.f32.mrf.mxu2  ;;  %v388_v7 = vpop.f32.mrf.mxu0 }
  0xb7   :  { %1342 = vmatmul.msk.bf16.gmra.mxu3 %vm365_vm0, %v1340_v12  ;;  %v443_v5 = vpop.f32.mrf.mxu3  ;;  %v425_v6 = vadd.f32 %v424_v2, %v406_v42  ;;  %v407_v9 = vpop.f32.mrf.mxu1 }
  0xb8   :  { %v408_v11 = vadd.f32 %v407_v9, %v388_v7 }
  0xb9   :  { %v444_v15 = vadd.f32 %v443_v5, %v425_v6 }
  0xbe   :  { %v426_v16 = vpop.f32.mrf.mxu2  ;;  %v457_v28 = vpop.f32.mrf.mxu0 }
  0xbf   :  { %v445_v20 = vpop.f32.mrf.mxu3  ;;  %v427_v24 = vadd.f32 %v426_v16, %v408_v11  ;;  %v545_v10 = vpop.f32.mrf.mxu1  ;;  %v2023_v13 = vadd.f32 %v457_v28, %v439_v61 }
  0xc1   :  { %v446_v14 = vadd.f32 %v445_v20, %v427_v24 }
  0xc6   :  { %v564_v17 = vpop.f32.mrf.mxu2  ;;  %v459_v21 = vpop.f32.mrf.mxu0 }
  0xc7   :  { %v583_v18 = vpop.f32.mrf.mxu3  ;;  %v565_v19 = vadd.f32 %v564_v17, %v545_v10  ;;  %v547_v22 = vpop.f32.mrf.mxu1  ;;  %v2025_v23 = vadd.f32 %v459_v21, %v441_v1 }
  0xc9   :  { %v584_v25 = vadd.f32 %v583_v18, %v565_v19 }
  0xce   :  { %v566_v27 = vpop.f32.mrf.mxu2  ;;  %v462_v26 = vpop.f32.mrf.mxu0 }
  0xcf   :  { %v585_v44 = vpop.f32.mrf.mxu3  ;;  %v567_v45 = vadd.f32 %v566_v27, %v547_v22  ;;  %v550_v29 = vpop.f32.mrf.mxu1  ;;  %v2027_v30 = vadd.f32 %v462_v26, %v444_v15 }
  0xd1   :  { %v586_v31 = vadd.f32 %v585_v44, %v567_v45 }
  0xd6   :  { %v569_v46 = vpop.f32.mrf.mxu2  ;;  %v464_v47 = vpop.f32.mrf.mxu0 }
  0xd7   :  { %v588_v55 = vpop.f32.mrf.mxu3  ;;  %v570_v43 = vadd.f32 %v569_v46, %v550_v29  ;;  %v552_v48 = vpop.f32.mrf.mxu1  ;;  %v2029_v49 = vadd.f32 %v464_v47, %v446_v14 }
  0xd9   :  { %v589_v50 = vadd.f32 %v588_v55, %v570_v43 }
  0xde   :  { %v571_v51 = vpop.f32.mrf.mxu2  ;;  %v602_v54 = vpop.f32.mrf.mxu0 }
  0xdf   :  { %v590_v52 = vpop.f32.mrf.mxu3  ;;  %v572_v53 = vadd.f32 %v571_v51, %v552_v48  ;;  %v621_v56 = vpop.f32.mrf.mxu1  ;;  %v603_v57 = vadd.f32 %v602_v54, %v584_v25 }
  0xe1   :  { %v591_v58 = vadd.f32 %v590_v52, %v572_v53  ;;  %v622_v59 = vadd.f32 %v621_v56, %v603_v57 }
  0xe3   :  { %v631_v60 = vmax.f32 %v2023_v13, %v622_v59 }
  0xe6   :  { %v713_v61 = vpop.f32.mrf.mxu2  ;;  %v604_v32 = vpop.f32.mrf.mxu0 }
  0xe7   :  { %v732_v62 = vpop.f32.mrf.mxu3  ;;  %v623_v33 = vpop.f32.mrf.mxu1  ;;  %v605_v34 = vadd.f32 %v604_v32, %v586_v31 }
  0xe8   :  { %v733_v63 = vadd.f32 %v732_v62, %v713_v61 }
  0xe9   :  { %v2032_v35 = vadd.f32 %v623_v33, %v605_v34 }
  0xeb   :  { %v632_v0 = vmax.f32 %v2025_v23, %v2032_v35 }
  0xee   :  { %v715_v4 = vpop.f32.mrf.mxu2  ;;  %v607_v36 = vpop.f32.mrf.mxu0 }
  0xef   :  { %v734_v8 = vpop.f32.mrf.mxu3  ;;  %v626_v37 = vpop.f32.mrf.mxu1  ;;  %v608_v38 = vadd.f32 %v607_v36, %v589_v50  ;;  %v1430_v36 = vld [vmem:[%s2058_s2] ss:$0 sm:$0xff] }
  0xf0   :  { %v735_v50 = vadd.f32 %v734_v8, %v715_v4 }
  0xf1   :  { %v627_v3 = vadd.f32 %v626_v37, %v608_v38 }
  0xf3   :  { %v633_v39 = vmax.f32 %v2027_v30, %v627_v3 }
  0xf6   :  { %v718_v40 = vpop.f32.mrf.mxu2  ;;  %v609_v42 = vpop.f32.mrf.mxu0 }
  0xf7   :  { %v628_v1 = vpop.f32.mrf.mxu1  ;;  %v610_v2 = vadd.f32 %v609_v42, %v591_v58 }
  0xf9   :  { %v2037_v5 = vadd.f32 %v628_v1, %v610_v2 }
  0xfa   :  { %v737_v41 = vpop.f32.mrf.mxu3 }
  0xfb   :  { %v738_v12 = vadd.f32 %v737_v41, %v718_v40  ;;  %v634_v6 = vmax.f32 %v2029_v49, %v2037_v5 }
  0xfe   :  { %v720_v7 = vpop.f32.mrf.mxu2  ;;  %v751_v11 = vpop.f32.mrf.mxu0 }
  0xff   :  { %v770_v15 = vpop.f32.mrf.mxu1  ;;  %v752_v16 = vadd.f32 %v751_v11, %v733_v63 }
 0x101   :  { %v771_v20 = vadd.f32 %v770_v15, %v752_v16 }
 0x102   :  { %v739_v9 = vpop.f32.mrf.mxu3 }
 0x106   :  { %v789_v24 = vpop.f32.mrf.mxu2  ;;  %v753_v13 = vpop.f32.mrf.mxu0 }
 0x107   :  { %v790_v10 = vadd.f32 %v789_v24, %v771_v20  ;;  %v772_v14 = vpop.f32.mrf.mxu1  ;;  %v754_v54 = vadd.f32 %v753_v13, %v735_v50 }
 0x109   :  { %v799_v17 = vmax.f32 %v631_v60, %v790_v10  ;;  %v773_v60 = vadd.f32 %v772_v14, %v754_v54 }
 0x10a   :  { %v881_v28 = vpop.f32.mrf.mxu3 }
 0x10e   :  { %v791_v18 = vpop.f32.mrf.mxu2  ;;  %v756_v21 = vpop.f32.mrf.mxu0 }
 0x10f   :  { %v775_v22 = vpop.f32.mrf.mxu1  ;;  %v757_v25 = vadd.f32 %v756_v21, %v738_v12  ;;  %v792_v62 = vadd.f32 %v791_v18, %v773_v60  ;;  %v740_v12 = vadd.f32 %v739_v9, %v720_v7 }
 0x111   :  { %v776_v27 = vadd.f32 %v775_v22, %v757_v25  ;;  %v800_v37 = vmax.f32 %v632_v0, %v792_v62 }
 0x112   :  { %v883_v19 = vpop.f32.mrf.mxu3 }
 0x116   :  { %v794_v44 = vpop.f32.mrf.mxu2  ;;  %v758_v29 = vpop.f32.mrf.mxu0 }
 0x117   :  { %v795_v26 = vadd.f32 %v794_v44, %v776_v27  ;;  %v777_v30 = vpop.f32.mrf.mxu1  ;;  %v759_v15 = vadd.f32 %v758_v29, %v740_v12 }
 0x119   :  { %v801_v31 = vmax.f32 %v633_v39, %v795_v26  ;;  %v778_v14 = vadd.f32 %v777_v30, %v759_v15 }
 0x11a   :  { %v886_v45 = vpop.f32.mrf.mxu3 }
 0x11e   :  { %v796_v46 = vpop.f32.mrf.mxu2  ;;  %v900_v43 = vpop.f32.mrf.mxu0 }
 0x11f   :  { %v919_v47 = vpop.f32.mrf.mxu1  ;;  %v901_v48 = vadd.f32 %v900_v43, %v881_v28  ;;  %v797_v0 = vadd.f32 %v796_v46, %v778_v14 }
 0x121   :  { %v920_v51 = vadd.f32 %v919_v47, %v901_v48  ;;  %v802_v21 = vmax.f32 %v634_v6, %v797_v0 }
 0x122   :  { %v888_v55 = vpop.f32.mrf.mxu3 }
 0x126   :  { %v938_v52 = vpop.f32.mrf.mxu2  ;;  %v902_v57 = vpop.f32.mrf.mxu0 }
 0x127   :  { %v939_v56 = vadd.f32 %v938_v52, %v920_v51  ;;  %v921_v58 = vpop.f32.mrf.mxu1  ;;  %v903_v59 = vadd.f32 %v902_v57, %v883_v19 }
 0x129   :  { %v922_v63 = vadd.f32 %v921_v58, %v903_v59 }
 0x12a   :  { %v957_v53 = vpop.f32.mrf.mxu3 }
 0x12b   :  { %v958_v61 = vadd.f32 %v957_v53, %v939_v56 }
 0x12d   :  { %v967_v34 = vmax.f32 %v799_v17, %v958_v61 }
 0x12e   :  { %v940_v32 = vpop.f32.mrf.mxu2  ;;  %v905_v8 = vpop.f32.mrf.mxu0 }
 0x12f   :  { %v941_v4 = vadd.f32 %v940_v32, %v922_v63  ;;  %v906_v3 = vadd.f32 %v905_v8, %v886_v45  ;;  %v924_v39 = vpop.f32.mrf.mxu1  ;;  %v975_v40 = vadd.f32 %v1430_v36, %v967_v34 }
 0x131   :  { %v925_v1 = vadd.f32 %v924_v39, %v906_v3  ;;  %v979_v16 = vmax.f32 %v975_v40, 0.0 }
 0x132   :  { %v959_v33 = vpop.f32.mrf.mxu3 }
 0x133   :  { %v960_v38 = vadd.f32 %v959_v33, %v941_v4 }
 0x135   :  { %v968_v41 = vmax.f32 %v800_v37, %v960_v38 }
 0x136   :  { %v943_v2 = vpop.f32.mrf.mxu2  ;;  %v907_v28 = vpop.f32.mrf.mxu0 }
 0x137   :  { %v976_v42 = vadd.f32 %v1430_v36, %v968_v41  ;;  %v944_v24 = vadd.f32 %v943_v2, %v925_v1  ;;  %v908_v13 = vadd.f32 %v907_v28, %v888_v55  ;;  %v926_v35 = vpop.f32.mrf.mxu1 }
 0x139   :  { %v980_v20 = vmax.f32 %v976_v42, 0.0  ;;  %v927_v7 = vadd.f32 %v926_v35, %v908_v13 }
 0x13a   :  { %v962_v11 = vpop.f32.mrf.mxu3 }
 0x13b   :  { %v1422_v10 = vpack.c.bf16 %v980_v20, %v979_v16  ;;  %v963_v23 = vadd.f32 %v962_v11, %v944_v24 }
 0x13d   :  { %1423 = vst [vmem:[%s2059_s3] sm:$0xff] %v1422_v10   ;;  %v969_v17 = vmax.f32 %v801_v31, %v963_v23 }
 0x13e   :  { %v945_v9 = vpop.f32.mrf.mxu2 }
 0x13f   :  { %v946_v18 = vadd.f32 %v945_v9, %v927_v7  ;;  %v977_v25 = vadd.f32 %v1430_v36, %v969_v17 }
 0x141   :  { %v981_v45 = vmax.f32 %v977_v25, 0.0 }
 0x142   :  { %v964_v19 = vpop.f32.mrf.mxu3 }
 0x143   :  { %v965_v22 = vadd.f32 %v964_v19, %v946_v18 }
 0x145   :  { %v970_v27 = vmax.f32 %v802_v21, %v965_v22 }
 0x147   :  { %v978_v44 = vadd.f32 %v1430_v36, %v970_v27 }
 0x149   :  { %v982_v26 = vmax.f32 %v978_v44, 0.0 }
 0x14b   :  { %v1427_v29 = vpack.c.bf16 %v982_v26, %v981_v45 }
 0x14d   :  { %1429 = vst [vmem:[%s2059_s3 + $0x8] sm:$0xff] %v1427_v29  }

// kernel: autoencoder_forward.8
= control target key start
LH: loop header
LB: loop body
LE: loop exit
PB: predicated region body
PF: predicated region fallthrough
CT: control target
= control target key end

     0   :  { %s2952_s1 = inlined_call_operand.vmem [shape: bf16[1152,256], index: 1, kind: input, shape index: {}]   ;;  %s2953_s0 = inlined_call_operand.vmem [shape: bf16[1,16,1152], index: 0, kind: input, shape index: {}]   ;;  %s2954_s2 = inlined_call_operand.vmem [shape: f32[1,256], index: 2, kind: input, shape index: {}]   ;;  %s2955_s3 = inlined_call_operand.vmem [shape: bf16[16,256], index: 3, kind: output, shape index: {}]  }
   0x1   :  { %v1298_v0 = vld [vmem:[%s2952_s1 + $0x70] sm:$0xf]  ;;  %v1840_v1 = vld [vmem:[%s2952_s1 + $0x74] sm:$0xf0]  ;;  %v1290_v11 = vld [vmem:[%s2952_s1 + $0x60] sm:$0xf] }
   0x2   :  { %v1362_v2 = vld [vmem:[%s2952_s1 + $0xf0] sm:$0xf]  ;;  %v1299_v3 = vor.u32 %v1840_v1, %v1298_v0  ;;  %v1856_v4 = vld [vmem:[%s2952_s1 + $0xf4] sm:$0xf0]  ;;  %v1838_v13 = vld [vmem:[%s2952_s1 + $0x64] sm:$0xf0] }
   0x3   :  { %v1426_v5 = vld [vmem:[%s2952_s1 + $0x170] sm:$0xf]  ;;  %v1872_v6 = vld [vmem:[%s2952_s1 + $0x174] sm:$0xf0]  ;;  %v1363_v7 = vor.u32 %v1856_v4, %v1362_v2  ;;  %v1354_v14 = vld [vmem:[%s2952_s1 + $0xe0] sm:$0xf]  ;;  %v1291_v16 = vor.u32 %v1838_v13, %v1290_v11 }
   0x4   :  { %v1427_v8 = vor.u32 %v1872_v6, %v1426_v5  ;;  %v1490_v9 = vld [vmem:[%s2952_s1 + $0x1f0] sm:$0xf]  ;;  %v1888_v10 = vld [vmem:[%s2952_s1 + $0x1f4] sm:$0xf0]  ;;  %940 = vmatpush.bf16.msra.mxu0 %v1299_v3  ;;  %v1854_v15 = vld [vmem:[%s2952_s1 + $0xe4] sm:$0xf0] }
   0x5   :  { %v1491_v12 = vor.u32 %v1888_v10, %v1490_v9  ;;  %954 = vmatpush.bf16.msra.mxu1 %v1363_v7  ;;  %v1355_v17 = vor.u32 %v1854_v15, %v1354_v14  ;;  %v1418_v18 = vld [vmem:[%s2952_s1 + $0x160] sm:$0xf]  ;;  %v1870_v19 = vld [vmem:[%s2952_s1 + $0x164] sm:$0xf0]  ;;  %v1282_v23 = vld [vmem:[%s2952_s1 + $0x50] sm:$0xf] }
   0x6   :  { %968 = vmatpush.bf16.msra.mxu2 %v1427_v8  ;;  %v1482_v20 = vld [vmem:[%s2952_s1 + $0x1e0] sm:$0xf]  ;;  %v1419_v21 = vor.u32 %v1870_v19, %v1418_v18  ;;  %v1886_v22 = vld [vmem:[%s2952_s1 + $0x1e4] sm:$0xf0]  ;;  %v1836_v24 = vld [vmem:[%s2952_s1 + $0x54] sm:$0xf0] }
   0x7   :  { %982 = vmatpush.bf16.msra.mxu3 %v1491_v12  ;;  %v1483_v25 = vor.u32 %v1886_v22, %v1482_v20  ;;  %v1346_v26 = vld [vmem:[%s2952_s1 + $0xd0] sm:$0xf]  ;;  %v1852_v27 = vld [vmem:[%s2952_s1 + $0xd4] sm:$0xf0]  ;;  %v1283_v29 = vor.u32 %v1836_v24, %v1282_v23  ;;  %v1274_v35 = vld [vmem:[%s2952_s1 + $0x40] sm:$0xf] }
   0x8   :  { %v1410_v28 = vld [vmem:[%s2952_s1 + $0x150] sm:$0xf]  ;;  %941 = vmatpush.bf16.msra.mxu0 %v1291_v16  ;;  %v1868_v30 = vld [vmem:[%s2952_s1 + $0x154] sm:$0xf0]  ;;  %v1347_v33 = vor.u32 %v1852_v27, %v1346_v26  ;;  %v1834_v36 = vld [vmem:[%s2952_s1 + $0x44] sm:$0xf0] }
   0x9   :  { %v1474_v31 = vld [vmem:[%s2952_s1 + $0x1d0] sm:$0xf]  ;;  %v1884_v32 = vld [vmem:[%s2952_s1 + $0x1d4] sm:$0xf0]  ;;  %955 = vmatpush.bf16.msra.mxu1 %v1355_v17  ;;  %v1411_v34 = vor.u32 %v1868_v30, %v1410_v28  ;;  %v1338_v37 = vld [vmem:[%s2952_s1 + $0xc0] sm:$0xf]  ;;  %v1275_v44 = vor.u32 %v1834_v36, %v1274_v35 }
   0xa   :  { %969 = vmatpush.bf16.msra.mxu2 %v1419_v21  ;;  %v1475_v38 = vor.u32 %v1884_v32, %v1474_v31  ;;  %v1850_v39 = vld [vmem:[%s2952_s1 + $0xc4] sm:$0xf0]  ;;  %v1402_v40 = vld [vmem:[%s2952_s1 + $0x140] sm:$0xf]  ;;  %v1266_v47 = vld [vmem:[%s2952_s1 + $0x30] sm:$0xf] }
   0xb   :  { %983 = vmatpush.bf16.msra.mxu3 %v1483_v25  ;;  %v1866_v41 = vld [vmem:[%s2952_s1 + $0x144] sm:$0xf0]  ;;  %v1466_v42 = vld [vmem:[%s2952_s1 + $0x1c0] sm:$0xf]  ;;  %v1339_v45 = vor.u32 %v1850_v39, %v1338_v37  ;;  %v1832_v48 = vld [vmem:[%s2952_s1 + $0x34] sm:$0xf0] }
   0xc   :  { %v1882_v43 = vld [vmem:[%s2952_s1 + $0x1c4] sm:$0xf0]  ;;  %942 = vmatpush.bf16.msra.mxu0 %v1283_v29  ;;  %v1403_v46 = vor.u32 %v1866_v41, %v1402_v40  ;;  %v1330_v49 = vld [vmem:[%s2952_s1 + $0xb0] sm:$0xf]  ;;  %v1848_v51 = vld [vmem:[%s2952_s1 + $0xb4] sm:$0xf0]  ;;  %v1267_v56 = vor.u32 %v1832_v48, %v1266_v47 }
   0xd   :  { %956 = vmatpush.bf16.msra.mxu1 %v1347_v33  ;;  %v1467_v50 = vor.u32 %v1882_v43, %v1466_v42  ;;  %v1394_v52 = vld [vmem:[%s2952_s1 + $0x130] sm:$0xf]  ;;  %v1864_v53 = vld [vmem:[%s2952_s1 + $0x134] sm:$0xf0]  ;;  %v1331_v57 = vor.u32 %v1848_v51, %v1330_v49  ;;  %v1258_v59 = vld [vmem:[%s2952_s1 + $0x20] sm:$0xf] }
   0xe   :  { %970 = vmatpush.bf16.msra.mxu2 %v1411_v34  ;;  %v1458_v54 = vld [vmem:[%s2952_s1 + $0x1b0] sm:$0xf]  ;;  %v1880_v55 = vld [vmem:[%s2952_s1 + $0x1b4] sm:$0xf0]  ;;  %v1395_v58 = vor.u32 %v1864_v53, %v1394_v52  ;;  %v1830_v60 = vld [vmem:[%s2952_s1 + $0x24] sm:$0xf0] }
   0xf   :  { %984 = vmatpush.bf16.msra.mxu3 %v1475_v38  ;;  %v1322_v61 = vld [vmem:[%s2952_s1 + $0xa0] sm:$0xf]  ;;  %v1459_v62 = vor.u32 %v1880_v55, %v1458_v54  ;;  %v1846_v63 = vld [vmem:[%s2952_s1 + $0xa4] sm:$0xf0]  ;;  %v1259_v4 = vor.u32 %v1830_v60, %v1258_v59  ;;  %v1250_v7 = vld [vmem:[%s2952_s1 + $0x10] sm:$0xf] }
  0x10   :  { %943 = vmatpush.bf16.msra.mxu0 %v1275_v44  ;;  %v1386_v0 = vld [vmem:[%s2952_s1 + $0x120] sm:$0xf]  ;;  %v1862_v1 = vld [vmem:[%s2952_s1 + $0x124] sm:$0xf0]  ;;  %v1323_v5 = vor.u32 %v1846_v63, %v1322_v61  ;;  %v1828_v8 = vld [vmem:[%s2952_s1 + $0x14] sm:$0xf0] }
  0x11   :  { %957 = vmatpush.bf16.msra.mxu1 %v1339_v45  ;;  %v1450_v2 = vld [vmem:[%s2952_s1 + $0x1a0] sm:$0xf]  ;;  %v1878_v3 = vld [vmem:[%s2952_s1 + $0x1a4] sm:$0xf0]  ;;  %v1387_v6 = vor.u32 %v1862_v1, %v1386_v0  ;;  %v1314_v9 = vld [vmem:[%s2952_s1 + $0x90] sm:$0xf]  ;;  %v1251_v16 = vor.u32 %v1828_v8, %v1250_v7 }
  0x12   :  { %971 = vmatpush.bf16.msra.mxu2 %v1403_v46  ;;  %v1451_v10 = vor.u32 %v1878_v3, %v1450_v2  ;;  %v1844_v11 = vld [vmem:[%s2952_s1 + $0x94] sm:$0xf0]  ;;  %v1378_v12 = vld [vmem:[%s2952_s1 + $0x110] sm:$0xf]  ;;  %v1242_v17 = vld [vmem:[%s2952_s1] sm:$0xf] }
  0x13   :  { %985 = vmatpush.bf16.msra.mxu3 %v1467_v50  ;;  %v1860_v13 = vld [vmem:[%s2952_s1 + $0x114] sm:$0xf0]  ;;  %v1442_v14 = vld [vmem:[%s2952_s1 + $0x190] sm:$0xf]  ;;  %v1826_v18 = vld [vmem:[%s2952_s1 + $0x4] sm:$0xf0]  ;;  %v1315_v19 = vor.u32 %v1844_v11, %v1314_v9 }
  0x14   :  { %944 = vmatpush.bf16.msra.mxu0 %v1267_v56  ;;  %v1876_v15 = vld [vmem:[%s2952_s1 + $0x194] sm:$0xf0]  ;;  %v1379_v20 = vor.u32 %v1860_v13, %v1378_v12  ;;  %v1306_v21 = vld [vmem:[%s2952_s1 + $0x80] sm:$0xf]  ;;  %v1842_v22 = vld [vmem:[%s2952_s1 + $0x84] sm:$0xf0]  ;;  %v1243_v31 = vor.u32 %v1826_v18, %v1242_v17 }
  0x15   :  { %958 = vmatpush.bf16.msra.mxu1 %v1331_v57  ;;  %v1370_v23 = vld [vmem:[%s2952_s1 + $0x100] sm:$0xf]  ;;  %v1443_v24 = vor.u32 %v1876_v15, %v1442_v14  ;;  %v1858_v25 = vld [vmem:[%s2952_s1 + $0x104] sm:$0xf0]  ;;  %v1554_v26 = vld [vmem:[%s2952_s1 + $0x270] sm:$0xf]  ;;  %v1307_v35 = vor.u32 %v1842_v22, %v1306_v21 }
  0x16   :  { %972 = vmatpush.bf16.msra.mxu2 %v1395_v58  ;;  %v1904_v27 = vld [vmem:[%s2952_s1 + $0x274] sm:$0xf0]  ;;  %v1618_v28 = vld [vmem:[%s2952_s1 + $0x2f0] sm:$0xf]  ;;  %v1434_v33 = vld [vmem:[%s2952_s1 + $0x180] sm:$0xf]  ;;  %v1371_v36 = vor.u32 %v1858_v25, %v1370_v23 }
  0x17   :  { %986 = vmatpush.bf16.msra.mxu3 %v1459_v62  ;;  %v1920_v29 = vld [vmem:[%s2952_s1 + $0x2f4] sm:$0xf0]  ;;  %v1682_v30 = vld [vmem:[%s2952_s1 + $0x370] sm:$0xf]  ;;  %v1874_v34 = vld [vmem:[%s2952_s1 + $0x184] sm:$0xf0]  ;;  %v1555_v39 = vor.u32 %v1904_v27, %v1554_v26 }
  0x18   :  { %945 = vmatpush.bf16.msra.mxu0 %v1259_v4  ;;  %v1936_v32 = vld [vmem:[%s2952_s1 + $0x374] sm:$0xf0]  ;;  %v1746_v37 = vld [vmem:[%s2952_s1 + $0x3f0] sm:$0xf]  ;;  %v1619_v40 = vor.u32 %v1920_v29, %v1618_v28  ;;  %v1546_v41 = vld [vmem:[%s2952_s1 + $0x260] sm:$0xf]  ;;  %v1435_v44 = vor.u32 %v1874_v34, %v1434_v33 }
  0x19   :  { %959 = vmatpush.bf16.msra.mxu1 %v1323_v5  ;;  %v1952_v38 = vld [vmem:[%s2952_s1 + $0x3f4] sm:$0xf0]  ;;  %v1902_v42 = vld [vmem:[%s2952_s1 + $0x264] sm:$0xf0]  ;;  %v1683_v43 = vor.u32 %v1936_v32, %v1682_v30  ;;  %v1610_v45 = vld [vmem:[%s2952_s1 + $0x2e0] sm:$0xf] }
  0x1a   :  { %973 = vmatpush.bf16.msra.mxu2 %v1387_v6  ;;  %v1918_v46 = vld [vmem:[%s2952_s1 + $0x2e4] sm:$0xf0]  ;;  %v1674_v47 = vld [vmem:[%s2952_s1 + $0x360] sm:$0xf]  ;;  %v1747_v48 = vor.u32 %v1952_v38, %v1746_v37  ;;  %v1538_v52 = vld [vmem:[%s2952_s1 + $0x250] sm:$0xf]  ;;  %v1547_v56 = vor.u32 %v1902_v42, %v1546_v41 }
  0x1b   :  { %987 = vmatpush.bf16.msra.mxu3 %v1451_v10  ;;  %v1934_v49 = vld [vmem:[%s2952_s1 + $0x364] sm:$0xf0]  ;;  %v1738_v50 = vld [vmem:[%s2952_s1 + $0x3e0] sm:$0xf]  ;;  %v1820_v54 = vld [vmem:[%s2953_s0 + $0x20] sm:$0xf0]  ;;  %v1611_v57 = vor.u32 %v1918_v46, %v1610_v45 }
  0x1c   :  { %946 = vmatpush.bf16.msra.mxu0 %v1251_v16  ;;  %v1950_v51 = vld [vmem:[%s2952_s1 + $0x3e4] sm:$0xf0]  ;;  %v1206_v53 = vld [vmem:[%s2953_s0] sm:$0xf]  ;;  %v1900_v58 = vld [vmem:[%s2952_s1 + $0x254] sm:$0xf0]  ;;  %v1675_v62 = vor.u32 %v1934_v49, %v1674_v47 }
  0x1d   :  { %960 = vmatpush.bf16.msra.mxu1 %v1315_v19  ;;  %v1214_v55 = vld [vmem:[%s2953_s0 + $0x8] sm:$0xf]  ;;  %v1602_v59 = vld [vmem:[%s2952_s1 + $0x2d0] sm:$0xf]  ;;  %v2247_v60 = vor.u32 %v1820_v54, %v1206_v53  ;;  %v1821_v61 = vld [vmem:[%s2953_s0 + $0x28] sm:$0xf0]  ;;  %v1739_v3 = vor.u32 %v1950_v51, %v1738_v50  ;;  %v1539_v11 = vor.u32 %v1900_v58, %v1538_v52 }
  0x1e   :  { %974 = vmatpush.bf16.msra.mxu2 %v1379_v20  ;;  %v1916_v63 = vld [vmem:[%s2952_s1 + $0x2d4] sm:$0xf0]  ;;  %v1666_v0 = vld [vmem:[%s2952_s1 + $0x350] sm:$0xf]  ;;  %v2261_v2 = vor.u32 %v1821_v61, %v1214_v55  ;;  %v1816_v5 = vld [vmem:[%s2953_s0 + $0x4] sm:$0xf] }
  0x1f   :  { %988 = vmatpush.bf16.msra.mxu3 %v1443_v24  ;;  %v1932_v1 = vld [vmem:[%s2952_s1 + $0x354] sm:$0xf0]  ;;  %v1730_v4 = vld [vmem:[%s2952_s1 + $0x3d0] sm:$0xf]  ;;  %v1208_v6 = vld [vmem:[%s2953_s0 + $0x24] sm:$0xf0]  ;;  %v1603_v12 = vor.u32 %v1916_v63, %v1602_v59 }
  0x20   :  { %947 = vmatpush.bf16.msra.mxu0 %v1243_v31  ;;  %v1948_v7 = vld [vmem:[%s2952_s1 + $0x3d4] sm:$0xf0]  ;;  %v2277_v8 = vor.u32 %v1816_v5, %v1208_v6  ;;  %v1817_v9 = vld [vmem:[%s2953_s0 + $0xc] sm:$0xf]  ;;  %v1216_v10 = vld [vmem:[%s2953_s0 + $0x2c] sm:$0xf0]  ;;  %v1667_v15 = vor.u32 %v1932_v1, %v1666_v0 }
  0x21   :  { %961 = vmatpush.bf16.msra.mxu1 %v1307_v35  ;;  %v1530_v13 = vld [vmem:[%s2952_s1 + $0x240] sm:$0xf]  ;;  %v2288_v14 = vor.u32 %v1817_v9, %v1216_v10  ;;  %v1898_v16 = vld [vmem:[%s2952_s1 + $0x244] sm:$0xf0]  ;;  %v1731_v19 = vor.u32 %v1948_v7, %v1730_v4  ;;  %v1522_v26 = vld [vmem:[%s2952_s1 + $0x230] sm:$0xf] }
  0x22   :  { %975 = vmatpush.bf16.msra.mxu2 %v1371_v36  ;;  %v1594_v17 = vld [vmem:[%s2952_s1 + $0x2c0] sm:$0xf]  ;;  %v1914_v18 = vld [vmem:[%s2952_s1 + $0x2c4] sm:$0xf0]  ;;  %v1531_v24 = vor.u32 %v1898_v16, %v1530_v13  ;;  %v1896_v28 = vld [vmem:[%s2952_s1 + $0x234] sm:$0xf0] }
  0x23   :  { %989 = vmatpush.bf16.msra.mxu3 %v1435_v44  ;;  %948 = vmatmul.bf16.vlgmr.msra.gmra.mxu0 %v2247_v60  ;;  %v1658_v20 = vld [vmem:[%s2952_s1 + $0x340] sm:$0xf]  ;;  %v1930_v21 = vld [vmem:[%s2952_s1 + $0x344] sm:$0xf0]  ;;  %v1595_v25 = vor.u32 %v1914_v18, %v1594_v17  ;;  %v1586_v29 = vld [vmem:[%s2952_s1 + $0x2b0] sm:$0xf]  ;;  %v1523_v36 = vor.u32 %v1896_v28, %v1522_v26 }
  0x24   :  { %996 = vmatpush.bf16.msrb.mxu0 %v1555_v39  ;;  %962 = vmatmul.bf16.vlgmr.msra.gmra.mxu1 %v2277_v8  ;;  %v1722_v22 = vld [vmem:[%s2952_s1 + $0x3c0] sm:$0xf]  ;;  %v1946_v23 = vld [vmem:[%s2952_s1 + $0x3c4] sm:$0xf0]  ;;  %v1659_v27 = vor.u32 %v1930_v21, %v1658_v20  ;;  %v1912_v30 = vld [vmem:[%s2952_s1 + $0x2b4] sm:$0xf0] }
  0x25   :  { %1010 = vmatpush.bf16.msrb.mxu1 %v1619_v40  ;;  %976 = vmatmul.bf16.vlgmr.msra.gmra.mxu2 %v2261_v2  ;;  %v1723_v31 = vor.u32 %v1946_v23, %v1722_v22  ;;  %v1650_v32 = vld [vmem:[%s2952_s1 + $0x330] sm:$0xf]  ;;  %v1928_v33 = vld [vmem:[%s2952_s1 + $0x334] sm:$0xf0]  ;;  %v1587_v37 = vor.u32 %v1912_v30, %v1586_v29  ;;  %v1514_v38 = vld [vmem:[%s2952_s1 + $0x220] sm:$0xf] }
  0x26   :  { %1024 = vmatpush.bf16.msrb.mxu2 %v1683_v43  ;;  %990 = vmatmul.bf16.vlgmr.msra.gmra.mxu3 %v2288_v14  ;;  %v1714_v34 = vld [vmem:[%s2952_s1 + $0x3b0] sm:$0xf]  ;;  %v1944_v35 = vld [vmem:[%s2952_s1 + $0x3b4] sm:$0xf0]  ;;  %v1651_v39 = vor.u32 %v1928_v33, %v1650_v32  ;;  %v1894_v40 = vld [vmem:[%s2952_s1 + $0x224] sm:$0xf0] }
  0x27   :  { %1038 = vmatpush.bf16.msrb.mxu3 %v1747_v48  ;;  %v1578_v41 = vld [vmem:[%s2952_s1 + $0x2a0] sm:$0xf]  ;;  %v1910_v42 = vld [vmem:[%s2952_s1 + $0x2a4] sm:$0xf0]  ;;  %v1715_v43 = vor.u32 %v1944_v35, %v1714_v34  ;;  %v1515_v48 = vor.u32 %v1894_v40, %v1514_v38  ;;  %v1506_v50 = vld [vmem:[%s2952_s1 + $0x210] sm:$0xf] }
  0x28   :  { %997 = vmatpush.bf16.msrb.mxu0 %v1547_v56  ;;  %v1642_v44 = vld [vmem:[%s2952_s1 + $0x320] sm:$0xf]  ;;  %v1926_v45 = vld [vmem:[%s2952_s1 + $0x324] sm:$0xf0]  ;;  %v1579_v49 = vor.u32 %v1910_v42, %v1578_v41  ;;  %v1892_v51 = vld [vmem:[%s2952_s1 + $0x214] sm:$0xf0] }
  0x29   :  { %1011 = vmatpush.bf16.msrb.mxu1 %v1611_v57  ;;  %v1706_v46 = vld [vmem:[%s2952_s1 + $0x3a0] sm:$0xf]  ;;  %v1942_v47 = vld [vmem:[%s2952_s1 + $0x3a4] sm:$0xf0]  ;;  %v1643_v52 = vor.u32 %v1926_v45, %v1642_v44  ;;  %v1570_v53 = vld [vmem:[%s2952_s1 + $0x290] sm:$0xf]  ;;  %v1507_v1 = vor.u32 %v1892_v51, %v1506_v50 }
  0x2a   :  { %1025 = vmatpush.bf16.msrb.mxu2 %v1675_v62  ;;  %v1908_v54 = vld [vmem:[%s2952_s1 + $0x294] sm:$0xf0]  ;;  %v1634_v55 = vld [vmem:[%s2952_s1 + $0x310] sm:$0xf]  ;;  %v1707_v56 = vor.u32 %v1942_v47, %v1706_v46  ;;  %v1498_v61 = vld [vmem:[%s2952_s1 + $0x200] sm:$0xf] }
  0x2b   :  { %1039 = vmatpush.bf16.msrb.mxu3 %v1739_v3  ;;  %v1924_v57 = vld [vmem:[%s2952_s1 + $0x314] sm:$0xf0]  ;;  %v1698_v58 = vld [vmem:[%s2952_s1 + $0x390] sm:$0xf]  ;;  %v1890_v62 = vld [vmem:[%s2952_s1 + $0x204] sm:$0xf0]  ;;  %v1571_v3 = vor.u32 %v1908_v54, %v1570_v53 }
  0x2c   :  { %998 = vmatpush.bf16.msrb.mxu0 %v1539_v11  ;;  %v1940_v59 = vld [vmem:[%s2952_s1 + $0x394] sm:$0xf0]  ;;  %v1562_v63 = vld [vmem:[%s2952_s1 + $0x280] sm:$0xf]  ;;  %v1906_v0 = vld [vmem:[%s2952_s1 + $0x284] sm:$0xf0]  ;;  %v1635_v7 = vor.u32 %v1924_v57, %v1634_v55  ;;  %v1499_v20 = vor.u32 %v1890_v62, %v1498_v61 }
  0x2d   :  { %1012 = vmatpush.bf16.msrb.mxu1 %v1603_v12  ;;  %v1626_v4 = vld [vmem:[%s2952_s1 + $0x300] sm:$0xf]  ;;  %v1922_v5 = vld [vmem:[%s2952_s1 + $0x304] sm:$0xf0]  ;;  %v1810_v6 = vld [vmem:[%s2952_s1 + $0x470] sm:$0xf]  ;;  %v1699_v12 = vor.u32 %v1940_v59, %v1698_v58  ;;  %v1563_v21 = vor.u32 %v1906_v0, %v1562_v63 }
  0x2e   :  { %1026 = vmatpush.bf16.msrb.mxu2 %v1667_v15  ;;  %v1968_v9 = vld [vmem:[%s2952_s1 + $0x474] sm:$0xf0]  ;;  %v1839_v10 = vld [vmem:[%s2952_s1 + $0x74] sm:$0xf]  ;;  %v1300_v11 = vld [vmem:[%s2952_s1 + $0x78] sm:$0xf0] }
  0x2f   :  { %1040 = vmatpush.bf16.msrb.mxu3 %v1731_v19  ;;  %v1855_v13 = vld [vmem:[%s2952_s1 + $0xf4] sm:$0xf]  ;;  %v1364_v15 = vld [vmem:[%s2952_s1 + $0xf8] sm:$0xf0]  ;;  %v1690_v16 = vld [vmem:[%s2952_s1 + $0x380] sm:$0xf]  ;;  %v1811_v26 = vor.u32 %v1968_v9, %v1810_v6  ;;  %v1303_v30 = vor.u32 %v1839_v10, %v1300_v11 }
  0x30   :  { %999 = vmatpush.bf16.msrb.mxu0 %v1531_v24  ;;  %v1938_v17 = vld [vmem:[%s2952_s1 + $0x384] sm:$0xf0]  ;;  %v1222_v18 = vld [vmem:[%s2953_s0 + $0x10] sm:$0xf]  ;;  %v1822_v19 = vld [vmem:[%s2953_s0 + $0x30] sm:$0xf0] }
  0x31   :  { %1013 = vmatpush.bf16.msrb.mxu1 %v1595_v25  ;;  %v1230_v22 = vld [vmem:[%s2953_s0 + $0x18] sm:$0xf]  ;;  %v1823_v23 = vld [vmem:[%s2953_s0 + $0x38] sm:$0xf0]  ;;  %v1871_v24 = vld [vmem:[%s2952_s1 + $0x174] sm:$0xf]  ;;  %v1627_v25 = vor.u32 %v1922_v5, %v1626_v4  ;;  %v1691_v35 = vor.u32 %v1938_v17, %v1690_v16 }
  0x32   :  { %1027 = vmatpush.bf16.msrb.mxu2 %v1659_v27  ;;  %v1428_v27 = vld [vmem:[%s2952_s1 + $0x178] sm:$0xf0]  ;;  %v1818_v28 = vld [vmem:[%s2953_s0 + $0x14] sm:$0xf]  ;;  %v1224_v29 = vld [vmem:[%s2953_s0 + $0x34] sm:$0xf0]  ;;  %v2471_v40 = vor.u32 %v1823_v23, %v1230_v22 }
  0x33   :  { %1041 = vmatpush.bf16.msrb.mxu3 %v1723_v31  ;;  %v1367_v31 = vor.u32 %v1855_v13, %v1364_v15  ;;  %v1819_v32 = vld [vmem:[%s2953_s0 + $0x1c] sm:$0xf]  ;;  %v1802_v33 = vld [vmem:[%s2952_s1 + $0x460] sm:$0xf]  ;;  %v1966_v34 = vld [vmem:[%s2952_s1 + $0x464] sm:$0xf0]  ;;  %v1431_v41 = vor.u32 %v1871_v24, %v1428_v27  ;;  %v2479_v44 = vor.u32 %v1818_v28, %v1224_v29 }
  0x34   :  { %1000 = vmatpush.bf16.msrb.mxu0 %v1523_v36  ;;  %v2460_v36 = vor.u32 %v1822_v19, %v1222_v18  ;;  %v1837_v38 = vld [vmem:[%s2952_s1 + $0x64] sm:$0xf]  ;;  %v1803_v45 = vor.u32 %v1966_v34, %v1802_v33  ;;  %v1420_v47 = vld [vmem:[%s2952_s1 + $0x168] sm:$0xf0]  ;;  %v1794_v50 = vld [vmem:[%s2952_s1 + $0x450] sm:$0xf] }
  0x35   :  { %1014 = vmatpush.bf16.msrb.mxu1 %v1587_v37  ;;  %v1232_v37 = vld [vmem:[%s2953_s0 + $0x3c] sm:$0xf0]  ;;  %v1853_v42 = vld [vmem:[%s2952_s1 + $0xe4] sm:$0xf]  ;;  %v1964_v51 = vld [vmem:[%s2952_s1 + $0x454] sm:$0xf0] }
  0x36   :  { %1028 = vmatpush.bf16.msrb.mxu2 %v1651_v39  ;;  %v1292_v39 = vld [vmem:[%s2952_s1 + $0x68] sm:$0xf0]  ;;  %v1869_v46 = vld [vmem:[%s2952_s1 + $0x164] sm:$0xf]  ;;  %v1835_v53 = vld [vmem:[%s2952_s1 + $0x54] sm:$0xf]  ;;  %v1795_v58 = vor.u32 %v1964_v51, %v1794_v50 }
  0x37   :  { %1042 = vmatpush.bf16.msrb.mxu3 %v1715_v43  ;;  %v1356_v43 = vld [vmem:[%s2952_s1 + $0xe8] sm:$0xf0]  ;;  %v1284_v54 = vld [vmem:[%s2952_s1 + $0x58] sm:$0xf0]  ;;  %v1423_v55 = vor.u32 %v1869_v46, %v1420_v47  ;;  %v1867_v59 = vld [vmem:[%s2952_s1 + $0x154] sm:$0xf] }
  0x38   :  { %1001 = vmatpush.bf16.msrb.mxu0 %v1515_v48  ;;  %v2487_v48 = vor.u32 %v1819_v32, %v1232_v37  ;;  %v1348_v57 = vld [vmem:[%s2952_s1 + $0xd8] sm:$0xf0]  ;;  %v1287_v62 = vor.u32 %v1835_v53, %v1284_v54  ;;  %v1786_v63 = vld [vmem:[%s2952_s1 + $0x440] sm:$0xf]  ;;  %v1962_v0 = vld [vmem:[%s2952_s1 + $0x444] sm:$0xf0] }
  0x39   :  { %1015 = vmatpush.bf16.msrb.mxu1 %v1579_v49  ;;  %v1295_v49 = vor.u32 %v1837_v38, %v1292_v39  ;;  %v1412_v61 = vld [vmem:[%s2952_s1 + $0x158] sm:$0xf0]  ;;  %v1276_v4 = vld [vmem:[%s2952_s1 + $0x48] sm:$0xf0]  ;;  %v1849_v6 = vld [vmem:[%s2952_s1 + $0xc4] sm:$0xf]  ;;  %v1787_v9 = vor.u32 %v1962_v0, %v1786_v63 }
  0x3a   :  { %1029 = vmatpush.bf16.msrb.mxu2 %v1643_v52  ;;  %v1359_v52 = vor.u32 %v1853_v42, %v1356_v43  ;;  %v1415_v5 = vor.u32 %v1867_v59, %v1412_v61  ;;  %v1865_v10 = vld [vmem:[%s2952_s1 + $0x144] sm:$0xf]  ;;  %v1404_v11 = vld [vmem:[%s2952_s1 + $0x148] sm:$0xf0]  ;;  %v1778_v13 = vld [vmem:[%s2952_s1 + $0x430] sm:$0xf] }
  0x3b   :  { %1043 = vmatpush.bf16.msrb.mxu3 %v1707_v56  ;;  %v1851_v56 = vld [vmem:[%s2952_s1 + $0xd4] sm:$0xf]  ;;  %v1960_v15 = vld [vmem:[%s2952_s1 + $0x434] sm:$0xf0]  ;;  %v1268_v18 = vld [vmem:[%s2952_s1 + $0x38] sm:$0xf0]  ;;  %v1407_v19 = vor.u32 %v1865_v10, %v1404_v11 }
  0x3c   :  { %1002 = vmatpush.bf16.msrb.mxu0 %v1507_v1  ;;  %v1351_v1 = vor.u32 %v1851_v56, %v1348_v57  ;;  %v1831_v17 = vld [vmem:[%s2952_s1 + $0x34] sm:$0xf]  ;;  %v1779_v22 = vor.u32 %v1960_v15, %v1778_v13  ;;  %v1396_v24 = vld [vmem:[%s2952_s1 + $0x138] sm:$0xf0]  ;;  %v1958_v27 = vld [vmem:[%s2952_s1 + $0x424] sm:$0xf0] }
  0x3d   :  { %1016 = vmatpush.bf16.msrb.mxu1 %v1571_v3  ;;  %v1833_v3 = vld [vmem:[%s2952_s1 + $0x44] sm:$0xf]  ;;  %v1863_v23 = vld [vmem:[%s2952_s1 + $0x134] sm:$0xf]  ;;  %v1324_v33 = vld [vmem:[%s2952_s1 + $0xa8] sm:$0xf0] }
  0x3e   :  { %1030 = vmatpush.bf16.msrb.mxu2 %v1635_v7  ;;  %v1340_v7 = vld [vmem:[%s2952_s1 + $0xc8] sm:$0xf0]  ;;  %v1829_v29 = vld [vmem:[%s2952_s1 + $0x24] sm:$0xf]  ;;  %v1762_v39 = vld [vmem:[%s2952_s1 + $0x410] sm:$0xf] }
  0x3f   :  { %1044 = vmatpush.bf16.msrb.mxu3 %v1699_v12  ;;  %v1279_v12 = vor.u32 %v1833_v3, %v1276_v4  ;;  %v1343_v16 = vor.u32 %v1849_v6, %v1340_v7  ;;  %v1845_v32 = vld [vmem:[%s2952_s1 + $0xa4] sm:$0xf]  ;;  %v1388_v37 = vld [vmem:[%s2952_s1 + $0x128] sm:$0xf0]  ;;  %v1827_v43 = vld [vmem:[%s2952_s1 + $0x14] sm:$0xf] }
  0x40   :  { %1003 = vmatpush.bf16.msrb.mxu0 %v1499_v20  ;;  %v1847_v20 = vld [vmem:[%s2952_s1 + $0xb4] sm:$0xf]  ;;  %v1327_v42 = vor.u32 %v1845_v32, %v1324_v33  ;;  %v1380_v51 = vld [vmem:[%s2952_s1 + $0x118] sm:$0xf0]  ;;  %v1754_v53 = vld [vmem:[%s2952_s1 + $0x400] sm:$0xf] }
  0x41   :  { %1017 = vmatpush.bf16.msrb.mxu1 %v1563_v21  ;;  %v1332_v21 = vld [vmem:[%s2952_s1 + $0xb8] sm:$0xf0]  ;;  %v1843_v46 = vld [vmem:[%s2952_s1 + $0x94] sm:$0xf]  ;;  %v1954_v54 = vld [vmem:[%s2952_s1 + $0x404] sm:$0xf0] }
  0x42   :  { %1031 = vmatpush.bf16.msrb.mxu2 %v1627_v25  ;;  %v1271_v25 = vor.u32 %v1831_v17, %v1268_v18  ;;  %v1335_v28 = vor.u32 %v1847_v20, %v1332_v21  ;;  %v1859_v50 = vld [vmem:[%s2952_s1 + $0x114] sm:$0xf]  ;;  %v1244_v57 = vld [vmem:[%s2952_s1 + $0x8] sm:$0xf0]  ;;  %v1492_v63 = vld [vmem:[%s2952_s1 + $0x1f8] sm:$0xf0]  ;;  %v1755_v6 = vor.u32 %v1954_v54, %v1754_v53 }
  0x43   :  { %1045 = vmatpush.bf16.msrb.mxu3 %v1691_v35  ;;  %1004 = vmatmul.bf16.vlgmr.msrb.gmra.mxu0 %v2460_v36  ;;  %v1861_v35 = vld [vmem:[%s2952_s1 + $0x124] sm:$0xf]  ;;  %v1308_v59 = vld [vmem:[%s2952_s1 + $0x88] sm:$0xf0]  ;;  %v1903_v0 = vld [vmem:[%s2952_s1 + $0x274] sm:$0xf] }
  0x44   :  { %1052 = vmatpush.bf16.msra.mxu0 %v1811_v26  ;;  %1018 = vmatmul.bf16.vlgmr.msrb.gmra.mxu1 %v2479_v44  ;;  %v1770_v26 = vld [vmem:[%s2952_s1 + $0x420] sm:$0xf]  ;;  %v1391_v47 = vor.u32 %v1861_v35, %v1388_v37  ;;  %v1556_v3 = vld [vmem:[%s2952_s1 + $0x278] sm:$0xf0]  ;;  %v1919_v4 = vld [vmem:[%s2952_s1 + $0x2f4] sm:$0xf] }
  0x45   :  { %1066 = vmatpush.bf16.msra.mxu1 %v1303_v30  ;;  %1032 = vmatmul.bf16.vlgmr.msrb.gmra.mxu2 %v2471_v40  ;;  %v1260_v30 = vld [vmem:[%s2952_s1 + $0x28] sm:$0xf0]  ;;  %v1771_v34 = vor.u32 %v1958_v27, %v1770_v26  ;;  %v1857_v7 = vld [vmem:[%s2952_s1 + $0x104] sm:$0xf]  ;;  %v1238_v10 = vld [vmem:[%s2953_s0 + $0x20] sm:$0xf]  ;;  %v1559_v18 = vor.u32 %v1903_v0, %v1556_v3 }
  0x46   :  { %1080 = vmatpush.bf16.msra.mxu2 %v1367_v31  ;;  %1046 = vmatmul.bf16.vlgmr.msrb.gmra.mxu3 %v2487_v48  ;;  %v1399_v31 = vor.u32 %v1863_v23, %v1396_v24  ;;  %v1263_v38 = vor.u32 %v1829_v29, %v1260_v30  ;;  %v1824_v13 = vld [vmem:[%s2953_s0 + $0x40] sm:$0xf0]  ;;  %v1935_v15 = vld [vmem:[%s2952_s1 + $0x374] sm:$0xf]  ;;  %v1484_v20 = vld [vmem:[%s2952_s1 + $0x1e8] sm:$0xf0] }
  0x47   :  { %1094 = vmatpush.bf16.msra.mxu3 %v1431_v41  ;;  %v1956_v41 = vld [vmem:[%s2952_s1 + $0x414] sm:$0xf0]  ;;  %v1901_v23 = vld [vmem:[%s2952_s1 + $0x264] sm:$0xf]  ;;  %v1548_v24 = vld [vmem:[%s2952_s1 + $0x268] sm:$0xf0] }
  0x48   :  { %1053 = vmatpush.bf16.msra.mxu0 %v1803_v45  ;;  %v1252_v45 = vld [vmem:[%s2952_s1 + $0x18] sm:$0xf0]  ;;  %v1917_v27 = vld [vmem:[%s2952_s1 + $0x2e4] sm:$0xf]  ;;  %v1551_v32 = vor.u32 %v1901_v23, %v1548_v24  ;;  %v1883_v33 = vld [vmem:[%s2952_s1 + $0x1d4] sm:$0xf] }
  0x49   :  { %1067 = vmatpush.bf16.msra.mxu1 %v1295_v49  ;;  %v1316_v49 = vld [vmem:[%s2952_s1 + $0x98] sm:$0xf0]  ;;  %v1255_v56 = vor.u32 %v1827_v43, %v1252_v45  ;;  %v1933_v30 = vld [vmem:[%s2952_s1 + $0x364] sm:$0xf]  ;;  %v1899_v37 = vld [vmem:[%s2952_s1 + $0x254] sm:$0xf] }
  0x4a   :  { %1081 = vmatpush.bf16.msra.mxu2 %v1359_v52  ;;  %v1763_v52 = vor.u32 %v1956_v41, %v1762_v39  ;;  %v1319_v61 = vor.u32 %v1843_v46, %v1316_v49  ;;  %v1915_v41 = vld [vmem:[%s2952_s1 + $0x2d4] sm:$0xf]  ;;  %v1668_v46 = vld [vmem:[%s2952_s1 + $0x358] sm:$0xf0]  ;;  %v1881_v49 = vld [vmem:[%s2952_s1 + $0x1c4] sm:$0xf] }
  0x4b   :  { %1095 = vmatpush.bf16.msra.mxu3 %v1423_v55  ;;  %v1825_v55 = vld [vmem:[%s2952_s1 + $0x4] sm:$0xf]  ;;  %v1931_v45 = vld [vmem:[%s2952_s1 + $0x354] sm:$0xf]  ;;  %v1588_v3 = vld [vmem:[%s2952_s1 + $0x2b8] sm:$0xf0] }
  0x4c   :  { %1054 = vmatpush.bf16.msra.mxu0 %v1795_v58  ;;  %v1841_v58 = vld [vmem:[%s2952_s1 + $0x84] sm:$0xf]  ;;  %v1247_v11 = vor.u32 %v1825_v55, %v1244_v57  ;;  %v1671_v53 = vor.u32 %v1931_v45, %v1668_v46  ;;  %v1444_v23 = vld [vmem:[%s2952_s1 + $0x198] sm:$0xf0] }
  0x4d   :  { %1068 = vmatpush.bf16.msra.mxu1 %v1287_v62  ;;  %v1887_v62 = vld [vmem:[%s2952_s1 + $0x1f4] sm:$0xf]  ;;  %v1311_v17 = vor.u32 %v1841_v58, %v1308_v59  ;;  %v1913_v54 = vld [vmem:[%s2952_s1 + $0x2c4] sm:$0xf]  ;;  %v1460_v59 = vld [vmem:[%s2952_s1 + $0x1b8] sm:$0xf0] }
  0x4e   :  { %1082 = vmatpush.bf16.msra.mxu2 %v1351_v1  ;;  %v1383_v1 = vor.u32 %v1859_v50, %v1380_v51  ;;  %v1468_v50 = vld [vmem:[%s2952_s1 + $0x1c8] sm:$0xf0]  ;;  %v1879_v58 = vld [vmem:[%s2952_s1 + $0x1b4] sm:$0xf]  ;;  %v1748_v45 = vld [vmem:[%s2952_s1 + $0x3f8] sm:$0xf0] }
  0x4f   :  { %1096 = vmatpush.bf16.msra.mxu3 %v1415_v5  ;;  %v1620_v5 = vld [vmem:[%s2952_s1 + $0x2f8] sm:$0xf0]  ;;  %v1471_v55 = vor.u32 %v1881_v49, %v1468_v50  ;;  %v1967_v49 = vld [vmem:[%s2952_s1 + $0x474] sm:$0xf] }
  0x50   :  { %1055 = vmatpush.bf16.msra.mxu0 %v1787_v9  ;;  %v1372_v9 = vld [vmem:[%s2952_s1 + $0x108] sm:$0xf0]  ;;  %v1623_v21 = vor.u32 %v1919_v4, %v1620_v5  ;;  %v1463_v4 = vor.u32 %v1879_v58, %v1460_v59  ;;  %v1927_v5 = vld [vmem:[%s2952_s1 + $0x334] sm:$0xf]  ;;  %v1812_v50 = vld [vmem:[%s2952_s1 + $0x478] sm:$0xf0] }
  0x51   :  { %1069 = vmatpush.bf16.msra.mxu1 %v1279_v12  ;;  %v1495_v12 = vor.u32 %v1887_v62, %v1492_v63  ;;  %v1895_v62 = vld [vmem:[%s2952_s1 + $0x234] sm:$0xf]  ;;  %v1524_v63 = vld [vmem:[%s2952_s1 + $0x238] sm:$0xf0]  ;;  %v1965_v58 = vld [vmem:[%s2952_s1 + $0x464] sm:$0xf] }
  0x52   :  { %1083 = vmatpush.bf16.msra.mxu2 %v1343_v16  ;;  %v1684_v16 = vld [vmem:[%s2952_s1 + $0x378] sm:$0xf0]  ;;  %v1804_v59 = vld [vmem:[%s2952_s1 + $0x468] sm:$0xf0] }
  0x53   :  { %1097 = vmatpush.bf16.msra.mxu3 %v1407_v19  ;;  %v1885_v19 = vld [vmem:[%s2952_s1 + $0x1e4] sm:$0xf]  ;;  %v1687_v26 = vor.u32 %v1935_v15, %v1684_v16 }
  0x54   :  { %1056 = vmatpush.bf16.msra.mxu0 %v1779_v22  ;;  %v1375_v22 = vor.u32 %v1857_v7, %v1372_v9  ;;  %v1487_v29 = vor.u32 %v1885_v19, %v1484_v20  ;;  %v1527_v7 = vor.u32 %v1895_v62, %v1524_v63  ;;  %v1877_v9 = vld [vmem:[%s2952_s1 + $0x1a4] sm:$0xf]  ;;  %v1644_v20 = vld [vmem:[%s2952_s1 + $0x328] sm:$0xf0]  ;;  %v1807_v62 = vor.u32 %v1965_v58, %v1804_v59  ;;  %v1947_v63 = vld [vmem:[%s2952_s1 + $0x3d4] sm:$0xf] }
  0x55   :  { %1070 = vmatpush.bf16.msra.mxu1 %v1271_v25  ;;  %v2679_v25 = vor.u32 %v1824_v13, %v1238_v10  ;;  %v1452_v10 = vld [vmem:[%s2952_s1 + $0x1a8] sm:$0xf0]  ;;  %v1909_v16 = vld [vmem:[%s2952_s1 + $0x2a4] sm:$0xf] }
  0x56   :  { %1084 = vmatpush.bf16.msra.mxu2 %v1335_v28  ;;  %v1612_v28 = vld [vmem:[%s2952_s1 + $0x2e8] sm:$0xf0]  ;;  %v1925_v19 = vld [vmem:[%s2952_s1 + $0x324] sm:$0xf] }
  0x57   :  { %1098 = vmatpush.bf16.msra.mxu3 %v1399_v31  ;;  %v1676_v31 = vld [vmem:[%s2952_s1 + $0x368] sm:$0xf0]  ;;  %v1615_v35 = vor.u32 %v1917_v27, %v1612_v28  ;;  %v1508_v27 = vld [vmem:[%s2952_s1 + $0x218] sm:$0xf0]  ;;  %v1647_v28 = vor.u32 %v1925_v19, %v1644_v20 }
  0x58   :  { %1057 = vmatpush.bf16.msra.mxu0 %v1771_v34  ;;  %v1476_v34 = vld [vmem:[%s2952_s1 + $0x1d8] sm:$0xf0]  ;;  %v1679_v39 = vor.u32 %v1933_v30, %v1676_v31  ;;  %v1516_v13 = vld [vmem:[%s2952_s1 + $0x228] sm:$0xf0] }
  0x59   :  { %1071 = vmatpush.bf16.msra.mxu1 %v1263_v38  ;;  %v1540_v38 = vld [vmem:[%s2952_s1 + $0x258] sm:$0xf0]  ;;  %v1479_v43 = vor.u32 %v1883_v33, %v1476_v34  ;;  %v1873_v34 = vld [vmem:[%s2952_s1 + $0x184] sm:$0xf]  ;;  %v1772_v19 = vld [vmem:[%s2952_s1 + $0x428] sm:$0xf0] }
  0x5a   :  { %1085 = vmatpush.bf16.msra.mxu2 %v1327_v42  ;;  %v1604_v42 = vld [vmem:[%s2952_s1 + $0x2d8] sm:$0xf0] }
  0x5b   :  { %1099 = vmatpush.bf16.msra.mxu3 %v1391_v47  ;;  %v1543_v47 = vor.u32 %v1899_v37, %v1540_v38  ;;  %v1607_v51 = vor.u32 %v1915_v41, %v1604_v42  ;;  %v1572_v30 = vld [vmem:[%s2952_s1 + $0x298] sm:$0xf0]  ;;  %v1436_v37 = vld [vmem:[%s2952_s1 + $0x188] sm:$0xf0]  ;;  %v1889_v38 = vld [vmem:[%s2952_s1 + $0x204] sm:$0xf] }
  0x5c   :  { %1058 = vmatpush.bf16.msra.mxu0 %v1763_v52  ;;  %v1897_v52 = vld [vmem:[%s2952_s1 + $0x244] sm:$0xf]  ;;  %v1636_v33 = vld [vmem:[%s2952_s1 + $0x318] sm:$0xf0] }
  0x5d   :  { %1072 = vmatpush.bf16.msra.mxu1 %v1255_v56  ;;  %v1929_v56 = vld [vmem:[%s2952_s1 + $0x344] sm:$0xf] }
  0x5e   :  { %1086 = vmatpush.bf16.msra.mxu2 %v1319_v61  ;;  %v1905_v42 = vld [vmem:[%s2952_s1 + $0x284] sm:$0xf] }
  0x5f   :  { %1100 = vmatpush.bf16.msra.mxu3 %v1383_v1  ;;  %v1911_v1 = vld [vmem:[%s2952_s1 + $0x2b4] sm:$0xf] }
  0x60   :  { %1059 = vmatpush.bf16.msra.mxu0 %v1755_v6  ;;  %v1652_v6 = vld [vmem:[%s2952_s1 + $0x338] sm:$0xf0] }
  0x61   :  { %1073 = vmatpush.bf16.msra.mxu1 %v1247_v11  ;;  %v1591_v11 = vor.u32 %v1911_v1, %v1588_v3  ;;  %v1655_v15 = vor.u32 %v1927_v5, %v1652_v6  ;;  %v1963_v1 = vld [vmem:[%s2952_s1 + $0x454] sm:$0xf]  ;;  %v1796_v3 = vld [vmem:[%s2952_s1 + $0x458] sm:$0xf0]  ;;  %v1724_v6 = vld [vmem:[%s2952_s1 + $0x3c8] sm:$0xf0] }
  0x62   :  { %1087 = vmatpush.bf16.msra.mxu2 %v1311_v17  ;;  %v1580_v17 = vld [vmem:[%s2952_s1 + $0x2a8] sm:$0xf0]  ;;  %v1799_v5 = vor.u32 %v1963_v1, %v1796_v3 }
  0x63   :  { %1101 = vmatpush.bf16.msra.mxu3 %v1375_v22  ;;  %1060 = vmatmul.bf16.vlgmr.msra.gmra.mxu0 %v2679_v25  ;;  %v1875_v22 = vld [vmem:[%s2952_s1 + $0x194] sm:$0xf]  ;;  %v1583_v24 = vor.u32 %v1909_v16, %v1580_v17  ;;  %v1941_v16 = vld [vmem:[%s2952_s1 + $0x3a4] sm:$0xf]  ;;  %v1708_v17 = vld [vmem:[%s2952_s1 + $0x3a8] sm:$0xf0] }
  0x64   :  { %1108 = vmatpush.bf16.msrb.mxu0 %v1495_v12  ;;  %1074 = vmatmul.bf16.vlgmr.msra.gmra.mxu1 %v2247_v60  ;;  %v1660_v60 = vld [vmem:[%s2952_s1 + $0x348] sm:$0xf0]  ;;  %v1893_v12 = vld [vmem:[%s2952_s1 + $0x224] sm:$0xf]  ;;  %v1447_v31 = vor.u32 %v1875_v22, %v1444_v23  ;;  %v1711_v20 = vor.u32 %v1941_v16, %v1708_v17  ;;  %v1939_v22 = vld [vmem:[%s2952_s1 + $0x394] sm:$0xf] }
  0x65   :  { %1122 = vmatpush.bf16.msrb.mxu1 %v1559_v18  ;;  %1088 = vmatmul.bf16.vlgmr.msra.gmra.mxu2 %v2277_v8  ;;  %v1532_v8 = vld [vmem:[%s2952_s1 + $0x248] sm:$0xf0]  ;;  %v1663_v0 = vor.u32 %v1929_v56, %v1660_v60  ;;  %v1455_v18 = vor.u32 %v1877_v9, %v1452_v10  ;;  %v1949_v56 = vld [vmem:[%s2952_s1 + $0x3e4] sm:$0xf]  ;;  %v1943_v9 = vld [vmem:[%s2952_s1 + $0x3b4] sm:$0xf] }
  0x66   :  { %1136 = vmatpush.bf16.msrb.mxu2 %v1623_v21  ;;  %1102 = vmatmul.bf16.vlgmr.msra.gmra.mxu3 %v2261_v2  ;;  %v1596_v2 = vld [vmem:[%s2952_s1 + $0x2c8] sm:$0xf0]  ;;  %v1535_v57 = vor.u32 %v1897_v52, %v1532_v8  ;;  %v1519_v21 = vor.u32 %v1893_v12, %v1516_v13  ;;  %v1921_v52 = vld [vmem:[%s2952_s1 + $0x304] sm:$0xf]  ;;  %v1716_v10 = vld [vmem:[%s2952_s1 + $0x3b8] sm:$0xf0] }
  0x67   :  { %1150 = vmatpush.bf16.msrb.mxu3 %v1687_v26  ;;  %v1599_v61 = vor.u32 %v1913_v54, %v1596_v2  ;;  %v1891_v26 = vld [vmem:[%s2952_s1 + $0x214] sm:$0xf]  ;;  %v1628_v8 = vld [vmem:[%s2952_s1 + $0x308] sm:$0xf0]  ;;  %v1780_v12 = vld [vmem:[%s2952_s1 + $0x438] sm:$0xf0]  ;;  %v1719_v13 = vor.u32 %v1943_v9, %v1716_v10 }
  0x68   :  { %1109 = vmatpush.bf16.msrb.mxu0 %v1487_v29  ;;  %v1907_v29 = vld [vmem:[%s2952_s1 + $0x294] sm:$0xf]  ;;  %v1740_v60 = vld [vmem:[%s2952_s1 + $0x3e8] sm:$0xf0]  ;;  %v1700_v23 = vld [vmem:[%s2952_s1 + $0x398] sm:$0xf0] }
  0x69   :  { %1123 = vmatpush.bf16.msrb.mxu1 %v1551_v32  ;;  %v1923_v32 = vld [vmem:[%s2952_s1 + $0x314] sm:$0xf]  ;;  %v1575_v41 = vor.u32 %v1907_v29, %v1572_v30  ;;  %v1937_v29 = vld [vmem:[%s2952_s1 + $0x384] sm:$0xf]  ;;  %v1692_v30 = vld [vmem:[%s2952_s1 + $0x388] sm:$0xf0] }
  0x6a   :  { %1137 = vmatpush.bf16.msrb.mxu2 %v1615_v35  ;;  %v1511_v35 = vor.u32 %v1891_v26, %v1508_v27  ;;  %v1639_v46 = vor.u32 %v1923_v32, %v1636_v33  ;;  %v1764_v26 = vld [vmem:[%s2952_s1 + $0x418] sm:$0xf0]  ;;  %v1703_v27 = vor.u32 %v1939_v22, %v1700_v23  ;;  %v1756_v32 = vld [vmem:[%s2952_s1 + $0x408] sm:$0xf0]  ;;  %v1695_v33 = vor.u32 %v1937_v29, %v1692_v30 }
  0x6b   :  { %1151 = vmatpush.bf16.msrb.mxu3 %v1679_v39  ;;  %v1500_v39 = vld [vmem:[%s2952_s1 + $0x208] sm:$0xf0] }
  0x6c   :  { %1110 = vmatpush.bf16.msrb.mxu0 %v1479_v43  ;;  %v1951_v43 = vld [vmem:[%s2952_s1 + $0x3f4] sm:$0xf] }
  0x6d   :  { %1124 = vmatpush.bf16.msrb.mxu1 %v1543_v47  ;;  %v1564_v47 = vld [vmem:[%s2952_s1 + $0x288] sm:$0xf0]  ;;  %v1751_v54 = vor.u32 %v1951_v43, %v1748_v45 }
  0x6e   :  { %1138 = vmatpush.bf16.msrb.mxu2 %v1607_v51  ;;  %v1439_v51 = vor.u32 %v1873_v34, %v1436_v37  ;;  %v1567_v2 = vor.u32 %v1905_v42, %v1564_v47 }
  0x6f   :  { %1152 = vmatpush.bf16.msrb.mxu3 %v1671_v53  ;;  %v1503_v53 = vor.u32 %v1889_v38, %v1500_v39 }
  0x70   :  { %1111 = vmatpush.bf16.msrb.mxu0 %v1471_v55  ;;  %v1815_v55 = vor.u32 %v1967_v49, %v1812_v50 }
  0x71   :  { %1125 = vmatpush.bf16.msrb.mxu1 %v1535_v57  ;;  %v1631_v57 = vor.u32 %v1921_v52, %v1628_v8 }
  0x72   :  { %1139 = vmatpush.bf16.msrb.mxu2 %v1599_v61  ;;  %v1743_v61 = vor.u32 %v1949_v56, %v1740_v60 }
  0x73   :  { %1153 = vmatpush.bf16.msrb.mxu3 %v1663_v0  ;;  %v1732_v0 = vld [vmem:[%s2952_s1 + $0x3d8] sm:$0xf0] }
  0x74   :  { %1112 = vmatpush.bf16.msrb.mxu0 %v1463_v4  ;;  %v1735_v4 = vor.u32 %v1947_v63, %v1732_v0 }
  0x75   :  { %1126 = vmatpush.bf16.msrb.mxu1 %v1527_v7 }
  0x76   :  { %1140 = vmatpush.bf16.msrb.mxu2 %v1591_v11  ;;  %v1959_v11 = vld [vmem:[%s2952_s1 + $0x434] sm:$0xf] }
  0x77   :  { %1154 = vmatpush.bf16.msrb.mxu3 %v1655_v15  ;;  %v1783_v15 = vor.u32 %v1959_v11, %v1780_v12 }
  0x78   :  { %1113 = vmatpush.bf16.msrb.mxu0 %v1455_v18  ;;  %v1957_v18 = vld [vmem:[%s2952_s1 + $0x424] sm:$0xf] }
  0x79   :  { %1127 = vmatpush.bf16.msrb.mxu1 %v1519_v21  ;;  %v1775_v21 = vor.u32 %v1957_v18, %v1772_v19 }
  0x7a   :  { %1141 = vmatpush.bf16.msrb.mxu2 %v1583_v24  ;;  %v1955_v24 = vld [vmem:[%s2952_s1 + $0x414] sm:$0xf] }
  0x7b   :  { %1155 = vmatpush.bf16.msrb.mxu3 %v1647_v28  ;;  %v1767_v28 = vor.u32 %v1955_v24, %v1764_v26 }
  0x7c   :  { %1114 = vmatpush.bf16.msrb.mxu0 %v1447_v31  ;;  %v1953_v31 = vld [vmem:[%s2952_s1 + $0x404] sm:$0xf] }
  0x7d   :  { %1128 = vmatpush.bf16.msrb.mxu1 %v1511_v35  ;;  %v1759_v34 = vor.u32 %v1953_v31, %v1756_v32 }
  0x7e   :  { %1142 = vmatpush.bf16.msrb.mxu2 %v1575_v41 }
  0x7f   :  { %1156 = vmatpush.bf16.msrb.mxu3 %v1639_v46 }
  0x80   :  { %1115 = vmatpush.bf16.msrb.mxu0 %v1439_v51 }
  0x81   :  { %1129 = vmatpush.bf16.msrb.mxu1 %v1503_v53 }
  0x82   :  { %1143 = vmatpush.bf16.msrb.mxu2 %v1567_v2 }
  0x83   :  { %1157 = vmatpush.bf16.msrb.mxu3 %v1631_v57  ;;  %1116 = vmatmul.bf16.vlgmr.msrb.gmra.mxu0 %v2288_v14  ;;  %v1945_v14 = vld [vmem:[%s2952_s1 + $0x3c4] sm:$0xf] }
  0x84   :  { %1164 = vmatpush.bf16.msra.mxu0 %v1751_v54  ;;  %1130 = vmatmul.bf16.vlgmr.msrb.gmra.mxu1 %v2460_v36  ;;  %v1961_v36 = vld [vmem:[%s2952_s1 + $0x444] sm:$0xf] }
  0x85   :  { %1178 = vmatpush.bf16.msra.mxu1 %v1815_v55  ;;  %1144 = vmatmul.bf16.vlgmr.msrb.gmra.mxu2 %v2479_v44  ;;  %v1788_v44 = vld [vmem:[%s2952_s1 + $0x448] sm:$0xf0] }
  0x86   :  { %1158 = vmatmul.bf16.vlgmr.msrb.gmra.mxu3 %v2471_v40  ;;  %v1727_v40 = vor.u32 %v1945_v14, %v1724_v6  ;;  %v1791_v7 = vor.u32 %v1961_v36, %v1788_v44 }
  0x88   :  { %1165 = vmatpush.bf16.msra.mxu0 %v1743_v61 }
  0x89   :  { %1179 = vmatpush.bf16.msra.mxu1 %v1807_v62 }
  0x8c   :  { %1166 = vmatpush.bf16.msra.mxu0 %v1735_v4 }
  0x8d   :  { %1180 = vmatpush.bf16.msra.mxu1 %v1799_v5 }
  0x90   :  { %1167 = vmatpush.bf16.msra.mxu0 %v1727_v40 }
  0x91   :  { %1181 = vmatpush.bf16.msra.mxu1 %v1791_v7 }
  0x94   :  { %1168 = vmatpush.bf16.msra.mxu0 %v1719_v13 }
  0x95   :  { %1182 = vmatpush.bf16.msra.mxu1 %v1783_v15 }
  0x98   :  { %1169 = vmatpush.bf16.msra.mxu0 %v1711_v20 }
  0x99   :  { %1183 = vmatpush.bf16.msra.mxu1 %v1775_v21 }
  0x9c   :  { %1170 = vmatpush.bf16.msra.mxu0 %v1703_v27 }
  0x9d   :  { %1184 = vmatpush.bf16.msra.mxu1 %v1767_v28 }
  0xa0   :  { %1171 = vmatpush.bf16.msra.mxu0 %v1695_v33  ;;  %v949_v37 = vpop.f32.mrf.mxu0 }
  0xa1   :  { %1185 = vmatpush.bf16.msra.mxu1 %v1759_v34  ;;  %v963_v35 = vpop.f32.mrf.mxu1 }
  0xa3   :  { %1172 = vmatmul.bf16.vlgmr.msra.gmra.mxu0 %v2487_v48  ;;  %v168_v48 = vld [vmem:[%s2954_s2] sm:$0x3] }
  0xa4   :  { %1186 = vmatmul.bf16.vlgmr.msra.gmra.mxu1 %v2679_v25  ;;  %v170_v2 = vperm.slane %v168_v48, 0  ;;  %v171_v60 = vperm.slane %v168_v48, 1 }
  0xa6   :  { %v950_v56 = vadd.f32 %v949_v37, %v170_v2 }
  0xa8   :  { %v977_v38 = vpop.f32.mrf.mxu2  ;;  %v951_v41 = vpop.f32.mrf.mxu0  ;;  %v964_v61 = vadd.f32 %v963_v35, %v950_v56 }
  0xa9   :  { %v965_v39 = vpop.f32.mrf.mxu1  ;;  %v991_v42 = vpop.f32.mrf.mxu3  ;;  %v952_v4 = vadd.f32 %v951_v41, %v170_v2 }
  0xaa   :  { %v978_v63 = vadd.f32 %v977_v38, %v964_v61 }
  0xab   :  { %v966_v44 = vadd.f32 %v965_v39, %v952_v4 }
  0xac   :  { %v992_v5 = vadd.f32 %v991_v42, %v978_v63 }
  0xb0   :  { %v979_v43 = vpop.f32.mrf.mxu2 }
  0xb1   :  { %v993_v46 = vpop.f32.mrf.mxu3  ;;  %v980_v11 = vadd.f32 %v979_v43, %v966_v44 }
  0xb3   :  { %v994_v19 = vadd.f32 %v993_v46, %v980_v11 }
  0xc0   :  { %v1005_v47 = vpop.f32.mrf.mxu0 }
  0xc1   :  { %v1019_v45 = vpop.f32.mrf.mxu1  ;;  %v1006_v40 = vadd.f32 %v1005_v47, %v992_v5 }
  0xc3   :  { %v1020_v12 = vadd.f32 %v1019_v45, %v1006_v40 }
  0xc8   :  { %v1033_v49 = vpop.f32.mrf.mxu2  ;;  %v1007_v51 = vpop.f32.mrf.mxu0 }
  0xc9   :  { %v1021_v50 = vpop.f32.mrf.mxu1  ;;  %v1047_v52 = vpop.f32.mrf.mxu3  ;;  %v1034_v20 = vadd.f32 %v1033_v49, %v1020_v12  ;;  %v1008_v23 = vadd.f32 %v1007_v51, %v994_v19 }
  0xcb   :  { %v1048_v26 = vadd.f32 %v1047_v52, %v1034_v20  ;;  %v1022_v30 = vadd.f32 %v1021_v50, %v1008_v23 }
  0xd0   :  { %v1035_v8 = vpop.f32.mrf.mxu2 }
  0xd1   :  { %v1049_v54 = vpop.f32.mrf.mxu3  ;;  %v1036_v35 = vadd.f32 %v1035_v8, %v1022_v30 }
  0xd3   :  { %v1050_v43 = vadd.f32 %v1049_v54, %v1036_v35 }
  0xe0   :  { %v1061_v25 = vpop.f32.mrf.mxu0 }
  0xe1   :  { %v1075_v53 = vpop.f32.mrf.mxu1  ;;  %v1062_v31 = vadd.f32 %v1061_v25, %v1048_v26 }
  0xe2   :  { %v1076_v62 = vadd.f32 %v1075_v53, %v171_v60 }
  0xe3   :  { %v1192_v41 = vmax.f32 %v1062_v31, 0.0 }
  0xe8   :  { %v1089_v55 = vpop.f32.mrf.mxu2  ;;  %v1063_v58 = vpop.f32.mrf.mxu0 }
  0xe9   :  { %v1077_v57 = vpop.f32.mrf.mxu1  ;;  %v1103_v59 = vpop.f32.mrf.mxu3  ;;  %v1090_v0 = vadd.f32 %v1089_v55, %v1076_v62  ;;  %v1064_v49 = vadd.f32 %v1063_v58, %v1050_v43 }
  0xea   :  { %v1078_v7 = vadd.f32 %v1077_v57, %v171_v60 }
  0xeb   :  { %v1104_v14 = vadd.f32 %v1103_v59, %v1090_v0  ;;  %v1194_v53 = vmax.f32 %v1064_v49, 0.0 }
  0xf0   :  { %v1091_v1 = vpop.f32.mrf.mxu2 }
  0xf1   :  { %v1105_v36 = vpop.f32.mrf.mxu3  ;;  %v1092_v13 = vadd.f32 %v1091_v1, %v1078_v7 }
  0xf3   :  { %v1106_v21 = vadd.f32 %v1105_v36, %v1092_v13 }
 0x100   :  { %v1117_v3 = vpop.f32.mrf.mxu0 }
 0x101   :  { %v1131_v6 = vpop.f32.mrf.mxu1  ;;  %v1118_v9 = vadd.f32 %v1117_v3, %v1104_v14 }
 0x103   :  { %v1132_v15 = vadd.f32 %v1131_v6, %v1118_v9 }
 0x108   :  { %v1145_v10 = vpop.f32.mrf.mxu2  ;;  %v1119_v16 = vpop.f32.mrf.mxu0 }
 0x109   :  { %v1133_v17 = vpop.f32.mrf.mxu1  ;;  %v1159_v18 = vpop.f32.mrf.mxu3  ;;  %v1146_v22 = vadd.f32 %v1145_v10, %v1132_v15  ;;  %v1120_v24 = vadd.f32 %v1119_v16, %v1106_v21 }
 0x10b   :  { %v1160_v27 = vadd.f32 %v1159_v18, %v1146_v22  ;;  %v1134_v32 = vadd.f32 %v1133_v17, %v1120_v24 }
 0x110   :  { %v1147_v28 = vpop.f32.mrf.mxu2 }
 0x111   :  { %v1148_v37 = vadd.f32 %v1147_v28, %v1134_v32  ;;  %v1161_v39 = vpop.f32.mrf.mxu3 }
 0x113   :  { %v1162_v45 = vadd.f32 %v1161_v39, %v1148_v37 }
 0x120   :  { %v1173_v29 = vpop.f32.mrf.mxu0 }
 0x121   :  { %v1174_v33 = vadd.f32 %v1173_v29, %v1160_v27  ;;  %v1187_v34 = vpop.f32.mrf.mxu1 }
 0x123   :  { %v1188_v38 = vadd.f32 %v1187_v34, %v1174_v33 }
 0x125   :  { %v1193_v42 = vmax.f32 %v1188_v38, 0.0 }
 0x127   :  { %v1196_v46 = vpack.c.bf16 %v1193_v42, %v1192_v41 }
 0x128   :  { %v1175_v47 = vpop.f32.mrf.mxu0 }
 0x129   :  { %1198 = vst [vmem:[%s2955_s3] sm:$0xff] %v1196_v46  ;;  %v1176_v50 = vadd.f32 %v1175_v47, %v1162_v45  ;;  %v1189_v51 = vpop.f32.mrf.mxu1 }
 0x12b   :  { %v1190_v52 = vadd.f32 %v1189_v51, %v1176_v50 }
 0x12d   :  { %v1195_v48 = vmax.f32 %v1190_v52, 0.0 }
 0x12f   :  { %v1197_v8 = vpack.c.bf16 %v1195_v48, %v1194_v53 }
 0x131   :  { %1199 = vst [vmem:[%s2955_s3 + $0x8] sm:$0xff] %v1197_v8 }

// kernel: tile.18
= control target key start
LH: loop header
LB: loop body
LE: loop exit
PB: predicated region body
PF: predicated region fallthrough
CT: control target
= control target key end

     0   :  { %s22_s0 = inlined_call_operand.vmem [shape: f32[128], index: 0, kind: input, shape index: {}]   ;;  %s23_s1 = inlined_call_operand.vmem [shape: f32[4,128], index: 1, kind: output, shape index: {}]  }
   0x1   :  { %v4_v0 = vld [vmem:[%s22_s0] ss:$0 sm:$0xff] }
   0x2   :  { %5 = vst [vmem:[%s23_s1] sm:$0xf] %v4_v0 }

// kernel: autoencoder_forward.9
= control target key start
LH: loop header
LB: loop body
LE: loop exit
PB: predicated region body
PF: predicated region fallthrough
CT: control target
= control target key end

     0   :  { %s5121_s1 = inlined_call_operand.vmem [shape: bf16[1024,512], index: 1, kind: input, shape index: {}]   ;;  %s5122_s0 = inlined_call_operand.vmem [shape: bf16[1,16,1024], index: 0, kind: input, shape index: {}]   ;;  %s5123_s2 = inlined_call_operand.vmem [shape: f32[1,512], index: 2, kind: input, shape index: {}]   ;;  %s5124_s3 = inlined_call_operand.vmem [shape: bf16[16,512], index: 3, kind: output, shape index: {}]  }
   0x1   :  { %v2222_v0 = vld [vmem:[%s5121_s1 + $0xe0] sm:$0xf]  ;;  %v3170_v1 = vld [vmem:[%s5121_s1 + $0xec] sm:$0xf0] }
   0x2   :  { %v2350_v2 = vld [vmem:[%s5121_s1 + $0x1e0] sm:$0xf]  ;;  %v2223_v3 = vor.u32 %v3170_v1, %v2222_v0  ;;  %v3202_v4 = vld [vmem:[%s5121_s1 + $0x1ec] sm:$0xf0] }
   0x3   :  { %v2478_v5 = vld [vmem:[%s5121_s1 + $0x2e0] sm:$0xf]  ;;  %v3234_v6 = vld [vmem:[%s5121_s1 + $0x2ec] sm:$0xf0]  ;;  %v2351_v7 = vor.u32 %v3202_v4, %v2350_v2 }
   0x4   :  { %v2479_v8 = vor.u32 %v3234_v6, %v2478_v5  ;;  %v2606_v9 = vld [vmem:[%s5121_s1 + $0x3e0] sm:$0xf]  ;;  %v3266_v10 = vld [vmem:[%s5121_s1 + $0x3ec] sm:$0xf0]  ;;  %1608 = vmatpush.bf16.msra.mxu0 %v2223_v3 }
   0x5   :  { %v2206_v11 = vld [vmem:[%s5121_s1 + $0xc0] sm:$0xf]  ;;  %v2607_v12 = vor.u32 %v3266_v10, %v2606_v9  ;;  %v3166_v13 = vld [vmem:[%s5121_s1 + $0xcc] sm:$0xf0]  ;;  %1622 = vmatpush.bf16.msra.mxu1 %v2351_v7 }
   0x6   :  { %v2334_v14 = vld [vmem:[%s5121_s1 + $0x1c0] sm:$0xf]  ;;  %v3198_v15 = vld [vmem:[%s5121_s1 + $0x1cc] sm:$0xf0]  ;;  %1636 = vmatpush.bf16.msra.mxu2 %v2479_v8  ;;  %v2207_v16 = vor.u32 %v3166_v13, %v2206_v11 }
   0x7   :  { %v2335_v17 = vor.u32 %v3198_v15, %v2334_v14  ;;  %v2462_v18 = vld [vmem:[%s5121_s1 + $0x2c0] sm:$0xf]  ;;  %v3230_v19 = vld [vmem:[%s5121_s1 + $0x2cc] sm:$0xf0]  ;;  %1650 = vmatpush.bf16.msra.mxu3 %v2607_v12 }
   0x8   :  { %v2590_v20 = vld [vmem:[%s5121_s1 + $0x3c0] sm:$0xf]  ;;  %v2463_v21 = vor.u32 %v3230_v19, %v2462_v18  ;;  %v3262_v22 = vld [vmem:[%s5121_s1 + $0x3cc] sm:$0xf0]  ;;  %1609 = vmatpush.bf16.msra.mxu0 %v2207_v16 }
   0x9   :  { %v2190_v23 = vld [vmem:[%s5121_s1 + $0xa0] sm:$0xf]  ;;  %v3162_v24 = vld [vmem:[%s5121_s1 + $0xac] sm:$0xf0]  ;;  %v2591_v25 = vor.u32 %v3262_v22, %v2590_v20  ;;  %1623 = vmatpush.bf16.msra.mxu1 %v2335_v17 }
   0xa   :  { %v2318_v26 = vld [vmem:[%s5121_s1 + $0x1a0] sm:$0xf]  ;;  %v3194_v27 = vld [vmem:[%s5121_s1 + $0x1ac] sm:$0xf0]  ;;  %v2191_v29 = vor.u32 %v3162_v24, %v2190_v23  ;;  %1637 = vmatpush.bf16.msra.mxu2 %v2463_v21 }
   0xb   :  { %v2446_v28 = vld [vmem:[%s5121_s1 + $0x2a0] sm:$0xf]  ;;  %v3226_v30 = vld [vmem:[%s5121_s1 + $0x2ac] sm:$0xf0]  ;;  %v2319_v33 = vor.u32 %v3194_v27, %v2318_v26  ;;  %1651 = vmatpush.bf16.msra.mxu3 %v2591_v25 }
   0xc   :  { %v2574_v31 = vld [vmem:[%s5121_s1 + $0x3a0] sm:$0xf]  ;;  %v3258_v32 = vld [vmem:[%s5121_s1 + $0x3ac] sm:$0xf0]  ;;  %v2447_v34 = vor.u32 %v3226_v30, %v2446_v28  ;;  %1610 = vmatpush.bf16.msra.mxu0 %v2191_v29 }
   0xd   :  { %v2174_v35 = vld [vmem:[%s5121_s1 + $0x80] sm:$0xf]  ;;  %v3158_v36 = vld [vmem:[%s5121_s1 + $0x8c] sm:$0xf0]  ;;  %v2575_v38 = vor.u32 %v3258_v32, %v2574_v31  ;;  %1624 = vmatpush.bf16.msra.mxu1 %v2319_v33 }
   0xe   :  { %v2302_v37 = vld [vmem:[%s5121_s1 + $0x180] sm:$0xf]  ;;  %v3190_v39 = vld [vmem:[%s5121_s1 + $0x18c] sm:$0xf0]  ;;  %v2175_v44 = vor.u32 %v3158_v36, %v2174_v35  ;;  %1638 = vmatpush.bf16.msra.mxu2 %v2447_v34 }
   0xf   :  { %v2430_v40 = vld [vmem:[%s5121_s1 + $0x280] sm:$0xf]  ;;  %v3222_v41 = vld [vmem:[%s5121_s1 + $0x28c] sm:$0xf0]  ;;  %v2303_v45 = vor.u32 %v3190_v39, %v2302_v37  ;;  %1652 = vmatpush.bf16.msra.mxu3 %v2575_v38 }
  0x10   :  { %v2558_v42 = vld [vmem:[%s5121_s1 + $0x380] sm:$0xf]  ;;  %v3254_v43 = vld [vmem:[%s5121_s1 + $0x38c] sm:$0xf0]  ;;  %v2431_v46 = vor.u32 %v3222_v41, %v2430_v40  ;;  %1611 = vmatpush.bf16.msra.mxu0 %v2175_v44 }
  0x11   :  { %v2158_v47 = vld [vmem:[%s5121_s1 + $0x60] sm:$0xf]  ;;  %v3154_v48 = vld [vmem:[%s5121_s1 + $0x6c] sm:$0xf0]  ;;  %v2559_v50 = vor.u32 %v3254_v43, %v2558_v42  ;;  %1625 = vmatpush.bf16.msra.mxu1 %v2303_v45 }
  0x12   :  { %v2286_v49 = vld [vmem:[%s5121_s1 + $0x160] sm:$0xf]  ;;  %v3186_v51 = vld [vmem:[%s5121_s1 + $0x16c] sm:$0xf0]  ;;  %v2159_v56 = vor.u32 %v3154_v48, %v2158_v47  ;;  %1639 = vmatpush.bf16.msra.mxu2 %v2431_v46 }
  0x13   :  { %v2414_v52 = vld [vmem:[%s5121_s1 + $0x260] sm:$0xf]  ;;  %v3218_v53 = vld [vmem:[%s5121_s1 + $0x26c] sm:$0xf0]  ;;  %v2287_v57 = vor.u32 %v3186_v51, %v2286_v49  ;;  %1653 = vmatpush.bf16.msra.mxu3 %v2559_v50 }
  0x14   :  { %v2542_v54 = vld [vmem:[%s5121_s1 + $0x360] sm:$0xf]  ;;  %v3250_v55 = vld [vmem:[%s5121_s1 + $0x36c] sm:$0xf0]  ;;  %v2415_v58 = vor.u32 %v3218_v53, %v2414_v52  ;;  %1612 = vmatpush.bf16.msra.mxu0 %v2159_v56 }
  0x15   :  { %v2142_v59 = vld [vmem:[%s5121_s1 + $0x40] sm:$0xf]  ;;  %v3150_v60 = vld [vmem:[%s5121_s1 + $0x4c] sm:$0xf0]  ;;  %v2543_v62 = vor.u32 %v3250_v55, %v2542_v54  ;;  %1626 = vmatpush.bf16.msra.mxu1 %v2287_v57  ;;  %v2086_v54 = vld [vmem:[%s5122_s0 + $0x8] sm:$0xf] }
  0x16   :  { %v2270_v61 = vld [vmem:[%s5121_s1 + $0x140] sm:$0xf]  ;;  %v3182_v63 = vld [vmem:[%s5121_s1 + $0x14c] sm:$0xf0]  ;;  %v2143_v4 = vor.u32 %v3150_v60, %v2142_v59  ;;  %1640 = vmatpush.bf16.msra.mxu2 %v2415_v58  ;;  %v3137_v59 = vld [vmem:[%s5122_s0 + $0x24] sm:$0xf0] }
  0x17   :  { %v2398_v0 = vld [vmem:[%s5121_s1 + $0x240] sm:$0xf]  ;;  %v3214_v1 = vld [vmem:[%s5121_s1 + $0x24c] sm:$0xf0]  ;;  %v2271_v5 = vor.u32 %v3182_v63, %v2270_v61  ;;  %1654 = vmatpush.bf16.msra.mxu3 %v2543_v62 }
  0x18   :  { %v2526_v2 = vld [vmem:[%s5121_s1 + $0x340] sm:$0xf]  ;;  %v3246_v3 = vld [vmem:[%s5121_s1 + $0x34c] sm:$0xf0]  ;;  %v2399_v6 = vor.u32 %v3214_v1, %v2398_v0  ;;  %1613 = vmatpush.bf16.msra.mxu0 %v2143_v4  ;;  %v3685_v1 = vor.u32 %v3137_v59, %v2086_v54 }
  0x19   :  { %v2126_v7 = vld [vmem:[%s5121_s1 + $0x20] sm:$0xf]  ;;  %v3146_v8 = vld [vmem:[%s5121_s1 + $0x2c] sm:$0xf0]  ;;  %v2527_v10 = vor.u32 %v3246_v3, %v2526_v2  ;;  %1627 = vmatpush.bf16.msra.mxu1 %v2271_v5 }
  0x1a   :  { %v2254_v9 = vld [vmem:[%s5121_s1 + $0x120] sm:$0xf]  ;;  %v3178_v11 = vld [vmem:[%s5121_s1 + $0x12c] sm:$0xf0]  ;;  %v2127_v16 = vor.u32 %v3146_v8, %v2126_v7  ;;  %1641 = vmatpush.bf16.msra.mxu2 %v2399_v6  ;;  %v3132_v6 = vld [vmem:[%s5122_s0 + $0x4] sm:$0xf] }
  0x1b   :  { %v2382_v12 = vld [vmem:[%s5121_s1 + $0x220] sm:$0xf]  ;;  %v3210_v13 = vld [vmem:[%s5121_s1 + $0x22c] sm:$0xf0]  ;;  %v2255_v19 = vor.u32 %v3178_v11, %v2254_v9  ;;  %1655 = vmatpush.bf16.msra.mxu3 %v2527_v10  ;;  %v2080_v7 = vld [vmem:[%s5122_s0 + $0x20] sm:$0xf0] }
  0x1c   :  { %v2510_v14 = vld [vmem:[%s5121_s1 + $0x320] sm:$0xf]  ;;  %v3242_v15 = vld [vmem:[%s5121_s1 + $0x32c] sm:$0xf0]  ;;  %v2383_v20 = vor.u32 %v3210_v13, %v2382_v12  ;;  %1614 = vmatpush.bf16.msra.mxu0 %v2127_v16  ;;  %v3133_v8 = vld [vmem:[%s5122_s0 + $0xc] sm:$0xf]  ;;  %v3707_v10 = vor.u32 %v3132_v6, %v2080_v7 }
  0x1d   :  { %v2110_v17 = vld [vmem:[%s5121_s1] sm:$0xf]  ;;  %v3142_v18 = vld [vmem:[%s5121_s1 + $0xc] sm:$0xf0]  ;;  %v2511_v24 = vor.u32 %v3242_v15, %v2510_v14  ;;  %1628 = vmatpush.bf16.msra.mxu1 %v2255_v19  ;;  %v2088_v11 = vld [vmem:[%s5122_s0 + $0x28] sm:$0xf0] }
  0x1e   :  { %v2238_v21 = vld [vmem:[%s5121_s1 + $0x100] sm:$0xf]  ;;  %v3174_v22 = vld [vmem:[%s5121_s1 + $0x10c] sm:$0xf0]  ;;  %v2111_v31 = vor.u32 %v3142_v18, %v2110_v17  ;;  %1642 = vmatpush.bf16.msra.mxu2 %v2383_v20  ;;  %v3721_v17 = vor.u32 %v3133_v8, %v2088_v11 }
  0x1f   :  { %v2366_v23 = vld [vmem:[%s5121_s1 + $0x200] sm:$0xf]  ;;  %v3206_v25 = vld [vmem:[%s5121_s1 + $0x20c] sm:$0xf0]  ;;  %v2239_v35 = vor.u32 %v3174_v22, %v2238_v21  ;;  %1656 = vmatpush.bf16.msra.mxu3 %v2511_v24 }
  0x20   :  { %v2494_v26 = vld [vmem:[%s5121_s1 + $0x300] sm:$0xf]  ;;  %v3238_v27 = vld [vmem:[%s5121_s1 + $0x30c] sm:$0xf0]  ;;  %v2367_v36 = vor.u32 %v3206_v25, %v2366_v23  ;;  %1615 = vmatpush.bf16.msra.mxu0 %v2111_v31 }
  0x21   :  { %v2734_v28 = vld [vmem:[%s5121_s1 + $0x4e0] sm:$0xf]  ;;  %v3298_v29 = vld [vmem:[%s5121_s1 + $0x4ec] sm:$0xf0]  ;;  %v2495_v39 = vor.u32 %v3238_v27, %v2494_v26  ;;  %1629 = vmatpush.bf16.msra.mxu1 %v2239_v35 }
  0x22   :  { %v2862_v30 = vld [vmem:[%s5121_s1 + $0x5e0] sm:$0xf]  ;;  %v3330_v32 = vld [vmem:[%s5121_s1 + $0x5ec] sm:$0xf0]  ;;  %v2735_v40 = vor.u32 %v3298_v29, %v2734_v28  ;;  %1643 = vmatpush.bf16.msra.mxu2 %v2367_v36 }
  0x23   :  { %v2990_v33 = vld [vmem:[%s5121_s1 + $0x6e0] sm:$0xf]  ;;  %v3362_v34 = vld [vmem:[%s5121_s1 + $0x6ec] sm:$0xf0]  ;;  %v2863_v43 = vor.u32 %v3330_v32, %v2862_v30  ;;  %1657 = vmatpush.bf16.msra.mxu3 %v2495_v39 }
  0x24   :  { %v3118_v37 = vld [vmem:[%s5121_s1 + $0x7e0] sm:$0xf]  ;;  %v3394_v38 = vld [vmem:[%s5121_s1 + $0x7ec] sm:$0xf0]  ;;  %v2991_v44 = vor.u32 %v3362_v34, %v2990_v33  ;;  %1664 = vmatpush.bf16.msrb.mxu0 %v2735_v40  ;;  %1630 = vmatmul.bf16.vlgmr.msra.gmra.mxu1 %v3707_v10 }
  0x25   :  { %v2718_v41 = vld [vmem:[%s5121_s1 + $0x4c0] sm:$0xf]  ;;  %v3294_v42 = vld [vmem:[%s5121_s1 + $0x4cc] sm:$0xf0]  ;;  %v3119_v48 = vor.u32 %v3394_v38, %v3118_v37  ;;  %1678 = vmatpush.bf16.msrb.mxu1 %v2863_v43  ;;  %1644 = vmatmul.bf16.vlgmr.msra.gmra.mxu2 %v3685_v1 }
  0x26   :  { %v2846_v45 = vld [vmem:[%s5121_s1 + $0x5c0] sm:$0xf]  ;;  %v3326_v46 = vld [vmem:[%s5121_s1 + $0x5cc] sm:$0xf0]  ;;  %v2719_v55 = vor.u32 %v3294_v42, %v2718_v41  ;;  %1692 = vmatpush.bf16.msrb.mxu2 %v2991_v44  ;;  %1658 = vmatmul.bf16.vlgmr.msra.gmra.mxu3 %v3721_v17 }
  0x27   :  { %v2974_v47 = vld [vmem:[%s5121_s1 + $0x6c0] sm:$0xf]  ;;  %v3358_v49 = vld [vmem:[%s5121_s1 + $0x6cc] sm:$0xf0]  ;;  %v2847_v60 = vor.u32 %v3326_v46, %v2846_v45  ;;  %1706 = vmatpush.bf16.msrb.mxu3 %v3119_v48 }
  0x28   :  { %v3102_v50 = vld [vmem:[%s5121_s1 + $0x7c0] sm:$0xf]  ;;  %v3390_v51 = vld [vmem:[%s5121_s1 + $0x7cc] sm:$0xf0]  ;;  %v2975_v61 = vor.u32 %v3358_v49, %v2974_v47  ;;  %1665 = vmatpush.bf16.msrb.mxu0 %v2719_v55 }
  0x29   :  { %v2078_v52 = vld [vmem:[%s5122_s0] sm:$0xf]  ;;  %v3290_v57 = vld [vmem:[%s5121_s1 + $0x4ac] sm:$0xf0]  ;;  %v3103_v2 = vor.u32 %v3390_v51, %v3102_v50  ;;  %1679 = vmatpush.bf16.msrb.mxu1 %v2847_v60 }
  0x2a   :  { %v3136_v53 = vld [vmem:[%s5122_s0 + $0x1c] sm:$0xf0]  ;;  %v3322_v63 = vld [vmem:[%s5121_s1 + $0x5ac] sm:$0xf0]  ;;  %1693 = vmatpush.bf16.msrb.mxu2 %v2975_v61 }
  0x2b   :  { %v2702_v56 = vld [vmem:[%s5121_s1 + $0x4a0] sm:$0xf]  ;;  %v3671_v58 = vor.u32 %v3136_v53, %v2078_v52  ;;  %v3354_v3 = vld [vmem:[%s5121_s1 + $0x6ac] sm:$0xf0]  ;;  %1707 = vmatpush.bf16.msrb.mxu3 %v3103_v2 }
  0x2c   :  { %v2830_v62 = vld [vmem:[%s5121_s1 + $0x5a0] sm:$0xf]  ;;  %v3386_v5 = vld [vmem:[%s5121_s1 + $0x7ac] sm:$0xf0]  ;;  %v2703_v9 = vor.u32 %v3290_v57, %v2702_v56 }
  0x2d   :  { %v2958_v0 = vld [vmem:[%s5121_s1 + $0x6a0] sm:$0xf]  ;;  %1616 = vmatmul.bf16.vlgmr.msra.gmra.mxu0 %v3671_v58  ;;  %v2831_v12 = vor.u32 %v3322_v63, %v2830_v62  ;;  %v3286_v15 = vld [vmem:[%s5121_s1 + $0x48c] sm:$0xf0] }
  0x2e   :  { %v3086_v4 = vld [vmem:[%s5121_s1 + $0x7a0] sm:$0xf]  ;;  %v2959_v13 = vor.u32 %v3354_v3, %v2958_v0  ;;  %v3318_v19 = vld [vmem:[%s5121_s1 + $0x58c] sm:$0xf0]  ;;  %1666 = vmatpush.bf16.msrb.mxu0 %v2703_v9  ;;  %v3168_v9 = vld [vmem:[%s5121_s1 + $0xe4] sm:$0xf] }
  0x2f   :  { %v2686_v14 = vld [vmem:[%s5121_s1 + $0x480] sm:$0xf]  ;;  %v3087_v18 = vor.u32 %v3386_v5, %v3086_v4  ;;  %v3350_v21 = vld [vmem:[%s5121_s1 + $0x68c] sm:$0xf0]  ;;  %1680 = vmatpush.bf16.msrb.mxu1 %v2831_v12  ;;  %v2224_v12 = vld [vmem:[%s5121_s1 + $0xf0] sm:$0xf0] }
  0x30   :  { %v2814_v16 = vld [vmem:[%s5121_s1 + $0x580] sm:$0xf]  ;;  %v3382_v23 = vld [vmem:[%s5121_s1 + $0x78c] sm:$0xf0]  ;;  %v2687_v24 = vor.u32 %v3286_v15, %v2686_v14  ;;  %1694 = vmatpush.bf16.msrb.mxu2 %v2959_v13  ;;  %v3200_v13 = vld [vmem:[%s5121_s1 + $0x1e4] sm:$0xf] }
  0x31   :  { %v2942_v20 = vld [vmem:[%s5121_s1 + $0x680] sm:$0xf]  ;;  %v2815_v25 = vor.u32 %v3318_v19, %v2814_v16  ;;  %v3282_v28 = vld [vmem:[%s5121_s1 + $0x46c] sm:$0xf0]  ;;  %1708 = vmatpush.bf16.msrb.mxu3 %v3087_v18  ;;  %v2352_v14 = vld [vmem:[%s5121_s1 + $0x1f0] sm:$0xf0] }
  0x32   :  { %v3070_v22 = vld [vmem:[%s5121_s1 + $0x780] sm:$0xf]  ;;  %v2943_v26 = vor.u32 %v3350_v21, %v2942_v20  ;;  %v3314_v31 = vld [vmem:[%s5121_s1 + $0x56c] sm:$0xf0]  ;;  %1667 = vmatpush.bf16.msrb.mxu0 %v2687_v24  ;;  %v3232_v15 = vld [vmem:[%s5121_s1 + $0x2e4] sm:$0xf] }
  0x33   :  { %v2670_v27 = vld [vmem:[%s5121_s1 + $0x460] sm:$0xf]  ;;  %v3071_v30 = vor.u32 %v3382_v23, %v3070_v22  ;;  %v3346_v33 = vld [vmem:[%s5121_s1 + $0x66c] sm:$0xf0]  ;;  %1681 = vmatpush.bf16.msrb.mxu1 %v2815_v25  ;;  %v2480_v16 = vld [vmem:[%s5121_s1 + $0x2f0] sm:$0xf0] }
  0x34   :  { %v2798_v29 = vld [vmem:[%s5121_s1 + $0x560] sm:$0xf]  ;;  %v3378_v35 = vld [vmem:[%s5121_s1 + $0x76c] sm:$0xf0]  ;;  %v2671_v36 = vor.u32 %v3282_v28, %v2670_v27  ;;  %1695 = vmatpush.bf16.msrb.mxu2 %v2943_v26  ;;  %v3264_v18 = vld [vmem:[%s5121_s1 + $0x3e4] sm:$0xf] }
  0x35   :  { %v2926_v32 = vld [vmem:[%s5121_s1 + $0x660] sm:$0xf]  ;;  %v2799_v37 = vor.u32 %v3314_v31, %v2798_v29  ;;  %v3278_v40 = vld [vmem:[%s5121_s1 + $0x44c] sm:$0xf0]  ;;  %1709 = vmatpush.bf16.msrb.mxu3 %v3071_v30  ;;  %v2608_v20 = vld [vmem:[%s5121_s1 + $0x3f0] sm:$0xf0]  ;;  %v2227_v29 = vor.u32 %v3168_v9, %v2224_v12 }
  0x36   :  { %v3054_v34 = vld [vmem:[%s5121_s1 + $0x760] sm:$0xf]  ;;  %v2927_v38 = vor.u32 %v3346_v33, %v2926_v32  ;;  %v3310_v43 = vld [vmem:[%s5121_s1 + $0x54c] sm:$0xf0]  ;;  %1668 = vmatpush.bf16.msrb.mxu0 %v2671_v36  ;;  %v2102_v25 = vld [vmem:[%s5122_s0 + $0x18] sm:$0xf]  ;;  %v2355_v33 = vor.u32 %v3200_v13, %v2352_v14 }
  0x37   :  { %v2654_v39 = vld [vmem:[%s5121_s1 + $0x440] sm:$0xf]  ;;  %v3055_v42 = vor.u32 %v3378_v35, %v3054_v34  ;;  %v3342_v45 = vld [vmem:[%s5121_s1 + $0x64c] sm:$0xf0]  ;;  %1682 = vmatpush.bf16.msrb.mxu1 %v2799_v37  ;;  %v3139_v26 = vld [vmem:[%s5122_s0 + $0x34] sm:$0xf0]  ;;  %v2483_v34 = vor.u32 %v3232_v15, %v2480_v16 }
  0x38   :  { %v2782_v41 = vld [vmem:[%s5121_s1 + $0x540] sm:$0xf]  ;;  %v3374_v47 = vld [vmem:[%s5121_s1 + $0x74c] sm:$0xf0]  ;;  %v2655_v48 = vor.u32 %v3278_v40, %v2654_v39  ;;  %1696 = vmatpush.bf16.msrb.mxu2 %v2927_v38  ;;  %v3134_v27 = vld [vmem:[%s5122_s0 + $0x14] sm:$0xf]  ;;  %v2611_v38 = vor.u32 %v3264_v18, %v2608_v20 }
  0x39   :  { %v2910_v44 = vld [vmem:[%s5121_s1 + $0x640] sm:$0xf]  ;;  %v2783_v50 = vor.u32 %v3310_v43, %v2782_v41  ;;  %v3274_v52 = vld [vmem:[%s5121_s1 + $0x42c] sm:$0xf0]  ;;  %1710 = vmatpush.bf16.msrb.mxu3 %v3055_v42  ;;  %v2096_v30 = vld [vmem:[%s5122_s0 + $0x30] sm:$0xf0]  ;;  %v3904_v43 = vor.u32 %v3139_v26, %v2102_v25 }
  0x3a   :  { %v3038_v46 = vld [vmem:[%s5121_s1 + $0x740] sm:$0xf]  ;;  %v2911_v51 = vor.u32 %v3342_v45, %v2910_v44  ;;  %v3306_v54 = vld [vmem:[%s5121_s1 + $0x52c] sm:$0xf0]  ;;  %1669 = vmatpush.bf16.msrb.mxu0 %v2655_v48  ;;  %v3135_v31 = vld [vmem:[%s5122_s0 + $0x1c] sm:$0xf]  ;;  %v3906_v44 = vor.u32 %v3134_v27, %v2096_v30 }
  0x3b   :  { %v2638_v49 = vld [vmem:[%s5121_s1 + $0x420] sm:$0xf]  ;;  %v3039_v55 = vor.u32 %v3374_v47, %v3038_v46  ;;  %v3338_v57 = vld [vmem:[%s5121_s1 + $0x62c] sm:$0xf0]  ;;  %1683 = vmatpush.bf16.msrb.mxu1 %v2783_v50  ;;  %v2104_v32 = vld [vmem:[%s5122_s0 + $0x38] sm:$0xf0] }
  0x3c   :  { %v2766_v53 = vld [vmem:[%s5121_s1 + $0x520] sm:$0xf]  ;;  %v3370_v60 = vld [vmem:[%s5121_s1 + $0x72c] sm:$0xf0]  ;;  %v2639_v63 = vor.u32 %v3274_v52, %v2638_v49  ;;  %1697 = vmatpush.bf16.msrb.mxu2 %v2911_v51  ;;  %v3164_v35 = vld [vmem:[%s5121_s1 + $0xc4] sm:$0xf]  ;;  %v3914_v47 = vor.u32 %v3135_v31, %v2104_v32 }
  0x3d   :  { %v2894_v56 = vld [vmem:[%s5121_s1 + $0x620] sm:$0xf]  ;;  %v3270_v62 = vld [vmem:[%s5121_s1 + $0x40c] sm:$0xf0]  ;;  %v2767_v5 = vor.u32 %v3306_v54, %v2766_v53  ;;  %1711 = vmatpush.bf16.msrb.mxu3 %v3039_v55  ;;  %v2208_v36 = vld [vmem:[%s5121_s1 + $0xd0] sm:$0xf0] }
  0x3e   :  { %v3022_v59 = vld [vmem:[%s5121_s1 + $0x720] sm:$0xf]  ;;  %v3302_v2 = vld [vmem:[%s5121_s1 + $0x50c] sm:$0xf0]  ;;  %v2895_v6 = vor.u32 %v3338_v57, %v2894_v56  ;;  %1670 = vmatpush.bf16.msrb.mxu0 %v2639_v63  ;;  %v3196_v37 = vld [vmem:[%s5121_s1 + $0x1c4] sm:$0xf]  ;;  %v2211_v48 = vor.u32 %v3164_v35, %v2208_v36 }
  0x3f   :  { %v2622_v61 = vld [vmem:[%s5121_s1 + $0x400] sm:$0xf]  ;;  %v3334_v4 = vld [vmem:[%s5121_s1 + $0x60c] sm:$0xf0]  ;;  %v3023_v11 = vor.u32 %v3370_v60, %v3022_v59  ;;  %1684 = vmatpush.bf16.msrb.mxu1 %v2767_v5  ;;  %v2336_v40 = vld [vmem:[%s5121_s1 + $0x1d0] sm:$0xf0] }
  0x40   :  { %v2750_v0 = vld [vmem:[%s5121_s1 + $0x500] sm:$0xf]  ;;  %v3366_v8 = vld [vmem:[%s5121_s1 + $0x70c] sm:$0xf0]  ;;  %v2623_v19 = vor.u32 %v3270_v62, %v2622_v61  ;;  %1698 = vmatpush.bf16.msrb.mxu2 %v2895_v6  ;;  %v3228_v41 = vld [vmem:[%s5121_s1 + $0x2c4] sm:$0xf]  ;;  %v2339_v49 = vor.u32 %v3196_v37, %v2336_v40 }
  0x41   :  { %v2878_v3 = vld [vmem:[%s5121_s1 + $0x600] sm:$0xf]  ;;  %v2094_v21 = vld [vmem:[%s5122_s0 + $0x10] sm:$0xf]  ;;  %v2751_v23 = vor.u32 %v3302_v2, %v2750_v0  ;;  %1712 = vmatpush.bf16.msrb.mxu3 %v3023_v11  ;;  %v2464_v42 = vld [vmem:[%s5121_s1 + $0x2d0] sm:$0xf0] }
  0x42   :  { %v3006_v7 = vld [vmem:[%s5121_s1 + $0x700] sm:$0xf]  ;;  %v3138_v22 = vld [vmem:[%s5122_s0 + $0x2c] sm:$0xf0]  ;;  %v2879_v24 = vor.u32 %v3334_v4, %v2878_v3  ;;  %1671 = vmatpush.bf16.msrb.mxu0 %v2623_v19  ;;  %v3260_v45 = vld [vmem:[%s5121_s1 + $0x3c4] sm:$0xf]  ;;  %v2467_v50 = vor.u32 %v3228_v41, %v2464_v42 }
  0x43   :  { %v3007_v28 = vor.u32 %v3366_v8, %v3006_v7  ;;  %v3893_v39 = vor.u32 %v3138_v22, %v2094_v21  ;;  %1685 = vmatpush.bf16.msrb.mxu1 %v2751_v23  ;;  %v2592_v46 = vld [vmem:[%s5121_s1 + $0x3d0] sm:$0xf0]  ;;  %v3160_v51 = vld [vmem:[%s5121_s1 + $0xa4] sm:$0xf] }
  0x44   :  { %1699 = vmatpush.bf16.msrb.mxu2 %v2879_v24  ;;  %v2192_v52 = vld [vmem:[%s5121_s1 + $0xb0] sm:$0xf0]  ;;  %v3192_v53 = vld [vmem:[%s5121_s1 + $0x1a4] sm:$0xf]  ;;  %v2595_v54 = vor.u32 %v3260_v45, %v2592_v46 }
  0x45   :  { %1713 = vmatpush.bf16.msrb.mxu3 %v3007_v28  ;;  %1672 = vmatmul.bf16.vlgmr.msrb.gmra.mxu0 %v3893_v39  ;;  %v2320_v55 = vld [vmem:[%s5121_s1 + $0x1b0] sm:$0xf0]  ;;  %v3224_v56 = vld [vmem:[%s5121_s1 + $0x2a4] sm:$0xf]  ;;  %v2195_v61 = vor.u32 %v3160_v51, %v2192_v52 }
  0x46   :  { %1720 = vmatpush.bf16.msra.mxu0 %v2227_v29  ;;  %v2448_v57 = vld [vmem:[%s5121_s1 + $0x2b0] sm:$0xf0]  ;;  %1686 = vmatmul.bf16.vlgmr.msrb.gmra.mxu1 %v3906_v44  ;;  %v3256_v59 = vld [vmem:[%s5121_s1 + $0x3a4] sm:$0xf]  ;;  %v2323_v62 = vor.u32 %v3192_v53, %v2320_v55 }
  0x47   :  { %1734 = vmatpush.bf16.msra.mxu1 %v2355_v33  ;;  %1700 = vmatmul.bf16.vlgmr.msrb.gmra.mxu2 %v3904_v43  ;;  %v2576_v60 = vld [vmem:[%s5121_s1 + $0x3b0] sm:$0xf0]  ;;  %v2451_v63 = vor.u32 %v3224_v56, %v2448_v57  ;;  %v3156_v0 = vld [vmem:[%s5121_s1 + $0x84] sm:$0xf] }
  0x48   :  { %1748 = vmatpush.bf16.msra.mxu2 %v2483_v34  ;;  %1714 = vmatmul.bf16.vlgmr.msrb.gmra.mxu3 %v3914_v47  ;;  %v2176_v2 = vld [vmem:[%s5121_s1 + $0x90] sm:$0xf0]  ;;  %v3188_v3 = vld [vmem:[%s5121_s1 + $0x184] sm:$0xf]  ;;  %v2579_v4 = vor.u32 %v3256_v59, %v2576_v60 }
  0x49   :  { %1762 = vmatpush.bf16.msra.mxu3 %v2611_v38  ;;  %v2304_v5 = vld [vmem:[%s5121_s1 + $0x190] sm:$0xf0]  ;;  %v3220_v6 = vld [vmem:[%s5121_s1 + $0x284] sm:$0xf]  ;;  %v2179_v11 = vor.u32 %v3156_v0, %v2176_v2 }
  0x4a   :  { %1721 = vmatpush.bf16.msra.mxu0 %v2211_v48  ;;  %v2432_v7 = vld [vmem:[%s5121_s1 + $0x290] sm:$0xf0]  ;;  %v3252_v8 = vld [vmem:[%s5121_s1 + $0x384] sm:$0xf]  ;;  %v2307_v12 = vor.u32 %v3188_v3, %v2304_v5 }
  0x4b   :  { %1735 = vmatpush.bf16.msra.mxu1 %v2339_v49  ;;  %v2560_v9 = vld [vmem:[%s5121_s1 + $0x390] sm:$0xf0]  ;;  %v2435_v13 = vor.u32 %v3220_v6, %v2432_v7  ;;  %v3152_v14 = vld [vmem:[%s5121_s1 + $0x64] sm:$0xf] }
  0x4c   :  { %1749 = vmatpush.bf16.msra.mxu2 %v2467_v50  ;;  %v2160_v15 = vld [vmem:[%s5121_s1 + $0x70] sm:$0xf0]  ;;  %v3184_v16 = vld [vmem:[%s5121_s1 + $0x164] sm:$0xf]  ;;  %v2563_v18 = vor.u32 %v3252_v8, %v2560_v9 }
  0x4d   :  { %1763 = vmatpush.bf16.msra.mxu3 %v2595_v54  ;;  %v2288_v19 = vld [vmem:[%s5121_s1 + $0x170] sm:$0xf0]  ;;  %v3216_v20 = vld [vmem:[%s5121_s1 + $0x264] sm:$0xf]  ;;  %v2163_v24 = vor.u32 %v3152_v14, %v2160_v15 }
  0x4e   :  { %1722 = vmatpush.bf16.msra.mxu0 %v2195_v61  ;;  %v2416_v21 = vld [vmem:[%s5121_s1 + $0x270] sm:$0xf0]  ;;  %v3248_v22 = vld [vmem:[%s5121_s1 + $0x364] sm:$0xf]  ;;  %v2291_v25 = vor.u32 %v3184_v16, %v2288_v19 }
  0x4f   :  { %1736 = vmatpush.bf16.msra.mxu1 %v2323_v62  ;;  %v2544_v23 = vld [vmem:[%s5121_s1 + $0x370] sm:$0xf0]  ;;  %v2419_v26 = vor.u32 %v3216_v20, %v2416_v21  ;;  %v3148_v27 = vld [vmem:[%s5121_s1 + $0x44] sm:$0xf] }
  0x50   :  { %1750 = vmatpush.bf16.msra.mxu2 %v2451_v63  ;;  %v2144_v28 = vld [vmem:[%s5121_s1 + $0x50] sm:$0xf0]  ;;  %v3180_v29 = vld [vmem:[%s5121_s1 + $0x144] sm:$0xf]  ;;  %v2547_v30 = vor.u32 %v3248_v22, %v2544_v23 }
  0x51   :  { %1764 = vmatpush.bf16.msra.mxu3 %v2579_v4  ;;  %v2272_v31 = vld [vmem:[%s5121_s1 + $0x150] sm:$0xf0]  ;;  %v3212_v32 = vld [vmem:[%s5121_s1 + $0x244] sm:$0xf]  ;;  %v2147_v36 = vor.u32 %v3148_v27, %v2144_v28 }
  0x52   :  { %1723 = vmatpush.bf16.msra.mxu0 %v2179_v11  ;;  %v2400_v33 = vld [vmem:[%s5121_s1 + $0x250] sm:$0xf0]  ;;  %v3244_v34 = vld [vmem:[%s5121_s1 + $0x344] sm:$0xf]  ;;  %v2275_v37 = vor.u32 %v3180_v29, %v2272_v31 }
  0x53   :  { %1737 = vmatpush.bf16.msra.mxu1 %v2307_v12  ;;  %v2528_v35 = vld [vmem:[%s5121_s1 + $0x350] sm:$0xf0]  ;;  %v2403_v38 = vor.u32 %v3212_v32, %v2400_v33  ;;  %v3144_v40 = vld [vmem:[%s5121_s1 + $0x24] sm:$0xf] }
  0x54   :  { %1751 = vmatpush.bf16.msra.mxu2 %v2435_v13  ;;  %v2128_v41 = vld [vmem:[%s5121_s1 + $0x30] sm:$0xf0]  ;;  %v3176_v42 = vld [vmem:[%s5121_s1 + $0x124] sm:$0xf]  ;;  %v2531_v45 = vor.u32 %v3244_v34, %v2528_v35 }
  0x55   :  { %1765 = vmatpush.bf16.msra.mxu3 %v2563_v18  ;;  %v2256_v46 = vld [vmem:[%s5121_s1 + $0x130] sm:$0xf0]  ;;  %v3208_v48 = vld [vmem:[%s5121_s1 + $0x224] sm:$0xf]  ;;  %v2131_v52 = vor.u32 %v3144_v40, %v2128_v41 }
  0x56   :  { %1724 = vmatpush.bf16.msra.mxu0 %v2163_v24  ;;  %v2384_v49 = vld [vmem:[%s5121_s1 + $0x230] sm:$0xf0]  ;;  %v3240_v50 = vld [vmem:[%s5121_s1 + $0x324] sm:$0xf]  ;;  %v2259_v55 = vor.u32 %v3176_v42, %v2256_v46 }
  0x57   :  { %1738 = vmatpush.bf16.msra.mxu1 %v2291_v25  ;;  %v2512_v51 = vld [vmem:[%s5121_s1 + $0x330] sm:$0xf0]  ;;  %v3140_v53 = vld [vmem:[%s5121_s1 + $0x4] sm:$0xf]  ;;  %v2387_v56 = vor.u32 %v3208_v48, %v2384_v49 }
  0x58   :  { %1752 = vmatpush.bf16.msra.mxu2 %v2419_v26  ;;  %v2112_v54 = vld [vmem:[%s5121_s1 + $0x10] sm:$0xf0]  ;;  %v3172_v57 = vld [vmem:[%s5121_s1 + $0x104] sm:$0xf]  ;;  %v2515_v61 = vor.u32 %v3240_v50, %v2512_v51 }
  0x59   :  { %1766 = vmatpush.bf16.msra.mxu3 %v2547_v30  ;;  %v2240_v59 = vld [vmem:[%s5121_s1 + $0x110] sm:$0xf0]  ;;  %v3204_v60 = vld [vmem:[%s5121_s1 + $0x204] sm:$0xf]  ;;  %v2115_v5 = vor.u32 %v3140_v53, %v2112_v54 }
  0x5a   :  { %1725 = vmatpush.bf16.msra.mxu0 %v2147_v36  ;;  %v2368_v62 = vld [vmem:[%s5121_s1 + $0x210] sm:$0xf0]  ;;  %v3236_v63 = vld [vmem:[%s5121_s1 + $0x304] sm:$0xf]  ;;  %v2243_v9 = vor.u32 %v3172_v57, %v2240_v59 }
  0x5b   :  { %1739 = vmatpush.bf16.msra.mxu1 %v2275_v37  ;;  %v2496_v0 = vld [vmem:[%s5121_s1 + $0x310] sm:$0xf0]  ;;  %v3296_v2 = vld [vmem:[%s5121_s1 + $0x4e4] sm:$0xf]  ;;  %v2371_v11 = vor.u32 %v3204_v60, %v2368_v62 }
  0x5c   :  { %1753 = vmatpush.bf16.msra.mxu2 %v2403_v38  ;;  %v2736_v3 = vld [vmem:[%s5121_s1 + $0x4f0] sm:$0xf0]  ;;  %v3328_v4 = vld [vmem:[%s5121_s1 + $0x5e4] sm:$0xf]  ;;  %v2499_v14 = vor.u32 %v3236_v63, %v2496_v0 }
  0x5d   :  { %1767 = vmatpush.bf16.msra.mxu3 %v2531_v45  ;;  %v2864_v6 = vld [vmem:[%s5121_s1 + $0x5f0] sm:$0xf0]  ;;  %v3360_v7 = vld [vmem:[%s5121_s1 + $0x6e4] sm:$0xf]  ;;  %v2739_v15 = vor.u32 %v3296_v2, %v2736_v3 }
  0x5e   :  { %1726 = vmatpush.bf16.msra.mxu0 %v2131_v52  ;;  %v2992_v8 = vld [vmem:[%s5121_s1 + $0x6f0] sm:$0xf0]  ;;  %v3392_v12 = vld [vmem:[%s5121_s1 + $0x7e4] sm:$0xf]  ;;  %v2867_v16 = vor.u32 %v3328_v4, %v2864_v6 }
  0x5f   :  { %1740 = vmatpush.bf16.msra.mxu1 %v2259_v55  ;;  %v3120_v13 = vld [vmem:[%s5121_s1 + $0x7f0] sm:$0xf0]  ;;  %v2995_v18 = vor.u32 %v3360_v7, %v2992_v8  ;;  %v3292_v19 = vld [vmem:[%s5121_s1 + $0x4c4] sm:$0xf] }
  0x60   :  { %1754 = vmatpush.bf16.msra.mxu2 %v2387_v56  ;;  %v2720_v20 = vld [vmem:[%s5121_s1 + $0x4d0] sm:$0xf0]  ;;  %v3324_v21 = vld [vmem:[%s5121_s1 + $0x5c4] sm:$0xf]  ;;  %v3123_v22 = vor.u32 %v3392_v12, %v3120_v13 }
  0x61   :  { %1768 = vmatpush.bf16.msra.mxu3 %v2515_v61  ;;  %v2848_v23 = vld [vmem:[%s5121_s1 + $0x5d0] sm:$0xf0]  ;;  %v3356_v24 = vld [vmem:[%s5121_s1 + $0x6c4] sm:$0xf]  ;;  %v2723_v28 = vor.u32 %v3292_v19, %v2720_v20 }
  0x62   :  { %1727 = vmatpush.bf16.msra.mxu0 %v2115_v5  ;;  %v2976_v25 = vld [vmem:[%s5121_s1 + $0x6d0] sm:$0xf0]  ;;  %v3388_v26 = vld [vmem:[%s5121_s1 + $0x7c4] sm:$0xf]  ;;  %v2851_v29 = vor.u32 %v3324_v21, %v2848_v23 }
  0x63   :  { %1741 = vmatpush.bf16.msra.mxu1 %v2243_v9  ;;  %v3104_v27 = vld [vmem:[%s5121_s1 + $0x7d0] sm:$0xf0]  ;;  %v2979_v30 = vor.u32 %v3356_v24, %v2976_v25  ;;  %v3288_v31 = vld [vmem:[%s5121_s1 + $0x4a4] sm:$0xf] }
  0x64   :  { %1755 = vmatpush.bf16.msra.mxu2 %v2371_v11  ;;  %v2704_v32 = vld [vmem:[%s5121_s1 + $0x4b0] sm:$0xf0]  ;;  %v3320_v33 = vld [vmem:[%s5121_s1 + $0x5a4] sm:$0xf]  ;;  %v3107_v34 = vor.u32 %v3388_v26, %v3104_v27 }
  0x65   :  { %1769 = vmatpush.bf16.msra.mxu3 %v2499_v14  ;;  %v2832_v35 = vld [vmem:[%s5121_s1 + $0x5b0] sm:$0xf0]  ;;  %v3352_v36 = vld [vmem:[%s5121_s1 + $0x6a4] sm:$0xf]  ;;  %1728 = vmatmul.bf16.vlgmr.msra.gmra.mxu0 %v3671_v58  ;;  %v2707_v41 = vor.u32 %v3288_v31, %v2704_v32 }
  0x66   :  { %1776 = vmatpush.bf16.msrb.mxu0 %v2739_v15  ;;  %v2960_v37 = vld [vmem:[%s5121_s1 + $0x6b0] sm:$0xf0]  ;;  %v3384_v38 = vld [vmem:[%s5121_s1 + $0x7a4] sm:$0xf]  ;;  %1742 = vmatmul.bf16.vlgmr.msra.gmra.mxu1 %v3707_v10  ;;  %v2835_v42 = vor.u32 %v3320_v33, %v2832_v35 }
  0x67   :  { %1790 = vmatpush.bf16.msrb.mxu1 %v2867_v16  ;;  %v3088_v40 = vld [vmem:[%s5121_s1 + $0x7b0] sm:$0xf0]  ;;  %1756 = vmatmul.bf16.vlgmr.msra.gmra.mxu2 %v3685_v1  ;;  %v2963_v45 = vor.u32 %v3352_v36, %v2960_v37  ;;  %v3284_v46 = vld [vmem:[%s5121_s1 + $0x484] sm:$0xf] }
  0x68   :  { %1804 = vmatpush.bf16.msrb.mxu2 %v2995_v18  ;;  %1770 = vmatmul.bf16.vlgmr.msra.gmra.mxu3 %v3721_v17  ;;  %v2688_v48 = vld [vmem:[%s5121_s1 + $0x490] sm:$0xf0]  ;;  %v3316_v49 = vld [vmem:[%s5121_s1 + $0x584] sm:$0xf]  ;;  %v3091_v50 = vor.u32 %v3384_v38, %v3088_v40 }
  0x69   :  { %1818 = vmatpush.bf16.msrb.mxu3 %v3123_v22  ;;  %v2816_v51 = vld [vmem:[%s5121_s1 + $0x590] sm:$0xf0]  ;;  %v3348_v52 = vld [vmem:[%s5121_s1 + $0x684] sm:$0xf]  ;;  %v2691_v56 = vor.u32 %v3284_v46, %v2688_v48  ;;  %v2230_v48 = vld [vmem:[%s5121_s1 + $0xe8] sm:$0xf] }
  0x6a   :  { %1777 = vmatpush.bf16.msrb.mxu0 %v2723_v28  ;;  %v2944_v53 = vld [vmem:[%s5121_s1 + $0x690] sm:$0xf0]  ;;  %v3380_v54 = vld [vmem:[%s5121_s1 + $0x784] sm:$0xf]  ;;  %v2819_v57 = vor.u32 %v3316_v49, %v2816_v51  ;;  %v3171_v49 = vld [vmem:[%s5121_s1 + $0xf4] sm:$0xf0] }
  0x6b   :  { %1791 = vmatpush.bf16.msrb.mxu1 %v2851_v29  ;;  %v3072_v55 = vld [vmem:[%s5121_s1 + $0x790] sm:$0xf0]  ;;  %v2947_v59 = vor.u32 %v3348_v52, %v2944_v53  ;;  %v3280_v60 = vld [vmem:[%s5121_s1 + $0x464] sm:$0xf]  ;;  %v3203_v52 = vld [vmem:[%s5121_s1 + $0x1f4] sm:$0xf0] }
  0x6c   :  { %1805 = vmatpush.bf16.msrb.mxu2 %v2979_v30  ;;  %v2672_v61 = vld [vmem:[%s5121_s1 + $0x470] sm:$0xf0]  ;;  %v3312_v62 = vld [vmem:[%s5121_s1 + $0x564] sm:$0xf]  ;;  %v3075_v63 = vor.u32 %v3380_v54, %v3072_v55  ;;  %v2486_v53 = vld [vmem:[%s5121_s1 + $0x2e8] sm:$0xf] }
  0x6d   :  { %1819 = vmatpush.bf16.msrb.mxu3 %v3107_v34  ;;  %v2800_v0 = vld [vmem:[%s5121_s1 + $0x570] sm:$0xf0]  ;;  %v3344_v2 = vld [vmem:[%s5121_s1 + $0x664] sm:$0xf]  ;;  %v2675_v6 = vor.u32 %v3280_v60, %v2672_v61  ;;  %v3235_v54 = vld [vmem:[%s5121_s1 + $0x2f4] sm:$0xf0]  ;;  %v2231_v61 = vor.u32 %v3171_v49, %v2230_v48 }
  0x6e   :  { %1778 = vmatpush.bf16.msrb.mxu0 %v2707_v41  ;;  %v2928_v3 = vld [vmem:[%s5121_s1 + $0x670] sm:$0xf0]  ;;  %v3376_v4 = vld [vmem:[%s5121_s1 + $0x764] sm:$0xf]  ;;  %v2803_v7 = vor.u32 %v3312_v62, %v2800_v0  ;;  %v2214_v0 = vld [vmem:[%s5121_s1 + $0xc8] sm:$0xf] }
  0x6f   :  { %1792 = vmatpush.bf16.msrb.mxu1 %v2835_v42  ;;  %v3056_v5 = vld [vmem:[%s5121_s1 + $0x770] sm:$0xf0]  ;;  %v2931_v8 = vor.u32 %v3344_v2, %v2928_v3  ;;  %v3276_v9 = vld [vmem:[%s5121_s1 + $0x444] sm:$0xf]  ;;  %v3167_v2 = vld [vmem:[%s5121_s1 + $0xd4] sm:$0xf0] }
  0x70   :  { %1806 = vmatpush.bf16.msrb.mxu2 %v2963_v45  ;;  %v2656_v11 = vld [vmem:[%s5121_s1 + $0x450] sm:$0xf0]  ;;  %v3308_v12 = vld [vmem:[%s5121_s1 + $0x544] sm:$0xf]  ;;  %v3059_v13 = vor.u32 %v3376_v4, %v3056_v5  ;;  %v2342_v3 = vld [vmem:[%s5121_s1 + $0x1c8] sm:$0xf] }
  0x71   :  { %1820 = vmatpush.bf16.msrb.mxu3 %v3091_v50  ;;  %v2784_v14 = vld [vmem:[%s5121_s1 + $0x550] sm:$0xf0]  ;;  %v3340_v15 = vld [vmem:[%s5121_s1 + $0x644] sm:$0xf]  ;;  %v2659_v20 = vor.u32 %v3276_v9, %v2656_v11  ;;  %v2358_v50 = vld [vmem:[%s5121_s1 + $0x1e8] sm:$0xf]  ;;  %v2215_v11 = vor.u32 %v3167_v2, %v2214_v0 }
  0x72   :  { %1779 = vmatpush.bf16.msrb.mxu0 %v2691_v56  ;;  %v2912_v16 = vld [vmem:[%s5121_s1 + $0x650] sm:$0xf0]  ;;  %v3372_v18 = vld [vmem:[%s5121_s1 + $0x744] sm:$0xf]  ;;  %v2787_v21 = vor.u32 %v3308_v12, %v2784_v14  ;;  %v2359_v62 = vor.u32 %v3203_v52, %v2358_v50  ;;  %v3199_v5 = vld [vmem:[%s5121_s1 + $0x1d4] sm:$0xf0] }
  0x73   :  { %1793 = vmatpush.bf16.msrb.mxu1 %v2819_v57  ;;  %v3040_v19 = vld [vmem:[%s5121_s1 + $0x750] sm:$0xf0]  ;;  %v2915_v22 = vor.u32 %v3340_v15, %v2912_v16  ;;  %v3272_v23 = vld [vmem:[%s5121_s1 + $0x424] sm:$0xf]  ;;  %v2614_v57 = vld [vmem:[%s5121_s1 + $0x3e8] sm:$0xf]  ;;  %v2343_v12 = vor.u32 %v3199_v5, %v2342_v3 }
  0x74   :  { %1807 = vmatpush.bf16.msrb.mxu2 %v2947_v59  ;;  %v2640_v24 = vld [vmem:[%s5121_s1 + $0x430] sm:$0xf0]  ;;  %v3304_v25 = vld [vmem:[%s5121_s1 + $0x524] sm:$0xf]  ;;  %v3043_v26 = vor.u32 %v3372_v18, %v3040_v19  ;;  %v3267_v59 = vld [vmem:[%s5121_s1 + $0x3f4] sm:$0xf0] }
  0x75   :  { %1821 = vmatpush.bf16.msrb.mxu3 %v3075_v63  ;;  %v2768_v27 = vld [vmem:[%s5121_s1 + $0x530] sm:$0xf0]  ;;  %v3336_v28 = vld [vmem:[%s5121_s1 + $0x624] sm:$0xf]  ;;  %v2643_v32 = vor.u32 %v3272_v23, %v2640_v24  ;;  %v2487_v63 = vor.u32 %v3235_v54, %v2486_v53  ;;  %v2615_v4 = vor.u32 %v3267_v59, %v2614_v57  ;;  %v3263_v9 = vld [vmem:[%s5121_s1 + $0x3d4] sm:$0xf0] }
  0x76   :  { %1780 = vmatpush.bf16.msrb.mxu0 %v2675_v6  ;;  %v2896_v29 = vld [vmem:[%s5121_s1 + $0x630] sm:$0xf0]  ;;  %v3368_v30 = vld [vmem:[%s5121_s1 + $0x724] sm:$0xf]  ;;  %v2771_v35 = vor.u32 %v3304_v25, %v2768_v27  ;;  %v2470_v6 = vld [vmem:[%s5121_s1 + $0x2c8] sm:$0xf] }
  0x77   :  { %1794 = vmatpush.bf16.msrb.mxu1 %v2803_v7  ;;  %v3024_v31 = vld [vmem:[%s5121_s1 + $0x730] sm:$0xf0]  ;;  %v3268_v33 = vld [vmem:[%s5121_s1 + $0x404] sm:$0xf]  ;;  %v2899_v36 = vor.u32 %v3336_v28, %v2896_v29  ;;  %v3231_v7 = vld [vmem:[%s5121_s1 + $0x2d4] sm:$0xf0] }
  0x78   :  { %1808 = vmatpush.bf16.msrb.mxu2 %v2931_v8  ;;  %v2624_v34 = vld [vmem:[%s5121_s1 + $0x410] sm:$0xf0]  ;;  %v3300_v37 = vld [vmem:[%s5121_s1 + $0x504] sm:$0xf]  ;;  %v3027_v41 = vor.u32 %v3368_v30, %v3024_v31  ;;  %v2598_v8 = vld [vmem:[%s5121_s1 + $0x3c8] sm:$0xf] }
  0x79   :  { %1822 = vmatpush.bf16.msrb.mxu3 %v3059_v13  ;;  %v2752_v38 = vld [vmem:[%s5121_s1 + $0x510] sm:$0xf0]  ;;  %v3332_v40 = vld [vmem:[%s5121_s1 + $0x604] sm:$0xf]  ;;  %v2627_v51 = vor.u32 %v3268_v33, %v2624_v34  ;;  %v2471_v13 = vor.u32 %v3231_v7, %v2470_v6  ;;  %v2198_v14 = vld [vmem:[%s5121_s1 + $0xa8] sm:$0xf]  ;;  %v2599_v18 = vor.u32 %v3263_v9, %v2598_v8 }
  0x7a   :  { %1781 = vmatpush.bf16.msrb.mxu0 %v2659_v20  ;;  %v2880_v42 = vld [vmem:[%s5121_s1 + $0x610] sm:$0xf0]  ;;  %v3364_v45 = vld [vmem:[%s5121_s1 + $0x704] sm:$0xf]  ;;  %v2755_v55 = vor.u32 %v3300_v37, %v2752_v38  ;;  %v3163_v15 = vld [vmem:[%s5121_s1 + $0xb4] sm:$0xf0] }
  0x7b   :  { %1795 = vmatpush.bf16.msrb.mxu1 %v2787_v21  ;;  %v3008_v46 = vld [vmem:[%s5121_s1 + $0x710] sm:$0xf0]  ;;  %v2883_v56 = vor.u32 %v3332_v40, %v2880_v42  ;;  %v2326_v16 = vld [vmem:[%s5121_s1 + $0x1a8] sm:$0xf]  ;;  %v3195_v19 = vld [vmem:[%s5121_s1 + $0x1b4] sm:$0xf0]  ;;  %v2199_v24 = vor.u32 %v3163_v15, %v2198_v14 }
  0x7c   :  { %1809 = vmatpush.bf16.msrb.mxu2 %v2915_v22  ;;  %v3011_v60 = vor.u32 %v3364_v45, %v3008_v46  ;;  %v2454_v20 = vld [vmem:[%s5121_s1 + $0x2a8] sm:$0xf]  ;;  %v3227_v21 = vld [vmem:[%s5121_s1 + $0x2b4] sm:$0xf0]  ;;  %v2327_v25 = vor.u32 %v3195_v19, %v2326_v16 }
  0x7d   :  { %1823 = vmatpush.bf16.msrb.mxu3 %v3043_v26  ;;  %v2582_v22 = vld [vmem:[%s5121_s1 + $0x3a8] sm:$0xf]  ;;  %v3259_v23 = vld [vmem:[%s5121_s1 + $0x3b4] sm:$0xf0]  ;;  %v2455_v26 = vor.u32 %v3227_v21, %v2454_v20 }
  0x7e   :  { %1782 = vmatpush.bf16.msrb.mxu0 %v2643_v32  ;;  %v2182_v27 = vld [vmem:[%s5121_s1 + $0x88] sm:$0xf]  ;;  %v3159_v28 = vld [vmem:[%s5121_s1 + $0x94] sm:$0xf0]  ;;  %v2583_v30 = vor.u32 %v3259_v23, %v2582_v22 }
  0x7f   :  { %1796 = vmatpush.bf16.msrb.mxu1 %v2771_v35  ;;  %v2310_v29 = vld [vmem:[%s5121_s1 + $0x188] sm:$0xf]  ;;  %v3191_v31 = vld [vmem:[%s5121_s1 + $0x194] sm:$0xf0] }
  0x80   :  { %1810 = vmatpush.bf16.msrb.mxu2 %v2899_v36  ;;  %v2438_v32 = vld [vmem:[%s5121_s1 + $0x288] sm:$0xf]  ;;  %v3223_v33 = vld [vmem:[%s5121_s1 + $0x294] sm:$0xf0]  ;;  %v2183_v36 = vor.u32 %v3159_v28, %v2182_v27  ;;  %v2311_v37 = vor.u32 %v3191_v31, %v2310_v29 }
  0x81   :  { %1824 = vmatpush.bf16.msrb.mxu3 %v3027_v41  ;;  %v2566_v34 = vld [vmem:[%s5121_s1 + $0x388] sm:$0xf]  ;;  %v3255_v35 = vld [vmem:[%s5121_s1 + $0x394] sm:$0xf0]  ;;  %v2439_v38 = vor.u32 %v3223_v33, %v2438_v32 }
  0x82   :  { %1783 = vmatpush.bf16.msrb.mxu0 %v2627_v51  ;;  %v2166_v40 = vld [vmem:[%s5121_s1 + $0x68] sm:$0xf]  ;;  %v3155_v41 = vld [vmem:[%s5121_s1 + $0x74] sm:$0xf0]  ;;  %v2567_v45 = vor.u32 %v3255_v35, %v2566_v34 }
  0x83   :  { %1797 = vmatpush.bf16.msrb.mxu1 %v2755_v55  ;;  %v2294_v42 = vld [vmem:[%s5121_s1 + $0x168] sm:$0xf]  ;;  %v3187_v46 = vld [vmem:[%s5121_s1 + $0x174] sm:$0xf0]  ;;  %v2167_v52 = vor.u32 %v3155_v41, %v2166_v40 }
  0x84   :  { %1811 = vmatpush.bf16.msrb.mxu2 %v2883_v56  ;;  %v2422_v48 = vld [vmem:[%s5121_s1 + $0x268] sm:$0xf]  ;;  %v3219_v49 = vld [vmem:[%s5121_s1 + $0x274] sm:$0xf0]  ;;  %v2295_v53 = vor.u32 %v3187_v46, %v2294_v42 }
  0x85   :  { %1825 = vmatpush.bf16.msrb.mxu3 %v3011_v60  ;;  %1784 = vmatmul.bf16.vlgmr.msrb.gmra.mxu0 %v3893_v39  ;;  %v2550_v50 = vld [vmem:[%s5121_s1 + $0x368] sm:$0xf]  ;;  %v3251_v51 = vld [vmem:[%s5121_s1 + $0x374] sm:$0xf0]  ;;  %v2423_v54 = vor.u32 %v3219_v49, %v2422_v48 }
  0x86   :  { %1832 = vmatpush.bf16.msra.mxu0 %v2231_v61  ;;  %1798 = vmatmul.bf16.vlgmr.msrb.gmra.mxu1 %v3906_v44  ;;  %v2150_v55 = vld [vmem:[%s5121_s1 + $0x48] sm:$0xf]  ;;  %v3151_v56 = vld [vmem:[%s5121_s1 + $0x54] sm:$0xf0]  ;;  %v2551_v59 = vor.u32 %v3251_v51, %v2550_v50 }
  0x87   :  { %1846 = vmatpush.bf16.msra.mxu1 %v2359_v62  ;;  %1812 = vmatmul.bf16.vlgmr.msrb.gmra.mxu2 %v3904_v43  ;;  %v2278_v57 = vld [vmem:[%s5121_s1 + $0x148] sm:$0xf]  ;;  %v3183_v60 = vld [vmem:[%s5121_s1 + $0x154] sm:$0xf0]  ;;  %v2151_v2 = vor.u32 %v3151_v56, %v2150_v55 }
  0x88   :  { %1860 = vmatpush.bf16.msra.mxu2 %v2487_v63  ;;  %1826 = vmatmul.bf16.vlgmr.msrb.gmra.mxu3 %v3914_v47  ;;  %v2406_v61 = vld [vmem:[%s5121_s1 + $0x248] sm:$0xf]  ;;  %v3215_v62 = vld [vmem:[%s5121_s1 + $0x254] sm:$0xf0]  ;;  %v2279_v3 = vor.u32 %v3183_v60, %v2278_v57 }
  0x89   :  { %1874 = vmatpush.bf16.msra.mxu3 %v2615_v4  ;;  %v2534_v63 = vld [vmem:[%s5121_s1 + $0x348] sm:$0xf]  ;;  %v3247_v0 = vld [vmem:[%s5121_s1 + $0x354] sm:$0xf0]  ;;  %v2407_v4 = vor.u32 %v3215_v62, %v2406_v61 }
  0x8a   :  { %1833 = vmatpush.bf16.msra.mxu0 %v2215_v11  ;;  %v2134_v5 = vld [vmem:[%s5121_s1 + $0x28] sm:$0xf]  ;;  %v3147_v6 = vld [vmem:[%s5121_s1 + $0x34] sm:$0xf0]  ;;  %v2535_v8 = vor.u32 %v3247_v0, %v2534_v63 }
  0x8b   :  { %1847 = vmatpush.bf16.msra.mxu1 %v2343_v12  ;;  %v2262_v7 = vld [vmem:[%s5121_s1 + $0x128] sm:$0xf]  ;;  %v3179_v9 = vld [vmem:[%s5121_s1 + $0x134] sm:$0xf0]  ;;  %v2135_v15 = vor.u32 %v3147_v6, %v2134_v5 }
  0x8c   :  { %1861 = vmatpush.bf16.msra.mxu2 %v2471_v13  ;;  %v2390_v11 = vld [vmem:[%s5121_s1 + $0x228] sm:$0xf]  ;;  %v3211_v12 = vld [vmem:[%s5121_s1 + $0x234] sm:$0xf0]  ;;  %v2263_v19 = vor.u32 %v3179_v9, %v2262_v7 }
  0x8d   :  { %1875 = vmatpush.bf16.msra.mxu3 %v2599_v18  ;;  %v2518_v13 = vld [vmem:[%s5121_s1 + $0x328] sm:$0xf]  ;;  %v3243_v14 = vld [vmem:[%s5121_s1 + $0x334] sm:$0xf0]  ;;  %v2391_v20 = vor.u32 %v3211_v12, %v2390_v11 }
  0x8e   :  { %1834 = vmatpush.bf16.msra.mxu0 %v2199_v24  ;;  %v2118_v16 = vld [vmem:[%s5121_s1 + $0x8] sm:$0xf]  ;;  %v3143_v18 = vld [vmem:[%s5121_s1 + $0x14] sm:$0xf0]  ;;  %v2519_v24 = vor.u32 %v3243_v14, %v2518_v13 }
  0x8f   :  { %1848 = vmatpush.bf16.msra.mxu1 %v2327_v25  ;;  %v2246_v21 = vld [vmem:[%s5121_s1 + $0x108] sm:$0xf]  ;;  %v3175_v22 = vld [vmem:[%s5121_s1 + $0x114] sm:$0xf0]  ;;  %v2119_v31 = vor.u32 %v3143_v18, %v2118_v16 }
  0x90   :  { %1862 = vmatpush.bf16.msra.mxu2 %v2455_v26  ;;  %v2374_v23 = vld [vmem:[%s5121_s1 + $0x208] sm:$0xf]  ;;  %v3207_v25 = vld [vmem:[%s5121_s1 + $0x214] sm:$0xf0]  ;;  %v2247_v35 = vor.u32 %v3175_v22, %v2246_v21 }
  0x91   :  { %1876 = vmatpush.bf16.msra.mxu3 %v2583_v30  ;;  %v2502_v26 = vld [vmem:[%s5121_s1 + $0x308] sm:$0xf]  ;;  %v3239_v27 = vld [vmem:[%s5121_s1 + $0x314] sm:$0xf0] }
  0x92   :  { %1835 = vmatpush.bf16.msra.mxu0 %v2183_v36  ;;  %v2742_v28 = vld [vmem:[%s5121_s1 + $0x4e8] sm:$0xf]  ;;  %v3299_v29 = vld [vmem:[%s5121_s1 + $0x4f4] sm:$0xf0]  ;;  %v2375_v36 = vor.u32 %v3207_v25, %v2374_v23  ;;  %v2503_v40 = vor.u32 %v3239_v27, %v2502_v26 }
  0x93   :  { %1849 = vmatpush.bf16.msra.mxu1 %v2311_v37  ;;  %v2870_v30 = vld [vmem:[%s5121_s1 + $0x5e8] sm:$0xf]  ;;  %v3331_v32 = vld [vmem:[%s5121_s1 + $0x5f4] sm:$0xf0]  ;;  %v2743_v41 = vor.u32 %v3299_v29, %v2742_v28 }
  0x94   :  { %1863 = vmatpush.bf16.msra.mxu2 %v2439_v38  ;;  %v2998_v33 = vld [vmem:[%s5121_s1 + $0x6e8] sm:$0xf]  ;;  %v3363_v34 = vld [vmem:[%s5121_s1 + $0x6f4] sm:$0xf0]  ;;  %v2871_v42 = vor.u32 %v3331_v32, %v2870_v30 }
  0x95   :  { %1877 = vmatpush.bf16.msra.mxu3 %v2567_v45  ;;  %v3126_v37 = vld [vmem:[%s5121_s1 + $0x7e8] sm:$0xf]  ;;  %v3395_v38 = vld [vmem:[%s5121_s1 + $0x7f4] sm:$0xf0]  ;;  %v2999_v45 = vor.u32 %v3363_v34, %v2998_v33 }
  0x96   :  { %1836 = vmatpush.bf16.msra.mxu0 %v2167_v52  ;;  %v2726_v46 = vld [vmem:[%s5121_s1 + $0x4c8] sm:$0xf]  ;;  %v3295_v48 = vld [vmem:[%s5121_s1 + $0x4d4] sm:$0xf0]  ;;  %v3127_v50 = vor.u32 %v3395_v38, %v3126_v37 }
  0x97   :  { %1850 = vmatpush.bf16.msra.mxu1 %v2295_v53  ;;  %v2854_v49 = vld [vmem:[%s5121_s1 + $0x5c8] sm:$0xf]  ;;  %v3327_v51 = vld [vmem:[%s5121_s1 + $0x5d4] sm:$0xf0]  ;;  %v2727_v56 = vor.u32 %v3295_v48, %v2726_v46 }
  0x98   :  { %1864 = vmatpush.bf16.msra.mxu2 %v2423_v54  ;;  %v2982_v52 = vld [vmem:[%s5121_s1 + $0x6c8] sm:$0xf]  ;;  %v3359_v53 = vld [vmem:[%s5121_s1 + $0x6d4] sm:$0xf0]  ;;  %v2855_v57 = vor.u32 %v3327_v51, %v2854_v49 }
  0x99   :  { %1878 = vmatpush.bf16.msra.mxu3 %v2551_v59  ;;  %v3110_v54 = vld [vmem:[%s5121_s1 + $0x7c8] sm:$0xf]  ;;  %v3391_v55 = vld [vmem:[%s5121_s1 + $0x7d4] sm:$0xf0]  ;;  %v2983_v59 = vor.u32 %v3359_v53, %v2982_v52 }
  0x9a   :  { %1837 = vmatpush.bf16.msra.mxu0 %v2151_v2  ;;  %v2710_v60 = vld [vmem:[%s5121_s1 + $0x4a8] sm:$0xf]  ;;  %v3291_v61 = vld [vmem:[%s5121_s1 + $0x4b4] sm:$0xf0]  ;;  %v3111_v63 = vor.u32 %v3391_v55, %v3110_v54 }
  0x9b   :  { %1851 = vmatpush.bf16.msra.mxu1 %v2279_v3  ;;  %v2838_v62 = vld [vmem:[%s5121_s1 + $0x5a8] sm:$0xf]  ;;  %v3323_v0 = vld [vmem:[%s5121_s1 + $0x5b4] sm:$0xf0]  ;;  %v2711_v6 = vor.u32 %v3291_v61, %v2710_v60 }
  0x9c   :  { %1865 = vmatpush.bf16.msra.mxu2 %v2407_v4  ;;  %v2966_v2 = vld [vmem:[%s5121_s1 + $0x6a8] sm:$0xf]  ;;  %v3355_v3 = vld [vmem:[%s5121_s1 + $0x6b4] sm:$0xf0]  ;;  %v2839_v7 = vor.u32 %v3323_v0, %v2838_v62 }
  0x9d   :  { %1879 = vmatpush.bf16.msra.mxu3 %v2535_v8  ;;  %v3094_v4 = vld [vmem:[%s5121_s1 + $0x7a8] sm:$0xf]  ;;  %v3387_v5 = vld [vmem:[%s5121_s1 + $0x7b4] sm:$0xf0]  ;;  %v2967_v8 = vor.u32 %v3355_v3, %v2966_v2 }
  0x9e   :  { %1838 = vmatpush.bf16.msra.mxu0 %v2135_v15  ;;  %v2694_v9 = vld [vmem:[%s5121_s1 + $0x488] sm:$0xf]  ;;  %v3287_v11 = vld [vmem:[%s5121_s1 + $0x494] sm:$0xf0]  ;;  %v3095_v13 = vor.u32 %v3387_v5, %v3094_v4 }
  0x9f   :  { %1852 = vmatpush.bf16.msra.mxu1 %v2263_v19  ;;  %v2822_v12 = vld [vmem:[%s5121_s1 + $0x588] sm:$0xf]  ;;  %v3319_v14 = vld [vmem:[%s5121_s1 + $0x594] sm:$0xf0] }
  0xa0   :  { %1866 = vmatpush.bf16.msra.mxu2 %v2391_v20  ;;  %v2950_v15 = vld [vmem:[%s5121_s1 + $0x688] sm:$0xf]  ;;  %v3351_v16 = vld [vmem:[%s5121_s1 + $0x694] sm:$0xf0]  ;;  %v2695_v20 = vor.u32 %v3287_v11, %v2694_v9  ;;  %v2823_v21 = vor.u32 %v3319_v14, %v2822_v12  ;;  %v3169_v11 = vld [vmem:[%s5121_s1 + $0xec] sm:$0xf] }
  0xa1   :  { %1880 = vmatpush.bf16.msra.mxu3 %v2519_v24  ;;  %v3078_v18 = vld [vmem:[%s5121_s1 + $0x788] sm:$0xf]  ;;  %v3383_v19 = vld [vmem:[%s5121_s1 + $0x794] sm:$0xf0]  ;;  %v2951_v22 = vor.u32 %v3351_v16, %v2950_v15  ;;  %v2232_v12 = vld [vmem:[%s5121_s1 + $0xf8] sm:$0xf0] }
  0xa2   :  { %1839 = vmatpush.bf16.msra.mxu0 %v2119_v31  ;;  %v2678_v23 = vld [vmem:[%s5121_s1 + $0x468] sm:$0xf]  ;;  %v3283_v24 = vld [vmem:[%s5121_s1 + $0x474] sm:$0xf0]  ;;  %v3079_v26 = vor.u32 %v3383_v19, %v3078_v18  ;;  %v2360_v15 = vld [vmem:[%s5121_s1 + $0x1f8] sm:$0xf0] }
  0xa3   :  { %1853 = vmatpush.bf16.msra.mxu1 %v2247_v35  ;;  %v2806_v25 = vld [vmem:[%s5121_s1 + $0x568] sm:$0xf]  ;;  %v3315_v27 = vld [vmem:[%s5121_s1 + $0x574] sm:$0xf0]  ;;  %v2679_v32 = vor.u32 %v3283_v24, %v2678_v23  ;;  %v3233_v16 = vld [vmem:[%s5121_s1 + $0x2ec] sm:$0xf]  ;;  %v2235_v24 = vor.u32 %v3169_v11, %v2232_v12 }
  0xa4   :  { %1867 = vmatpush.bf16.msra.mxu2 %v2375_v36  ;;  %v2934_v28 = vld [vmem:[%s5121_s1 + $0x668] sm:$0xf]  ;;  %v3347_v29 = vld [vmem:[%s5121_s1 + $0x674] sm:$0xf0]  ;;  %v2807_v33 = vor.u32 %v3315_v27, %v2806_v25  ;;  %v2488_v18 = vld [vmem:[%s5121_s1 + $0x2f8] sm:$0xf0] }
  0xa5   :  { %1881 = vmatpush.bf16.msra.mxu3 %v2503_v40  ;;  %1840 = vmatmul.bf16.vlgmr.msra.gmra.mxu0 %v3671_v58  ;;  %v3062_v30 = vld [vmem:[%s5121_s1 + $0x768] sm:$0xf]  ;;  %v3379_v31 = vld [vmem:[%s5121_s1 + $0x774] sm:$0xf0]  ;;  %v2935_v34 = vor.u32 %v3347_v29, %v2934_v28  ;;  %v3165_v27 = vld [vmem:[%s5121_s1 + $0xcc] sm:$0xf] }
  0xa6   :  { %1888 = vmatpush.bf16.msrb.mxu0 %v2743_v41  ;;  %1854 = vmatmul.bf16.vlgmr.msra.gmra.mxu1 %v3707_v10  ;;  %v2662_v35 = vld [vmem:[%s5121_s1 + $0x448] sm:$0xf]  ;;  %v3279_v36 = vld [vmem:[%s5121_s1 + $0x454] sm:$0xf0]  ;;  %v3063_v38 = vor.u32 %v3379_v31, %v3062_v30  ;;  %v2216_v28 = vld [vmem:[%s5121_s1 + $0xd8] sm:$0xf0] }
  0xa7   :  { %1902 = vmatpush.bf16.msrb.mxu1 %v2871_v42  ;;  %1868 = vmatmul.bf16.vlgmr.msra.gmra.mxu2 %v3685_v1  ;;  %v2790_v37 = vld [vmem:[%s5121_s1 + $0x548] sm:$0xf]  ;;  %v3311_v40 = vld [vmem:[%s5121_s1 + $0x554] sm:$0xf0]  ;;  %v2663_v48 = vor.u32 %v3279_v36, %v2662_v35  ;;  %v3197_v29 = vld [vmem:[%s5121_s1 + $0x1cc] sm:$0xf]  ;;  %v2219_v36 = vor.u32 %v3165_v27, %v2216_v28 }
  0xa8   :  { %1916 = vmatpush.bf16.msrb.mxu2 %v2999_v45  ;;  %1882 = vmatmul.bf16.vlgmr.msra.gmra.mxu3 %v3721_v17  ;;  %v2918_v41 = vld [vmem:[%s5121_s1 + $0x648] sm:$0xf]  ;;  %v3343_v42 = vld [vmem:[%s5121_s1 + $0x654] sm:$0xf0]  ;;  %v2791_v49 = vor.u32 %v3311_v40, %v2790_v37  ;;  %v2344_v31 = vld [vmem:[%s5121_s1 + $0x1d8] sm:$0xf0] }
  0xa9   :  { %1930 = vmatpush.bf16.msrb.mxu3 %v3127_v50  ;;  %v3046_v45 = vld [vmem:[%s5121_s1 + $0x748] sm:$0xf]  ;;  %v3375_v46 = vld [vmem:[%s5121_s1 + $0x754] sm:$0xf0]  ;;  %v2919_v50 = vor.u32 %v3343_v42, %v2918_v41  ;;  %v2600_v35 = vld [vmem:[%s5121_s1 + $0x3d8] sm:$0xf0]  ;;  %v2347_v37 = vor.u32 %v3197_v29, %v2344_v31 }
  0xaa   :  { %1889 = vmatpush.bf16.msrb.mxu0 %v2727_v56  ;;  %v2646_v51 = vld [vmem:[%s5121_s1 + $0x428] sm:$0xf]  ;;  %v3275_v52 = vld [vmem:[%s5121_s1 + $0x434] sm:$0xf0]  ;;  %v3047_v54 = vor.u32 %v3375_v46, %v3046_v45  ;;  %v3161_v40 = vld [vmem:[%s5121_s1 + $0xac] sm:$0xf] }
  0xab   :  { %1903 = vmatpush.bf16.msrb.mxu1 %v2855_v57  ;;  %v2774_v53 = vld [vmem:[%s5121_s1 + $0x528] sm:$0xf]  ;;  %v3307_v55 = vld [vmem:[%s5121_s1 + $0x534] sm:$0xf0]  ;;  %v2647_v61 = vor.u32 %v3275_v52, %v2646_v51  ;;  %v2200_v41 = vld [vmem:[%s5121_s1 + $0xb8] sm:$0xf0] }
  0xac   :  { %1917 = vmatpush.bf16.msrb.mxu2 %v2983_v59  ;;  %v2902_v56 = vld [vmem:[%s5121_s1 + $0x628] sm:$0xf]  ;;  %v3339_v57 = vld [vmem:[%s5121_s1 + $0x634] sm:$0xf0]  ;;  %v2775_v0 = vor.u32 %v3307_v55, %v2774_v53  ;;  %v3193_v42 = vld [vmem:[%s5121_s1 + $0x1ac] sm:$0xf]  ;;  %v2203_v52 = vor.u32 %v3161_v40, %v2200_v41 }
  0xad   :  { %1931 = vmatpush.bf16.msrb.mxu3 %v3111_v63  ;;  %v3030_v59 = vld [vmem:[%s5121_s1 + $0x728] sm:$0xf]  ;;  %v3371_v60 = vld [vmem:[%s5121_s1 + $0x734] sm:$0xf0]  ;;  %v2903_v2 = vor.u32 %v3339_v57, %v2902_v56  ;;  %v2328_v46 = vld [vmem:[%s5121_s1 + $0x1b8] sm:$0xf0] }
  0xae   :  { %1890 = vmatpush.bf16.msrb.mxu0 %v2711_v6  ;;  %v2630_v62 = vld [vmem:[%s5121_s1 + $0x408] sm:$0xf]  ;;  %v3271_v63 = vld [vmem:[%s5121_s1 + $0x414] sm:$0xf0]  ;;  %v3031_v6 = vor.u32 %v3371_v60, %v3030_v59  ;;  %v2584_v51 = vld [vmem:[%s5121_s1 + $0x3b8] sm:$0xf0]  ;;  %v2331_v53 = vor.u32 %v3193_v42, %v2328_v46 }
  0xaf   :  { %1904 = vmatpush.bf16.msrb.mxu1 %v2839_v7  ;;  %v2758_v3 = vld [vmem:[%s5121_s1 + $0x508] sm:$0xf]  ;;  %v3303_v4 = vld [vmem:[%s5121_s1 + $0x514] sm:$0xf0]  ;;  %v2631_v14 = vor.u32 %v3271_v63, %v2630_v62  ;;  %v3157_v55 = vld [vmem:[%s5121_s1 + $0x8c] sm:$0xf] }
  0xb0   :  { %1918 = vmatpush.bf16.msrb.mxu2 %v2967_v8  ;;  %v2886_v5 = vld [vmem:[%s5121_s1 + $0x608] sm:$0xf]  ;;  %v3335_v7 = vld [vmem:[%s5121_s1 + $0x614] sm:$0xf0]  ;;  %v2759_v19 = vor.u32 %v3303_v4, %v2758_v3  ;;  %v2184_v56 = vld [vmem:[%s5121_s1 + $0x98] sm:$0xf0]  ;;  %v4752_v3 = vpop.f32.mrf.mxu0 }
  0xb1   :  { %1932 = vmatpush.bf16.msrb.mxu3 %v3095_v13  ;;  %v3014_v8 = vld [vmem:[%s5121_s1 + $0x708] sm:$0xf]  ;;  %v3367_v9 = vld [vmem:[%s5121_s1 + $0x714] sm:$0xf0]  ;;  %v3201_v13 = vld [vmem:[%s5121_s1 + $0x1ec] sm:$0xf] }
  0xb2   :  { %1891 = vmatpush.bf16.msrb.mxu0 %v2695_v20  ;;  %v2887_v20 = vor.u32 %v3335_v7, %v2886_v5  ;;  %v3015_v23 = vor.u32 %v3367_v9, %v3014_v8  ;;  %v2363_v25 = vor.u32 %v3201_v13, %v2360_v15  ;;  %v3189_v57 = vld [vmem:[%s5121_s1 + $0x18c] sm:$0xf]  ;;  %v2312_v60 = vld [vmem:[%s5121_s1 + $0x198] sm:$0xf0]  ;;  %v4763_v9 = vpop.f32.mrf.mxu1 }
  0xb3   :  { %1905 = vmatpush.bf16.msrb.mxu1 %v2823_v21  ;;  %v3265_v21 = vld [vmem:[%s5121_s1 + $0x3ec] sm:$0xf]  ;;  %v2440_v62 = vld [vmem:[%s5121_s1 + $0x298] sm:$0xf0]  ;;  %v2315_v4 = vor.u32 %v3189_v57, %v2312_v60 }
  0xb4   :  { %1919 = vmatpush.bf16.msrb.mxu2 %v2951_v22  ;;  %v2616_v22 = vld [vmem:[%s5121_s1 + $0x3f8] sm:$0xf0]  ;;  %v3253_v63 = vld [vmem:[%s5121_s1 + $0x38c] sm:$0xf] }
  0xb5   :  { %1933 = vmatpush.bf16.msrb.mxu3 %v3079_v26  ;;  %v2491_v26 = vor.u32 %v3233_v16, %v2488_v18  ;;  %v2619_v30 = vor.u32 %v3265_v21, %v2616_v22  ;;  %v2168_v7 = vld [vmem:[%s5121_s1 + $0x78] sm:$0xf0]  ;;  %v3185_v8 = vld [vmem:[%s5121_s1 + $0x16c] sm:$0xf] }
  0xb6   :  { %1892 = vmatpush.bf16.msrb.mxu0 %v2679_v32  ;;  %v3229_v32 = vld [vmem:[%s5121_s1 + $0x2cc] sm:$0xf]  ;;  %v2296_v12 = vld [vmem:[%s5121_s1 + $0x178] sm:$0xf0] }
  0xb7   :  { %1906 = vmatpush.bf16.msrb.mxu1 %v2807_v33  ;;  %v2472_v33 = vld [vmem:[%s5121_s1 + $0x2d8] sm:$0xf0]  ;;  %v3217_v13 = vld [vmem:[%s5121_s1 + $0x26c] sm:$0xf] }
  0xb8   :  { %1920 = vmatpush.bf16.msrb.mxu2 %v2935_v34  ;;  %v3261_v34 = vld [vmem:[%s5121_s1 + $0x3cc] sm:$0xf]  ;;  %v2552_v16 = vld [vmem:[%s5121_s1 + $0x378] sm:$0xf0] }
  0xb9   :  { %1934 = vmatpush.bf16.msrb.mxu3 %v3063_v38  ;;  %v2475_v38 = vor.u32 %v3229_v32, %v2472_v33  ;;  %v2603_v45 = vor.u32 %v3261_v34, %v2600_v35  ;;  %v3249_v15 = vld [vmem:[%s5121_s1 + $0x36c] sm:$0xf]  ;;  %v2152_v22 = vld [vmem:[%s5121_s1 + $0x58] sm:$0xf0]  ;;  %v4806_v32 = vpop.f32.mrf.mxu3 }
  0xba   :  { %1893 = vmatpush.bf16.msrb.mxu0 %v2663_v48  ;;  %v3225_v48 = vld [vmem:[%s5121_s1 + $0x2ac] sm:$0xf]  ;;  %v2408_v27 = vld [vmem:[%s5121_s1 + $0x258] sm:$0xf0] }
  0xbb   :  { %1907 = vmatpush.bf16.msrb.mxu1 %v2791_v49  ;;  %v2456_v49 = vld [vmem:[%s5121_s1 + $0x2b8] sm:$0xf0]  ;;  %v3149_v21 = vld [vmem:[%s5121_s1 + $0x4c] sm:$0xf] }
  0xbc   :  { %1921 = vmatpush.bf16.msrb.mxu2 %v2919_v50  ;;  %v3257_v50 = vld [vmem:[%s5121_s1 + $0x3ac] sm:$0xf]  ;;  %v2536_v29 = vld [vmem:[%s5121_s1 + $0x358] sm:$0xf0]  ;;  %v2155_v31 = vor.u32 %v3149_v21, %v2152_v22 }
  0xbd   :  { %1935 = vmatpush.bf16.msrb.mxu3 %v3047_v54  ;;  %v2459_v54 = vor.u32 %v3225_v48, %v2456_v49  ;;  %v2587_v59 = vor.u32 %v3257_v50, %v2584_v51  ;;  %v3245_v28 = vld [vmem:[%s5121_s1 + $0x34c] sm:$0xf]  ;;  %v2264_v40 = vld [vmem:[%s5121_s1 + $0x138] sm:$0xf0]  ;;  %v4834_v49 = vpop.f32.mrf.mxu1 }
  0xbe   :  { %1894 = vmatpush.bf16.msrb.mxu0 %v2647_v61  ;;  %v3221_v61 = vld [vmem:[%s5121_s1 + $0x28c] sm:$0xf]  ;;  %v2392_v42 = vld [vmem:[%s5121_s1 + $0x238] sm:$0xf0] }
  0xbf   :  { %1908 = vmatpush.bf16.msrb.mxu1 %v2775_v0  ;;  %v2568_v0 = vld [vmem:[%s5121_s1 + $0x398] sm:$0xf0]  ;;  %v2443_v5 = vor.u32 %v3221_v61, %v2440_v62  ;;  %v3145_v35 = vld [vmem:[%s5121_s1 + $0x2c] sm:$0xf] }
  0xc0   :  { %1922 = vmatpush.bf16.msrb.mxu2 %v2903_v2  ;;  %v2187_v2 = vor.u32 %v3157_v55, %v2184_v56  ;;  %v2571_v11 = vor.u32 %v3253_v63, %v2568_v0  ;;  %v3209_v41 = vld [vmem:[%s5121_s1 + $0x22c] sm:$0xf]  ;;  %v2520_v48 = vld [vmem:[%s5121_s1 + $0x338] sm:$0xf0] }
  0xc1   :  { %1936 = vmatpush.bf16.msrb.mxu3 %v3031_v6  ;;  %v3153_v6 = vld [vmem:[%s5121_s1 + $0x6c] sm:$0xf]  ;;  %v2248_v56 = vld [vmem:[%s5121_s1 + $0x118] sm:$0xf0] }
  0xc2   :  { %1895 = vmatpush.bf16.msrb.mxu0 %v2631_v14  ;;  %v2424_v14 = vld [vmem:[%s5121_s1 + $0x278] sm:$0xf0]  ;;  %v2171_v18 = vor.u32 %v3153_v6, %v2168_v7  ;;  %v3241_v46 = vld [vmem:[%s5121_s1 + $0x32c] sm:$0xf] }
  0xc3   :  { %1909 = vmatpush.bf16.msrb.mxu1 %v2759_v19  ;;  %v2299_v19 = vor.u32 %v3185_v8, %v2296_v12  ;;  %v3141_v51 = vld [vmem:[%s5121_s1 + $0xc] sm:$0xf]  ;;  %v2376_v60 = vld [vmem:[%s5121_s1 + $0x218] sm:$0xf0] }
  0xc4   :  { %1923 = vmatpush.bf16.msrb.mxu2 %v2887_v20  ;;  %v2427_v20 = vor.u32 %v3217_v13, %v2424_v14  ;;  %v3173_v55 = vld [vmem:[%s5121_s1 + $0x10c] sm:$0xf]  ;;  %v2504_v62 = vld [vmem:[%s5121_s1 + $0x318] sm:$0xf0] }
  0xc5   :  { %1937 = vmatpush.bf16.msrb.mxu3 %v3015_v23  ;;  %1896 = vmatmul.bf16.vlgmr.msrb.gmra.mxu0 %v3893_v39  ;;  %v3181_v23 = vld [vmem:[%s5121_s1 + $0x14c] sm:$0xf]  ;;  %v2744_v0 = vld [vmem:[%s5121_s1 + $0x4f8] sm:$0xf0]  ;;  %v2251_v8 = vor.u32 %v3173_v55, %v2248_v56 }
  0xc6   :  { %1944 = vmatpush.bf16.msra.mxu0 %v2235_v24  ;;  %1910 = vmatmul.bf16.vlgmr.msrb.gmra.mxu1 %v3906_v44  ;;  %v2555_v24 = vor.u32 %v3249_v15, %v2552_v16  ;;  %v3205_v57 = vld [vmem:[%s5121_s1 + $0x20c] sm:$0xf]  ;;  %v3000_v7 = vld [vmem:[%s5121_s1 + $0x6f8] sm:$0xf0] }
  0xc7   :  { %1958 = vmatpush.bf16.msra.mxu1 %v2363_v25  ;;  %1924 = vmatmul.bf16.vlgmr.msrb.gmra.mxu2 %v3904_v43  ;;  %v2280_v25 = vld [vmem:[%s5121_s1 + $0x158] sm:$0xf0]  ;;  %v3237_v61 = vld [vmem:[%s5121_s1 + $0x30c] sm:$0xf] }
  0xc8   :  { %1972 = vmatpush.bf16.msra.mxu2 %v2491_v26  ;;  %1938 = vmatmul.bf16.vlgmr.msrb.gmra.mxu3 %v3914_v47  ;;  %v3213_v26 = vld [vmem:[%s5121_s1 + $0x24c] sm:$0xf]  ;;  %v2283_v33 = vor.u32 %v3181_v23, %v2280_v25  ;;  %v3128_v13 = vld [vmem:[%s5121_s1 + $0x7f8] sm:$0xf0]  ;;  %v2507_v15 = vor.u32 %v3237_v61, %v2504_v62 }
  0xc9   :  { %1986 = vmatpush.bf16.msra.mxu3 %v2619_v30  ;;  %v4804_v30 = vpop.f32.mrf.mxu2  ;;  %v2411_v34 = vor.u32 %v3213_v26, %v2408_v27  ;;  %v3297_v63 = vld [vmem:[%s5121_s1 + $0x4ec] sm:$0xf]  ;;  %v2728_v22 = vld [vmem:[%s5121_s1 + $0x4d8] sm:$0xf0] }
  0xca   :  { %1945 = vmatpush.bf16.msra.mxu0 %v2219_v36  ;;  %v2136_v36 = vld [vmem:[%s5121_s1 + $0x38] sm:$0xf0]  ;;  %v3361_v6 = vld [vmem:[%s5121_s1 + $0x6ec] sm:$0xf]  ;;  %v2747_v16 = vor.u32 %v3297_v63, %v2744_v0  ;;  %v4975_v63 = vld [vmem:[%s5123_s2] sm:$0xf] }
  0xcb   :  { %1959 = vmatpush.bf16.msra.mxu1 %v2347_v37  ;;  %v3177_v37 = vld [vmem:[%s5121_s1 + $0x12c] sm:$0xf]  ;;  %v2139_v50 = vor.u32 %v3145_v35, %v2136_v36  ;;  %v2856_v25 = vld [vmem:[%s5121_s1 + $0x5d8] sm:$0xf0] }
  0xcc   :  { %1973 = vmatpush.bf16.msra.mxu2 %v2475_v38  ;;  %v2539_v38 = vor.u32 %v3245_v28, %v2536_v29  ;;  %v3393_v12 = vld [vmem:[%s5121_s1 + $0x7ec] sm:$0xf]  ;;  %v2984_v27 = vld [vmem:[%s5121_s1 + $0x6d8] sm:$0xf0] }
  0xcd   :  { %1987 = vmatpush.bf16.msra.mxu3 %v2603_v45  ;;  %v4826_v45 = vpop.f32.mrf.mxu0  ;;  %v3293_v21 = vld [vmem:[%s5121_s1 + $0x4cc] sm:$0xf]  ;;  %v2696_v55 = vld [vmem:[%s5121_s1 + $0x498] sm:$0xf0] }
  0xce   :  { %1946 = vmatpush.bf16.msra.mxu0 %v2203_v52  ;;  %v2120_v52 = vld [vmem:[%s5121_s1 + $0x18] sm:$0xf0]  ;;  %v3325_v23 = vld [vmem:[%s5121_s1 + $0x5cc] sm:$0xf] }
  0xcf   :  { %1960 = vmatpush.bf16.msra.mxu1 %v2331_v53  ;;  %v2267_v53 = vor.u32 %v3177_v37, %v2264_v40  ;;  %v3357_v26 = vld [vmem:[%s5121_s1 + $0x6cc] sm:$0xf]  ;;  %v2859_v35 = vor.u32 %v3325_v23, %v2856_v25  ;;  %v2824_v56 = vld [vmem:[%s5121_s1 + $0x598] sm:$0xf0] }
  0xd0   :  { %1974 = vmatpush.bf16.msra.mxu2 %v2459_v54  ;;  %v2395_v54 = vor.u32 %v3209_v41, %v2392_v42  ;;  %v3389_v29 = vld [vmem:[%s5121_s1 + $0x7cc] sm:$0xf]  ;;  %v2987_v36 = vor.u32 %v3357_v26, %v2984_v27  ;;  %v2840_v42 = vld [vmem:[%s5121_s1 + $0x5b8] sm:$0xf0] }
  0xd1   :  { %1988 = vmatpush.bf16.msra.mxu3 %v2587_v59  ;;  %v2523_v59 = vor.u32 %v3241_v46, %v2520_v48  ;;  %v4884_v14 = vpop.f32.mrf.mxu2  ;;  %v3289_v37 = vld [vmem:[%s5121_s1 + $0x4ac] sm:$0xf]  ;;  %v2968_v48 = vld [vmem:[%s5121_s1 + $0x6b8] sm:$0xf0] }
  0xd2   :  { %1947 = vmatpush.bf16.msra.mxu0 %v2187_v2  ;;  %v3329_v2 = vld [vmem:[%s5121_s1 + $0x5ec] sm:$0xf]  ;;  %v3080_v62 = vld [vmem:[%s5121_s1 + $0x798] sm:$0xf0] }
  0xd3   :  { %1961 = vmatpush.bf16.msra.mxu1 %v2315_v4  ;;  %v2123_v4 = vor.u32 %v3141_v51, %v2120_v52  ;;  %v3321_v40 = vld [vmem:[%s5121_s1 + $0x5ac] sm:$0xf]  ;;  %v2664_v26 = vld [vmem:[%s5121_s1 + $0x458] sm:$0xf0] }
  0xd4   :  { %1975 = vmatpush.bf16.msra.mxu2 %v2443_v5  ;;  %v2872_v5 = vld [vmem:[%s5121_s1 + $0x5f8] sm:$0xf0]  ;;  %v3353_v46 = vld [vmem:[%s5121_s1 + $0x6ac] sm:$0xf]  ;;  %v2843_v52 = vor.u32 %v3321_v40, %v2840_v42 }
  0xd5   :  { %1989 = vmatpush.bf16.msra.mxu3 %v2571_v11  ;;  %v2379_v11 = vor.u32 %v3205_v57, %v2376_v60  ;;  %v4906_v28 = vpop.f32.mrf.mxu0  ;;  %v3349_v57 = vld [vmem:[%s5121_s1 + $0x68c] sm:$0xf] }
  0xd6   :  { %1948 = vmatpush.bf16.msra.mxu0 %v2171_v18  ;;  %v4886_v18 = vpop.f32.mrf.mxu3  ;;  %v3381_v61 = vld [vmem:[%s5121_s1 + $0x78c] sm:$0xf] }
  0xd7   :  { %1962 = vmatpush.bf16.msra.mxu1 %v2299_v19  ;;  %v2875_v19 = vor.u32 %v3329_v2, %v2872_v5  ;;  %v3277_v25 = vld [vmem:[%s5121_s1 + $0x44c] sm:$0xf] }
  0xd8   :  { %1976 = vmatpush.bf16.msra.mxu2 %v2427_v20  ;;  %v3003_v20 = vor.u32 %v3361_v6, %v3000_v7  ;;  %v3281_v6 = vld [vmem:[%s5121_s1 + $0x46c] sm:$0xf]  ;;  %v2680_v7 = vld [vmem:[%s5121_s1 + $0x478] sm:$0xf0]  ;;  %v2667_v40 = vor.u32 %v3277_v25, %v2664_v26 }
  0xd9   :  { %1990 = vmatpush.bf16.msra.mxu3 %v2555_v24  ;;  %v3131_v24 = vor.u32 %v3393_v12, %v3128_v13  ;;  %v3083_v12 = vor.u32 %v3381_v61, %v3080_v62  ;;  %v2808_v13 = vld [vmem:[%s5121_s1 + $0x578] sm:$0xf0]  ;;  %v3309_v27 = vld [vmem:[%s5121_s1 + $0x54c] sm:$0xf] }
  0xda   :  { %1949 = vmatpush.bf16.msra.mxu0 %v2155_v31  ;;  %v3112_v31 = vld [vmem:[%s5121_s1 + $0x7d8] sm:$0xf0] }
  0xdb   :  { %1963 = vmatpush.bf16.msra.mxu1 %v2283_v33  ;;  %v4914_v33 = vpop.f32.mrf.mxu1  ;;  %v3115_v41 = vor.u32 %v3389_v29, %v3112_v31  ;;  %v2792_v31 = vld [vmem:[%s5121_s1 + $0x558] sm:$0xf0] }
  0xdc   :  { %1977 = vmatpush.bf16.msra.mxu2 %v2411_v34  ;;  %v2731_v34 = vor.u32 %v3293_v21, %v2728_v22  ;;  %v280_v21 = vperm.slane %v4975_v63, 0  ;;  %v2683_v22 = vor.u32 %v3281_v6, %v2680_v7  ;;  %v3301_v6 = vld [vmem:[%s5121_s1 + $0x50c] sm:$0xf] }
  0xdd   :  { %1991 = vmatpush.bf16.msra.mxu3 %v2539_v38  ;;  %v2712_v38 = vld [vmem:[%s5121_s1 + $0x4b8] sm:$0xf0]  ;;  %v4977_v2 = vpop.f32.mrf.mxu0 }
  0xde   :  { %1950 = vmatpush.bf16.msra.mxu0 %v2139_v50  ;;  %v3385_v50 = vld [vmem:[%s5121_s1 + $0x7ac] sm:$0xf]  ;;  %v2715_v51 = vor.u32 %v3289_v37, %v2712_v38  ;;  %v4964_v60 = vpop.f32.mrf.mxu3  ;;  %v3048_v37 = vld [vmem:[%s5121_s1 + $0x758] sm:$0xf0]  ;;  %v1618_v42 = vadd.f32 %v4752_v3, %v280_v21 }
  0xdf   :  { %1964 = vmatpush.bf16.msra.mxu1 %v2267_v53  ;;  %v2971_v53 = vor.u32 %v3353_v46, %v2968_v48  ;;  %v2795_v48 = vor.u32 %v3309_v27, %v2792_v31 }
  0xe0   :  { %1978 = vmatpush.bf16.msra.mxu2 %v2395_v54  ;;  %v3285_v54 = vld [vmem:[%s5121_s1 + $0x48c] sm:$0xf]  ;;  %v1632_v61 = vadd.f32 %v4763_v9, %v1618_v42  ;;  %v2760_v9 = vld [vmem:[%s5121_s1 + $0x518] sm:$0xf0] }
  0xe1   :  { %1992 = vmatpush.bf16.msra.mxu3 %v2523_v59  ;;  %v2952_v59 = vld [vmem:[%s5121_s1 + $0x698] sm:$0xf0]  ;;  %v2699_v0 = vor.u32 %v3285_v54, %v2696_v55  ;;  %v3337_v55 = vld [vmem:[%s5121_s1 + $0x62c] sm:$0xf] }
  0xe2   :  { %1951 = vmatpush.bf16.msra.mxu0 %v2123_v4  ;;  %v2955_v5 = vor.u32 %v3349_v57, %v2952_v59  ;;  %v2776_v54 = vld [vmem:[%s5121_s1 + $0x538] sm:$0xf0] }
  0xe3   :  { %1965 = vmatpush.bf16.msra.mxu1 %v2251_v8  ;;  %v3313_v8 = vld [vmem:[%s5121_s1 + $0x56c] sm:$0xf]  ;;  %v3032_v57 = vld [vmem:[%s5121_s1 + $0x738] sm:$0xf0] }
  0xe4   :  { %1979 = vmatpush.bf16.msra.mxu2 %v2379_v11  ;;  %v4988_v11 = vpop.f32.mrf.mxu1  ;;  %v2811_v23 = vor.u32 %v3313_v8, %v2808_v13  ;;  %v2888_v13 = vld [vmem:[%s5121_s1 + $0x618] sm:$0xf0] }
  0xe5   :  { %1993 = vmatpush.bf16.msra.mxu3 %v2507_v15  ;;  %1952 = vmatmul.bf16.vlgmr.msra.gmra.mxu0 %v3671_v58  ;;  %v3317_v58 = vld [vmem:[%s5121_s1 + $0x58c] sm:$0xf] }
  0xe6   :  { %2000 = vmatpush.bf16.msrb.mxu0 %v2747_v16  ;;  %1966 = vmatmul.bf16.vlgmr.msra.gmra.mxu1 %v3707_v10  ;;  %v2827_v4 = vor.u32 %v3317_v58, %v2824_v56  ;;  %v3345_v15 = vld [vmem:[%s5121_s1 + $0x66c] sm:$0xf]  ;;  %v2936_v16 = vld [vmem:[%s5121_s1 + $0x678] sm:$0xf0]  ;;  %v5036_v46 = vpop.f32.mrf.mxu3 }
  0xe7   :  { %2014 = vmatpush.bf16.msrb.mxu1 %v2875_v19  ;;  %1980 = vmatmul.bf16.vlgmr.msra.gmra.mxu2 %v3685_v1  ;;  %v3096_v1 = vld [vmem:[%s5121_s1 + $0x7b8] sm:$0xf0]  ;;  %v3377_v19 = vld [vmem:[%s5121_s1 + $0x76c] sm:$0xf] }
  0xe8   :  { %2028 = vmatpush.bf16.msrb.mxu2 %v3003_v20  ;;  %1994 = vmatmul.bf16.vlgmr.msra.gmra.mxu3 %v3721_v17  ;;  %v4953_v17 = vpop.f32.mrf.mxu2  ;;  %v3099_v10 = vor.u32 %v3385_v50, %v3096_v1  ;;  %v3064_v20 = vld [vmem:[%s5121_s1 + $0x778] sm:$0xf0]  ;;  %v1729_v1 = vpop.f32.mrf.mxu0  ;;  %v3369_v56 = vld [vmem:[%s5121_s1 + $0x72c] sm:$0xf] }
  0xe9   :  { %2042 = vmatpush.bf16.msrb.mxu3 %v3131_v24  ;;  %v2939_v24 = vor.u32 %v3345_v15, %v2936_v16  ;;  %v3067_v29 = vor.u32 %v3377_v19, %v3064_v20  ;;  %v2904_v58 = vld [vmem:[%s5121_s1 + $0x638] sm:$0xf0]  ;;  %v3035_v8 = vor.u32 %v3369_v56, %v3032_v57  ;;  %v3365_v15 = vld [vmem:[%s5121_s1 + $0x70c] sm:$0xf] }
  0xea   :  { %2001 = vmatpush.bf16.msrb.mxu0 %v2731_v34  ;;  %v3341_v34 = vld [vmem:[%s5121_s1 + $0x64c] sm:$0xf]  ;;  %v3016_v16 = vld [vmem:[%s5121_s1 + $0x718] sm:$0xf0] }
  0xeb   :  { %2015 = vmatpush.bf16.msrb.mxu1 %v2859_v35  ;;  %v2920_v35 = vld [vmem:[%s5121_s1 + $0x658] sm:$0xf0]  ;;  %v3019_v27 = vor.u32 %v3365_v15, %v3016_v16 }
  0xec   :  { %2029 = vmatpush.bf16.msrb.mxu2 %v2987_v36  ;;  %v3373_v36 = vld [vmem:[%s5121_s1 + $0x74c] sm:$0xf]  ;;  %v2923_v50 = vor.u32 %v3341_v34, %v2920_v35 }
  0xed   :  { %2043 = vmatpush.bf16.msrb.mxu3 %v3115_v41  ;;  %v281_v41 = vperm.slane %v4975_v63, 1  ;;  %v3051_v3 = vor.u32 %v3373_v36, %v3048_v37 }
  0xee   :  { %2002 = vmatpush.bf16.msrb.mxu0 %v2715_v51  ;;  %v3273_v51 = vld [vmem:[%s5121_s1 + $0x42c] sm:$0xf]  ;;  %v1771_v25 = vpop.f32.mrf.mxu3 }
  0xef   :  { %2016 = vmatpush.bf16.msrb.mxu1 %v2843_v52  ;;  %v2648_v52 = vld [vmem:[%s5121_s1 + $0x438] sm:$0xf0]  ;;  %v1730_v7 = vadd.f32 %v1729_v1, %v281_v41 }
  0xf0   :  { %2030 = vmatpush.bf16.msrb.mxu2 %v2971_v53  ;;  %v5030_v38 = vpop.f32.mrf.mxu2  ;;  %v3305_v53 = vld [vmem:[%s5121_s1 + $0x52c] sm:$0xf]  ;;  %v2651_v59 = vor.u32 %v3273_v51, %v2648_v52  ;;  %v1731_v31 = vpop.f32.mrf.mxu0 }
  0xf1   :  { %2044 = vmatpush.bf16.msrb.mxu3 %v3099_v10  ;;  %v1743_v10 = vpop.f32.mrf.mxu1  ;;  %v2779_v62 = vor.u32 %v3305_v53, %v2776_v54  ;;  %v1732_v37 = vadd.f32 %v1731_v31, %v281_v41 }
  0xf2   :  { %2003 = vmatpush.bf16.msrb.mxu0 %v2699_v0  ;;  %v2907_v0 = vor.u32 %v3337_v55, %v2904_v58  ;;  %v1744_v26 = vadd.f32 %v1743_v10, %v1730_v7 }
  0xf3   :  { %2017 = vmatpush.bf16.msrb.mxu1 %v2827_v4  ;;  %v3269_v4 = vld [vmem:[%s5121_s1 + $0x40c] sm:$0xf] }
  0xf4   :  { %2031 = vmatpush.bf16.msrb.mxu2 %v2955_v5  ;;  %v2632_v5 = vld [vmem:[%s5121_s1 + $0x418] sm:$0xf0] }
  0xf5   :  { %2045 = vmatpush.bf16.msrb.mxu3 %v3083_v12  ;;  %v3333_v12 = vld [vmem:[%s5121_s1 + $0x60c] sm:$0xf]  ;;  %v2635_v19 = vor.u32 %v3269_v4, %v2632_v5 }
  0xf6   :  { %2004 = vmatpush.bf16.msrb.mxu0 %v2683_v22  ;;  %v1646_v22 = vadd.f32 %v4804_v30, %v1632_v61 }
  0xf7   :  { %2018 = vmatpush.bf16.msrb.mxu1 %v2811_v23  ;;  %v2763_v23 = vor.u32 %v3301_v6, %v2760_v9 }
  0xf8   :  { %2032 = vmatpush.bf16.msrb.mxu2 %v2939_v24  ;;  %v1757_v20 = vpop.f32.mrf.mxu2  ;;  %v2891_v24 = vor.u32 %v3333_v12, %v2888_v13  ;;  %v1660_v35 = vadd.f32 %v4806_v32, %v1646_v22 }
  0xf9   :  { %2046 = vmatpush.bf16.msrb.mxu3 %v3067_v29  ;;  %v1620_v29 = vadd.f32 %v4826_v45, %v280_v21  ;;  %v1745_v34 = vpop.f32.mrf.mxu1  ;;  %v1758_v30 = vadd.f32 %v1757_v20, %v1744_v26 }
  0xfa   :  { %2005 = vmatpush.bf16.msrb.mxu0 %v2667_v40  ;;  %v1674_v45 = vadd.f32 %v4906_v28, %v1660_v35  ;;  %v1746_v42 = vadd.f32 %v1745_v34, %v1732_v37  ;;  %v283_v34 = vperm.slane %v4975_v63, 3 }
  0xfb   :  { %2019 = vmatpush.bf16.msrb.mxu1 %v2795_v48  ;;  %v1634_v36 = vadd.f32 %v4834_v49, %v1620_v29  ;;  %v1772_v21 = vadd.f32 %v1771_v25, %v1758_v30  ;;  %v1773_v48 = vpop.f32.mrf.mxu3 }
  0xfc   :  { %2033 = vmatpush.bf16.msrb.mxu2 %v2923_v50  ;;  %v1688_v50 = vadd.f32 %v4914_v33, %v1674_v45 }
  0xfd   :  { %2047 = vmatpush.bf16.msrb.mxu3 %v3051_v3  ;;  %v1648_v32 = vadd.f32 %v4884_v14, %v1634_v36 }
  0xfe   :  { %2006 = vmatpush.bf16.msrb.mxu0 %v2651_v59 }
  0xff   :  { %2020 = vmatpush.bf16.msrb.mxu1 %v2779_v62  ;;  %v1662_v41 = vadd.f32 %v4886_v18, %v1648_v32 }
 0x100   :  { %2034 = vmatpush.bf16.msrb.mxu2 %v2907_v0  ;;  %v1759_v40 = vpop.f32.mrf.mxu2 }
 0x101   :  { %2048 = vmatpush.bf16.msrb.mxu3 %v3035_v8  ;;  %v1676_v28 = vadd.f32 %v4977_v2, %v1662_v41 }
 0x102   :  { %2007 = vmatpush.bf16.msrb.mxu0 %v2635_v19  ;;  %v1785_v49 = vpop.f32.mrf.mxu0 }
 0x103   :  { %2021 = vmatpush.bf16.msrb.mxu1 %v2763_v23  ;;  %v1786_v1 = vadd.f32 %v1785_v49, %v1772_v21  ;;  %v1690_v33 = vadd.f32 %v4988_v11, %v1676_v28  ;;  %v282_v23 = vperm.slane %v4975_v63, 2 }
 0x104   :  { %2035 = vmatpush.bf16.msrb.mxu2 %v2891_v24 }
 0x105   :  { %2049 = vmatpush.bf16.msrb.mxu3 %v3019_v27  ;;  %2008 = vmatmul.bf16.vlgmr.msrb.gmra.mxu0 %v3893_v39  ;;  %v1799_v39 = vpop.f32.mrf.mxu1  ;;  %v1704_v18 = vadd.f32 %v5030_v38, %v1690_v33 }
 0x106   :  { %2022 = vmatmul.bf16.vlgmr.msrb.gmra.mxu1 %v3906_v44  ;;  %v1760_v44 = vadd.f32 %v1759_v40, %v1746_v42  ;;  %v1800_v51 = vadd.f32 %v1799_v39, %v1786_v1 }
 0x107   :  { %2036 = vmatmul.bf16.vlgmr.msrb.gmra.mxu2 %v3904_v43  ;;  %v1702_v43 = vadd.f32 %v4953_v17, %v1688_v50  ;;  %v1718_v2 = vadd.f32 %v5036_v46, %v1704_v18 }
 0x108   :  { %2050 = vmatmul.bf16.vlgmr.msrb.gmra.mxu3 %v3914_v47  ;;  %v1774_v47 = vadd.f32 %v1773_v48, %v1760_v44 }
 0x109   :  { %v1716_v53 = vadd.f32 %v4964_v60, %v1702_v43  ;;  %v2060_v11 = vmax.f32 %v1718_v2, 0.0 }
 0x10a   :  { %v1813_v52 = vpop.f32.mrf.mxu2  ;;  %v1787_v3 = vpop.f32.mrf.mxu0 }
 0x10b   :  { %v1814_v14 = vadd.f32 %v1813_v52, %v1800_v51  ;;  %v1827_v54 = vpop.f32.mrf.mxu3  ;;  %v1788_v55 = vadd.f32 %v1787_v3, %v1774_v47  ;;  %v2056_v56 = vmax.f32 %v1716_v53, 0.0 }
 0x10d   :  { %v1828_v58 = vadd.f32 %v1827_v54, %v1814_v14  ;;  %v1801_v10 = vpop.f32.mrf.mxu1 }
 0x10e   :  { %v1802_v59 = vadd.f32 %v1801_v10, %v1788_v55 }
 0x10f   :  { %v2057_v57 = vmax.f32 %v1828_v58, 0.0 }
 0x111   :  { %v2064_v17 = vpack.c.bf16 %v2057_v57, %v2056_v56 }
 0x112   :  { %v1815_v61 = vpop.f32.mrf.mxu2 }
 0x113   :  { %2068 = vst [vmem:[%s5124_s3] sm:$0xff] %v2064_v17  ;;  %v1816_v60 = vadd.f32 %v1815_v61, %v1802_v59  ;;  %v1829_v62 = vpop.f32.mrf.mxu3 }
 0x115   :  { %v1830_v0 = vadd.f32 %v1829_v62, %v1816_v60 }
 0x117   :  { %v2061_v4 = vmax.f32 %v1830_v0, 0.0 }
 0x119   :  { %v2066_v5 = vpack.c.bf16 %v2061_v4, %v2060_v11 }
 0x11b   :  { %2070 = vst [vmem:[%s5124_s3 + $0x10] sm:$0xff] %v2066_v5 }
 0x122   :  { %v1841_v38 = vpop.f32.mrf.mxu0 }
 0x123   :  { %v1855_v6 = vpop.f32.mrf.mxu1  ;;  %v1842_v25 = vadd.f32 %v1841_v38, %v282_v23 }
 0x125   :  { %v1856_v31 = vadd.f32 %v1855_v6, %v1842_v25 }
 0x12a   :  { %v1869_v7 = vpop.f32.mrf.mxu2  ;;  %v1843_v9 = vpop.f32.mrf.mxu0 }
 0x12b   :  { %v1883_v8 = vpop.f32.mrf.mxu3  ;;  %v1857_v46 = vpop.f32.mrf.mxu1  ;;  %v1870_v30 = vadd.f32 %v1869_v7, %v1856_v31  ;;  %v1844_v45 = vadd.f32 %v1843_v9, %v282_v23 }
 0x12d   :  { %v1884_v40 = vadd.f32 %v1883_v8, %v1870_v30  ;;  %v1858_v48 = vadd.f32 %v1857_v46, %v1844_v45 }
 0x132   :  { %v1871_v12 = vpop.f32.mrf.mxu2 }
 0x133   :  { %v1885_v13 = vpop.f32.mrf.mxu3  ;;  %v1872_v41 = vadd.f32 %v1871_v12, %v1858_v48 }
 0x135   :  { %v1886_v52 = vadd.f32 %v1885_v13, %v1872_v41 }
 0x142   :  { %v1897_v15 = vpop.f32.mrf.mxu0 }
 0x143   :  { %v1911_v16 = vpop.f32.mrf.mxu1  ;;  %v1898_v49 = vadd.f32 %v1897_v15, %v1884_v40 }
 0x145   :  { %v1912_v43 = vadd.f32 %v1911_v16, %v1898_v49 }
 0x14a   :  { %v1925_v19 = vpop.f32.mrf.mxu2  ;;  %v1899_v22 = vpop.f32.mrf.mxu0 }
 0x14b   :  { %v1939_v20 = vpop.f32.mrf.mxu3  ;;  %v1913_v24 = vpop.f32.mrf.mxu1  ;;  %v1926_v3 = vadd.f32 %v1925_v19, %v1912_v43  ;;  %v1900_v33 = vadd.f32 %v1899_v22, %v1886_v52 }
 0x14d   :  { %v1940_v10 = vadd.f32 %v1939_v20, %v1926_v3  ;;  %v1914_v59 = vadd.f32 %v1913_v24, %v1900_v33 }
 0x14f   :  { %v2058_v60 = vmax.f32 %v1940_v10, 0.0 }
 0x152   :  { %v1927_v26 = vpop.f32.mrf.mxu2 }
 0x153   :  { %v1941_v27 = vpop.f32.mrf.mxu3  ;;  %v1928_v62 = vadd.f32 %v1927_v26, %v1914_v59 }
 0x155   :  { %v1942_v6 = vadd.f32 %v1941_v27, %v1928_v62 }
 0x157   :  { %v2062_v46 = vmax.f32 %v1942_v6, 0.0 }
 0x162   :  { %v1953_v29 = vpop.f32.mrf.mxu0 }
 0x163   :  { %v1967_v35 = vpop.f32.mrf.mxu1  ;;  %v1954_v36 = vadd.f32 %v1953_v29, %v283_v34 }
 0x165   :  { %v1968_v32 = vadd.f32 %v1967_v35, %v1954_v36 }
 0x16a   :  { %v1981_v37 = vpop.f32.mrf.mxu2  ;;  %v1955_v42 = vpop.f32.mrf.mxu0 }
 0x16b   :  { %v1995_v21 = vpop.f32.mrf.mxu3  ;;  %v1969_v50 = vpop.f32.mrf.mxu1  ;;  %v1982_v1 = vadd.f32 %v1981_v37, %v1968_v32  ;;  %v1956_v39 = vadd.f32 %v1955_v42, %v283_v34 }
 0x16d   :  { %v1996_v51 = vadd.f32 %v1995_v21, %v1982_v1  ;;  %v1970_v28 = vadd.f32 %v1969_v50, %v1956_v39 }
 0x172   :  { %v1983_v44 = vpop.f32.mrf.mxu2 }
 0x173   :  { %v1997_v63 = vpop.f32.mrf.mxu3  ;;  %v1984_v54 = vadd.f32 %v1983_v44, %v1970_v28 }
 0x175   :  { %v1998_v56 = vadd.f32 %v1997_v63, %v1984_v54 }
 0x182   :  { %v2009_v47 = vpop.f32.mrf.mxu0 }
 0x183   :  { %v2010_v53 = vadd.f32 %v2009_v47, %v1996_v51  ;;  %v2023_v14 = vpop.f32.mrf.mxu1 }
 0x185   :  { %v2024_v55 = vadd.f32 %v2023_v14, %v2010_v53 }
 0x18a   :  { %v2037_v58 = vpop.f32.mrf.mxu2  ;;  %v2011_v17 = vpop.f32.mrf.mxu0 }
 0x18b   :  { %v2038_v18 = vadd.f32 %v2037_v58, %v2024_v55  ;;  %v2051_v57 = vpop.f32.mrf.mxu3  ;;  %v2012_v2 = vadd.f32 %v2011_v17, %v1998_v56  ;;  %v2025_v11 = vpop.f32.mrf.mxu1 }
 0x18d   :  { %v2052_v61 = vadd.f32 %v2051_v57, %v2038_v18  ;;  %v2026_v5 = vadd.f32 %v2025_v11, %v2012_v2 }
 0x18f   :  { %v2059_v0 = vmax.f32 %v2052_v61, 0.0 }
 0x191   :  { %v2065_v4 = vpack.c.bf16 %v2059_v0, %v2058_v60 }
 0x192   :  { %v2039_v38 = vpop.f32.mrf.mxu2 }
 0x193   :  { %2069 = vst [vmem:[%s5124_s3 + $0x8] sm:$0xff] %v2065_v4  ;;  %v2040_v7 = vadd.f32 %v2039_v38, %v2026_v5  ;;  %v2053_v8 = vpop.f32.mrf.mxu3 }
 0x195   :  { %v2054_v9 = vadd.f32 %v2053_v8, %v2040_v7 }
 0x197   :  { %v2063_v12 = vmax.f32 %v2054_v9, 0.0 }
 0x199   :  { %v2067_v13 = vpack.c.bf16 %v2063_v12, %v2062_v46 }
 0x19b   :  { %2071 = vst [vmem:[%s5124_s3 + $0x18] sm:$0xff] %v2067_v13 }

// kernel: tile.23
= control target key start
LH: loop header
LB: loop body
LE: loop exit
PB: predicated region body
PF: predicated region fallthrough
CT: control target
= control target key end

     0   :  { %s22_s0 = inlined_call_operand.vmem [shape: f32[64], index: 0, kind: input, shape index: {}]   ;;  %s23_s1 = inlined_call_operand.vmem [shape: f32[4,64], index: 1, kind: output, shape index: {}]  }
   0x1   :  { %v4_v0 = vld [vmem:[%s22_s0] ss:$0 sm:$0xff] }
   0x2   :  { %5 = vst [vmem:[%s23_s1] sm:$0xf] %v4_v0 }

// kernel: tile.24
= control target key start
LH: loop header
LB: loop body
LE: loop exit
PB: predicated region body
PF: predicated region fallthrough
CT: control target
= control target key end

     0   :  { %s6_s8 = smov 3  ;;  %vm8_vm0 = vcmask 523264   ;;  %s31_s9 = smov 64   ;;  %vm15_vm1 = vcmask 1048064   ;;  %s51_s0 = inlined_call_operand.vmem [shape: f32[4,64], index: 0, kind: input, shape index: {}]   ;;  %s52_s1 = inlined_call_operand.vmem [shape: f32[1,256], index: 1, kind: output, shape index: {}]  }
   0x1   :  { %v4_v0 = vld [vmem:[%s51_s0] sm:$0xf]  ;;  %s11_s0 = smov 3 }
   0x2   :  { %5 = vst [vmem:[#allocation1] sm:$0xf] %v4_v0 }
   0x9   :  { %v12_v1 = vld [vmem:[#allocation1 + $0x1] ss:$2 sm:%s11_s0]   ;;  %v7_v2 = vld [vmem:[#allocation1] ss:$2 sm:%s6_s8]  }
   0xa   :  { %13 = vrot.lane.b32.xlu0 %v12_v1, %s31_s9  ;;  %9 = vst.msk [vmem:[#allocation0] ss:$8 sm:$0x3] %vm8_vm0, %v7_v2  }
  0x7c   :  { %v14_v3 = vpop.permute.xlu0 %13  }
  0x7d   :  { %16 = vst.msk [vmem:[#allocation0] ss:$8 sm:$0x3] %vm15_vm1, %v14_v3  }
  0x84   :  { %v19_v4 = vld [vmem:[#allocation0] sm:$0x1]  ;;  %v24_v5 = vld [vmem:[#allocation0 + $0x8] sm:$0x1] }
  0x85   :  { %22 = vst [vmem:[%s52_s1] sm:$0x1] %v19_v4 }
  0x86   :  { %29 = vst [vmem:[%s52_s1 + $0x1] sm:$0x1] %v24_v5 }

// kernel: autoencoder_forward.10
= control target key start
LH: loop header
LB: loop body
LE: loop exit
PB: predicated region body
PF: predicated region fallthrough
CT: control target
= control target key end

     0   :  { %s2399_s1 = inlined_call_operand.vmem [shape: bf16[512,256], index: 1, kind: input, shape index: {}]   ;;  %s2400_s0 = inlined_call_operand.vmem [shape: bf16[1,128,512], index: 0, kind: input, shape index: {}]   ;;  %s2401_s2 = inlined_call_operand.vmem [shape: f32[1,256], index: 2, kind: input, shape index: {}]   ;;  %s2402_s3 = inlined_call_operand.vmem [shape: bf16[128,256], index: 3, kind: output, shape index: {}]  }
   0x1   :  { %v1242_v0 = vld [vmem:[%s2399_s1 + $0x70] sm:$0xf]  ;;  %v1487_v1 = vld [vmem:[%s2399_s1 + $0x74] sm:$0xf0]  ;;  %v1234_v11 = vld [vmem:[%s2399_s1 + $0x60] sm:$0xf] }
   0x2   :  { %v1306_v2 = vld [vmem:[%s2399_s1 + $0xf0] sm:$0xf]  ;;  %v1243_v3 = vor.u32 %v1487_v1, %v1242_v0  ;;  %v1503_v4 = vld [vmem:[%s2399_s1 + $0xf4] sm:$0xf0]  ;;  %v1485_v13 = vld [vmem:[%s2399_s1 + $0x64] sm:$0xf0] }
   0x3   :  { %v1370_v5 = vld [vmem:[%s2399_s1 + $0x170] sm:$0xf]  ;;  %v1519_v6 = vld [vmem:[%s2399_s1 + $0x174] sm:$0xf0]  ;;  %v1307_v7 = vor.u32 %v1503_v4, %v1306_v2  ;;  %v1298_v14 = vld [vmem:[%s2399_s1 + $0xe0] sm:$0xf]  ;;  %v1235_v16 = vor.u32 %v1485_v13, %v1234_v11 }
   0x4   :  { %v1371_v8 = vor.u32 %v1519_v6, %v1370_v5  ;;  %v1434_v9 = vld [vmem:[%s2399_s1 + $0x1f0] sm:$0xf]  ;;  %v1535_v10 = vld [vmem:[%s2399_s1 + $0x1f4] sm:$0xf0]  ;;  %596 = vmatpush.bf16.msra.mxu0 %v1243_v3  ;;  %v1501_v15 = vld [vmem:[%s2399_s1 + $0xe4] sm:$0xf0] }
   0x5   :  { %v1435_v12 = vor.u32 %v1535_v10, %v1434_v9  ;;  %645 = vmatpush.bf16.msra.mxu1 %v1307_v7  ;;  %v1299_v17 = vor.u32 %v1501_v15, %v1298_v14  ;;  %v1362_v18 = vld [vmem:[%s2399_s1 + $0x160] sm:$0xf]  ;;  %v1517_v19 = vld [vmem:[%s2399_s1 + $0x164] sm:$0xf0]  ;;  %v1226_v23 = vld [vmem:[%s2399_s1 + $0x50] sm:$0xf] }
   0x6   :  { %694 = vmatpush.bf16.msra.mxu2 %v1371_v8  ;;  %v1426_v20 = vld [vmem:[%s2399_s1 + $0x1e0] sm:$0xf]  ;;  %v1363_v21 = vor.u32 %v1517_v19, %v1362_v18  ;;  %v1533_v22 = vld [vmem:[%s2399_s1 + $0x1e4] sm:$0xf0]  ;;  %v1483_v24 = vld [vmem:[%s2399_s1 + $0x54] sm:$0xf0] }
   0x7   :  { %743 = vmatpush.bf16.msra.mxu3 %v1435_v12  ;;  %v1427_v25 = vor.u32 %v1533_v22, %v1426_v20  ;;  %v1290_v26 = vld [vmem:[%s2399_s1 + $0xd0] sm:$0xf]  ;;  %v1499_v27 = vld [vmem:[%s2399_s1 + $0xd4] sm:$0xf0]  ;;  %v1227_v29 = vor.u32 %v1483_v24, %v1226_v23  ;;  %v1218_v35 = vld [vmem:[%s2399_s1 + $0x40] sm:$0xf] }
   0x8   :  { %v1354_v28 = vld [vmem:[%s2399_s1 + $0x150] sm:$0xf]  ;;  %597 = vmatpush.bf16.msra.mxu0 %v1235_v16  ;;  %v1515_v30 = vld [vmem:[%s2399_s1 + $0x154] sm:$0xf0]  ;;  %v1291_v33 = vor.u32 %v1499_v27, %v1290_v26  ;;  %v1481_v36 = vld [vmem:[%s2399_s1 + $0x44] sm:$0xf0] }
   0x9   :  { %v1418_v31 = vld [vmem:[%s2399_s1 + $0x1d0] sm:$0xf]  ;;  %v1531_v32 = vld [vmem:[%s2399_s1 + $0x1d4] sm:$0xf0]  ;;  %646 = vmatpush.bf16.msra.mxu1 %v1299_v17  ;;  %v1355_v34 = vor.u32 %v1515_v30, %v1354_v28  ;;  %v1282_v37 = vld [vmem:[%s2399_s1 + $0xc0] sm:$0xf]  ;;  %v1219_v44 = vor.u32 %v1481_v36, %v1218_v35 }
   0xa   :  { %695 = vmatpush.bf16.msra.mxu2 %v1363_v21  ;;  %v1419_v38 = vor.u32 %v1531_v32, %v1418_v31  ;;  %v1497_v39 = vld [vmem:[%s2399_s1 + $0xc4] sm:$0xf0]  ;;  %v1346_v40 = vld [vmem:[%s2399_s1 + $0x140] sm:$0xf]  ;;  %v1210_v47 = vld [vmem:[%s2399_s1 + $0x30] sm:$0xf] }
   0xb   :  { %744 = vmatpush.bf16.msra.mxu3 %v1427_v25  ;;  %v1513_v41 = vld [vmem:[%s2399_s1 + $0x144] sm:$0xf0]  ;;  %v1410_v42 = vld [vmem:[%s2399_s1 + $0x1c0] sm:$0xf]  ;;  %v1283_v45 = vor.u32 %v1497_v39, %v1282_v37  ;;  %v1479_v48 = vld [vmem:[%s2399_s1 + $0x34] sm:$0xf0] }
   0xc   :  { %v1529_v43 = vld [vmem:[%s2399_s1 + $0x1c4] sm:$0xf0]  ;;  %598 = vmatpush.bf16.msra.mxu0 %v1227_v29  ;;  %v1347_v46 = vor.u32 %v1513_v41, %v1346_v40  ;;  %v1274_v49 = vld [vmem:[%s2399_s1 + $0xb0] sm:$0xf]  ;;  %v1495_v51 = vld [vmem:[%s2399_s1 + $0xb4] sm:$0xf0]  ;;  %v1211_v56 = vor.u32 %v1479_v48, %v1210_v47 }
   0xd   :  { %647 = vmatpush.bf16.msra.mxu1 %v1291_v33  ;;  %v1411_v50 = vor.u32 %v1529_v43, %v1410_v42  ;;  %v1338_v52 = vld [vmem:[%s2399_s1 + $0x130] sm:$0xf]  ;;  %v1511_v53 = vld [vmem:[%s2399_s1 + $0x134] sm:$0xf0]  ;;  %v1275_v57 = vor.u32 %v1495_v51, %v1274_v49  ;;  %v1202_v59 = vld [vmem:[%s2399_s1 + $0x20] sm:$0xf] }
   0xe   :  { %696 = vmatpush.bf16.msra.mxu2 %v1355_v34  ;;  %v1402_v54 = vld [vmem:[%s2399_s1 + $0x1b0] sm:$0xf]  ;;  %v1527_v55 = vld [vmem:[%s2399_s1 + $0x1b4] sm:$0xf0]  ;;  %v1339_v58 = vor.u32 %v1511_v53, %v1338_v52  ;;  %v1477_v60 = vld [vmem:[%s2399_s1 + $0x24] sm:$0xf0] }
   0xf   :  { %745 = vmatpush.bf16.msra.mxu3 %v1419_v38  ;;  %v1266_v61 = vld [vmem:[%s2399_s1 + $0xa0] sm:$0xf]  ;;  %v1403_v62 = vor.u32 %v1527_v55, %v1402_v54  ;;  %v1493_v63 = vld [vmem:[%s2399_s1 + $0xa4] sm:$0xf0]  ;;  %v1203_v4 = vor.u32 %v1477_v60, %v1202_v59  ;;  %v1194_v7 = vld [vmem:[%s2399_s1 + $0x10] sm:$0xf] }
  0x10   :  { %599 = vmatpush.bf16.msra.mxu0 %v1219_v44  ;;  %v1330_v0 = vld [vmem:[%s2399_s1 + $0x120] sm:$0xf]  ;;  %v1509_v1 = vld [vmem:[%s2399_s1 + $0x124] sm:$0xf0]  ;;  %v1267_v5 = vor.u32 %v1493_v63, %v1266_v61  ;;  %v1475_v8 = vld [vmem:[%s2399_s1 + $0x14] sm:$0xf0] }
  0x11   :  { %648 = vmatpush.bf16.msra.mxu1 %v1283_v45  ;;  %v1394_v2 = vld [vmem:[%s2399_s1 + $0x1a0] sm:$0xf]  ;;  %v1525_v3 = vld [vmem:[%s2399_s1 + $0x1a4] sm:$0xf0]  ;;  %v1331_v6 = vor.u32 %v1509_v1, %v1330_v0  ;;  %v1258_v9 = vld [vmem:[%s2399_s1 + $0x90] sm:$0xf]  ;;  %v1195_v17 = vor.u32 %v1475_v8, %v1194_v7 }
  0x12   :  { %697 = vmatpush.bf16.msra.mxu2 %v1347_v46  ;;  %v1395_v10 = vor.u32 %v1525_v3, %v1394_v2  ;;  %v1491_v11 = vld [vmem:[%s2399_s1 + $0x94] sm:$0xf0]  ;;  %v1322_v12 = vld [vmem:[%s2399_s1 + $0x110] sm:$0xf]  ;;  %v1186_v16 = vld [vmem:[%s2399_s1] sm:$0xf] }
  0x13   :  { %746 = vmatpush.bf16.msra.mxu3 %v1411_v50  ;;  %v1507_v13 = vld [vmem:[%s2399_s1 + $0x114] sm:$0xf0]  ;;  %v1386_v14 = vld [vmem:[%s2399_s1 + $0x190] sm:$0xf]  ;;  %v1473_v18 = vld [vmem:[%s2399_s1 + $0x4] sm:$0xf0]  ;;  %v1259_v21 = vor.u32 %v1491_v11, %v1258_v9 }
  0x14   :  { %600 = vmatpush.bf16.msra.mxu0 %v1211_v56  ;;  %v1523_v15 = vld [vmem:[%s2399_s1 + $0x194] sm:$0xf0]  ;;  %v1250_v19 = vld [vmem:[%s2399_s1 + $0x80] sm:$0xf]  ;;  %v1489_v20 = vld [vmem:[%s2399_s1 + $0x84] sm:$0xf0]  ;;  %v1323_v22 = vor.u32 %v1507_v13, %v1322_v12  ;;  %v1187_v34 = vor.u32 %v1473_v18, %v1186_v16 }
  0x15   :  { %649 = vmatpush.bf16.msra.mxu1 %v1275_v57  ;;  %v1314_v23 = vld [vmem:[%s2399_s1 + $0x100] sm:$0xf]  ;;  %v1505_v24 = vld [vmem:[%s2399_s1 + $0x104] sm:$0xf0]  ;;  %v1387_v26 = vor.u32 %v1523_v15, %v1386_v14  ;;  %v1442_v29 = vld [vmem:[%s2400_s0 + $0xc] sm:$0xf0]  ;;  %v1251_v38 = vor.u32 %v1489_v20, %v1250_v19 }
  0x16   :  { %698 = vmatpush.bf16.msra.mxu2 %v1339_v58  ;;  %v1378_v25 = vld [vmem:[%s2399_s1 + $0x180] sm:$0xf]  ;;  %v1521_v27 = vld [vmem:[%s2399_s1 + $0x184] sm:$0xf0]  ;;  %v1440_v30 = vld [vmem:[%s2400_s0 + $0x4] sm:$0xf]  ;;  %v1315_v39 = vor.u32 %v1505_v24, %v1314_v23 }
  0x17   :  { %747 = vmatpush.bf16.msra.mxu3 %v1403_v62  ;;  %v1058_v28 = vld [vmem:[%s2400_s0] sm:$0xf]  ;;  %v1060_v31 = vld [vmem:[%s2400_s0 + $0x10] sm:$0xf0]  ;;  %v1372_v33 = vld [vmem:[%s2399_s1 + $0x178] sm:$0xf0]  ;;  %v1379_v43 = vor.u32 %v1521_v27, %v1378_v25 }
  0x18   :  { %601 = vmatpush.bf16.msra.mxu0 %v1203_v4  ;;  %v1518_v32 = vld [vmem:[%s2399_s1 + $0x174] sm:$0xf]  ;;  %v1066_v35 = vld [vmem:[%s2400_s0 + $0x8] sm:$0xf]  ;;  %v1436_v37 = vld [vmem:[%s2399_s1 + $0x1f8] sm:$0xf0]  ;;  %v1793_v48 = vor.u32 %v1442_v29, %v1058_v28  ;;  %v1804_v53 = vor.u32 %v1440_v30, %v1060_v31 }
  0x19   :  { %650 = vmatpush.bf16.msra.mxu1 %v1267_v5  ;;  %v1534_v36 = vld [vmem:[%s2399_s1 + $0x1f4] sm:$0xf]  ;;  %v1443_v40 = vld [vmem:[%s2400_s0 + $0x14] sm:$0xf0]  ;;  %v1441_v41 = vld [vmem:[%s2400_s0 + $0xc] sm:$0xf]  ;;  %v1375_v44 = vor.u32 %v1518_v32, %v1372_v33 }
  0x1a   :  { %699 = vmatpush.bf16.msra.mxu2 %v1331_v6  ;;  %v1068_v42 = vld [vmem:[%s2400_s0 + $0x18] sm:$0xf0]  ;;  %v1486_v45 = vld [vmem:[%s2399_s1 + $0x74] sm:$0xf]  ;;  %v1439_v49 = vor.u32 %v1534_v36, %v1436_v37  ;;  %v1516_v51 = vld [vmem:[%s2399_s1 + $0x164] sm:$0xf]  ;;  %v1806_v54 = vor.u32 %v1443_v40, %v1066_v35 }
  0x1b   :  { %748 = vmatpush.bf16.msra.mxu3 %v1395_v10  ;;  %v1244_v46 = vld [vmem:[%s2399_s1 + $0x78] sm:$0xf0]  ;;  %v1502_v47 = vld [vmem:[%s2399_s1 + $0xf4] sm:$0xf]  ;;  %v1364_v52 = vld [vmem:[%s2399_s1 + $0x168] sm:$0xf0]  ;;  %v1814_v57 = vor.u32 %v1441_v41, %v1068_v42 }
  0x1c   :  { %602 = vmatpush.bf16.msra.mxu0 %v1195_v17  ;;  %v1308_v50 = vld [vmem:[%s2399_s1 + $0xf8] sm:$0xf0]  ;;  %v1532_v55 = vld [vmem:[%s2399_s1 + $0x1e4] sm:$0xf]  ;;  %v1428_v56 = vld [vmem:[%s2399_s1 + $0x1e8] sm:$0xf0]  ;;  %v1247_v58 = vor.u32 %v1486_v45, %v1244_v46  ;;  %v1367_v60 = vor.u32 %v1516_v51, %v1364_v52 }
  0x1d   :  { %651 = vmatpush.bf16.msra.mxu1 %v1259_v21  ;;  %v1311_v59 = vor.u32 %v1502_v47, %v1308_v50  ;;  %v1484_v61 = vld [vmem:[%s2399_s1 + $0x64] sm:$0xf]  ;;  %v1236_v62 = vld [vmem:[%s2399_s1 + $0x68] sm:$0xf0]  ;;  %v1431_v63 = vor.u32 %v1532_v55, %v1428_v56  ;;  %v1514_v3 = vld [vmem:[%s2399_s1 + $0x154] sm:$0xf] }
  0x1e   :  { %700 = vmatpush.bf16.msra.mxu2 %v1323_v22  ;;  %v1500_v0 = vld [vmem:[%s2399_s1 + $0xe4] sm:$0xf]  ;;  %v1300_v1 = vld [vmem:[%s2399_s1 + $0xe8] sm:$0xf0]  ;;  %v1239_v2 = vor.u32 %v1484_v61, %v1236_v62  ;;  %v1356_v4 = vld [vmem:[%s2399_s1 + $0x158] sm:$0xf0] }
  0x1f   :  { %749 = vmatpush.bf16.msra.mxu3 %v1387_v26  ;;  %v1482_v5 = vld [vmem:[%s2399_s1 + $0x54] sm:$0xf]  ;;  %v1303_v6 = vor.u32 %v1500_v0, %v1300_v1  ;;  %v1359_v7 = vor.u32 %v1514_v3, %v1356_v4  ;;  %v1228_v8 = vld [vmem:[%s2399_s1 + $0x58] sm:$0xf0]  ;;  %v1074_v16 = vld [vmem:[%s2400_s0 + $0x20] sm:$0xf] }
  0x20   :  { %603 = vmatpush.bf16.msra.mxu0 %v1187_v34  ;;  %v1530_v9 = vld [vmem:[%s2399_s1 + $0x1d4] sm:$0xf]  ;;  %v1420_v10 = vld [vmem:[%s2399_s1 + $0x1d8] sm:$0xf0]  ;;  %v1231_v14 = vor.u32 %v1482_v5, %v1228_v8  ;;  %v1446_v17 = vld [vmem:[%s2400_s0 + $0x2c] sm:$0xf0] }
  0x21   :  { %652 = vmatpush.bf16.msra.mxu1 %v1251_v38  ;;  %v1423_v11 = vor.u32 %v1530_v9, %v1420_v10  ;;  %v1498_v12 = vld [vmem:[%s2399_s1 + $0xd4] sm:$0xf]  ;;  %v1292_v13 = vld [vmem:[%s2399_s1 + $0xd8] sm:$0xf0]  ;;  %v1444_v18 = vld [vmem:[%s2400_s0 + $0x24] sm:$0xf]  ;;  %v1880_v24 = vor.u32 %v1446_v17, %v1074_v16 }
  0x22   :  { %701 = vmatpush.bf16.msra.mxu2 %v1315_v39  ;;  %v1295_v15 = vor.u32 %v1498_v12, %v1292_v13  ;;  %v1076_v19 = vld [vmem:[%s2400_s0 + $0x30] sm:$0xf0]  ;;  %v1082_v20 = vld [vmem:[%s2400_s0 + $0x28] sm:$0xf]  ;;  %v1447_v21 = vld [vmem:[%s2400_s0 + $0x34] sm:$0xf0] }
  0x23   :  { %750 = vmatpush.bf16.msra.mxu3 %v1379_v43  ;;  %604 = vmatmul.bf16.vlgmr.msra.gmra.mxu0 %v1793_v48  ;;  %v1445_v22 = vld [vmem:[%s2400_s0 + $0x2c] sm:$0xf]  ;;  %v1084_v23 = vld [vmem:[%s2400_s0 + $0x38] sm:$0xf0]  ;;  %v1882_v25 = vor.u32 %v1444_v18, %v1076_v19  ;;  %v1884_v26 = vor.u32 %v1447_v21, %v1082_v20  ;;  %v1512_v28 = vld [vmem:[%s2399_s1 + $0x144] sm:$0xf] }
  0x24   :  { %653 = vmatmul.bf16.vlgmr.msra.gmra.mxu1 %v1804_v53  ;;  %792 = vmatpush.bf16.msrb.mxu0 %v1247_v58  ;;  %v1886_v27 = vor.u32 %v1445_v22, %v1084_v23  ;;  %v1348_v29 = vld [vmem:[%s2399_s1 + $0x148] sm:$0xf0]  ;;  %v1480_v30 = vld [vmem:[%s2399_s1 + $0x44] sm:$0xf]  ;;  %v1090_v40 = vld [vmem:[%s2400_s0 + $0x40] sm:$0xf] }
  0x25   :  { %702 = vmatmul.bf16.vlgmr.msra.gmra.mxu2 %v1806_v54  ;;  %841 = vmatpush.bf16.msrb.mxu1 %v1311_v59  ;;  %v1351_v31 = vor.u32 %v1512_v28, %v1348_v29  ;;  %v1220_v32 = vld [vmem:[%s2399_s1 + $0x48] sm:$0xf0]  ;;  %v1528_v33 = vld [vmem:[%s2399_s1 + $0x1c4] sm:$0xf]  ;;  %v1450_v41 = vld [vmem:[%s2400_s0 + $0x4c] sm:$0xf0] }
  0x26   :  { %890 = vmatpush.bf16.msrb.mxu2 %v1375_v44  ;;  %751 = vmatmul.bf16.vlgmr.msra.gmra.mxu3 %v1814_v57  ;;  %v1412_v34 = vld [vmem:[%s2399_s1 + $0x1c8] sm:$0xf0]  ;;  %v1223_v35 = vor.u32 %v1480_v30, %v1220_v32  ;;  %v1496_v37 = vld [vmem:[%s2399_s1 + $0xc4] sm:$0xf]  ;;  %v1092_v43 = vld [vmem:[%s2400_s0 + $0x50] sm:$0xf0] }
  0x27   :  { %939 = vmatpush.bf16.msrb.mxu3 %v1439_v49  ;;  %v1415_v36 = vor.u32 %v1528_v33, %v1412_v34  ;;  %v1284_v38 = vld [vmem:[%s2399_s1 + $0xc8] sm:$0xf0]  ;;  %v1448_v42 = vld [vmem:[%s2400_s0 + $0x44] sm:$0xf]  ;;  %v1098_v44 = vld [vmem:[%s2400_s0 + $0x48] sm:$0xf]  ;;  %v1940_v49 = vor.u32 %v1450_v41, %v1090_v40 }
  0x28   :  { %793 = vmatpush.bf16.msrb.mxu0 %v1239_v2  ;;  %v1287_v39 = vor.u32 %v1496_v37, %v1284_v38  ;;  %v1451_v45 = vld [vmem:[%s2400_s0 + $0x54] sm:$0xf0]  ;;  %v1449_v46 = vld [vmem:[%s2400_s0 + $0x4c] sm:$0xf]  ;;  %v1100_v47 = vld [vmem:[%s2400_s0 + $0x58] sm:$0xf0]  ;;  %v1942_v50 = vor.u32 %v1448_v42, %v1092_v43 }
  0x29   :  { %842 = vmatpush.bf16.msrb.mxu1 %v1303_v6  ;;  %v1944_v51 = vor.u32 %v1451_v45, %v1098_v44  ;;  %v1946_v52 = vor.u32 %v1449_v46, %v1100_v47  ;;  %v1510_v55 = vld [vmem:[%s2399_s1 + $0x134] sm:$0xf]  ;;  %v1340_v56 = vld [vmem:[%s2399_s1 + $0x138] sm:$0xf0]  ;;  %v1106_v4 = vld [vmem:[%s2400_s0 + $0x60] sm:$0xf] }
  0x2a   :  { %891 = vmatpush.bf16.msrb.mxu2 %v1367_v60  ;;  %v1478_v58 = vld [vmem:[%s2399_s1 + $0x34] sm:$0xf]  ;;  %v1343_v59 = vor.u32 %v1510_v55, %v1340_v56  ;;  %v1212_v60 = vld [vmem:[%s2399_s1 + $0x38] sm:$0xf0]  ;;  %v1454_v5 = vld [vmem:[%s2400_s0 + $0x6c] sm:$0xf0] }
  0x2b   :  { %940 = vmatpush.bf16.msrb.mxu3 %v1431_v63  ;;  %v1526_v61 = vld [vmem:[%s2399_s1 + $0x1b4] sm:$0xf]  ;;  %v1404_v62 = vld [vmem:[%s2399_s1 + $0x1b8] sm:$0xf0]  ;;  %v1215_v63 = vor.u32 %v1478_v58, %v1212_v60  ;;  %v1452_v6 = vld [vmem:[%s2400_s0 + $0x64] sm:$0xf]  ;;  %v2000_v12 = vor.u32 %v1454_v5, %v1106_v4 }
  0x2c   :  { %794 = vmatpush.bf16.msrb.mxu0 %v1231_v14  ;;  %v1407_v0 = vor.u32 %v1526_v61, %v1404_v62  ;;  %v1494_v1 = vld [vmem:[%s2399_s1 + $0xb4] sm:$0xf]  ;;  %v1276_v2 = vld [vmem:[%s2399_s1 + $0xb8] sm:$0xf0]  ;;  %v1114_v8 = vld [vmem:[%s2400_s0 + $0x68] sm:$0xf] }
  0x2d   :  { %843 = vmatpush.bf16.msrb.mxu1 %v1295_v15  ;;  %v1279_v3 = vor.u32 %v1494_v1, %v1276_v2  ;;  %v1455_v9 = vld [vmem:[%s2400_s0 + $0x74] sm:$0xf0]  ;;  %v1453_v10 = vld [vmem:[%s2400_s0 + $0x6c] sm:$0xf]  ;;  %v1508_v16 = vld [vmem:[%s2399_s1 + $0x124] sm:$0xf] }
  0x2e   :  { %892 = vmatpush.bf16.msrb.mxu2 %v1359_v7  ;;  %v1108_v7 = vld [vmem:[%s2400_s0 + $0x70] sm:$0xf0]  ;;  %v2004_v14 = vor.u32 %v1455_v9, %v1114_v8  ;;  %v1332_v17 = vld [vmem:[%s2399_s1 + $0x128] sm:$0xf0]  ;;  %v1476_v18 = vld [vmem:[%s2399_s1 + $0x24] sm:$0xf] }
  0x2f   :  { %941 = vmatpush.bf16.msrb.mxu3 %v1423_v11  ;;  %v1116_v11 = vld [vmem:[%s2400_s0 + $0x78] sm:$0xf0]  ;;  %v2002_v13 = vor.u32 %v1452_v6, %v1108_v7  ;;  %v1335_v19 = vor.u32 %v1508_v16, %v1332_v17  ;;  %v1204_v20 = vld [vmem:[%s2399_s1 + $0x28] sm:$0xf0]  ;;  %v1524_v21 = vld [vmem:[%s2399_s1 + $0x1a4] sm:$0xf] }
  0x30   :  { %795 = vmatpush.bf16.msrb.mxu0 %v1223_v35  ;;  %v2006_v15 = vor.u32 %v1453_v10, %v1116_v11  ;;  %v1396_v22 = vld [vmem:[%s2399_s1 + $0x1a8] sm:$0xf0]  ;;  %v1207_v23 = vor.u32 %v1476_v18, %v1204_v20  ;;  %v1492_v29 = vld [vmem:[%s2399_s1 + $0xa4] sm:$0xf]  ;;  %v1122_v32 = vld [vmem:[%s2400_s0 + $0x80] sm:$0xf] }
  0x31   :  { %844 = vmatpush.bf16.msrb.mxu1 %v1287_v39  ;;  %v1399_v28 = vor.u32 %v1524_v21, %v1396_v22  ;;  %v1268_v30 = vld [vmem:[%s2399_s1 + $0xa8] sm:$0xf0]  ;;  %v1458_v33 = vld [vmem:[%s2400_s0 + $0x8c] sm:$0xf0]  ;;  %v1456_v34 = vld [vmem:[%s2400_s0 + $0x84] sm:$0xf] }
  0x32   :  { %893 = vmatpush.bf16.msrb.mxu2 %v1351_v31  ;;  %v1271_v31 = vor.u32 %v1492_v29, %v1268_v30  ;;  %v1124_v35 = vld [vmem:[%s2400_s0 + $0x90] sm:$0xf0]  ;;  %v1459_v37 = vld [vmem:[%s2400_s0 + $0x94] sm:$0xf0]  ;;  %v1457_v38 = vld [vmem:[%s2400_s0 + $0x8c] sm:$0xf]  ;;  %v2060_v40 = vor.u32 %v1458_v33, %v1122_v32 }
  0x33   :  { %609 = vmatmul.bf16.gmra.mxu0 %v1880_v24  ;;  %942 = vmatpush.bf16.msrb.mxu3 %v1415_v36  ;;  %v1130_v36 = vld [vmem:[%s2400_s0 + $0x88] sm:$0xf]  ;;  %v1132_v39 = vld [vmem:[%s2400_s0 + $0x98] sm:$0xf0]  ;;  %v2062_v41 = vor.u32 %v1456_v34, %v1124_v35  ;;  %v1506_v44 = vld [vmem:[%s2399_s1 + $0x114] sm:$0xf] }
  0x34   :  { %658 = vmatmul.bf16.gmra.mxu1 %v1882_v25  ;;  %796 = vmatpush.bf16.msrb.mxu0 %v1215_v63  ;;  %v2064_v42 = vor.u32 %v1459_v37, %v1130_v36  ;;  %v2066_v43 = vor.u32 %v1457_v38, %v1132_v39  ;;  %v1324_v45 = vld [vmem:[%s2399_s1 + $0x118] sm:$0xf0]  ;;  %v1474_v46 = vld [vmem:[%s2399_s1 + $0x14] sm:$0xf]  ;;  %v1462_v1 = vld [vmem:[%s2400_s0 + $0xac] sm:$0xf0] }
  0x35   :  { %707 = vmatmul.bf16.gmra.mxu2 %v1884_v26  ;;  %845 = vmatpush.bf16.msrb.mxu1 %v1279_v3  ;;  %v1327_v47 = vor.u32 %v1506_v44, %v1324_v45  ;;  %v1196_v55 = vld [vmem:[%s2399_s1 + $0x18] sm:$0xf0]  ;;  %v1522_v56 = vld [vmem:[%s2399_s1 + $0x194] sm:$0xf]  ;;  %v1460_v2 = vld [vmem:[%s2400_s0 + $0xa4] sm:$0xf] }
  0x36   :  { %756 = vmatmul.bf16.gmra.mxu3 %v1886_v27  ;;  %894 = vmatpush.bf16.msrb.mxu2 %v1343_v59  ;;  %v1388_v58 = vld [vmem:[%s2399_s1 + $0x198] sm:$0xf0]  ;;  %v1199_v59 = vor.u32 %v1474_v46, %v1196_v55  ;;  %v1490_v61 = vld [vmem:[%s2399_s1 + $0x94] sm:$0xf]  ;;  %v1146_v4 = vld [vmem:[%s2400_s0 + $0xa8] sm:$0xf] }
  0x37   :  { %943 = vmatpush.bf16.msrb.mxu3 %v1407_v0  ;;  %v1391_v60 = vor.u32 %v1522_v56, %v1388_v58  ;;  %v1260_v62 = vld [vmem:[%s2399_s1 + $0x98] sm:$0xf0]  ;;  %v1138_v0 = vld [vmem:[%s2400_s0 + $0xa0] sm:$0xf]  ;;  %v1140_v3 = vld [vmem:[%s2400_s0 + $0xb0] sm:$0xf0] }
  0x38   :  { %797 = vmatpush.bf16.msrb.mxu0 %v1207_v23  ;;  %v1263_v63 = vor.u32 %v1490_v61, %v1260_v62  ;;  %v1463_v5 = vld [vmem:[%s2400_s0 + $0xb4] sm:$0xf0]  ;;  %v1461_v6 = vld [vmem:[%s2400_s0 + $0xac] sm:$0xf]  ;;  %v1148_v7 = vld [vmem:[%s2400_s0 + $0xb8] sm:$0xf0]  ;;  %v2120_v8 = vor.u32 %v1462_v1, %v1138_v0  ;;  %v2122_v9 = vor.u32 %v1460_v2, %v1140_v3 }
  0x39   :  { %846 = vmatpush.bf16.msrb.mxu1 %v1271_v31  ;;  %v2124_v10 = vor.u32 %v1463_v5, %v1146_v4  ;;  %v2126_v11 = vor.u32 %v1461_v6, %v1148_v7  ;;  %v1504_v16 = vld [vmem:[%s2399_s1 + $0x104] sm:$0xf]  ;;  %v1316_v17 = vld [vmem:[%s2399_s1 + $0x108] sm:$0xf0]  ;;  %v1154_v32 = vld [vmem:[%s2400_s0 + $0xc0] sm:$0xf] }
  0x3a   :  { %895 = vmatpush.bf16.msrb.mxu2 %v1335_v19  ;;  %v1472_v18 = vld [vmem:[%s2399_s1 + $0x4] sm:$0xf]  ;;  %v1319_v19 = vor.u32 %v1504_v16, %v1316_v17  ;;  %v1188_v20 = vld [vmem:[%s2399_s1 + $0x8] sm:$0xf0]  ;;  %v1466_v33 = vld [vmem:[%s2400_s0 + $0xcc] sm:$0xf0] }
  0x3b   :  { %944 = vmatpush.bf16.msrb.mxu3 %v1399_v28  ;;  %v1520_v21 = vld [vmem:[%s2399_s1 + $0x184] sm:$0xf]  ;;  %v1380_v22 = vld [vmem:[%s2399_s1 + $0x188] sm:$0xf0]  ;;  %v1191_v23 = vor.u32 %v1472_v18, %v1188_v20  ;;  %v1156_v35 = vld [vmem:[%s2400_s0 + $0xd0] sm:$0xf0]  ;;  %v2180_v44 = vor.u32 %v1466_v33, %v1154_v32 }
  0x3c   :  { %798 = vmatpush.bf16.msrb.mxu0 %v1199_v59  ;;  %v1383_v28 = vor.u32 %v1520_v21, %v1380_v22  ;;  %v1488_v29 = vld [vmem:[%s2399_s1 + $0x84] sm:$0xf]  ;;  %v1252_v30 = vld [vmem:[%s2399_s1 + $0x88] sm:$0xf0]  ;;  %v1162_v36 = vld [vmem:[%s2400_s0 + $0xc8] sm:$0xf] }
  0x3d   :  { %847 = vmatpush.bf16.msrb.mxu1 %v1263_v63  ;;  %v1255_v31 = vor.u32 %v1488_v29, %v1252_v30  ;;  %v1464_v34 = vld [vmem:[%s2400_s0 + $0xc4] sm:$0xf]  ;;  %v1467_v37 = vld [vmem:[%s2400_s0 + $0xd4] sm:$0xf0]  ;;  %v1465_v38 = vld [vmem:[%s2400_s0 + $0xcc] sm:$0xf] }
  0x3e   :  { %896 = vmatpush.bf16.msrb.mxu2 %v1327_v47  ;;  %v1164_v39 = vld [vmem:[%s2400_s0 + $0xd8] sm:$0xf0]  ;;  %v2182_v45 = vor.u32 %v1464_v34, %v1156_v35  ;;  %v2184_v46 = vor.u32 %v1467_v37, %v1162_v36  ;;  %v1170_v55 = vld [vmem:[%s2400_s0 + $0xe0] sm:$0xf]  ;;  %v1470_v56 = vld [vmem:[%s2400_s0 + $0xec] sm:$0xf0] }
  0x3f   :  { %945 = vmatpush.bf16.msrb.mxu3 %v1391_v60  ;;  %v2186_v47 = vor.u32 %v1465_v38, %v1164_v39  ;;  %v1468_v58 = vld [vmem:[%s2400_s0 + $0xe4] sm:$0xf]  ;;  %v1172_v59 = vld [vmem:[%s2400_s0 + $0xf0] sm:$0xf0]  ;;  %v1178_v60 = vld [vmem:[%s2400_s0 + $0xe8] sm:$0xf]  ;;  %v2216_v0 = vor.u32 %v1470_v56, %v1170_v55 }
  0x40   :  { %799 = vmatpush.bf16.msrb.mxu0 %v1191_v23  ;;  %v1471_v61 = vld [vmem:[%s2400_s0 + $0xf4] sm:$0xf0]  ;;  %v1469_v62 = vld [vmem:[%s2400_s0 + $0xec] sm:$0xf]  ;;  %v1180_v63 = vld [vmem:[%s2400_s0 + $0xf8] sm:$0xf0]  ;;  %v2218_v1 = vor.u32 %v1468_v58, %v1172_v59 }
  0x41   :  { %848 = vmatpush.bf16.msrb.mxu1 %v1255_v31  ;;  %v2220_v2 = vor.u32 %v1471_v61, %v1178_v60  ;;  %v2222_v3 = vor.u32 %v1469_v62, %v1180_v63  ;;  %v2231_v4 = vld [vmem:[%s2401_s2] sm:$0x3] }
  0x42   :  { %897 = vmatpush.bf16.msrb.mxu2 %v1319_v19  ;;  %v2234_v5 = vperm.slane %v2231_v4, 0 }
  0x43   :  { %614 = vmatmul.bf16.gmra.mxu0 %v1940_v49  ;;  %946 = vmatpush.bf16.msrb.mxu3 %v1383_v28 }
  0x44   :  { %663 = vmatmul.bf16.gmra.mxu1 %v1942_v50 }
  0x45   :  { %712 = vmatmul.bf16.gmra.mxu2 %v1944_v51 }
  0x46   :  { %761 = vmatmul.bf16.gmra.mxu3 %v1946_v52 }
  0x53   :  { %619 = vmatmul.bf16.gmra.mxu0 %v2000_v12 }
  0x54   :  { %668 = vmatmul.bf16.gmra.mxu1 %v2002_v13 }
  0x55   :  { %717 = vmatmul.bf16.gmra.mxu2 %v2004_v14 }
  0x56   :  { %766 = vmatmul.bf16.gmra.mxu3 %v2006_v15 }
  0x63   :  { %624 = vmatmul.bf16.gmra.mxu0 %v2060_v40 }
  0x64   :  { %673 = vmatmul.bf16.gmra.mxu1 %v2062_v41 }
  0x65   :  { %722 = vmatmul.bf16.gmra.mxu2 %v2064_v42 }
  0x66   :  { %771 = vmatmul.bf16.gmra.mxu3 %v2066_v43 }
  0x73   :  { %629 = vmatmul.bf16.gmra.mxu0 %v2120_v8 }
  0x74   :  { %678 = vmatmul.bf16.gmra.mxu1 %v2122_v9 }
  0x75   :  { %727 = vmatmul.bf16.gmra.mxu2 %v2124_v10 }
  0x76   :  { %776 = vmatmul.bf16.gmra.mxu3 %v2126_v11 }
  0x83   :  { %634 = vmatmul.bf16.gmra.mxu0 %v2180_v44 }
  0x84   :  { %683 = vmatmul.bf16.gmra.mxu1 %v2182_v45 }
  0x85   :  { %732 = vmatmul.bf16.gmra.mxu2 %v2184_v46 }
  0x86   :  { %781 = vmatmul.bf16.gmra.mxu3 %v2186_v47 }
  0x93   :  { %639 = vmatmul.bf16.gmra.mxu0 %v2216_v0 }
  0x94   :  { %688 = vmatmul.bf16.gmra.mxu1 %v2218_v1 }
  0x95   :  { %737 = vmatmul.bf16.gmra.mxu2 %v2220_v2 }
  0x96   :  { %786 = vmatmul.bf16.gmra.mxu3 %v2222_v3 }
  0xa0   :  { %v605_v6 = vpop.f32.mrf.mxu0 }
  0xa1   :  { %v606_v7 = vadd.f32 %v605_v6, %v2234_v5  ;;  %v654_v16 = vpop.f32.mrf.mxu1 }
  0xa3   :  { %v655_v17 = vadd.f32 %v654_v16, %v606_v7  ;;  %800 = vmatmul.bf16.vlgmr.msrb.gmra.mxu0 %v1793_v48 }
  0xa4   :  { %849 = vmatmul.bf16.vlgmr.msrb.gmra.mxu1 %v1804_v53 }
  0xa5   :  { %898 = vmatmul.bf16.vlgmr.msrb.gmra.mxu2 %v1806_v54 }
  0xa6   :  { %947 = vmatmul.bf16.vlgmr.msrb.gmra.mxu3 %v1814_v57 }
  0xa8   :  { %v703_v18 = vpop.f32.mrf.mxu2  ;;  %v607_v21 = vpop.f32.mrf.mxu0 }
  0xa9   :  { %v704_v19 = vadd.f32 %v703_v18, %v655_v17  ;;  %v752_v20 = vpop.f32.mrf.mxu3  ;;  %v608_v22 = vadd.f32 %v607_v21, %v2234_v5  ;;  %v656_v23 = vpop.f32.mrf.mxu1 }
  0xab   :  { %v2242_v28 = vadd.f32 %v752_v20, %v704_v19  ;;  %v657_v29 = vadd.f32 %v656_v23, %v608_v22 }
  0xb0   :  { %v705_v30 = vpop.f32.mrf.mxu2  ;;  %v610_v48 = vpop.f32.mrf.mxu0 }
  0xb1   :  { %v706_v31 = vadd.f32 %v705_v30, %v657_v29  ;;  %v754_v32 = vpop.f32.mrf.mxu3  ;;  %v611_v53 = vadd.f32 %v610_v48, %v2234_v5  ;;  %v659_v33 = vpop.f32.mrf.mxu1 }
  0xb3   :  { %v2245_v54 = vadd.f32 %v754_v32, %v706_v31  ;;  %v660_v57 = vadd.f32 %v659_v33, %v611_v53  ;;  %805 = vmatmul.bf16.gmra.mxu0 %v1880_v24 }
  0xb4   :  { %854 = vmatmul.bf16.gmra.mxu1 %v1882_v25 }
  0xb5   :  { %903 = vmatmul.bf16.gmra.mxu2 %v1884_v26 }
  0xb6   :  { %952 = vmatmul.bf16.gmra.mxu3 %v1886_v27 }
  0xb8   :  { %v708_v34 = vpop.f32.mrf.mxu2  ;;  %v612_v37 = vpop.f32.mrf.mxu0 }
  0xb9   :  { %v709_v35 = vadd.f32 %v708_v34, %v660_v57  ;;  %v757_v36 = vpop.f32.mrf.mxu3  ;;  %v613_v38 = vadd.f32 %v612_v37, %v2234_v5  ;;  %v661_v39 = vpop.f32.mrf.mxu1 }
  0xbb   :  { %v2252_v55 = vadd.f32 %v757_v36, %v709_v35  ;;  %v662_v56 = vadd.f32 %v661_v39, %v613_v38 }
  0xc0   :  { %v710_v58 = vpop.f32.mrf.mxu2  ;;  %v615_v24 = vpop.f32.mrf.mxu0 }
  0xc1   :  { %v711_v59 = vadd.f32 %v710_v58, %v662_v56  ;;  %v759_v60 = vpop.f32.mrf.mxu3  ;;  %v616_v25 = vadd.f32 %v615_v24, %v2234_v5  ;;  %v664_v61 = vpop.f32.mrf.mxu1 }
  0xc3   :  { %v2255_v26 = vadd.f32 %v759_v60, %v711_v59  ;;  %v665_v27 = vadd.f32 %v664_v61, %v616_v25  ;;  %810 = vmatmul.bf16.gmra.mxu0 %v1940_v49 }
  0xc4   :  { %859 = vmatmul.bf16.gmra.mxu1 %v1942_v50 }
  0xc5   :  { %908 = vmatmul.bf16.gmra.mxu2 %v1944_v51 }
  0xc6   :  { %957 = vmatmul.bf16.gmra.mxu3 %v1946_v52 }
  0xc8   :  { %v713_v62 = vpop.f32.mrf.mxu2  ;;  %v617_v7 = vpop.f32.mrf.mxu0 }
  0xc9   :  { %v714_v63 = vadd.f32 %v713_v62, %v665_v27  ;;  %v762_v6 = vpop.f32.mrf.mxu3  ;;  %v618_v16 = vadd.f32 %v617_v7, %v2234_v5  ;;  %v666_v17 = vpop.f32.mrf.mxu1 }
  0xcb   :  { %v2262_v18 = vadd.f32 %v762_v6, %v714_v63  ;;  %v667_v19 = vadd.f32 %v666_v17, %v618_v16 }
  0xd0   :  { %v715_v20 = vpop.f32.mrf.mxu2  ;;  %v620_v49 = vpop.f32.mrf.mxu0 }
  0xd1   :  { %v716_v21 = vadd.f32 %v715_v20, %v667_v19  ;;  %v764_v22 = vpop.f32.mrf.mxu3  ;;  %v621_v50 = vadd.f32 %v620_v49, %v2234_v5  ;;  %v669_v23 = vpop.f32.mrf.mxu1 }
  0xd3   :  { %v2265_v51 = vadd.f32 %v764_v22, %v716_v21  ;;  %v670_v52 = vadd.f32 %v669_v23, %v621_v50  ;;  %815 = vmatmul.bf16.gmra.mxu0 %v2000_v12 }
  0xd4   :  { %864 = vmatmul.bf16.gmra.mxu1 %v2002_v13 }
  0xd5   :  { %913 = vmatmul.bf16.gmra.mxu2 %v2004_v14 }
  0xd6   :  { %962 = vmatmul.bf16.gmra.mxu3 %v2006_v15 }
  0xd8   :  { %v718_v29 = vpop.f32.mrf.mxu2  ;;  %v622_v32 = vpop.f32.mrf.mxu0 }
  0xd9   :  { %v719_v30 = vadd.f32 %v718_v29, %v670_v52  ;;  %v767_v31 = vpop.f32.mrf.mxu3  ;;  %v623_v48 = vadd.f32 %v622_v32, %v2234_v5  ;;  %v671_v53 = vpop.f32.mrf.mxu1 }
  0xdb   :  { %v2272_v33 = vadd.f32 %v767_v31, %v719_v30  ;;  %v672_v57 = vadd.f32 %v671_v53, %v623_v48 }
  0xe0   :  { %v720_v34 = vpop.f32.mrf.mxu2  ;;  %v625_v12 = vpop.f32.mrf.mxu0 }
  0xe1   :  { %v721_v35 = vadd.f32 %v720_v34, %v672_v57  ;;  %v769_v36 = vpop.f32.mrf.mxu3  ;;  %v626_v13 = vadd.f32 %v625_v12, %v2234_v5  ;;  %v674_v37 = vpop.f32.mrf.mxu1 }
  0xe3   :  { %v2275_v14 = vadd.f32 %v769_v36, %v721_v35  ;;  %v675_v15 = vadd.f32 %v674_v37, %v626_v13  ;;  %820 = vmatmul.bf16.gmra.mxu0 %v2060_v40 }
  0xe4   :  { %869 = vmatmul.bf16.gmra.mxu1 %v2062_v41 }
  0xe5   :  { %918 = vmatmul.bf16.gmra.mxu2 %v2064_v42 }
  0xe6   :  { %967 = vmatmul.bf16.gmra.mxu3 %v2066_v43 }
  0xe8   :  { %v723_v38 = vpop.f32.mrf.mxu2  ;;  %v627_v58 = vpop.f32.mrf.mxu0 }
  0xe9   :  { %v724_v39 = vadd.f32 %v723_v38, %v675_v15  ;;  %v772_v56 = vpop.f32.mrf.mxu3  ;;  %v628_v59 = vadd.f32 %v627_v58, %v2234_v5  ;;  %v676_v60 = vpop.f32.mrf.mxu1 }
  0xeb   :  { %v2282_v24 = vadd.f32 %v772_v56, %v724_v39  ;;  %v677_v25 = vadd.f32 %v676_v60, %v628_v59 }
  0xf0   :  { %v725_v61 = vpop.f32.mrf.mxu2  ;;  %v630_v40 = vpop.f32.mrf.mxu0 }
  0xf1   :  { %v726_v27 = vadd.f32 %v725_v61, %v677_v25  ;;  %v774_v62 = vpop.f32.mrf.mxu3  ;;  %v631_v41 = vadd.f32 %v630_v40, %v2234_v5  ;;  %v679_v63 = vpop.f32.mrf.mxu1  ;;  %v2315_v25 = vperm.slane %v2231_v4, 1  ;;  %v988_v4 = vmax.f32 %v2242_v28, 0.0 }
  0xf3   :  { %v2285_v42 = vadd.f32 %v774_v62, %v726_v27  ;;  %v680_v43 = vadd.f32 %v679_v63, %v631_v41  ;;  %825 = vmatmul.bf16.gmra.mxu0 %v2120_v8 }
  0xf4   :  { %874 = vmatmul.bf16.gmra.mxu1 %v2122_v9 }
  0xf5   :  { %923 = vmatmul.bf16.gmra.mxu2 %v2124_v10 }
  0xf6   :  { %972 = vmatmul.bf16.gmra.mxu3 %v2126_v11 }
  0xf8   :  { %v728_v6 = vpop.f32.mrf.mxu2  ;;  %v632_v17 = vpop.f32.mrf.mxu0 }
  0xf9   :  { %v729_v7 = vadd.f32 %v728_v6, %v680_v43  ;;  %v777_v16 = vpop.f32.mrf.mxu3  ;;  %v633_v19 = vadd.f32 %v632_v17, %v2234_v5  ;;  %v681_v20 = vpop.f32.mrf.mxu1 }
  0xfb   :  { %v2292_v21 = vadd.f32 %v777_v16, %v729_v7  ;;  %v682_v22 = vadd.f32 %v681_v20, %v633_v19 }
 0x100   :  { %v730_v49 = vpop.f32.mrf.mxu2  ;;  %v635_v8 = vpop.f32.mrf.mxu0 }
 0x101   :  { %v731_v50 = vadd.f32 %v730_v49, %v682_v22  ;;  %v779_v23 = vpop.f32.mrf.mxu3  ;;  %v636_v9 = vadd.f32 %v635_v8, %v2234_v5  ;;  %v684_v52 = vpop.f32.mrf.mxu1 }
 0x103   :  { %v2295_v10 = vadd.f32 %v779_v23, %v731_v50  ;;  %v685_v11 = vadd.f32 %v684_v52, %v636_v9  ;;  %830 = vmatmul.bf16.gmra.mxu0 %v2180_v44 }
 0x104   :  { %879 = vmatmul.bf16.gmra.mxu1 %v2182_v45 }
 0x105   :  { %928 = vmatmul.bf16.gmra.mxu2 %v2184_v46 }
 0x106   :  { %977 = vmatmul.bf16.gmra.mxu3 %v2186_v47 }
 0x108   :  { %v733_v29 = vpop.f32.mrf.mxu2  ;;  %v637_v32 = vpop.f32.mrf.mxu0 }
 0x109   :  { %v734_v30 = vadd.f32 %v733_v29, %v685_v11  ;;  %v782_v31 = vpop.f32.mrf.mxu3  ;;  %v638_v48 = vadd.f32 %v637_v32, %v2234_v5  ;;  %v686_v53 = vpop.f32.mrf.mxu1  ;;  %v990_v11 = vmax.f32 %v2245_v54, 0.0 }
 0x10b   :  { %v2302_v57 = vadd.f32 %v782_v31, %v734_v30  ;;  %v687_v34 = vadd.f32 %v686_v53, %v638_v48 }
 0x110   :  { %v735_v35 = vpop.f32.mrf.mxu2  ;;  %v640_v44 = vpop.f32.mrf.mxu0 }
 0x111   :  { %v736_v36 = vadd.f32 %v735_v35, %v687_v34  ;;  %v784_v12 = vpop.f32.mrf.mxu3  ;;  %v641_v45 = vadd.f32 %v640_v44, %v2234_v5  ;;  %v689_v13 = vpop.f32.mrf.mxu1 }
 0x113   :  { %v2305_v46 = vadd.f32 %v784_v12, %v736_v36  ;;  %v690_v47 = vadd.f32 %v689_v13, %v641_v45  ;;  %835 = vmatmul.bf16.gmra.mxu0 %v2216_v0  ;;  %v992_v12 = vmax.f32 %v2252_v55, 0.0 }
 0x114   :  { %884 = vmatmul.bf16.gmra.mxu1 %v2218_v1 }
 0x115   :  { %933 = vmatmul.bf16.gmra.mxu2 %v2220_v2 }
 0x116   :  { %982 = vmatmul.bf16.gmra.mxu3 %v2222_v3 }
 0x118   :  { %v738_v37 = vpop.f32.mrf.mxu2  ;;  %v642_v39 = vpop.f32.mrf.mxu0 }
 0x119   :  { %v739_v15 = vadd.f32 %v738_v37, %v690_v47  ;;  %v787_v38 = vpop.f32.mrf.mxu3  ;;  %v643_v56 = vadd.f32 %v642_v39, %v2234_v5  ;;  %v691_v58 = vpop.f32.mrf.mxu1 }
 0x11b   :  { %v2312_v59 = vadd.f32 %v787_v38, %v739_v15  ;;  %v692_v60 = vadd.f32 %v691_v58, %v643_v56  ;;  %v994_v58 = vmax.f32 %v2255_v26, 0.0 }
 0x120   :  { %v740_v0 = vpop.f32.mrf.mxu2  ;;  %v801_v27 = vpop.f32.mrf.mxu0 }
 0x121   :  { %v741_v61 = vadd.f32 %v740_v0, %v692_v60  ;;  %v789_v1 = vpop.f32.mrf.mxu3  ;;  %v802_v2 = vadd.f32 %v801_v27, %v2315_v25  ;;  %v850_v3 = vpop.f32.mrf.mxu1 }
 0x123   :  { %v2318_v62 = vadd.f32 %v789_v1, %v741_v61  ;;  %v851_v40 = vadd.f32 %v850_v3, %v802_v2 }
 0x128   :  { %v899_v41 = vpop.f32.mrf.mxu2  ;;  %v803_v43 = vpop.f32.mrf.mxu0 }
 0x129   :  { %v900_v63 = vadd.f32 %v899_v41, %v851_v40  ;;  %v948_v5 = vpop.f32.mrf.mxu3  ;;  %v852_v6 = vpop.f32.mrf.mxu1  ;;  %v804_v16 = vadd.f32 %v803_v43, %v2315_v25 }
 0x12b   :  { %v949_v7 = vadd.f32 %v948_v5, %v900_v63  ;;  %v853_v20 = vadd.f32 %v852_v6, %v804_v16  ;;  %v996_v63 = vmax.f32 %v2262_v18, 0.0 }
 0x12d   :  { %v989_v17 = vmax.f32 %v949_v7, 0.0 }
 0x12f   :  { %v1020_v19 = vpack.c.bf16 %v989_v17, %v988_v4 }
 0x130   :  { %v901_v22 = vpop.f32.mrf.mxu2  ;;  %v806_v23 = vpop.f32.mrf.mxu0 }
 0x131   :  { %1036 = vst [vmem:[%s2402_s3] sm:$0xff] %v1020_v19  ;;  %v902_v49 = vadd.f32 %v901_v22, %v853_v20  ;;  %v950_v50 = vpop.f32.mrf.mxu3  ;;  %v807_v8 = vadd.f32 %v806_v23, %v2315_v25  ;;  %v855_v9 = vpop.f32.mrf.mxu1  ;;  %v998_v22 = vmax.f32 %v2265_v51, 0.0 }
 0x133   :  { %v951_v52 = vadd.f32 %v950_v50, %v902_v49  ;;  %v856_v30 = vadd.f32 %v855_v9, %v807_v8 }
 0x135   :  { %v991_v29 = vmax.f32 %v951_v52, 0.0 }
 0x137   :  { %v1021_v28 = vpack.c.bf16 %v991_v29, %v990_v11 }
 0x138   :  { %v904_v31 = vpop.f32.mrf.mxu2  ;;  %v808_v53 = vpop.f32.mrf.mxu0 }
 0x139   :  { %1037 = vst [vmem:[%s2402_s3 + $0x8] sm:$0xff] %v1021_v28  ;;  %v905_v32 = vadd.f32 %v904_v31, %v856_v30  ;;  %v953_v48 = vpop.f32.mrf.mxu3  ;;  %v857_v34 = vpop.f32.mrf.mxu1  ;;  %v809_v36 = vadd.f32 %v808_v53, %v2315_v25  ;;  %v1000_v28 = vmax.f32 %v2272_v33, 0.0 }
 0x13b   :  { %v954_v35 = vadd.f32 %v953_v48, %v905_v32  ;;  %v858_v54 = vadd.f32 %v857_v34, %v809_v36 }
 0x13d   :  { %v993_v44 = vmax.f32 %v954_v35, 0.0 }
 0x13f   :  { %v1022_v45 = vpack.c.bf16 %v993_v44, %v992_v12 }
 0x140   :  { %v906_v13 = vpop.f32.mrf.mxu2  ;;  %v811_v15 = vpop.f32.mrf.mxu0 }
 0x141   :  { %1038 = vst [vmem:[%s2402_s3 + $0x10] sm:$0xff] %v1022_v45  ;;  %v907_v47 = vadd.f32 %v906_v13, %v858_v54  ;;  %v955_v37 = vpop.f32.mrf.mxu3  ;;  %v812_v38 = vadd.f32 %v811_v15, %v2315_v25  ;;  %v860_v39 = vpop.f32.mrf.mxu1  ;;  %v1002_v45 = vmax.f32 %v2275_v14, 0.0 }
 0x143   :  { %v956_v56 = vadd.f32 %v955_v37, %v907_v47  ;;  %v861_v0 = vadd.f32 %v860_v39, %v812_v38 }
 0x145   :  { %v995_v60 = vmax.f32 %v956_v56, 0.0 }
 0x147   :  { %v1023_v55 = vpack.c.bf16 %v995_v60, %v994_v58  ;;  %v1004_v60 = vmax.f32 %v2282_v24, 0.0 }
 0x148   :  { %v909_v61 = vpop.f32.mrf.mxu2  ;;  %v813_v2 = vpop.f32.mrf.mxu0 }
 0x149   :  { %1039 = vst [vmem:[%s2402_s3 + $0x18] sm:$0xff] %v1023_v55  ;;  %v910_v1 = vadd.f32 %v909_v61, %v861_v0  ;;  %v958_v27 = vpop.f32.mrf.mxu3  ;;  %v862_v3 = vpop.f32.mrf.mxu1  ;;  %v814_v41 = vadd.f32 %v813_v2, %v2315_v25 }
 0x14b   :  { %v959_v40 = vadd.f32 %v958_v27, %v910_v1  ;;  %v863_v26 = vadd.f32 %v862_v3, %v814_v41 }
 0x14d   :  { %v997_v5 = vmax.f32 %v959_v40, 0.0 }
 0x14f   :  { %v1024_v43 = vpack.c.bf16 %v997_v5, %v996_v63  ;;  %v1006_v63 = vmax.f32 %v2285_v42, 0.0 }
 0x150   :  { %v911_v6 = vpop.f32.mrf.mxu2  ;;  %v816_v4 = vpop.f32.mrf.mxu0 }
 0x151   :  { %1040 = vst [vmem:[%s2402_s3 + $0x20] sm:$0xff] %v1024_v43  ;;  %v912_v7 = vadd.f32 %v911_v6, %v863_v26  ;;  %v960_v16 = vpop.f32.mrf.mxu3  ;;  %v817_v17 = vadd.f32 %v816_v4, %v2315_v25  ;;  %v865_v19 = vpop.f32.mrf.mxu1 }
 0x153   :  { %v961_v20 = vadd.f32 %v960_v16, %v912_v7  ;;  %v866_v50 = vadd.f32 %v865_v19, %v817_v17 }
 0x155   :  { %v999_v49 = vmax.f32 %v961_v20, 0.0  ;;  %v1008_v20 = vmax.f32 %v2292_v21, 0.0 }
 0x157   :  { %v1025_v18 = vpack.c.bf16 %v999_v49, %v998_v22 }
 0x158   :  { %v914_v23 = vpop.f32.mrf.mxu2  ;;  %v818_v52 = vpop.f32.mrf.mxu0 }
 0x159   :  { %1041 = vst [vmem:[%s2402_s3 + $0x28] sm:$0xff] %v1025_v18  ;;  %v915_v8 = vadd.f32 %v914_v23, %v866_v50  ;;  %v963_v9 = vpop.f32.mrf.mxu3  ;;  %v867_v11 = vpop.f32.mrf.mxu1  ;;  %v819_v30 = vadd.f32 %v818_v52, %v2315_v25 }
 0x15b   :  { %v964_v29 = vadd.f32 %v963_v9, %v915_v8  ;;  %v868_v51 = vadd.f32 %v867_v11, %v819_v30 }
 0x15d   :  { %v1001_v31 = vmax.f32 %v964_v29, 0.0  ;;  %v1010_v29 = vmax.f32 %v2295_v10, 0.0 }
 0x15f   :  { %v1026_v32 = vpack.c.bf16 %v1001_v31, %v1000_v28 }
 0x160   :  { %v916_v48 = vpop.f32.mrf.mxu2  ;;  %v821_v35 = vpop.f32.mrf.mxu0 }
 0x161   :  { %1042 = vst [vmem:[%s2402_s3 + $0x30] sm:$0xff] %v1026_v32  ;;  %v917_v53 = vadd.f32 %v916_v48, %v868_v51  ;;  %v965_v34 = vpop.f32.mrf.mxu3  ;;  %v822_v36 = vadd.f32 %v821_v35, %v2315_v25  ;;  %v870_v12 = vpop.f32.mrf.mxu1 }
 0x163   :  { %v966_v44 = vadd.f32 %v965_v34, %v917_v53  ;;  %v871_v13 = vadd.f32 %v870_v12, %v822_v36  ;;  %v1012_v36 = vmax.f32 %v2302_v57, 0.0 }
 0x165   :  { %v1003_v54 = vmax.f32 %v966_v44, 0.0 }
 0x167   :  { %v1027_v33 = vpack.c.bf16 %v1003_v54, %v1002_v45 }
 0x168   :  { %v919_v47 = vpop.f32.mrf.mxu2  ;;  %v823_v38 = vpop.f32.mrf.mxu0 }
 0x169   :  { %1043 = vst [vmem:[%s2402_s3 + $0x38] sm:$0xff] %v1027_v33  ;;  %v920_v37 = vadd.f32 %v919_v47, %v871_v13  ;;  %v968_v15 = vpop.f32.mrf.mxu3  ;;  %v872_v39 = vpop.f32.mrf.mxu1  ;;  %v824_v58 = vadd.f32 %v823_v38, %v2315_v25  ;;  %v1014_v38 = vmax.f32 %v2305_v46, 0.0 }
 0x16b   :  { %v969_v56 = vadd.f32 %v968_v15, %v920_v37  ;;  %v873_v14 = vadd.f32 %v872_v39, %v824_v58 }
 0x16d   :  { %v1005_v0 = vmax.f32 %v969_v56, 0.0 }
 0x16f   :  { %v1028_v55 = vpack.c.bf16 %v1005_v0, %v1004_v60 }
 0x170   :  { %v921_v61 = vpop.f32.mrf.mxu2  ;;  %v826_v2 = vpop.f32.mrf.mxu0 }
 0x171   :  { %1044 = vst [vmem:[%s2402_s3 + $0x40] sm:$0xff] %v1028_v55  ;;  %v922_v1 = vadd.f32 %v921_v61, %v873_v14  ;;  %v970_v27 = vpop.f32.mrf.mxu3  ;;  %v827_v3 = vadd.f32 %v826_v2, %v2315_v25  ;;  %v875_v40 = vpop.f32.mrf.mxu1 }
 0x173   :  { %v971_v41 = vadd.f32 %v970_v27, %v922_v1  ;;  %v876_v43 = vadd.f32 %v875_v40, %v827_v3  ;;  %v1016_v1 = vmax.f32 %v2312_v59, 0.0 }
 0x175   :  { %v1007_v5 = vmax.f32 %v971_v41, 0.0 }
 0x177   :  { %v1029_v24 = vpack.c.bf16 %v1007_v5, %v1006_v63 }
 0x178   :  { %v924_v26 = vpop.f32.mrf.mxu2  ;;  %v828_v16 = vpop.f32.mrf.mxu0 }
 0x179   :  { %1045 = vst [vmem:[%s2402_s3 + $0x48] sm:$0xff] %v1029_v24  ;;  %v925_v6 = vadd.f32 %v924_v26, %v876_v43  ;;  %v973_v7 = vpop.f32.mrf.mxu3  ;;  %v877_v4 = vpop.f32.mrf.mxu1  ;;  %v829_v19 = vadd.f32 %v828_v16, %v2315_v25  ;;  %v1018_v43 = vmax.f32 %v2318_v62, 0.0 }
 0x17b   :  { %v974_v17 = vadd.f32 %v973_v7, %v925_v6  ;;  %v878_v42 = vadd.f32 %v877_v4, %v829_v19 }
 0x17d   :  { %v1009_v22 = vmax.f32 %v974_v17, 0.0 }
 0x17f   :  { %v1030_v49 = vpack.c.bf16 %v1009_v22, %v1008_v20 }
 0x180   :  { %v926_v50 = vpop.f32.mrf.mxu2  ;;  %v831_v8 = vpop.f32.mrf.mxu0 }
 0x181   :  { %1046 = vst [vmem:[%s2402_s3 + $0x50] sm:$0xff] %v1030_v49  ;;  %v927_v18 = vadd.f32 %v926_v50, %v878_v42  ;;  %v975_v23 = vpop.f32.mrf.mxu3  ;;  %v832_v9 = vadd.f32 %v831_v8, %v2315_v25  ;;  %v880_v52 = vpop.f32.mrf.mxu1 }
 0x183   :  { %v976_v11 = vadd.f32 %v975_v23, %v927_v18  ;;  %v881_v28 = vadd.f32 %v880_v52, %v832_v9 }
 0x185   :  { %v1011_v30 = vmax.f32 %v976_v11, 0.0 }
 0x187   :  { %v1031_v21 = vpack.c.bf16 %v1011_v30, %v1010_v29 }
 0x188   :  { %v929_v31 = vpop.f32.mrf.mxu2  ;;  %v833_v48 = vpop.f32.mrf.mxu0 }
 0x189   :  { %1047 = vst [vmem:[%s2402_s3 + $0x58] sm:$0xff] %v1031_v21  ;;  %v930_v32 = vadd.f32 %v929_v31, %v881_v28  ;;  %v978_v51 = vpop.f32.mrf.mxu3  ;;  %v882_v53 = vpop.f32.mrf.mxu1  ;;  %v834_v35 = vadd.f32 %v833_v48, %v2315_v25 }
 0x18b   :  { %v979_v34 = vadd.f32 %v978_v51, %v930_v32  ;;  %v883_v10 = vadd.f32 %v882_v53, %v834_v35 }
 0x18d   :  { %v1013_v12 = vmax.f32 %v979_v34, 0.0 }
 0x18f   :  { %v1032_v44 = vpack.c.bf16 %v1013_v12, %v1012_v36 }
 0x190   :  { %v931_v45 = vpop.f32.mrf.mxu2  ;;  %v836_v33 = vpop.f32.mrf.mxu0 }
 0x191   :  { %1048 = vst [vmem:[%s2402_s3 + $0x60] sm:$0xff] %v1032_v44  ;;  %v932_v54 = vadd.f32 %v931_v45, %v883_v10  ;;  %v980_v13 = vpop.f32.mrf.mxu3  ;;  %v837_v47 = vadd.f32 %v836_v33, %v2315_v25  ;;  %v885_v15 = vpop.f32.mrf.mxu1 }
 0x193   :  { %v981_v37 = vadd.f32 %v980_v13, %v932_v54  ;;  %v886_v56 = vadd.f32 %v885_v15, %v837_v47 }
 0x195   :  { %v1015_v39 = vmax.f32 %v981_v37, 0.0 }
 0x197   :  { %v1033_v57 = vpack.c.bf16 %v1015_v39, %v1014_v38 }
 0x198   :  { %v934_v58 = vpop.f32.mrf.mxu2  ;;  %v838_v55 = vpop.f32.mrf.mxu0 }
 0x199   :  { %1049 = vst [vmem:[%s2402_s3 + $0x68] sm:$0xff] %v1033_v57  ;;  %v935_v60 = vadd.f32 %v934_v58, %v886_v56  ;;  %v983_v0 = vpop.f32.mrf.mxu3  ;;  %v839_v61 = vadd.f32 %v838_v55, %v2315_v25  ;;  %v887_v2 = vpop.f32.mrf.mxu1 }
 0x19b   :  { %v984_v14 = vadd.f32 %v983_v0, %v935_v60  ;;  %v888_v46 = vadd.f32 %v887_v2, %v839_v61 }
 0x19d   :  { %v1017_v27 = vmax.f32 %v984_v14, 0.0 }
 0x19f   :  { %v1034_v3 = vpack.c.bf16 %v1017_v27, %v1016_v1 }
 0x1a0   :  { %v936_v40 = vpop.f32.mrf.mxu2 }
 0x1a1   :  { %1050 = vst [vmem:[%s2402_s3 + $0x70] sm:$0xff] %v1034_v3  ;;  %v937_v41 = vadd.f32 %v936_v40, %v888_v46  ;;  %v985_v63 = vpop.f32.mrf.mxu3 }
 0x1a3   :  { %v986_v5 = vadd.f32 %v985_v63, %v937_v41 }
 0x1a5   :  { %v1019_v24 = vmax.f32 %v986_v5, 0.0 }
 0x1a7   :  { %v1035_v26 = vpack.c.bf16 %v1019_v24, %v1018_v43 }
 0x1a9   :  { %1051 = vst [vmem:[%s2402_s3 + $0x78] sm:$0xff] %v1035_v26 }

// kernel: tile.28
= control target key start
LH: loop header
LB: loop body
LE: loop exit
PB: predicated region body
PF: predicated region fallthrough
CT: control target
= control target key end

     0   :  { %s22_s0 = inlined_call_operand.vmem [shape: f32[3], index: 0, kind: input, shape index: {}]   ;;  %s23_s1 = inlined_call_operand.vmem [shape: f32[4,3], index: 1, kind: output, shape index: {}]  }
   0x1   :  { %v4_v0 = vld [vmem:[%s22_s0] ss:$0 sm:$0xff] }
   0x2   :  { %5 = vst [vmem:[%s23_s1] sm:$0xf] %v4_v0 }

// kernel: tile.29
= control target key start
LH: loop header
LB: loop body
LE: loop exit
PB: predicated region body
PF: predicated region fallthrough
CT: control target
= control target key end

     0   :  { %s37_s8 = smov 3   ;;  %s38_s9 = smov 6   ;;  %vm7_vm0 = vcmask 23552   ;;  %vm13_vm1 = vcmask 97352   ;;  %vm19_vm2 = vcmask 72752   ;;  %vm25_vm3 = vcmask 48152   ;;  %s55_s0 = inlined_call_operand.vmem [shape: f32[4,3], index: 0, kind: input, shape index: {}]   ;;  %s56_s1 = inlined_call_operand.vmem [shape: f32[12], index: 1, kind: output, shape index: {}]  }
   0x1   :  { %v4_v0 = vld [vmem:[%s55_s0] sm:$0xf]  ;;  %s36_s0 = smov 9  }
   0x2   :  { %5 = vst [vmem:[#allocation1] sm:$0xf] %v4_v0 }
   0x9   :  { %v10_v1 = vld [vmem:[#allocation1 + $0x3] sm:$0x1]   ;;  %v22_v2 = vld [vmem:[#allocation1 + $0x1] sm:$0x1]   ;;  %v16_v3 = vld [vmem:[#allocation1 + $0x2] sm:$0x1]  }
   0xa   :  { %11 = vrot.lane.b32.xlu0 %v10_v1, %s36_s0  ;;  %23 = vrot.lane.b32.xlu1 %v22_v2, %s37_s8  ;;  %v6_v4 = vld [vmem:[#allocation1] sm:$0x1]  }
   0xb   :  { %8 = vst.msk [vmem:[#allocation0] sm:$0x1] %vm7_vm0, %v6_v4  }
  0x12   :  { %17 = vrot.lane.b32.xlu0 %v16_v3, %s38_s9 }
  0x7c   :  { %v12_v5 = vpop.permute.xlu0 %11   ;;  %v24_v6 = vpop.permute.xlu1 %23  }
  0x7d   :  { %14 = vst.msk [vmem:[#allocation0] sm:$0x1] %vm13_vm1, %v12_v5  }
  0x84   :  { %v18_v7 = vpop.permute.xlu0 %17  }
  0x85   :  { %20 = vst.msk [vmem:[#allocation0] sm:$0x1] %vm19_vm2, %v18_v7  }
  0x86   :  { %26 = vst.msk [vmem:[#allocation0] sm:$0x1] %vm25_vm3, %v24_v6  }
  0x8d   :  { %v29_v8 = vld [vmem:[#allocation0] sm:$0x1] }
  0x8e   :  { %32 = vst [vmem:[%s56_s1] sm:$0x1] %v29_v8 }

// kernel: autoencoder_forward.11
= control target key start
LH: loop header
LB: loop body
LE: loop exit
PB: predicated region body
PF: predicated region fallthrough
CT: control target
= control target key end

     0   :  { %s3286_s12 = smov 0   ;;  %s3288_s13 = smov 0   ;;  %s4835_s0 = inlined_call_operand.vmem [shape: bf16[1,2048,256], index: 0, kind: input, shape index: {}]   ;;  %s4836_s1 = inlined_call_operand.vmem [shape: bf16[256,128], index: 1, kind: input, shape index: {}]   ;;  %s4837_s2 = inlined_call_operand.vmem [shape: f32[1,128], index: 2, kind: input, shape index: {}]   ;;  %s4838_s3 = inlined_call_operand.vmem [shape: f32[2048,128], index: 3, kind: output, shape index: {}]  }
   0x1   :  { %s3290_s14 = smov 0  }
   0x2 LB: > { %s25_s15 = sadd.s32 1, %s3260_s13  ;;  %p2470_p0 = scmp.ge.s32.totalorder %s3264_s14, 1  ;;  %s3264_s14 = sphi %s3290_s14, %s13_s14   ;;  %s3260_s13 = sphi %s3288_s13, %s4944_s13   ;;  %s3256_s12 = sphi %s3286_s12, %s4943_s12  }
   0x3   : > { %p27_p1 = scmp.ge.s32.totalorder %s25_s15, 4  ;;  %p170_p2 = scmp.lt.s32.totalorder %s3264_s14, 5 }
   0x5   : > { %s4946_s15 = smov (%p27_p1, %s25_s15), 0  ;;  %p171_p3 = pnand %p2470_p0, %p170_p2 }
   0x6   : > { %s2471_s28 = sshll.u32 (!%p171_p3), %s3256_s12, 6 }
   0x7   : > { %174 = sbr.rel (%p171_p3) target bundleno = 488 (0x1e8), region = 32  ;;  %p206_p4 = scmp.lt.s32.totalorder (!%p171_p3), %s2471_s28, 255 }
   0xc   : > { %v2934_v0 = vld [vmem:[%s4836_s1 + $0x38] sm:$0xff]  ;;  %v2933_v2 = vld [vmem:[%s4836_s1 + $0x30] sm:$0xff]  ;;  %v2932_v4 = vld [vmem:[%s4836_s1 + $0x28] sm:$0xff]  ;;  %s4948_s28 = smov (!%p206_p4, %s2471_s28), 255 }
   0xd   : > { %v2942_v1 = vld [vmem:[%s4836_s1 + $0x78] sm:$0xff]  ;;  %744 = vmatpush.bf16.msra.mxu0 %v2934_v0  ;;  %2943 = vmatpush.bf16.msra.mxu2 %v2934_v0  ;;  %v2941_v3 = vld [vmem:[%s4836_s1 + $0x70] sm:$0xff]  ;;  %v2940_v5 = vld [vmem:[%s4836_s1 + $0x68] sm:$0xff]  ;;  %s2862_s17 = sshll.u32 %s4948_s28, 3 }
   0xe   : > { %913 = vmatpush.bf16.msra.mxu1 %v2942_v1  ;;  %2951 = vmatpush.bf16.msra.mxu3 %v2942_v1  ;;  %v2931_v6 = vld [vmem:[%s4836_s1 + $0x20] sm:$0xff]  ;;  %v2930_v8 = vld [vmem:[%s4836_s1 + $0x18] sm:$0xff]  ;;  %v2929_v10 = vld [vmem:[%s4836_s1 + $0x10] sm:$0xff]  ;;  %s3354_s22 = scalar_lea.vmem %s4835_s0, %s2862_s17  ;;  %s3537_s7 = scalar_lea.vmem %s4838_s3, %s2862_s17 }
   0xf   : > { %v2939_v7 = vld [vmem:[%s4836_s1 + $0x60] sm:$0xff]  ;;  %v2938_v9 = vld [vmem:[%s4836_s1 + $0x58] sm:$0xff]  ;;  %v2937_v11 = vld [vmem:[%s4836_s1 + $0x50] sm:$0xff] }
  0x10   : > { %v2928_v12 = vld [vmem:[%s4836_s1 + $0x8] sm:$0xff]  ;;  %v2927_v14 = vld [vmem:[%s4836_s1] sm:$0xff]  ;;  %v2486_v28 = vld [vmem:[%s3354_s22 + $0x10] sm:$0xf] }
  0x11   : > { %745 = vmatpush.bf16.msra.mxu0 %v2933_v2  ;;  %2944 = vmatpush.bf16.msra.mxu2 %v2933_v2  ;;  %v2936_v13 = vld [vmem:[%s4836_s1 + $0x48] sm:$0xff]  ;;  %v2935_v15 = vld [vmem:[%s4836_s1 + $0x40] sm:$0xff]  ;;  %v2866_v29 = vld [vmem:[%s3354_s22 + $0x14] sm:$0xf0] }
  0x12   : > { %914 = vmatpush.bf16.msra.mxu1 %v2941_v3  ;;  %2952 = vmatpush.bf16.msra.mxu3 %v2941_v3  ;;  %v2478_v16 = vld [vmem:[%s3354_s22] sm:$0xf]  ;;  %v2864_v17 = vld [vmem:[%s3354_s22 + $0x4] sm:$0xf0]  ;;  %v2863_v20 = vld [vmem:[%s3354_s22 + $0x4] sm:$0xf]  ;;  %v2487_v36 = vor.u32 %v2866_v29, %v2486_v28 }
  0x13   : > { %v2606_v18 = vld [vmem:[%s3354_s22 + $0x100] sm:$0xf]  ;;  %v2896_v19 = vld [vmem:[%s3354_s22 + $0x104] sm:$0xf0]  ;;  %v2480_v21 = vld [vmem:[%s3354_s22 + $0x8] sm:$0xf0]  ;;  %v2479_v24 = vor.u32 %v2864_v17, %v2478_v16 }
  0x14   : > { %v2895_v22 = vld [vmem:[%s3354_s22 + $0x104] sm:$0xf]  ;;  %v2608_v23 = vld [vmem:[%s3354_s22 + $0x108] sm:$0xf0]  ;;  %v2607_v25 = vor.u32 %v2896_v19, %v2606_v18  ;;  %v2483_v26 = vor.u32 %v2863_v20, %v2480_v21  ;;  %v2614_v30 = vld [vmem:[%s3354_s22 + $0x110] sm:$0xf] }
  0x15   : > { %746 = vmatpush.bf16.msra.mxu0 %v2932_v4  ;;  %2945 = vmatpush.bf16.msra.mxu2 %v2932_v4  ;;  %v2611_v27 = vor.u32 %v2895_v22, %v2608_v23  ;;  %v2898_v31 = vld [vmem:[%s3354_s22 + $0x114] sm:$0xf0]  ;;  %v2865_v32 = vld [vmem:[%s3354_s22 + $0x14] sm:$0xf]  ;;  %v2488_v33 = vld [vmem:[%s3354_s22 + $0x18] sm:$0xf0] }
  0x16   : > { %915 = vmatpush.bf16.msra.mxu1 %v2940_v5  ;;  %2953 = vmatpush.bf16.msra.mxu3 %v2940_v5  ;;  %v2897_v34 = vld [vmem:[%s3354_s22 + $0x114] sm:$0xf]  ;;  %v2616_v35 = vld [vmem:[%s3354_s22 + $0x118] sm:$0xf0]  ;;  %v2615_v37 = vor.u32 %v2898_v31, %v2614_v30  ;;  %v2491_v38 = vor.u32 %v2865_v32, %v2488_v33  ;;  %v2494_v40 = vld [vmem:[%s3354_s22 + $0x20] sm:$0xf] }
  0x17   : > { %v2619_v39 = vor.u32 %v2897_v34, %v2616_v35  ;;  %v2868_v41 = vld [vmem:[%s3354_s22 + $0x24] sm:$0xf0]  ;;  %v2622_v42 = vld [vmem:[%s3354_s22 + $0x120] sm:$0xf]  ;;  %v2867_v44 = vld [vmem:[%s3354_s22 + $0x24] sm:$0xf] }
  0x18   : > { %v2900_v43 = vld [vmem:[%s3354_s22 + $0x124] sm:$0xf0]  ;;  %v2496_v45 = vld [vmem:[%s3354_s22 + $0x28] sm:$0xf0]  ;;  %v2899_v46 = vld [vmem:[%s3354_s22 + $0x124] sm:$0xf]  ;;  %v2495_v48 = vor.u32 %v2868_v41, %v2494_v40 }
  0x19   : > { %747 = vmatpush.bf16.msra.mxu0 %v2931_v6  ;;  %2946 = vmatpush.bf16.msra.mxu2 %v2931_v6  ;;  %v2624_v47 = vld [vmem:[%s3354_s22 + $0x128] sm:$0xf0]  ;;  %v2623_v49 = vor.u32 %v2900_v43, %v2622_v42  ;;  %v2499_v50 = vor.u32 %v2867_v44, %v2496_v45  ;;  %v2502_v52 = vld [vmem:[%s3354_s22 + $0x30] sm:$0xf]  ;;  %v2870_v53 = vld [vmem:[%s3354_s22 + $0x34] sm:$0xf0] }
  0x1a   : > { %916 = vmatpush.bf16.msra.mxu1 %v2939_v7  ;;  %2954 = vmatpush.bf16.msra.mxu3 %v2939_v7  ;;  %v2627_v51 = vor.u32 %v2899_v46, %v2624_v47  ;;  %v2630_v54 = vld [vmem:[%s3354_s22 + $0x130] sm:$0xf]  ;;  %v2902_v55 = vld [vmem:[%s3354_s22 + $0x134] sm:$0xf0]  ;;  %v2869_v56 = vld [vmem:[%s3354_s22 + $0x34] sm:$0xf]  ;;  %v2503_v60 = vor.u32 %v2870_v53, %v2502_v52 }
  0x1b   : > { %v2504_v57 = vld [vmem:[%s3354_s22 + $0x38] sm:$0xf0]  ;;  %v2901_v58 = vld [vmem:[%s3354_s22 + $0x134] sm:$0xf]  ;;  %v2631_v61 = vor.u32 %v2902_v55, %v2630_v54  ;;  %v2510_v0 = vld [vmem:[%s3354_s22 + $0x40] sm:$0xf] }
  0x1c   : > { %v2632_v59 = vld [vmem:[%s3354_s22 + $0x138] sm:$0xf0]  ;;  %v2507_v62 = vor.u32 %v2869_v56, %v2504_v57  ;;  %v2872_v1 = vld [vmem:[%s3354_s22 + $0x44] sm:$0xf0]  ;;  %v2638_v2 = vld [vmem:[%s3354_s22 + $0x140] sm:$0xf] }
  0x1d   : > { %748 = vmatpush.bf16.msra.mxu0 %v2930_v8  ;;  %2947 = vmatpush.bf16.msra.mxu2 %v2930_v8  ;;  %v2635_v63 = vor.u32 %v2901_v58, %v2632_v59  ;;  %v2904_v3 = vld [vmem:[%s3354_s22 + $0x144] sm:$0xf0]  ;;  %v2871_v4 = vld [vmem:[%s3354_s22 + $0x44] sm:$0xf]  ;;  %v2512_v5 = vld [vmem:[%s3354_s22 + $0x48] sm:$0xf0]  ;;  %v2511_v8 = vor.u32 %v2872_v1, %v2510_v0 }
  0x1e   : > { %917 = vmatpush.bf16.msra.mxu1 %v2938_v9  ;;  %2955 = vmatpush.bf16.msra.mxu3 %v2938_v9  ;;  %v2903_v6 = vld [vmem:[%s3354_s22 + $0x144] sm:$0xf]  ;;  %v2640_v7 = vld [vmem:[%s3354_s22 + $0x148] sm:$0xf0]  ;;  %v2639_v9 = vor.u32 %v2904_v3, %v2638_v2  ;;  %v2873_v16 = vld [vmem:[%s3354_s22 + $0x54] sm:$0xf] }
  0x1f   : > { %v2520_v17 = vld [vmem:[%s3354_s22 + $0x58] sm:$0xf0]  ;;  %v2905_v18 = vld [vmem:[%s3354_s22 + $0x154] sm:$0xf]  ;;  %v2875_v28 = vld [vmem:[%s3354_s22 + $0x64] sm:$0xf] }
  0x20   : > { %v2648_v19 = vld [vmem:[%s3354_s22 + $0x158] sm:$0xf0]  ;;  %v2523_v22 = vor.u32 %v2873_v16, %v2520_v17  ;;  %v2528_v29 = vld [vmem:[%s3354_s22 + $0x68] sm:$0xf0]  ;;  %v2907_v30 = vld [vmem:[%s3354_s22 + $0x164] sm:$0xf] }
  0x21   : > { %749 = vmatpush.bf16.msra.mxu0 %v2929_v10  ;;  %2948 = vmatpush.bf16.msra.mxu2 %v2929_v10  ;;  %v2515_v10 = vor.u32 %v2871_v4, %v2512_v5  ;;  %v2651_v23 = vor.u32 %v2905_v18, %v2648_v19  ;;  %v2656_v31 = vld [vmem:[%s3354_s22 + $0x168] sm:$0xf0]  ;;  %v2531_v34 = vor.u32 %v2875_v28, %v2528_v29  ;;  %v2877_v40 = vld [vmem:[%s3354_s22 + $0x74] sm:$0xf]  ;;  %v2536_v41 = vld [vmem:[%s3354_s22 + $0x78] sm:$0xf0] }
  0x22   : > { %918 = vmatpush.bf16.msra.mxu1 %v2937_v11  ;;  %2956 = vmatpush.bf16.msra.mxu3 %v2937_v11  ;;  %v2643_v11 = vor.u32 %v2903_v6, %v2640_v7  ;;  %v2659_v35 = vor.u32 %v2907_v30, %v2656_v31  ;;  %v2909_v42 = vld [vmem:[%s3354_s22 + $0x174] sm:$0xf]  ;;  %v2664_v43 = vld [vmem:[%s3354_s22 + $0x178] sm:$0xf0]  ;;  %v2539_v46 = vor.u32 %v2877_v40, %v2536_v41  ;;  %v2912_v52 = vld [vmem:[%s3354_s22 + $0x184] sm:$0xf0] }
  0x23   : > { %v2667_v47 = vor.u32 %v2909_v42, %v2664_v43  ;;  %v2879_v53 = vld [vmem:[%s3354_s22 + $0x84] sm:$0xf]  ;;  %v2544_v54 = vld [vmem:[%s3354_s22 + $0x88] sm:$0xf0]  ;;  %v2552_v16 = vld [vmem:[%s3354_s22 + $0x98] sm:$0xf0] }
  0x24   : > { %v2911_v55 = vld [vmem:[%s3354_s22 + $0x184] sm:$0xf]  ;;  %v2672_v56 = vld [vmem:[%s3354_s22 + $0x188] sm:$0xf0]  ;;  %v2913_v19 = vld [vmem:[%s3354_s22 + $0x194] sm:$0xf] }
  0x25   : > { %750 = vmatpush.bf16.msra.mxu0 %v2928_v12  ;;  %2949 = vmatpush.bf16.msra.mxu2 %v2928_v12  ;;  %v2518_v12 = vld [vmem:[%s3354_s22 + $0x50] sm:$0xf]  ;;  %v3464_v40 = vld [vmem:[%s3354_s22 + $0xa4] sm:$0xf0]  ;;  %v3470_v43 = vld [vmem:[%s3354_s22 + $0x1a0] sm:$0xf] }
  0x26   : > { %919 = vmatpush.bf16.msra.mxu1 %v2936_v13  ;;  %2957 = vmatpush.bf16.msra.mxu3 %v2936_v13  ;;  %v2874_v13 = vld [vmem:[%s3354_s22 + $0x54] sm:$0xf0] }
  0x27   : > { %v2519_v20 = vor.u32 %v2874_v13, %v2518_v12  ;;  %v2882_v12 = vld [vmem:[%s3354_s22 + $0x94] sm:$0xf0]  ;;  %v2678_v13 = vld [vmem:[%s3354_s22 + $0x190] sm:$0xf] }
  0x29   : > { %751 = vmatpush.bf16.msra.mxu0 %v2927_v14  ;;  %2950 = vmatpush.bf16.msra.mxu2 %v2927_v14  ;;  %v2646_v14 = vld [vmem:[%s3354_s22 + $0x150] sm:$0xf] }
  0x2a   : > { %920 = vmatpush.bf16.msra.mxu1 %v2935_v15  ;;  %2958 = vmatpush.bf16.msra.mxu3 %v2935_v15  ;;  %v2906_v15 = vld [vmem:[%s3354_s22 + $0x154] sm:$0xf0] }
  0x2b   : > { %v2647_v21 = vor.u32 %v2906_v15, %v2646_v14  ;;  %v2914_v14 = vld [vmem:[%s3354_s22 + $0x194] sm:$0xf0]  ;;  %v2881_v15 = vld [vmem:[%s3354_s22 + $0x94] sm:$0xf] }
  0x2c   : > { %752 = vmatmul.bf16.vlgmr.msra.gmra.mxu0 %v2479_v24  ;;  %832 = vmatmul.bf16.vlgmr.msra.gmra.mxu2 %v2607_v25  ;;  %v2526_v24 = vld [vmem:[%s3354_s22 + $0x60] sm:$0xf]  ;;  %v2876_v25 = vld [vmem:[%s3354_s22 + $0x64] sm:$0xf0]  ;;  %v2555_v28 = vor.u32 %v2881_v15, %v2552_v16  ;;  %v3527_v15 = vld [vmem:[%s3354_s22 + $0xb0] sm:$0xf] }
  0x2d   : > { %921 = vmatmul.bf16.vlgmr.msra.gmra.mxu1 %v2483_v26  ;;  %1001 = vmatmul.bf16.vlgmr.msra.gmra.mxu3 %v2611_v27  ;;  %v2654_v26 = vld [vmem:[%s3354_s22 + $0x160] sm:$0xf]  ;;  %v2908_v27 = vld [vmem:[%s3354_s22 + $0x164] sm:$0xf0]  ;;  %v2527_v32 = vor.u32 %v2876_v25, %v2526_v24  ;;  %v3530_v16 = vld [vmem:[%s3354_s22 + $0xb4] sm:$0xf0] }
  0x2e   : > { %v2655_v33 = vor.u32 %v2908_v27, %v2654_v26  ;;  %v2679_v26 = vor.u32 %v2914_v14, %v2678_v13 }
  0x3c   : > { %757 = vmatmul.bf16.gmra.mxu0 %v2487_v36  ;;  %837 = vmatmul.bf16.gmra.mxu2 %v2615_v37  ;;  %v2534_v36 = vld [vmem:[%s3354_s22 + $0x70] sm:$0xf]  ;;  %v2878_v37 = vld [vmem:[%s3354_s22 + $0x74] sm:$0xf0] }
  0x3d   : > { %926 = vmatmul.bf16.gmra.mxu1 %v2491_v38  ;;  %1006 = vmatmul.bf16.gmra.mxu3 %v2619_v39  ;;  %v2662_v38 = vld [vmem:[%s3354_s22 + $0x170] sm:$0xf]  ;;  %v2910_v39 = vld [vmem:[%s3354_s22 + $0x174] sm:$0xf0]  ;;  %v2535_v44 = vor.u32 %v2878_v37, %v2534_v36 }
  0x3e   : > { %v2663_v45 = vor.u32 %v2910_v39, %v2662_v38  ;;  %v3461_v39 = vld [vmem:[%s3354_s22 + $0xa0] sm:$0xf] }
  0x4c   : > { %762 = vmatmul.bf16.gmra.mxu0 %v2495_v48  ;;  %842 = vmatmul.bf16.gmra.mxu2 %v2623_v49  ;;  %v3432_v48 = vld [vmem:[%s4837_s2] ss:$0 sm:$0xff] }
  0x4d   : > { %931 = vmatmul.bf16.gmra.mxu1 %v2499_v50  ;;  %1011 = vmatmul.bf16.gmra.mxu3 %v2627_v51  ;;  %v2542_v49 = vld [vmem:[%s3354_s22 + $0x80] sm:$0xf]  ;;  %v2880_v50 = vld [vmem:[%s3354_s22 + $0x84] sm:$0xf0] }
  0x4e   : > { %v2670_v51 = vld [vmem:[%s3354_s22 + $0x180] sm:$0xf]  ;;  %v2543_v57 = vor.u32 %v2880_v50, %v2542_v49  ;;  %v3483_v50 = vld [vmem:[%s3354_s22 + $0xa8] sm:$0xf0] }
  0x4f   : > { %v2671_v58 = vor.u32 %v2912_v52, %v2670_v51  ;;  %v3486_v51 = vld [vmem:[%s3354_s22 + $0x1a4] sm:$0xf] }
  0x5c   : > { %767 = vmatmul.bf16.gmra.mxu0 %v2503_v60  ;;  %847 = vmatmul.bf16.gmra.mxu2 %v2631_v61  ;;  %v2547_v60 = vor.u32 %v2879_v53, %v2544_v54  ;;  %v2675_v61 = vor.u32 %v2911_v55, %v2672_v56  ;;  %v2559_v56 = vor.u32 %v3464_v40, %v3461_v39 }
  0x5d   : > { %936 = vmatmul.bf16.gmra.mxu1 %v2507_v62  ;;  %1016 = vmatmul.bf16.gmra.mxu3 %v2635_v63 }
  0x6c   : > { %772 = vmatmul.bf16.gmra.mxu0 %v2511_v8  ;;  %852 = vmatmul.bf16.gmra.mxu2 %v2639_v9  ;;  %v2550_v9 = vld [vmem:[%s3354_s22 + $0x90] sm:$0xf] }
  0x6d   : > { %941 = vmatmul.bf16.gmra.mxu1 %v2515_v10  ;;  %1021 = vmatmul.bf16.gmra.mxu3 %v2643_v11  ;;  %v2551_v25 = vor.u32 %v2882_v12, %v2550_v9 }
  0x7c   : > { %777 = vmatmul.bf16.gmra.mxu0 %v2519_v20  ;;  %857 = vmatmul.bf16.gmra.mxu2 %v2647_v21  ;;  %v2680_v20 = vld [vmem:[%s3354_s22 + $0x198] sm:$0xf0] }
  0x7d   : > { %946 = vmatmul.bf16.gmra.mxu1 %v2523_v22  ;;  %1026 = vmatmul.bf16.gmra.mxu3 %v2651_v23  ;;  %v2683_v29 = vor.u32 %v2913_v19, %v2680_v20 }
  0x8c   : > { %782 = vmatmul.bf16.gmra.mxu0 %v2527_v32  ;;  %862 = vmatmul.bf16.gmra.mxu2 %v2655_v33 }
  0x8d   : > { %951 = vmatmul.bf16.gmra.mxu1 %v2531_v34  ;;  %1031 = vmatmul.bf16.gmra.mxu3 %v2659_v35 }
  0x9c   : > { %787 = vmatmul.bf16.gmra.mxu0 %v2535_v44  ;;  %867 = vmatmul.bf16.gmra.mxu2 %v2663_v45  ;;  %v3473_v44 = vld [vmem:[%s3354_s22 + $0x1a4] sm:$0xf0]  ;;  %v3476_v45 = vld [vmem:[%s3354_s22 + $0xa4] sm:$0xf] }
  0x9d   : > { %956 = vmatmul.bf16.gmra.mxu1 %v2539_v46  ;;  %1036 = vmatmul.bf16.gmra.mxu3 %v2667_v47 }
  0xa9   : > { %v753_v59 = vpop.f32.mrf.mxu0 }
  0xaa   : > { %v754_v62 = vadd.f32 %v3432_v48, %v753_v59  ;;  %v922_v63 = vpop.f32.mrf.mxu1 }
  0xac   : > { %v923_v0 = vadd.f32 %v922_v63, %v754_v62  ;;  %792 = vmatmul.bf16.gmra.mxu0 %v2543_v57  ;;  %872 = vmatmul.bf16.gmra.mxu2 %v2671_v58  ;;  %v3494_v57 = vld [vmem:[%s3354_s22 + $0x1a8] sm:$0xf0] }
  0xad   : > { %961 = vmatmul.bf16.gmra.mxu1 %v2547_v60  ;;  %1041 = vmatmul.bf16.gmra.mxu3 %v2675_v61  ;;  %v2687_v61 = vor.u32 %v3473_v44, %v3470_v43 }
  0xae   : > { %v2796_v1 = vmul.f32 -1.442695, %v923_v0 }
  0xaf   : > { %v833_v2 = vpop.f32.mrf.mxu2 }
  0xb0   : > { %2984 = vpow2.f32 %v2796_v1  ;;  %v834_v3 = vadd.f32 %v3432_v48, %v833_v2  ;;  %v1002_v4 = vpop.f32.mrf.mxu3  ;;  %v2563_v1 = vor.u32 %v3476_v45, %v3483_v50 }
  0xb1   : > { %v755_v5 = vpop.f32.mrf.mxu0 }
  0xb2   : > { %v1003_v6 = vadd.f32 %v1002_v4, %v834_v3  ;;  %v756_v7 = vadd.f32 %v3432_v48, %v755_v5  ;;  %v924_v8 = vpop.f32.mrf.mxu1  ;;  %v2691_v4 = vor.u32 %v3486_v51, %v3494_v57 }
  0xb4   : > { %v2828_v10 = vmul.f32 -1.442695, %v1003_v6  ;;  %v925_v11 = vadd.f32 %v924_v8, %v756_v7 }
  0xb6   : > { %v2985_v17 = vpop.eup %2984  ;;  %2986 = vpow2.f32 %v2828_v10  ;;  %v2797_v18 = vmul.f32 -1.442695, %v925_v11 }
  0xb7   : > { %v3453_v21 = vadd.f32 1.0, %v2985_v17  ;;  %v835_v22 = vpop.f32.mrf.mxu2 }
  0xb8   : > { %2988 = vpow2.f32 %v2797_v18  ;;  %v836_v23 = vadd.f32 %v3432_v48, %v835_v22  ;;  %v1004_v24 = vpop.f32.mrf.mxu3 }
  0xb9   : > { %2990 = vrcp.f32 %v3453_v21  ;;  %v758_v27 = vpop.f32.mrf.mxu0  ;;  %v1347_v52 = vand.u32 2147483647, %v3453_v21  ;;  %v1349_v53 = vand.u32 2147483648, %v3453_v21  ;;  %vm1343_vm0 = vweird.f32 %v3453_v21 }
  0xba   : > { %v1005_v30 = vadd.f32 %v1004_v24, %v836_v23  ;;  %v759_v31 = vadd.f32 %v3432_v48, %v758_v27  ;;  %v927_v32 = vpop.f32.mrf.mxu1  ;;  %v3550_v23 = vld [vmem:[%s3354_s22 + $0x1b0] sm:$0xf]  ;;  %v3553_v24 = vld [vmem:[%s3354_s22 + $0x1b4] sm:$0xf0] }
  0xbb   : > { %vm3511_vm2 = vcmp.eq.f32.partialorder %v1347_v52, 8.507059e+37  ;;  %v1350_v7 = vor.u32 1.1754944e-38, %v1349_v53  ;;  %v2695_v43 = vor.u32 %v3553_v24, %v3550_v23  ;;  %v3670_v24 = vld [vmem:[%s3354_s22 + $0xc0] sm:$0xf] }
  0xbc   : > { %v2987_v33 = vpop.eup %2986  ;;  %v2829_v34 = vmul.f32 -1.442695, %v1005_v30  ;;  %v928_v35 = vadd.f32 %v927_v32, %v759_v31  ;;  %797 = vmatmul.bf16.gmra.mxu0 %v2551_v25  ;;  %877 = vmatmul.bf16.gmra.mxu2 %v2679_v26  ;;  %v3564_v30 = vld [vmem:[%s3354_s22 + $0xb8] sm:$0xf0] }
  0xbd   : > { %v3458_v36 = vadd.f32 1.0, %v2987_v33  ;;  %966 = vmatmul.bf16.gmra.mxu1 %v2555_v28  ;;  %1046 = vmatmul.bf16.gmra.mxu3 %v2683_v29  ;;  %v3561_v29 = vld [vmem:[%s3354_s22 + $0xb4] sm:$0xf] }
  0xbe   : > { %v2989_v37 = vpop.eup %2988  ;;  %2992 = vpow2.f32 %v2829_v34  ;;  %v2798_v38 = vmul.f32 -1.442695, %v928_v35  ;;  %v2567_v34 = vor.u32 %v3530_v16, %v3527_v15  ;;  %v2571_v44 = vor.u32 %v3561_v29, %v3564_v30 }
  0xbf   : > { %v3466_v41 = vpop.eup %2990  ;;  %2994 = vrcp.f32 %v3458_v36  ;;  %v838_v42 = vpop.f32.mrf.mxu2  ;;  %v3480_v47 = vadd.f32 1.0, %v2989_v37  ;;  %v1827_v59 = vand.u32 2147483647, %v3458_v36  ;;  %v1829_v62 = vand.u32 2147483648, %v3458_v36 }
  0xc0   : > { %v1339_v46 = vmul.f32 %v3466_v41, %v3453_v21  ;;  %2996 = vpow2.f32 %v2798_v38  ;;  %v1007_v49 = vpop.f32.mrf.mxu3  ;;  %v839_v54 = vadd.f32 %v3432_v48, %v838_v42  ;;  %vm1344_vm1 = vweird.f32 %v3466_v41 }
  0xc1   : > { %v760_v55 = vpop.f32.mrf.mxu0  ;;  %2998 = vrcp.f32 %v3480_v47  ;;  %vm1823_vm3 = vweird.f32 %v3458_v36  ;;  %vm3521_vm4 = vcmp.eq.f32.partialorder %v1827_v59, 8.507059e+37  ;;  %v1362_v14 = vand.u32 2147483647, %v3480_v47  ;;  %vm3543_vm5 = vmor %vm1343_vm0, %vm1344_vm1 }
  0xc2   : > { %v1340_v58 = vsub.f32 1.0, %v1339_v46  ;;  %v929_v60 = vpop.f32.mrf.mxu1  ;;  %v1008_v63 = vadd.f32 %v1007_v49, %v839_v54  ;;  %v761_v0 = vadd.f32 %v3432_v48, %v760_v55  ;;  %v1830_v18 = vor.u32 1.1754944e-38, %v1829_v62 }
  0xc3   : > { %v1364_v19 = vand.u32 2147483648, %v3480_v47  ;;  %vm1358_vm6 = vweird.f32 %v3480_v47  ;;  %vm3575_vm8 = vcmp.eq.f32.partialorder %v1362_v14, 8.507059e+37 }
  0xc4   : > { %v2993_v2 = vpop.eup %2992  ;;  %v1341_v3 = vmul.f32 %v3466_v41, %v1340_v58  ;;  %v2830_v9 = vmul.f32 -1.442695, %v1008_v63  ;;  %v930_v20 = vadd.f32 %v929_v60, %v761_v0 }
  0xc5   : > { %v3509_v5 = vpop.eup %2994  ;;  %v3515_v8 = vadd.f32 1.0, %v2993_v2  ;;  %v1365_v46 = vor.u32 1.1754944e-38, %v1364_v19 }
  0xc6   : > { %v2997_v10 = vpop.eup %2996  ;;  %v1342_v11 = vadd.f32 %v3466_v41, %v1341_v3  ;;  %v1819_v12 = vmul.f32 %v3509_v5, %v3458_v36  ;;  %vm1824_vm7 = vweird.f32 %v3509_v5  ;;  %v2799_v42 = vmul.f32 -1.442695, %v930_v20 }
  0xc7   : > { %3000 = vrcp.f32 %v3515_v8  ;;  %v840_v22 = vpop.f32.mrf.mxu2  ;;  %v2999_v25 = vpop.eup %2998  ;;  %v3558_v27 = vadd.f32 1.0, %v2997_v10  ;;  %vm1825_vm9 = vmor %vm1823_vm3, %vm1824_vm7  ;;  %v1844_v53 = vand.u32 2147483648, %v3515_v8  ;;  %vm1838_vm11 = vweird.f32 %v3515_v8 }
  0xc8   : > { %v1346_v21 = vsel %vm3543_vm5, %v3466_v41, %v1342_v11  ;;  %v1820_v26 = vsub.f32 1.0, %v1819_v12  ;;  %3002 = vpow2.f32 %v2830_v9  ;;  %v1009_v28 = vpop.f32.mrf.mxu3  ;;  %v1354_v32 = vmul.f32 %v2999_v25, %v3480_v47 }
  0xc9   : > { %v1351_v31 = vsel %vm3511_vm2, %v1350_v7, %v1346_v21  ;;  %v763_v33 = vpop.f32.mrf.mxu0  ;;  %3004 = vrcp.f32 %v3558_v27  ;;  %v841_v49 = vadd.f32 %v3432_v48, %v840_v22  ;;  %vm1359_vm10 = vweird.f32 %v2999_v25  ;;  %v2917_v21 = vld [vmem:[%s3354_s22 + $0x1b4] sm:$0xf] }
  0xca   : > { %2298 = vst [vmem:[%s3537_s7] sm:$0xff] %v1351_v31  ;;  %v1821_v35 = vmul.f32 %v3509_v5, %v1820_v26  ;;  %v932_v38 = vpop.f32.mrf.mxu1  ;;  %v1355_v41 = vsub.f32 1.0, %v1354_v32  ;;  %v764_v50 = vadd.f32 %v3432_v48, %v763_v33  ;;  %3006 = vpow2.f32 %v2799_v42  ;;  %vm1360_vm12 = vmor %vm1358_vm6, %vm1359_vm10  ;;  %v2696_v26 = vld [vmem:[%s3354_s22 + $0x1b8] sm:$0xf0] }
  0xcb   : > { %v1010_v40 = vadd.f32 %v1009_v28, %v841_v49  ;;  %v1842_v62 = vand.u32 2147483647, %v3515_v8  ;;  %v1845_v3 = vor.u32 1.1754944e-38, %v1844_v53  ;;  %v1377_v7 = vand.u32 2147483647, %v3558_v27 }
  0xcc   : > { %v1822_v45 = vadd.f32 %v3509_v5, %v1821_v35  ;;  %802 = vmatmul.bf16.gmra.mxu0 %v2559_v56  ;;  %882 = vmatmul.bf16.gmra.mxu2 %v2687_v61  ;;  %v1356_v52 = vmul.f32 %v2999_v25, %v1355_v41  ;;  %v933_v58 = vadd.f32 %v932_v38, %v764_v50  ;;  %vm1373_vm14 = vweird.f32 %v3558_v27 }
  0xcd   : > { %v3001_v51 = vpop.eup %3000  ;;  %971 = vmatmul.bf16.gmra.mxu1 %v2563_v1  ;;  %1051 = vmatmul.bf16.gmra.mxu3 %v2691_v4  ;;  %v2831_v63 = vmul.f32 -1.442695, %v1010_v40  ;;  %v1379_v14 = vand.u32 2147483648, %v3558_v27  ;;  %vm1843_vm1 = vcmp.eq.f32.partialorder %v1842_v62, 8.507059e+37  ;;  %vm3621_vm2 = vcmp.eq.f32.partialorder %v1377_v7, 8.507059e+37 }
  0xce   : > { %v3003_v54 = vpop.eup %3002  ;;  %v1826_v55 = vsel %vm1825_vm9, %v3509_v5, %v1822_v45  ;;  %v1834_v39 = vmul.f32 %v3001_v51, %v3515_v8  ;;  %v1357_v56 = vadd.f32 %v2999_v25, %v1356_v52  ;;  %vm1839_vm13 = vweird.f32 %v3001_v51 }
  0xcf   : > { %v1831_v36 = vsel %vm3521_vm4, %v1830_v18, %v1826_v55  ;;  %v3600_v57 = vadd.f32 1.0, %v3003_v54  ;;  %v843_v59 = vpop.f32.mrf.mxu2  ;;  %v3005_v60 = vpop.eup %3004  ;;  %v2800_v12 = vmul.f32 -1.442695, %v933_v58  ;;  %vm1840_vm15 = vmor %vm1838_vm11, %vm1839_vm13  ;;  %v1380_v37 = vor.u32 1.1754944e-38, %v1379_v14 }
  0xd0   : > { %2330 = vst [vmem:[%s3537_s7 + $0x100] sm:$0xff] %v1831_v36  ;;  %v1835_v61 = vsub.f32 1.0, %v1834_v39  ;;  %v844_v0 = vadd.f32 %v3432_v48, %v843_v59  ;;  %v1012_v1 = vpop.f32.mrf.mxu3  ;;  %v1361_v2 = vsel %vm1360_vm12, %v2999_v25, %v1357_v56  ;;  %v1369_v4 = vmul.f32 %v3005_v60, %v3558_v27  ;;  %v3007_v10 = vpop.eup %3006 }
  0xd1   : > { %3008 = vrcp.f32 %v3600_v57  ;;  %v765_v5 = vpop.f32.mrf.mxu0  ;;  %v1366_v6 = vsel %vm3575_vm8, %v1365_v46, %v1361_v2  ;;  %v3616_v17 = vadd.f32 1.0, %v3007_v10  ;;  %vm1374_vm0 = vweird.f32 %v3005_v60 }
  0xd2   : > { %v1836_v47 = vmul.f32 %v3001_v51, %v1835_v61  ;;  %v934_v9 = vpop.f32.mrf.mxu1  ;;  %2299 = vst [vmem:[%s3537_s7 + $0x8] sm:$0xff] %v1366_v6  ;;  %v1370_v11 = vsub.f32 1.0, %v1369_v4  ;;  %3010 = vpow2.f32 %v2831_v63  ;;  %v1013_v18 = vadd.f32 %v1012_v1, %v844_v0  ;;  %vm1375_vm3 = vmor %vm1373_vm14, %vm1374_vm0  ;;  %v3683_v1 = vld [vmem:[%s3354_s22 + $0xc4] sm:$0xf0] }
  0xd3   : > { %3012 = vpow2.f32 %v2800_v12  ;;  %v766_v20 = vadd.f32 %v3432_v48, %v765_v5  ;;  %v1857_v32 = vand.u32 2147483647, %v3600_v57  ;;  %v1859_v41 = vand.u32 2147483648, %v3600_v57  ;;  %v3692_v5 = vld [vmem:[%s3354_s22 + $0x1c0] sm:$0xf] }
  0xd4   : > { %v1837_v13 = vadd.f32 %v3001_v51, %v1836_v47  ;;  %v1371_v19 = vmul.f32 %v3005_v60, %v1370_v11  ;;  %3014 = vrcp.f32 %v3616_v17  ;;  %v2832_v33 = vmul.f32 -1.442695, %v1013_v18  ;;  %v3695_v6 = vld [vmem:[%s3354_s22 + $0x1c4] sm:$0xf0] }
  0xd5   : > { %v935_v42 = vadd.f32 %v934_v9, %v766_v20  ;;  %v2699_v52 = vor.u32 %v2917_v21, %v2696_v26  ;;  %vm1853_vm4 = vweird.f32 %v3600_v57  ;;  %vm3645_vm5 = vcmp.eq.f32.partialorder %v1857_v32, 8.507059e+37 }
  0xd6   : > { %v1841_v22 = vsel %vm1840_vm15, %v3001_v51, %v1837_v13  ;;  %v1372_v31 = vadd.f32 %v3005_v60, %v1371_v19  ;;  %3016 = vpow2.f32 %v2832_v33  ;;  %v1392_v56 = vand.u32 2147483647, %v3616_v17 }
  0xd7   : > { %v3628_v28 = vpop.eup %3008  ;;  %v1846_v8 = vsel %vm1843_vm1, %v1845_v3, %v1841_v22  ;;  %v845_v35 = vpop.f32.mrf.mxu2  ;;  %v2801_v55 = vmul.f32 -1.442695, %v935_v42  ;;  %v1860_v61 = vor.u32 1.1754944e-38, %v1859_v41  ;;  %vm1388_vm7 = vweird.f32 %v3616_v17 }
  0xd8   : > { %2331 = vst [vmem:[%s3537_s7 + $0x108] sm:$0xff] %v1846_v8  ;;  %v1849_v38 = vmul.f32 %v3628_v28, %v3600_v57  ;;  %v1014_v45 = vpop.f32.mrf.mxu3  ;;  %v3011_v46 = vpop.eup %3010  ;;  %v1376_v49 = vsel %vm1375_vm3, %v3005_v60, %v1372_v31  ;;  %v846_v50 = vadd.f32 %v3432_v48, %v845_v35  ;;  %vm1854_vm6 = vweird.f32 %v3628_v28 }
  0xd9   : > { %v768_v51 = vpop.f32.mrf.mxu0  ;;  %v1381_v27 = vsel %vm3621_vm2, %v1380_v37, %v1376_v49  ;;  %v3641_v54 = vadd.f32 1.0, %v3011_v46  ;;  %v3013_v40 = vpop.eup %3012  ;;  %v1394_v16 = vand.u32 2147483648, %v3616_v17  ;;  %vm1855_vm8 = vmor %vm1853_vm4, %vm1854_vm6  ;;  %vm3676_vm9 = vcmp.eq.f32.partialorder %v1392_v56, 8.507059e+37 }
  0xda   : > { %v1850_v53 = vsub.f32 1.0, %v1849_v38  ;;  %v937_v39 = vpop.f32.mrf.mxu1  ;;  %2300 = vst [vmem:[%s3537_s7 + $0x10] sm:$0xff] %v1381_v27  ;;  %v1015_v58 = vadd.f32 %v1014_v45, %v846_v50  ;;  %v3015_v59 = vpop.eup %3014  ;;  %v3661_v63 = vadd.f32 1.0, %v3013_v40  ;;  %v769_v0 = vadd.f32 %v3432_v48, %v768_v51 }
  0xdb   : > { %3018 = vrcp.f32 %v3641_v54  ;;  %v1384_v62 = vmul.f32 %v3015_v59, %v3616_v17  ;;  %v1872_v30 = vand.u32 2147483647, %v3641_v54  ;;  %vm1389_vm10 = vweird.f32 %v3015_v59 }
  0xdc   : > { %v1851_v60 = vmul.f32 %v3628_v28, %v1850_v53  ;;  %807 = vmatmul.bf16.gmra.mxu0 %v2567_v34  ;;  %887 = vmatmul.bf16.gmra.mxu2 %v2695_v43  ;;  %3020 = vpow2.f32 %v2801_v55  ;;  %v2833_v23 = vmul.f32 -1.442695, %v1015_v58  ;;  %v3017_v34 = vpop.eup %3016  ;;  %v1874_v3 = vand.u32 2147483648, %v3641_v54  ;;  %vm1390_vm12 = vmor %vm1388_vm7, %vm1389_vm10 }
  0xdd   : > { %976 = vmatmul.bf16.gmra.mxu1 %v2571_v44  ;;  %1056 = vmatmul.bf16.gmra.mxu3 %v2699_v52  ;;  %v1385_v43 = vsub.f32 1.0, %v1384_v62  ;;  %3022 = vrcp.f32 %v3661_v63  ;;  %v3687_v57 = vadd.f32 1.0, %v3017_v34  ;;  %v938_v9 = vadd.f32 %v937_v39, %v769_v0 }
  0xde   : > { %v1852_v15 = vadd.f32 %v3628_v28, %v1851_v60  ;;  %3024 = vpow2.f32 %v2833_v23  ;;  %v1395_v12 = vor.u32 1.1754944e-38, %v1394_v16  ;;  %v1407_v13 = vand.u32 2147483647, %v3661_v63 }
  0xdf   : > { %v848_v44 = vpop.f32.mrf.mxu2  ;;  %v1386_v7 = vmul.f32 %v3015_v59, %v1385_v43  ;;  %3026 = vrcp.f32 %v3687_v57  ;;  %v2575_v18 = vor.u32 %v3683_v1, %v3670_v24  ;;  %vm1868_vm11 = vweird.f32 %v3641_v54 }
  0xe0   : > { %v1856_v2 = vsel %vm1855_vm8, %v3628_v28, %v1852_v15  ;;  %v3689_v4 = vpop.f32.mrf.mxu3  ;;  %v2703_v22 = vor.u32 %v3695_v6, %v3692_v5  ;;  %vm3711_vm13 = vcmp.eq.f32.partialorder %v1872_v30, 8.507059e+37  ;;  %v1875_v26 = vor.u32 1.1754944e-38, %v1874_v3 }
  0xe1   : > { %v1861_v47 = vsel %vm3645_vm5, %v1860_v61, %v1856_v2  ;;  %v770_v10 = vpop.f32.mrf.mxu0  ;;  %v3019_v11 = vpop.eup %3018  ;;  %v1387_v19 = vadd.f32 %v3015_v59, %v1386_v7  ;;  %vm1403_vm14 = vweird.f32 %v3661_v63  ;;  %v2802_v28 = vmul.f32 -1.442695, %v938_v9 }
  0xe2   : > { %2332 = vst [vmem:[%s3537_s7 + $0x110] sm:$0xff] %v1861_v47  ;;  %v939_v14 = vpop.f32.mrf.mxu1  ;;  %v1864_v20 = vmul.f32 %v3019_v11, %v3641_v54  ;;  %v3021_v25 = vpop.eup %3020  ;;  %v1409_v33 = vand.u32 2147483648, %v3661_v63  ;;  %vm1869_vm15 = vweird.f32 %v3019_v11  ;;  %vm3722_vm0 = vcmp.eq.f32.partialorder %v1407_v13, 8.507059e+37 }
  0xe3   : > { %v3023_v8 = vpop.eup %3022  ;;  %v1391_v31 = vsel %vm1390_vm12, %v3015_v59, %v1387_v19  ;;  %v3717_v35 = vadd.f32 1.0, %v3021_v25  ;;  %v1887_v41 = vand.u32 2147483647, %v3687_v57  ;;  %v1889_v46 = vand.u32 2147483648, %v3687_v57  ;;  %vm1870_vm2 = vmor %vm1868_vm11, %vm1869_vm15 }
  0xe4   : > { %v1865_v32 = vsub.f32 1.0, %v1864_v20  ;;  %v1396_v17 = vsel %vm3676_vm9, %v1395_v12, %v1391_v31  ;;  %v1399_v37 = vmul.f32 %v3023_v8, %v3661_v63  ;;  %v3025_v42 = vpop.eup %3024  ;;  %v849_v49 = vadd.f32 %v3432_v48, %v848_v44  ;;  %v2704_v31 = vld [vmem:[%s3354_s22 + $0x1c8] sm:$0xf0] }
  0xe5   : > { %2301 = vst [vmem:[%s3537_s7 + $0x18] sm:$0xff] %v1396_v17  ;;  %3028 = vrcp.f32 %v3717_v35  ;;  %v3731_v51 = vpop.eup %3026  ;;  %v3733_v27 = vadd.f32 1.0, %v3025_v42  ;;  %v771_v53 = vadd.f32 %v3432_v48, %v770_v10  ;;  %v1410_v40 = vor.u32 1.1754944e-38, %v1409_v33 }
  0xe6   : > { %v1866_v45 = vmul.f32 %v3019_v11, %v1865_v32  ;;  %v1400_v52 = vsub.f32 1.0, %v1399_v37  ;;  %3030 = vpow2.f32 %v2802_v28  ;;  %v1879_v36 = vmul.f32 %v3731_v51, %v3687_v57 }
  0xe7   : > { %v850_v50 = vpop.f32.mrf.mxu2  ;;  %vm1883_vm1 = vweird.f32 %v3687_v57  ;;  %vm1404_vm3 = vweird.f32 %v3023_v8  ;;  %v1422_v59 = vand.u32 2147483647, %v3717_v35  ;;  %3032 = vrcp.f32 %v3733_v27  ;;  %v2576_v57 = vld [vmem:[%s3354_s22 + $0xc8] sm:$0xf0] }
  0xe8   : > { %v1019_v55 = vpop.f32.mrf.mxu3  ;;  %v1867_v39 = vadd.f32 %v3019_v11, %v1866_v45  ;;  %v1401_v58 = vmul.f32 %v3023_v8, %v1400_v52  ;;  %v1880_v62 = vsub.f32 1.0, %v1879_v36  ;;  %vm3744_vm4 = vcmp.eq.f32.partialorder %v1887_v41, 8.507059e+37  ;;  %vm1405_vm6 = vmor %vm1403_vm14, %vm1404_vm3 }
  0xe9   : > { %v773_v56 = vpop.f32.mrf.mxu0  ;;  %v1890_v15 = vor.u32 1.1754944e-38, %v1889_v46  ;;  %vm1418_vm5 = vweird.f32 %v3717_v35  ;;  %v1018_v23 = vadd.f32 %v3689_v4, %v849_v49  ;;  %v940_v24 = vadd.f32 %v939_v14, %v771_v53  ;;  %v2582_v49 = vld [vmem:[%s3354_s22 + $0xd0] sm:$0xf] }
  0xea   : > { %v942_v60 = vpop.f32.mrf.mxu1  ;;  %v1871_v61 = vsel %vm1870_vm2, %v3019_v11, %v1867_v39  ;;  %v1402_v54 = vadd.f32 %v3023_v8, %v1401_v58  ;;  %v1881_v43 = vmul.f32 %v3731_v51, %v1880_v62  ;;  %vm1884_vm7 = vweird.f32 %v3731_v51 }
  0xeb   : > { %v1876_v16 = vsel %vm3711_vm13, %v1875_v26, %v1871_v61  ;;  %v3752_v34 = vpop.eup %3028  ;;  %v1424_v29 = vand.u32 2147483648, %v3717_v35  ;;  %v851_v30 = vadd.f32 %v3432_v48, %v850_v50  ;;  %vm3764_vm8 = vcmp.eq.f32.partialorder %v1422_v59, 8.507059e+37  ;;  %vm1885_vm9 = vmor %vm1883_vm1, %vm1884_vm7  ;;  %v2890_v50 = vld [vmem:[%s3354_s22 + $0xd4] sm:$0xf0] }
  0xec   : > { %812 = vmatmul.bf16.gmra.mxu0 %v2575_v18  ;;  %2333 = vst [vmem:[%s3537_s7 + $0x118] sm:$0xff] %v1876_v16  ;;  %892 = vmatmul.bf16.gmra.mxu2 %v2703_v22  ;;  %v3031_v44 = vpop.eup %3030  ;;  %v1406_v1 = vsel %vm1405_vm6, %v3023_v8, %v1402_v54  ;;  %v1414_v2 = vmul.f32 %v3752_v34, %v3717_v35  ;;  %v1902_v63 = vand.u32 2147483647, %v3733_v27  ;;  %v2834_v4 = vmul.f32 -1.442695, %v1018_v23 }
  0xed   : > { %v1411_v5 = vsel %vm3722_vm0, %v1410_v40, %v1406_v1  ;;  %v1882_v6 = vadd.f32 %v3731_v51, %v1881_v43  ;;  %v3772_v47 = vadd.f32 1.0, %v3031_v44  ;;  %v2803_v7 = vmul.f32 -1.442695, %v940_v24  ;;  %v3774_v10 = vpop.eup %3032  ;;  %v2887_v22 = vld [vmem:[%s3354_s22 + $0xc4] sm:$0xf] }
  0xee   : > { %2302 = vst [vmem:[%s3537_s7 + $0x20] sm:$0xff] %v1411_v5  ;;  %v1415_v11 = vsub.f32 1.0, %v1414_v2  ;;  %3034 = vpow2.f32 %v2834_v4  ;;  %v1020_v12 = vadd.f32 %v1019_v55, %v851_v30  ;;  %v774_v13 = vadd.f32 %v3432_v48, %v773_v56  ;;  %v2919_v8 = vld [vmem:[%s3354_s22 + $0x1c4] sm:$0xf] }
  0xef   : > { %v853_v9 = vpop.f32.mrf.mxu2  ;;  %v1886_v18 = vsel %vm1885_vm9, %v3731_v51, %v1882_v6  ;;  %v1425_v19 = vor.u32 1.1754944e-38, %v1424_v29  ;;  %v1894_v20 = vmul.f32 %v3774_v10, %v3733_v27  ;;  %3036 = vrcp.f32 %v3772_v47 }
  0xf0   : > { %v1022_v14 = vpop.f32.mrf.mxu3  ;;  %v1891_v21 = vsel %vm3744_vm4, %v1890_v15, %v1886_v18  ;;  %v1416_v26 = vmul.f32 %v3752_v34, %v1415_v11  ;;  %vm1419_vm10 = vweird.f32 %v3752_v34  ;;  %v1904_v28 = vand.u32 2147483648, %v3733_v27 }
  0xf1   : > { %v775_v25 = vpop.f32.mrf.mxu0  ;;  %2334 = vst [vmem:[%s3537_s7 + $0x120] sm:$0xff] %v1891_v21  ;;  %v1895_v33 = vsub.f32 1.0, %v1894_v20  ;;  %vm1898_vm11 = vweird.f32 %v3733_v27  ;;  %3038 = vpow2.f32 %v2803_v7  ;;  %v2835_v17 = vmul.f32 -1.442695, %v1020_v12  ;;  %vm1420_vm13 = vmor %vm1418_vm5, %vm1419_vm10 }
  0xf2   : > { %v944_v32 = vpop.f32.mrf.mxu1  ;;  %v1417_v37 = vadd.f32 %v3752_v34, %v1416_v26  ;;  %vm3798_vm12 = vcmp.eq.f32.partialorder %v1902_v63, 8.507059e+37  ;;  %v943_v41 = vadd.f32 %v942_v60, %v774_v13  ;;  %v2579_v42 = vor.u32 %v2887_v22, %v2576_v57 }
  0xf3   : > { %v1896_v45 = vmul.f32 %v3774_v10, %v1895_v33  ;;  %vm1899_vm14 = vweird.f32 %v3774_v10  ;;  %3040 = vpow2.f32 %v2835_v17  ;;  %v2707_v46 = vor.u32 %v2919_v8, %v2704_v31 }
  0xf4   : > { %v3035_v51 = vpop.eup %3034  ;;  %v1421_v52 = vsel %vm1420_vm13, %v3752_v34, %v1417_v37  ;;  %v1905_v53 = vor.u32 1.1754944e-38, %v1904_v28  ;;  %v2804_v55 = vmul.f32 -1.442695, %v943_v41  ;;  %981 = vmatmul.bf16.gmra.mxu1 %v2579_v42  ;;  %v854_v39 = vadd.f32 %v3432_v48, %v853_v9  ;;  %vm1900_vm15 = vmor %vm1898_vm11, %vm1899_vm14 }
  0xf5   : > { %v3037_v40 = vpop.eup %3036  ;;  %v1426_v35 = vsel %vm3764_vm8, %v1425_v19, %v1421_v52  ;;  %v1897_v36 = vadd.f32 %v3774_v10, %v1896_v45  ;;  %v3813_v56 = vadd.f32 1.0, %v3035_v51  ;;  %1061 = vmatmul.bf16.gmra.mxu3 %v2707_v46  ;;  %v776_v58 = vadd.f32 %v3432_v48, %v775_v25 }
  0xf6   : > { %2303 = vst [vmem:[%s3537_s7 + $0x28] sm:$0xff] %v1426_v35  ;;  %v1429_v60 = vmul.f32 %v3037_v40, %v3772_v47  ;;  %3042 = vpow2.f32 %v2804_v55  ;;  %v1023_v61 = vadd.f32 %v1022_v14, %v854_v39  ;;  %v2583_v0 = vor.u32 %v2890_v50, %v2582_v49 }
  0xf7   : > { %v855_v59 = vpop.f32.mrf.mxu2  ;;  %v3039_v15 = vpop.eup %3038  ;;  %v1901_v16 = vsel %vm1900_vm15, %v3774_v10, %v1897_v36  ;;  %vm1433_vm0 = vweird.f32 %v3772_v47  ;;  %v1437_v54 = vand.u32 2147483647, %v3772_v47  ;;  %3044 = vrcp.f32 %v3813_v56 }
  0xf8   : > { %v1024_v62 = vpop.f32.mrf.mxu3  ;;  %v1906_v27 = vsel %vm3798_vm12, %v1905_v53, %v1901_v16  ;;  %v1430_v24 = vsub.f32 1.0, %v1429_v60  ;;  %v1439_v34 = vand.u32 2147483648, %v3772_v47  ;;  %v3829_v43 = vadd.f32 1.0, %v3039_v15 }
  0xf9   : > { %v778_v23 = vpop.f32.mrf.mxu0  ;;  %v3041_v30 = vpop.eup %3040  ;;  %2335 = vst [vmem:[%s3537_s7 + $0x128] sm:$0xff] %v1906_v27  ;;  %vm1434_vm1 = vweird.f32 %v3037_v40  ;;  %v2836_v44 = vmul.f32 -1.442695, %v1023_v61  ;;  %v945_v1 = vadd.f32 %v944_v32, %v776_v58  ;;  %v856_v2 = vadd.f32 %v3432_v48, %v855_v59 }
  0xfa   : > { %v947_v29 = vpop.f32.mrf.mxu1  ;;  %v1431_v3 = vmul.f32 %v3037_v40, %v1430_v24  ;;  %v1917_v63 = vand.u32 2147483647, %v3813_v56  ;;  %v1919_v4 = vand.u32 2147483648, %v3813_v56  ;;  %3046 = vrcp.f32 %v3829_v43  ;;  %vm1435_vm3 = vmor %vm1433_vm0, %vm1434_vm1  ;;  %v2922_v24 = vld [vmem:[%s3354_s22 + $0x1d4] sm:$0xf0] }
  0xfb   : > { %vm3836_vm2 = vcmp.eq.f32.partialorder %v1437_v54, 8.507059e+37  ;;  %v3840_v6 = vadd.f32 1.0, %v3041_v30  ;;  %3048 = vpow2.f32 %v2836_v44  ;;  %v2805_v10 = vmul.f32 -1.442695, %v945_v1 }
  0xfc   : > { %817 = vmatmul.bf16.gmra.mxu0 %v2583_v0  ;;  %v3043_v7 = vpop.eup %3042  ;;  %v1432_v9 = vadd.f32 %v3037_v40, %v1431_v3  ;;  %v1025_v11 = vadd.f32 %v1024_v62, %v856_v2  ;;  %v779_v12 = vadd.f32 %v3432_v48, %v778_v23  ;;  %v1440_v14 = vor.u32 1.1754944e-38, %v1439_v34  ;;  %v2889_v34 = vld [vmem:[%s3354_s22 + $0xd4] sm:$0xf]  ;;  %v2584_v3 = vld [vmem:[%s3354_s22 + $0xd8] sm:$0xf0] }
  0xfd   : > { %v3045_v13 = vpop.eup %3044  ;;  %vm1913_vm4 = vweird.f32 %v3813_v56  ;;  %v1452_v18 = vand.u32 2147483647, %v3829_v43  ;;  %3050 = vrcp.f32 %v3840_v6  ;;  %vm3852_vm5 = vcmp.eq.f32.partialorder %v1917_v63, 8.507059e+37 }
  0xfe   : > { %v1436_v20 = vsel %vm1435_vm3, %v3037_v40, %v1432_v9  ;;  %v1909_v22 = vmul.f32 %v3045_v13, %v3813_v56  ;;  %v1920_v57 = vor.u32 1.1754944e-38, %v1919_v4  ;;  %v1454_v47 = vand.u32 2147483648, %v3829_v43  ;;  %v2710_v56 = vld [vmem:[%s3354_s22 + $0x1d0] sm:$0xf] }
  0xff   : > { %v3849_v19 = vpop.f32.mrf.mxu2  ;;  %v1441_v21 = vsel %vm3836_vm2, %v1440_v14, %v1436_v20  ;;  %v1932_v26 = vand.u32 2147483647, %v3840_v6  ;;  %v3862_v28 = vadd.f32 1.0, %v3043_v7  ;;  %3052 = vpow2.f32 %v2805_v10 }
 0x100   : > { %v3857_v25 = vpop.f32.mrf.mxu3  ;;  %v3047_v31 = vpop.eup %3046  ;;  %2304 = vst [vmem:[%s3537_s7 + $0x30] sm:$0xff] %v1441_v21  ;;  %v1910_v32 = vsub.f32 1.0, %v1909_v22  ;;  %v1934_v33 = vand.u32 2147483648, %v3840_v6  ;;  %v2837_v17 = vmul.f32 -1.442695, %v1025_v11  ;;  %v948_v37 = vadd.f32 %v947_v29, %v779_v12 }
 0x101   : > { %v3864_v8 = vpop.f32.mrf.mxu0  ;;  %v3049_v41 = vpop.eup %3048  ;;  %v1444_v42 = vmul.f32 %v3047_v31, %v3829_v43  ;;  %vm1448_vm6 = vweird.f32 %v3829_v43  ;;  %vm3872_vm7 = vcmp.eq.f32.partialorder %v1452_v18, 8.507059e+37  ;;  %3054 = vrcp.f32 %v3862_v28  ;;  %v2712_v21 = vld [vmem:[%s3354_s22 + $0x1d8] sm:$0xf0] }
 0x102   : > { %v3868_v38 = vpop.f32.mrf.mxu1  ;;  %v1911_v46 = vmul.f32 %v3045_v13, %v1910_v32  ;;  %vm1914_vm8 = vweird.f32 %v3045_v13  ;;  %v1455_v49 = vor.u32 1.1754944e-38, %v1454_v47  ;;  %vm1928_vm9 = vweird.f32 %v3840_v6  ;;  %v2921_v47 = vld [vmem:[%s3354_s22 + $0x1d4] sm:$0xf] }
 0x103   : > { %v3878_v50 = vpop.eup %3050  ;;  %v1445_v51 = vsub.f32 1.0, %v1444_v42  ;;  %v3880_v52 = vadd.f32 1.0, %v3049_v41  ;;  %3056 = vpow2.f32 %v2837_v17  ;;  %v2806_v53 = vmul.f32 -1.442695, %v948_v37  ;;  %vm1915_vm12 = vmor %vm1913_vm4, %vm1914_vm8 }
 0x104   : > { %v1912_v55 = vadd.f32 %v3045_v13, %v1911_v46  ;;  %vm1449_vm10 = vweird.f32 %v3047_v31  ;;  %v1924_v39 = vmul.f32 %v3878_v50, %v3840_v6  ;;  %vm3884_vm11 = vcmp.eq.f32.partialorder %v1932_v26, 8.507059e+37 }
 0x105   : > { %v1935_v35 = vor.u32 1.1754944e-38, %v1934_v33  ;;  %v3053_v36 = vpop.eup %3052  ;;  %v1446_v58 = vmul.f32 %v3047_v31, %v1445_v51  ;;  %v1467_v59 = vand.u32 2147483647, %v3862_v28  ;;  %v1469_v60 = vand.u32 2147483648, %v3862_v28  ;;  %vm1450_vm15 = vmor %vm1448_vm6, %vm1449_vm10  ;;  %v3976_v51 = vld [vmem:[%s4837_s2] ss:$0 sm:$0xff] }
 0x106   : > { %3058 = vrcp.f32 %v3880_v52  ;;  %v1916_v62 = vsel %vm1915_vm12, %v3045_v13, %v1912_v55  ;;  %v1925_v0 = vsub.f32 1.0, %v1924_v39  ;;  %vm1929_vm13 = vweird.f32 %v3878_v50 }
 0x107   : > { %v3893_v61 = vpop.f32.mrf.mxu2  ;;  %vm1463_vm14 = vweird.f32 %v3862_v28  ;;  %v3900_v16 = vpop.eup %3054  ;;  %v1921_v54 = vsel %vm3852_vm5, %v1920_v57, %v1916_v62  ;;  %v1447_v23 = vadd.f32 %v3047_v31, %v1446_v58  ;;  %v3904_v27 = vadd.f32 1.0, %v3053_v36  ;;  %vm1930_vm2 = vmor %vm1928_vm9, %vm1929_vm13 }
 0x108   : > { %v3898_v15 = vpop.f32.mrf.mxu3  ;;  %3060 = vpow2.f32 %v2806_v53  ;;  %2336 = vst [vmem:[%s3537_s7 + $0x130] sm:$0xff] %v1921_v54  ;;  %v1926_v30 = vmul.f32 %v3878_v50, %v1925_v0  ;;  %v1459_v44 = vmul.f32 %v3900_v16, %v3862_v28  ;;  %v1947_v1 = vand.u32 2147483647, %v3880_v52 }
 0x109   : > { %v3908_v29 = vpop.f32.mrf.mxu0  ;;  %v1949_v2 = vand.u32 2147483648, %v3880_v52  ;;  %v3057_v4 = vpop.eup %3056  ;;  %v1451_v5 = vsel %vm1450_vm15, %v3047_v31, %v1447_v23  ;;  %vm3922_vm0 = vcmp.eq.f32.partialorder %v1467_v59, 8.507059e+37  ;;  %v1470_v43 = vor.u32 1.1754944e-38, %v1469_v60 }
 0x10a   : > { %v3920_v63 = vpop.f32.mrf.mxu1  ;;  %3062 = vrcp.f32 %v3904_v27  ;;  %v1456_v9 = vsel %vm3872_vm7, %v1455_v49, %v1451_v5  ;;  %v1927_v10 = vadd.f32 %v3878_v50, %v1926_v30  ;;  %v1460_v11 = vsub.f32 1.0, %v1459_v44  ;;  %v2892_v30 = vld [vmem:[%s3354_s22 + $0xe4] sm:$0xf0] }
 0x10b   : > { %vm1943_vm1 = vweird.f32 %v3880_v52  ;;  %2305 = vst [vmem:[%s3537_s7 + $0x38] sm:$0xff] %v1456_v9  ;;  %vm1464_vm3 = vweird.f32 %v3900_v16  ;;  %v3939_v13 = vadd.f32 1.0, %v3057_v4  ;;  %v2711_v14 = vor.u32 %v2922_v24, %v2710_v56 }
 0x10c   : > { %v3931_v12 = vpop.eup %3058  ;;  %v2587_v18 = vor.u32 %v2889_v34, %v2584_v3  ;;  %v1931_v20 = vsel %vm1930_vm2, %v3878_v50, %v1927_v10  ;;  %v1461_v22 = vmul.f32 %v3900_v16, %v1460_v11  ;;  %vm3945_vm4 = vcmp.eq.f32.partialorder %v1947_v1, 8.507059e+37  ;;  %vm1465_vm7 = vmor %vm1463_vm14, %vm1464_vm3  ;;  %v2590_v34 = vld [vmem:[%s3354_s22 + $0xe0] sm:$0xf] }
 0x10d   : > { %v1939_v48 = vmul.f32 %v3931_v12, %v3880_v52  ;;  %v1950_v6 = vor.u32 1.1754944e-38, %v1949_v2  ;;  %v1936_v31 = vsel %vm3884_vm11, %v1935_v35, %v1931_v20  ;;  %v1482_v32 = vand.u32 2147483647, %v3904_v27  ;;  %897 = vmatmul.bf16.gmra.mxu2 %v2711_v14  ;;  %v2924_v2 = vld [vmem:[%s3354_s22 + $0x1e4] sm:$0xf0] }
 0x10e   : > { %v3061_v26 = vpop.eup %3060  ;;  %v1484_v33 = vand.u32 2147483648, %v3904_v27  ;;  %3064 = vrcp.f32 %v3939_v13  ;;  %986 = vmatmul.bf16.gmra.mxu1 %v2587_v18  ;;  %2337 = vst [vmem:[%s3537_s7 + $0x138] sm:$0xff] %v1936_v31  ;;  %v1462_v37 = vadd.f32 %v3900_v16, %v1461_v22  ;;  %vm1944_vm5 = vweird.f32 %v3931_v12  ;;  %v2592_v14 = vld [vmem:[%s3354_s22 + $0xe8] sm:$0xf0] }
 0x10f   : > { %v3956_v17 = vpop.f32.mrf.mxu2  ;;  %v1940_v41 = vsub.f32 1.0, %v1939_v48  ;;  %vm1478_vm6 = vweird.f32 %v3904_v27  ;;  %v1964_v46 = vand.u32 2147483648, %v3939_v13  ;;  %v3971_v49 = vadd.f32 1.0, %v3061_v26  ;;  %vm4006_vm11 = vmor %vm1943_vm1, %vm1944_vm5 }
 0x110   : > { %v3962_v42 = vpop.f32.mrf.mxu3  ;;  %v3964_v45 = vpop.eup %3062  ;;  %v2715_v50 = vor.u32 %v2921_v47, %v2712_v21  ;;  %v859_v53 = vadd.f32 %v3976_v51, %v3849_v19  ;;  %v1466_v39 = vsel %vm1465_vm7, %v3900_v16, %v1462_v37  ;;  %v1962_v35 = vand.u32 2147483647, %v3939_v13 }
 0x111   : > { %v3980_v55 = vpop.f32.mrf.mxu0  ;;  %v1941_v28 = vmul.f32 %v3931_v12, %v1940_v41  ;;  %v1474_v40 = vmul.f32 %v3964_v45, %v3904_v27  ;;  %v1471_v58 = vsel %vm3922_vm0, %v1470_v43, %v1466_v39  ;;  %vm3991_vm8 = vcmp.eq.f32.partialorder %v1482_v32, 8.507059e+37 }
 0x112   : > { %v3987_v36 = vpop.f32.mrf.mxu1  ;;  %v1485_v19 = vor.u32 1.1754944e-38, %v1484_v33  ;;  %3066 = vrcp.f32 %v3971_v49  ;;  %1066 = vmatmul.bf16.gmra.mxu3 %v2715_v50  ;;  %2306 = vst [vmem:[%s3537_s7 + $0x40] sm:$0xff] %v1471_v58  ;;  %vm1479_vm9 = vweird.f32 %v3964_v45  ;;  %vm1958_vm10 = vweird.f32 %v3939_v13 }
 0x113   : > { %v1942_v60 = vadd.f32 %v3931_v12, %v1941_v28  ;;  %v1475_v62 = vsub.f32 1.0, %v1474_v40  ;;  %v1965_v16 = vor.u32 1.1754944e-38, %v1964_v46  ;;  %v1028_v54 = vadd.f32 %v3857_v25, %v859_v53  ;;  %vm1480_vm15 = vmor %vm1478_vm6, %vm1479_vm9  ;;  %v2726_v25 = vld [vmem:[%s3354_s22 + $0x1f0] sm:$0xf] }
 0x114   : > { %v4000_v0 = vpop.eup %3064  ;;  %v781_v23 = vadd.f32 %v3976_v51, %v3864_v8  ;;  %v861_v24 = vadd.f32 %v3976_v51, %v3893_v61  ;;  %vm4023_vm12 = vcmp.eq.f32.partialorder %v1962_v35, 8.507059e+37  ;;  %vm1493_vm13 = vweird.f32 %v3971_v49  ;;  %v2718_v61 = vld [vmem:[%s3354_s22 + $0x1e0] sm:$0xf] }
 0x115   : > { %v1946_v52 = vsel %vm4006_vm11, %v3931_v12, %v1942_v60  ;;  %v1476_v44 = vmul.f32 %v3964_v45, %v1475_v62  ;;  %v1954_v1 = vmul.f32 %v4000_v0, %v3939_v13  ;;  %v1497_v8 = vand.u32 2147483647, %v3971_v49  ;;  %v2891_v12 = vld [vmem:[%s3354_s22 + $0xe4] sm:$0xf] }
 0x116   : > { %v1951_v3 = vsel %vm3945_vm4, %v1950_v6, %v1946_v52  ;;  %vm1959_vm14 = vweird.f32 %v4000_v0  ;;  %v1499_v4 = vand.u32 2147483648, %v3971_v49  ;;  %v2838_v5 = vmul.f32 -1.442695, %v1028_v54  ;;  %v2923_v6 = vld [vmem:[%s3354_s22 + $0x1e4] sm:$0xf] }
 0x117   : > { %v865_v7 = vpop.f32.mrf.mxu2  ;;  %2338 = vst [vmem:[%s3537_s7 + $0x140] sm:$0xff] %v1951_v3  ;;  %v1477_v43 = vadd.f32 %v3964_v45, %v1476_v44  ;;  %v1955_v9 = vsub.f32 1.0, %v1954_v1  ;;  %v950_v10 = vadd.f32 %v3868_v38, %v781_v23  ;;  %v1030_v11 = vadd.f32 %v3898_v15, %v861_v24  ;;  %v2720_v38 = vld [vmem:[%s3354_s22 + $0x1e8] sm:$0xf0]  ;;  %vm1960_vm1 = vmor %vm1958_vm10, %vm1959_vm14  ;;  %v2598_v52 = vld [vmem:[%s3354_s22 + $0xf0] sm:$0xf] }
 0x118   : > { %v1034_v18 = vpop.f32.mrf.mxu3  ;;  %v3067_v20 = vpop.eup %3066  ;;  %3068 = vpow2.f32 %v2838_v5  ;;  %v784_v22 = vadd.f32 %v3976_v51, %v3908_v29  ;;  %v2591_v48 = vor.u32 %v2892_v30, %v2590_v34  ;;  %v2719_v57 = vor.u32 %v2924_v2, %v2718_v61  ;;  %v2894_v1 = vld [vmem:[%s3354_s22 + $0xf4] sm:$0xf0] }
 0x119   : > { %v788_v47 = vpop.f32.mrf.mxu0  ;;  %v1481_v15 = vsel %vm1480_vm15, %v3964_v45, %v1477_v43  ;;  %v1956_v21 = vmul.f32 %v4000_v0, %v1955_v9  ;;  %v1489_v26 = vmul.f32 %v3067_v20, %v3971_v49  ;;  %vm1494_vm0 = vweird.f32 %v3067_v20  ;;  %v2600_v43 = vld [vmem:[%s3354_s22 + $0xf8] sm:$0xf0] }
 0x11a   : > { %v957_v31 = vpop.f32.mrf.mxu1  ;;  %v1486_v27 = vsel %vm3991_vm8, %v1485_v19, %v1481_v15  ;;  %v2807_v32 = vmul.f32 -1.442695, %v950_v10  ;;  %v2839_v33 = vmul.f32 -1.442695, %v1030_v11  ;;  %v953_v29 = vadd.f32 %v3920_v63, %v784_v22  ;;  %822 = vmatmul.bf16.gmra.mxu0 %v2591_v48  ;;  %vm1495_vm2 = vmor %vm1493_vm13, %vm1494_vm0 }
 0x11b   : > { %2307 = vst [vmem:[%s3537_s7 + $0x48] sm:$0xff] %v1486_v27  ;;  %v1957_v37 = vadd.f32 %v4000_v0, %v1956_v21  ;;  %v1490_v41 = vsub.f32 1.0, %v1489_v26  ;;  %v2595_v46 = vor.u32 %v2891_v12, %v2592_v14  ;;  %v2723_v45 = vor.u32 %v2923_v6, %v2720_v38 }
 0x11c   : > { %3070 = vpow2.f32 %v2807_v32  ;;  %v2808_v50 = vmul.f32 -1.442695, %v953_v29  ;;  %v864_v53 = vadd.f32 %v3976_v51, %v3956_v17  ;;  %v786_v63 = vadd.f32 %v3976_v51, %v3980_v55 }
 0x11d   : > { %v1961_v39 = vsel %vm1960_vm1, %v4000_v0, %v1957_v37  ;;  %v1491_v28 = vmul.f32 %v3067_v20, %v1490_v41  ;;  %3072 = vpow2.f32 %v2839_v33  ;;  %v866_v40 = vadd.f32 %v3976_v51, %v865_v7  ;;  %902 = vmatmul.bf16.gmra.mxu2 %v2719_v57  ;;  %v2893_v7 = vld [vmem:[%s3354_s22 + $0xf4] sm:$0xf] }
 0x11e   : > { %v3069_v35 = vpop.eup %3068  ;;  %v1966_v13 = vsel %vm4023_vm12, %v1965_v16, %v1961_v39  ;;  %3074 = vpow2.f32 %v2808_v50  ;;  %991 = vmatmul.bf16.gmra.mxu1 %v2595_v46  ;;  %v1033_v58 = vadd.f32 %v3962_v42, %v864_v53  ;;  %v955_v17 = vadd.f32 %v3987_v36, %v786_v63  ;;  %v2925_v53 = vld [vmem:[%s3354_s22 + $0x1f4] sm:$0xf]  ;;  %v2728_v63 = vld [vmem:[%s3354_s22 + $0x1f8] sm:$0xf0] }
 0x11f   : > { %v4071_v59 = vpop.f32.mrf.mxu2  ;;  %2339 = vst [vmem:[%s3537_s7 + $0x148] sm:$0xff] %v1966_v13  ;;  %v1492_v55 = vadd.f32 %v3067_v20, %v1491_v28  ;;  %v4074_v19 = vadd.f32 1.0, %v3069_v35  ;;  %v1035_v60 = vadd.f32 %v1034_v18, %v866_v40  ;;  %v1500_v0 = vor.u32 1.1754944e-38, %v1499_v4  ;;  %v2926_v4 = vld [vmem:[%s3354_s22 + $0x1f4] sm:$0xf0] }
 0x120   : > { %v4076_v62 = vpop.f32.mrf.mxu3  ;;  %v2840_v56 = vmul.f32 -1.442695, %v1033_v58  ;;  %v2809_v42 = vmul.f32 -1.442695, %v955_v17  ;;  %vm1498_vm3 = vcmp.eq.f32.partialorder %v1497_v8, 8.507059e+37  ;;  %v789_v54 = vadd.f32 %v3976_v51, %v788_v47 }
 0x121   : > { %v4081_v16 = vpop.f32.mrf.mxu0  ;;  %v1496_v36 = vsel %vm1495_vm2, %v3067_v20, %v1492_v55  ;;  %3076 = vrcp.f32 %v4074_v19  ;;  %v2841_v30 = vmul.f32 -1.442695, %v1035_v60  ;;  %v1977_v61 = vand.u32 2147483647, %v4074_v19 }
 0x122   : > { %v4087_v23 = vpop.f32.mrf.mxu1  ;;  %v3071_v24 = vpop.eup %3070  ;;  %v1501_v34 = vsel %vm1498_vm3, %v1500_v0, %v1496_v36  ;;  %1071 = vmatmul.bf16.gmra.mxu3 %v2723_v45  ;;  %3078 = vpow2.f32 %v2840_v56  ;;  %v1979_v2 = vand.u32 2147483648, %v4074_v19  ;;  %v958_v5 = vadd.f32 %v957_v31, %v789_v54 }
 0x123   : > { %v3073_v44 = vpop.eup %3072  ;;  %2308 = vst [vmem:[%s3537_s7 + $0x50] sm:$0xff] %v1501_v34  ;;  %v4091_v49 = vadd.f32 1.0, %v3071_v24  ;;  %3080 = vpow2.f32 %v2809_v42  ;;  %v2599_v9 = vor.u32 %v2894_v1, %v2598_v52  ;;  %vm1973_vm4 = vweird.f32 %v4074_v19 }
 0x124   : > { %v3075_v8 = vpop.eup %3074  ;;  %v4097_v3 = vadd.f32 1.0, %v3073_v44  ;;  %3082 = vpow2.f32 %v2841_v30  ;;  %v2727_v18 = vor.u32 %v2926_v4, %v2726_v25  ;;  %vm4116_vm5 = vcmp.eq.f32.partialorder %v1977_v61, 8.507059e+37 }
 0x125   : > { %3084 = vrcp.f32 %v4091_v49  ;;  %v1514_v12 = vand.u32 2147483648, %v4091_v49  ;;  %v4110_v14 = vadd.f32 1.0, %v3075_v8  ;;  %v1980_v6 = vor.u32 1.1754944e-38, %v1979_v2 }
 0x126   : > { %3086 = vrcp.f32 %v4097_v3  ;;  %v1512_v38 = vand.u32 2147483647, %v4091_v49  ;;  %v2603_v47 = vor.u32 %v2893_v7, %v2600_v43  ;;  %v1992_v26 = vand.u32 2147483647, %v4097_v3 }
 0x127   : > { %v4104_v10 = vpop.f32.mrf.mxu2  ;;  %v4106_v11 = vpop.eup %3076  ;;  %v1994_v31 = vand.u32 2147483648, %v4097_v3  ;;  %3088 = vrcp.f32 %v4110_v14  ;;  %v2810_v27 = vmul.f32 -1.442695, %v958_v5  ;;  %vm1508_vm6 = vweird.f32 %v4091_v49 }
 0x128   : > { %v4112_v20 = vpop.f32.mrf.mxu3  ;;  %v3079_v22 = vpop.eup %3078  ;;  %v1969_v48 = vmul.f32 %v4106_v11, %v4074_v19  ;;  %vm1974_vm7 = vweird.f32 %v4106_v11  ;;  %v1515_v45 = vor.u32 1.1754944e-38, %v1514_v12  ;;  %vm1988_vm8 = vweird.f32 %v4097_v3 }
 0x129   : > { %v4121_v15 = vpop.f32.mrf.mxu0  ;;  %v3081_v21 = vpop.eup %3080  ;;  %v4127_v29 = vadd.f32 1.0, %v3079_v22  ;;  %v1529_v50 = vand.u32 2147483648, %v4110_v14  ;;  %vm4143_vm9 = vcmp.eq.f32.partialorder %v1512_v38, 8.507059e+37  ;;  %v1527_v13 = vand.u32 2147483647, %v4110_v14  ;;  %vm1975_vm11 = vmor %vm1973_vm4, %vm1974_vm7 }
 0x12a   : > { %v3083_v32 = vpop.eup %3082  ;;  %v1970_v33 = vsub.f32 1.0, %v1969_v48  ;;  %v4129_v37 = vadd.f32 1.0, %v3081_v21  ;;  %827 = vmatmul.bf16.gmra.mxu0 %v2599_v9  ;;  %v4131_v41 = vpop.f32.mrf.mxu1  ;;  %vm4150_vm10 = vcmp.eq.f32.partialorder %v1992_v26, 8.507059e+37  ;;  %v1995_v55 = vor.u32 1.1754944e-38, %v1994_v31 }
 0x12b   : > { %v4133_v46 = vpop.eup %3084  ;;  %3090 = vrcp.f32 %v4127_v29  ;;  %v4154_v60 = vadd.f32 1.0, %v3083_v32  ;;  %v2731_v42 = vor.u32 %v2925_v53, %v2728_v63  ;;  %vm1523_vm12 = vweird.f32 %v4110_v14 }
 0x12c   : > { %v3087_v39 = vpop.eup %3086  ;;  %v1971_v28 = vmul.f32 %v4106_v11, %v1970_v33  ;;  %v1504_v40 = vmul.f32 %v4133_v46, %v4091_v49  ;;  %3092 = vpow2.f32 %v2810_v27  ;;  %v1530_v34 = vor.u32 1.1754944e-38, %v1529_v50 }
 0x12d   : > { %v1984_v58 = vmul.f32 %v3087_v39, %v4097_v3  ;;  %3094 = vrcp.f32 %v4129_v37  ;;  %907 = vmatmul.bf16.gmra.mxu2 %v2727_v18  ;;  %v3089_v54 = vpop.eup %3088  ;;  %v2007_v30 = vand.u32 2147483647, %v4127_v29  ;;  %vm1509_vm13 = vweird.f32 %v4133_v46 }
 0x12e   : > { %v1972_v0 = vadd.f32 %v4106_v11, %v1971_v28  ;;  %v1505_v56 = vsub.f32 1.0, %v1504_v40  ;;  %996 = vmatmul.bf16.gmra.mxu1 %v2603_v47  ;;  %v1519_v1 = vmul.f32 %v3089_v54, %v4110_v14  ;;  %vm4170_vm14 = vcmp.eq.f32.partialorder %v1527_v13, 8.507059e+37  ;;  %vm1510_vm1 = vmor %vm1508_vm6, %vm1509_vm13 }
 0x12f   : > { %v4158_v36 = vpop.f32.mrf.mxu2  ;;  %v1985_v24 = vsub.f32 1.0, %v1984_v58  ;;  %vm1989_vm15 = vweird.f32 %v3087_v39  ;;  %vm2003_vm0 = vweird.f32 %v4127_v29  ;;  %v2009_v43 = vand.u32 2147483648, %v4127_v29 }
 0x130   : > { %v1976_v52 = vsel %vm1975_vm11, %v4106_v11, %v1972_v0  ;;  %v1506_v44 = vmul.f32 %v4133_v46, %v1505_v56  ;;  %v4174_v19 = vpop.f32.mrf.mxu3  ;;  %v1520_v7 = vsub.f32 1.0, %v1519_v1  ;;  %3096 = vrcp.f32 %v4154_v60  ;;  %vm1990_vm4 = vmor %vm1988_vm8, %vm1989_vm15 }
 0x131   : > { %v4176_v8 = vpop.f32.mrf.mxu0  ;;  %v1981_v61 = vsel %vm4116_vm5, %v1980_v6, %v1976_v52  ;;  %v1986_v2 = vmul.f32 %v3087_v39, %v1985_v24  ;;  %v3091_v4 = vpop.eup %3090  ;;  %vm4190_vm2 = vcmp.eq.f32.partialorder %v2007_v30, 8.507059e+37  ;;  %vm1538_vm3 = vweird.f32 %v4129_v37 }
 0x132   : > { %2340 = vst [vmem:[%s3537_s7 + $0x150] sm:$0xff] %v1981_v61  ;;  %v1507_v5 = vadd.f32 %v4133_v46, %v1506_v44  ;;  %1076 = vmatmul.bf16.gmra.mxu3 %v2731_v42  ;;  %v3093_v9 = vpop.eup %3092  ;;  %v1999_v12 = vmul.f32 %v3091_v4, %v4127_v29  ;;  %v1521_v49 = vmul.f32 %v3089_v54, %v1520_v7  ;;  %vm1524_vm5 = vweird.f32 %v3089_v54  ;;  %v4200_v6 = vpop.f32.mrf.mxu1 }
 0x133   : > { %v1987_v11 = vadd.f32 %v3087_v39, %v1986_v2  ;;  %v3095_v22 = vpop.eup %3094  ;;  %v1542_v57 = vand.u32 2147483647, %v4129_v37  ;;  %vm2004_vm6 = vweird.f32 %v3091_v4  ;;  %v1544_v27 = vand.u32 2147483648, %v4129_v37  ;;  %vm1525_vm7 = vmor %vm1523_vm12, %vm1524_vm5 }
 0x134   : > { %v1511_v48 = vsel %vm1510_vm1, %v4133_v46, %v1507_v5  ;;  %v2000_v21 = vsub.f32 1.0, %v1999_v12  ;;  %v1534_v26 = vmul.f32 %v3095_v22, %v4129_v37  ;;  %v1522_v3 = vadd.f32 %v3089_v54, %v1521_v49 }
 0x135   : > { %v1516_v38 = vsel %vm4143_vm9, %v1515_v45, %v1511_v48  ;;  %v1991_v47 = vsel %vm1990_vm4, %v3087_v39, %v1987_v11  ;;  %vm1539_vm8 = vweird.f32 %v3095_v22  ;;  %v4212_v45 = vadd.f32 1.0, %v3093_v9  ;;  %vm2005_vm9 = vmor %vm2003_vm0, %vm2004_vm6 }
 0x136   : > { %2309 = vst [vmem:[%s3537_s7 + $0x58] sm:$0xff] %v1516_v38  ;;  %v1996_v31 = vsel %vm4150_vm10, %v1995_v55, %v1991_v47  ;;  %v2001_v33 = vmul.f32 %v3091_v4, %v2000_v21  ;;  %v1535_v46 = vsub.f32 1.0, %v1534_v26  ;;  %v3097_v50 = vpop.eup %3096  ;;  %v1526_v53 = vsel %vm1525_vm7, %v3089_v54, %v1522_v3  ;;  %vm1540_vm11 = vmor %vm1538_vm3, %vm1539_vm8 }
 0x137   : > { %v875_v32 = vpop.f32.mrf.mxu2  ;;  %2341 = vst [vmem:[%s3537_s7 + $0x158] sm:$0xff] %v1996_v31  ;;  %v869_v63 = vadd.f32 %v3976_v51, %v4071_v59  ;;  %v791_v39 = vadd.f32 %v3976_v51, %v4081_v16  ;;  %v871_v28 = vadd.f32 %v3976_v51, %v4104_v10  ;;  %v1531_v14 = vsel %vm4170_vm14, %v1530_v34, %v1526_v53 }
 0x138   : > { %v2002_v35 = vadd.f32 %v3091_v4, %v2001_v33  ;;  %v1536_v13 = vmul.f32 %v3095_v22, %v1535_v46  ;;  %v2014_v58 = vmul.f32 %v3097_v50, %v4154_v60  ;;  %2310 = vst [vmem:[%s3537_s7 + $0x60] sm:$0xff] %v1531_v14  ;;  %v2010_v59 = vor.u32 1.1754944e-38, %v2009_v43  ;;  %v1044_v17 = vpop.f32.mrf.mxu3 }
 0x139   : > { %v798_v40 = vpop.f32.mrf.mxu0  ;;  %vm4227_vm10 = vcmp.eq.f32.partialorder %v1542_v57, 8.507059e+37  ;;  %v1545_v10 = vor.u32 1.1754944e-38, %v1544_v27  ;;  %3098 = vrcp.f32 %v4212_v45  ;;  %v2022_v42 = vand.u32 2147483647, %v4154_v60 }
 0x13a   : > { %v2006_v55 = vsel %vm2005_vm9, %v3091_v4, %v2002_v35  ;;  %v1537_v0 = vadd.f32 %v3095_v22, %v1536_v13  ;;  %v2015_v56 = vsub.f32 1.0, %v2014_v58  ;;  %v2024_v29 = vand.u32 2147483648, %v4154_v60  ;;  %v967_v61 = vpop.f32.mrf.mxu1 }
 0x13b   : > { %v2011_v54 = vsel %vm4190_vm2, %v2010_v59, %v2006_v55  ;;  %v1038_v24 = vadd.f32 %v4076_v62, %v869_v63  ;;  %v960_v34 = vadd.f32 %v4087_v23, %v791_v39  ;;  %vm2019_vm12 = vweird.f32 %v3097_v50 }
 0x13c   : > { %2342 = vst [vmem:[%s3537_s7 + $0x160] sm:$0xff] %v2011_v54  ;;  %v1541_v30 = vsel %vm1540_vm11, %v3095_v22, %v1537_v0  ;;  %v2016_v52 = vmul.f32 %v3097_v50, %v2015_v56  ;;  %v1040_v44 = vadd.f32 %v4112_v20, %v871_v28  ;;  %vm2018_vm13 = vweird.f32 %v4154_v60 }
 0x13d   : > { %v1546_v1 = vsel %vm4227_vm10, %v1545_v10, %v1541_v30  ;;  %v2842_v37 = vmul.f32 -1.442695, %v1038_v24  ;;  %v2811_v25 = vmul.f32 -1.442695, %v960_v34  ;;  %v794_v23 = vadd.f32 %v3976_v51, %v4121_v15  ;;  %vm2020_vm14 = vmor %vm2018_vm13, %vm2019_vm12 }
 0x13e   : > { %2311 = vst [vmem:[%s3537_s7 + $0x68] sm:$0xff] %v1546_v1  ;;  %v2017_v4 = vadd.f32 %v3097_v50, %v2016_v52  ;;  %v2843_v62 = vmul.f32 -1.442695, %v1040_v44  ;;  %v874_v5 = vadd.f32 %v3976_v51, %v4158_v36  ;;  %vm2023_vm15 = vcmp.eq.f32.partialorder %v2022_v42, 8.507059e+37 }
 0x13f   : > { %v878_v2 = vpop.f32.mrf.mxu2  ;;  %v3099_v20 = vpop.eup %3098  ;;  %v2025_v7 = vor.u32 1.1754944e-38, %v2024_v29  ;;  %3100 = vpow2.f32 %v2842_v37  ;;  %v796_v60 = vadd.f32 %v3976_v51, %v4176_v8  ;;  %v876_v12 = vadd.f32 %v3976_v51, %v875_v32 }
 0x140   : > { %v2021_v9 = vsel %vm2020_vm14, %v3097_v50, %v2017_v4  ;;  %v1549_v11 = vmul.f32 %v3099_v20, %v4212_v45  ;;  %3102 = vpow2.f32 %v2811_v25  ;;  %v963_v36 = vadd.f32 %v4131_v41, %v794_v23  ;;  %v1047_v21 = vpop.f32.mrf.mxu3 }
 0x141   : > { %v800_v43 = vpop.f32.mrf.mxu0  ;;  %v2026_v15 = vsel %vm2023_vm15, %v2025_v7, %v2021_v9  ;;  %3104 = vpow2.f32 %v2843_v62  ;;  %v1043_v18 = vadd.f32 %v4174_v19, %v874_v5  ;;  %vm1553_vm0 = vweird.f32 %v4212_v45 }
 0x142   : > { %2343 = vst [vmem:[%s3537_s7 + $0x168] sm:$0xff] %v2026_v15  ;;  %v1550_v22 = vsub.f32 1.0, %v1549_v11  ;;  %v1557_v48 = vand.u32 2147483647, %v4212_v45  ;;  %v965_v8 = vadd.f32 %v4200_v6, %v796_v60  ;;  %v1559_v49 = vand.u32 2147483648, %v4212_v45  ;;  %v969_v39 = vpop.f32.mrf.mxu1 }
 0x143   : > { %v2812_v57 = vmul.f32 -1.442695, %v963_v36  ;;  %v2844_v38 = vmul.f32 -1.442695, %v1043_v18  ;;  %v799_v47 = vadd.f32 %v3976_v51, %v798_v40  ;;  %vm1554_vm1 = vweird.f32 %v3099_v20 }
 0x144   : > { %v1551_v26 = vmul.f32 %v3099_v20, %v1550_v22  ;;  %v2813_v41 = vmul.f32 -1.442695, %v965_v8  ;;  %v879_v19 = vadd.f32 %v3976_v51, %v878_v2  ;;  %v1045_v3 = vadd.f32 %v1044_v17, %v876_v12  ;;  %vm1555_vm2 = vmor %vm1553_vm0, %vm1554_vm1 }
 0x145   : > { %v3101_v31 = vpop.eup %3100  ;;  %3106 = vpow2.f32 %v2812_v57  ;;  %v801_v27 = vadd.f32 %v3976_v51, %v800_v43  ;;  %v1560_v50 = vor.u32 1.1754944e-38, %v1559_v49  ;;  %v968_v63 = vadd.f32 %v967_v61, %v799_v47 }
 0x146   : > { %v3103_v32 = vpop.eup %3102  ;;  %v1552_v33 = vadd.f32 %v3099_v20, %v1551_v26  ;;  %v4265_v6 = vadd.f32 1.0, %v3101_v31  ;;  %3108 = vpow2.f32 %v2844_v38  ;;  %vm1558_vm3 = vcmp.eq.f32.partialorder %v1557_v48, 8.507059e+37 }
 0x147   : > { %v3105_v46 = vpop.eup %3104  ;;  %v4269_v53 = vadd.f32 1.0, %v3103_v32  ;;  %3110 = vpow2.f32 %v2813_v41  ;;  %v880_v28 = vpop.f32.mrf.mxu2  ;;  %v1048_v14 = vadd.f32 %v1047_v21, %v879_v19  ;;  %v2845_v58 = vmul.f32 -1.442695, %v1045_v3 }
 0x148   : > { %v1556_v40 = vsel %vm1555_vm2, %v3099_v20, %v1552_v33  ;;  %3112 = vrcp.f32 %v4265_v6  ;;  %v970_v45 = vadd.f32 %v969_v39, %v801_v27  ;;  %v4274_v59 = vadd.f32 1.0, %v3105_v46  ;;  %v1049_v44 = vpop.f32.mrf.mxu3 }
 0x149   : > { %v803_v35 = vpop.f32.mrf.mxu0  ;;  %v1561_v13 = vsel %vm1558_vm3, %v1560_v50, %v1556_v40  ;;  %3114 = vrcp.f32 %v4269_v53  ;;  %v881_v16 = vadd.f32 %v3976_v51, %v880_v28  ;;  %v2037_v17 = vand.u32 2147483647, %v4265_v6 }
 0x14a   : > { %2312 = vst [vmem:[%s3537_s7 + $0x70] sm:$0xff] %v1561_v13  ;;  %v2039_v55 = vand.u32 2147483648, %v4265_v6  ;;  %v2814_v0 = vmul.f32 -1.442695, %v968_v63  ;;  %v1572_v42 = vand.u32 2147483647, %v4269_v53  ;;  %3116 = vrcp.f32 %v4274_v59  ;;  %v972_v11 = vpop.f32.mrf.mxu1 }
 0x14b   : > { %v3107_v10 = vpop.eup %3106  ;;  %v1574_v54 = vand.u32 2147483648, %v4269_v53  ;;  %v4282_v29 = vmul.f32 -1.442695, %v1048_v14  ;;  %3118 = vpow2.f32 %v2845_v58  ;;  %v4288_v52 = vmul.f32 -1.442695, %v970_v45 }
 0x14c   : > { %v3109_v56 = vpop.eup %3108  ;;  %v4284_v34 = vadd.f32 1.0, %v3107_v10  ;;  %vm2033_vm4 = vweird.f32 %v4265_v6  ;;  %vm1568_vm5 = vweird.f32 %v4269_v53  ;;  %v1050_v37 = vadd.f32 %v1049_v44, %v881_v16 }
 0x14d   : > { %v3111_v24 = vpop.eup %3110  ;;  %v4286_v30 = vadd.f32 1.0, %v3109_v56  ;;  %v804_v25 = vadd.f32 %v3976_v51, %v803_v35  ;;  %vm4294_vm6 = vcmp.eq.f32.partialorder %v2037_v17, 8.507059e+37  ;;  %v2040_v62 = vor.u32 1.1754944e-38, %v2039_v55 }
 0x14e   : > { %v3113_v1 = vpop.eup %3112  ;;  %v2052_v23 = vand.u32 2147483647, %v4274_v59  ;;  %vm4300_vm7 = vcmp.eq.f32.partialorder %v1572_v42, 8.507059e+37  ;;  %v1575_v7 = vor.u32 1.1754944e-38, %v1574_v54  ;;  %v2054_v60 = vand.u32 2147483648, %v4274_v59 }
 0x14f   : > { %v3115_v61 = vpop.eup %3114  ;;  %v2029_v2 = vmul.f32 %v3113_v1, %v4265_v6  ;;  %3120 = vrcp.f32 %v4284_v34  ;;  %vm2048_vm8 = vweird.f32 %v4274_v59  ;;  %v4308_v9 = vadd.f32 1.0, %v3111_v24  ;;  %v4322_v21 = vpop.f32.mrf.mxu2 }
 0x150   : > { %v1564_v5 = vmul.f32 %v3115_v61, %v4269_v53  ;;  %3122 = vrcp.f32 %v4286_v30  ;;  %v3117_v12 = vpop.eup %3116  ;;  %v4310_v36 = vmul.f32 -1.442695, %v1050_v37  ;;  %v4312_v18 = vadd.f32 %v972_v11, %v804_v25  ;;  %v1052_v45 = vpop.f32.mrf.mxu3 }
 0x151   : > { %v2030_v43 = vsub.f32 1.0, %v2029_v2  ;;  %3124 = vpow2.f32 %v2814_v0  ;;  %v4314_v22 = vpop.f32.mrf.mxu0  ;;  %v3119_v48 = vpop.eup %3118  ;;  %vm2034_vm9 = vweird.f32 %v3113_v1  ;;  %v2044_v49 = vmul.f32 %v3117_v12, %v4274_v59 }
 0x152   : > { %v1565_v15 = vsub.f32 1.0, %v1564_v5  ;;  %vm4317_vm10 = vcmp.eq.f32.partialorder %v2052_v23, 8.507059e+37  ;;  %vm1569_vm11 = vweird.f32 %v3115_v61  ;;  %v2055_v47 = vor.u32 1.1754944e-38, %v2054_v60  ;;  %vm2035_vm13 = vmor %vm2033_vm4, %vm2034_vm9  ;;  %v4365_v2 = vpop.f32.mrf.mxu1 }
 0x153   : > { %v2031_v8 = vmul.f32 %v3113_v1, %v2030_v43  ;;  %vm1583_vm12 = vweird.f32 %v4284_v34  ;;  %v2045_v41 = vsub.f32 1.0, %v2044_v49  ;;  %v1587_v19 = vand.u32 2147483647, %v4284_v34  ;;  %vm1570_vm14 = vmor %vm1568_vm5, %vm1569_vm11 }
 0x154   : > { %v1566_v38 = vmul.f32 %v3115_v61, %v1565_v15  ;;  %3126 = vrcp.f32 %v4308_v9  ;;  %v1589_v27 = vand.u32 2147483648, %v4284_v34  ;;  %v2067_v32 = vand.u32 2147483647, %v4286_v30 }
 0x155   : > { %v2032_v26 = vadd.f32 %v3113_v1, %v2031_v8  ;;  %v3121_v31 = vpop.eup %3120  ;;  %v4330_v33 = vadd.f32 1.0, %v3119_v48  ;;  %v2046_v63 = vmul.f32 %v3117_v12, %v2045_v41  ;;  %vm2049_vm15 = vweird.f32 %v3117_v12 }
 0x156   : > { %v1567_v3 = vadd.f32 %v3115_v61, %v1566_v38  ;;  %v3123_v46 = vpop.eup %3122  ;;  %v1579_v6 = vmul.f32 %v3121_v31, %v4284_v34  ;;  %vm2063_vm0 = vweird.f32 %v4286_v30  ;;  %v2069_v58 = vand.u32 2147483648, %v4286_v30  ;;  %vm2050_vm1 = vmor %vm2048_vm8, %vm2049_vm15 }
 0x157   : > { %v2036_v50 = vsel %vm2035_vm13, %v3113_v1, %v2032_v26  ;;  %v3125_v39 = vpop.eup %3124  ;;  %v2059_v14 = vmul.f32 %v3123_v46, %v4286_v30  ;;  %v2047_v53 = vadd.f32 %v3117_v12, %v2046_v63  ;;  %vm4347_vm2 = vcmp.eq.f32.partialorder %v1587_v19, 8.507059e+37  ;;  %v885_v23 = vpop.f32.mrf.mxu2 }
 0x158   : > { %v2041_v28 = vsel %vm4294_vm6, %v2040_v62, %v2036_v50  ;;  %v1571_v40 = vsel %vm1570_vm14, %v3115_v61, %v1567_v3  ;;  %v1580_v13 = vsub.f32 1.0, %v1579_v6  ;;  %v1590_v10 = vor.u32 1.1754944e-38, %v1589_v27  ;;  %v1054_v38 = vpop.f32.mrf.mxu3 }
 0x159   : > { %2344 = vst [vmem:[%s3537_s7 + $0x170] sm:$0xff] %v2041_v28  ;;  %v1576_v35 = vsel %vm4300_vm7, %v1575_v7, %v1571_v40  ;;  %v2060_v17 = vsub.f32 1.0, %v2059_v14  ;;  %3128 = vrcp.f32 %v4330_v33  ;;  %v2051_v0 = vsel %vm2050_vm1, %v3117_v12, %v2047_v53  ;;  %v4359_v44 = vpop.f32.mrf.mxu0 }
 0x15a   : > { %2313 = vst [vmem:[%s3537_s7 + $0x78] sm:$0xff] %v1576_v35  ;;  %v3127_v55 = vpop.eup %3126  ;;  %v1581_v56 = vmul.f32 %v3121_v31, %v1580_v13  ;;  %vm1584_vm3 = vweird.f32 %v3121_v31  ;;  %vm4352_vm4 = vcmp.eq.f32.partialorder %v2067_v32, 8.507059e+37  ;;  %v2056_v59 = vsel %vm4317_vm10, %v2055_v47, %v2051_v0 }
 0x15b   : > { %v2061_v54 = vmul.f32 %v3123_v46, %v2060_v17  ;;  %vm2064_vm5 = vweird.f32 %v3123_v46  ;;  %v1594_v24 = vmul.f32 %v3127_v55, %v4308_v9  ;;  %2345 = vst [vmem:[%s3537_s7 + $0x178] sm:$0xff] %v2056_v59  ;;  %v2070_v37 = vor.u32 1.1754944e-38, %v2069_v58  ;;  %vm1585_vm6 = vmor %vm1583_vm12, %vm1584_vm3 }
 0x15c   : > { %v1582_v1 = vadd.f32 %v3121_v31, %v1581_v56  ;;  %v1602_v25 = vand.u32 2147483647, %v4308_v9  ;;  %v4363_v61 = vadd.f32 1.0, %v3125_v39  ;;  %vm1598_vm7 = vweird.f32 %v4308_v9  ;;  %vm2065_vm8 = vmor %vm2063_vm0, %vm2064_vm5  ;;  %v977_v39 = vpop.f32.mrf.mxu1 }
 0x15d   : > { %v2062_v4 = vadd.f32 %v3123_v46, %v2061_v54  ;;  %v1595_v62 = vsub.f32 1.0, %v1594_v24  ;;  %3130 = vpow2.f32 %v4282_v29  ;;  %vm1599_vm9 = vweird.f32 %v3127_v55 }
 0x15e   : > { %v1586_v5 = vsel %vm1585_vm6, %v3121_v31, %v1582_v1  ;;  %v1604_v20 = vand.u32 2147483648, %v4308_v9  ;;  %3132 = vrcp.f32 %v4363_v61  ;;  %v2816_v29 = vmul.f32 -1.442695, %v4312_v18  ;;  %vm1600_vm11 = vmor %vm1598_vm7, %vm1599_vm9  ;;  %v4447_v1 = vld [vmem:[%s4837_s2] ss:$0 sm:$0xff] }
 0x15f   : > { %v3129_v34 = vpop.eup %3128  ;;  %v1591_v7 = vsel %vm4347_vm2, %v1590_v10, %v1586_v5  ;;  %v2066_v60 = vsel %vm2065_vm8, %v3123_v46, %v2062_v4  ;;  %v1596_v43 = vmul.f32 %v3127_v55, %v1595_v62  ;;  %vm4382_vm10 = vcmp.eq.f32.partialorder %v1602_v25, 8.507059e+37  ;;  %v4420_v14 = vpop.f32.mrf.mxu2 }
 0x160   : > { %2314 = vst [vmem:[%s3537_s7 + $0x80] sm:$0xff] %v1591_v7  ;;  %v2071_v11 = vsel %vm4352_vm4, %v2070_v37, %v2066_v60  ;;  %v2074_v12 = vmul.f32 %v3129_v34, %v4330_v33  ;;  %v2082_v15 = vand.u32 2147483647, %v4330_v33  ;;  %v2084_v8 = vand.u32 2147483648, %v4330_v33  ;;  %v4451_v25 = vpop.f32.mrf.mxu3 }
 0x161   : > { %2346 = vst [vmem:[%s3537_s7 + $0x180] sm:$0xff] %v2071_v11  ;;  %v1597_v48 = vadd.f32 %v3127_v55, %v1596_v43  ;;  %3134 = vpow2.f32 %v4288_v52  ;;  %v884_v18 = vadd.f32 %v3976_v51, %v4322_v21  ;;  %v1605_v49 = vor.u32 1.1754944e-38, %v1604_v20  ;;  %v4410_v46 = vpop.f32.mrf.mxu0 }
 0x162   : > { %v2075_v57 = vsub.f32 1.0, %v2074_v12  ;;  %vm2078_vm12 = vweird.f32 %v4330_v33  ;;  %3136 = vpow2.f32 %v4310_v36  ;;  %vm2079_vm13 = vweird.f32 %v3129_v34 }
 0x163   : > { %v3131_v47 = vpop.eup %3130  ;;  %v1601_v26 = vsel %vm1600_vm11, %v3127_v55, %v1597_v48  ;;  %3138 = vpow2.f32 %v2816_v29  ;;  %v1053_v52 = vadd.f32 %v1052_v45, %v884_v18  ;;  %v806_v31 = vadd.f32 %v3976_v51, %v4314_v22  ;;  %vm2080_vm15 = vmor %vm2078_vm12, %vm2079_vm13 }
 0x164   : > { %v3133_v41 = vpop.eup %3132  ;;  %v1606_v21 = vsel %vm4382_vm10, %v1605_v49, %v1601_v26  ;;  %v2076_v19 = vmul.f32 %v3129_v34, %v2075_v57  ;;  %v4400_v9 = vadd.f32 1.0, %v3131_v47  ;;  %vm4405_vm14 = vcmp.eq.f32.partialorder %v2082_v15, 8.507059e+37  ;;  %v979_v15 = vpop.f32.mrf.mxu1 }
 0x165   : > { %2315 = vst [vmem:[%s3537_s7 + $0x88] sm:$0xff] %v1606_v21  ;;  %v2085_v36 = vor.u32 1.1754944e-38, %v2084_v8  ;;  %v1609_v27 = vmul.f32 %v3133_v41, %v4363_v61  ;;  %v2848_v32 = vmul.f32 -1.442695, %v1053_v52  ;;  %v1617_v63 = vand.u32 2147483647, %v4363_v61 }
 0x166   : > { %v2077_v50 = vadd.f32 %v3129_v34, %v2076_v19  ;;  %v1619_v6 = vand.u32 2147483648, %v4363_v61  ;;  %3140 = vrcp.f32 %v4400_v9  ;;  %vm1613_vm0 = vweird.f32 %v4363_v61 }
 0x167   : > { %v3135_v22 = vpop.eup %3134  ;;  %v1610_v28 = vsub.f32 1.0, %v1609_v27  ;;  %3142 = vpow2.f32 %v2848_v32  ;;  %v886_v40 = vadd.f32 %v3976_v51, %v885_v23  ;;  %vm1614_vm1 = vweird.f32 %v3133_v41 }
 0x168   : > { %v3137_v35 = vpop.eup %3136  ;;  %v2081_v53 = vsel %vm2080_vm15, %v3129_v34, %v2077_v50  ;;  %v4422_v13 = vadd.f32 1.0, %v3135_v22  ;;  %v975_v58 = vadd.f32 %v4365_v2, %v806_v31  ;;  %v2097_v10 = vand.u32 2147483647, %v4400_v9  ;;  %vm1615_vm3 = vmor %vm1613_vm0, %vm1614_vm1 }
 0x169   : > { %v3139_v45 = vpop.eup %3138  ;;  %v2086_v33 = vsel %vm4405_vm14, %v2085_v36, %v2081_v53  ;;  %v1611_v16 = vmul.f32 %v3133_v41, %v1610_v28  ;;  %v4428_v17 = vadd.f32 1.0, %v3137_v35  ;;  %vm4431_vm2 = vcmp.eq.f32.partialorder %v1617_v63, 8.507059e+37  ;;  %v4468_v11 = vpop.f32.mrf.mxu0 }
 0x16a   : > { %2347 = vst [vmem:[%s3537_s7 + $0x188] sm:$0xff] %v2086_v33  ;;  %v1620_v55 = vor.u32 1.1754944e-38, %v1619_v6  ;;  %3144 = vrcp.f32 %v4422_v13  ;;  %v2099_v56 = vand.u32 2147483648, %v4400_v9  ;;  %v1055_v42 = vadd.f32 %v1054_v38, %v886_v40  ;;  %v890_v38 = vpop.f32.mrf.mxu2  ;;  %v1059_v40 = vpop.f32.mrf.mxu3 }
 0x16b   : > { %v1612_v0 = vadd.f32 %v3133_v41, %v1611_v16  ;;  %3146 = vrcp.f32 %v4428_v17  ;;  %vm2093_vm4 = vweird.f32 %v4400_v9  ;;  %v4442_v54 = vadd.f32 1.0, %v3139_v45 }
 0x16c   : > { %v3141_v59 = vpop.eup %3140  ;;  %v2817_v24 = vmul.f32 -1.442695, %v975_v58  ;;  %v809_v37 = vadd.f32 %v4447_v1, %v4359_v44  ;;  %vm4454_vm5 = vcmp.eq.f32.partialorder %v2097_v10, 8.507059e+37  ;;  %v1632_v23 = vand.u32 2147483647, %v4422_v13 }
 0x16d   : > { %v3143_v2 = vpop.eup %3142  ;;  %v1616_v4 = vsel %vm1615_vm3, %v3133_v41, %v1612_v0  ;;  %v2089_v61 = vmul.f32 %v3141_v59, %v4400_v9  ;;  %v1634_v5 = vand.u32 2147483648, %v4422_v13  ;;  %v2112_v34 = vand.u32 2147483647, %v4428_v17 }
 0x16e   : > { %v1621_v20 = vsel %vm4431_vm2, %v1620_v55, %v1616_v4  ;;  %v2114_v44 = vand.u32 2147483648, %v4428_v17  ;;  %3148 = vrcp.f32 %v4442_v54  ;;  %v2100_v60 = vor.u32 1.1754944e-38, %v2099_v56 }
 0x16f   : > { %2316 = vst [vmem:[%s3537_s7 + $0x90] sm:$0xff] %v1621_v20  ;;  %v2090_v7 = vsub.f32 1.0, %v2089_v61  ;;  %v4466_v43 = vadd.f32 1.0, %v3143_v2  ;;  %v2849_v29 = vmul.f32 -1.442695, %v1055_v42  ;;  %vm1628_vm6 = vweird.f32 %v4422_v13 }
 0x170   : > { %v3145_v30 = vpop.eup %3144  ;;  %vm2108_vm7 = vweird.f32 %v4428_v17  ;;  %3150 = vpow2.f32 %v2817_v24  ;;  %v978_v12 = vadd.f32 %v977_v39, %v809_v37  ;;  %vm2094_vm8 = vweird.f32 %v3141_v59 }
 0x171   : > { %v3147_v48 = vpop.eup %3146  ;;  %v2091_v8 = vmul.f32 %v3141_v59, %v2090_v7  ;;  %v1624_v18 = vmul.f32 %v3145_v30, %v4422_v13  ;;  %vm4473_vm9 = vcmp.eq.f32.partialorder %v1632_v23, 8.507059e+37  ;;  %v1635_v57 = vor.u32 1.1754944e-38, %v1634_v5  ;;  %vm2095_vm12 = vmor %vm2093_vm4, %vm2094_vm8  ;;  %v4511_v55 = vpop.f32.mrf.mxu0 }
 0x172   : > { %v2104_v47 = vmul.f32 %v3147_v48, %v4428_v17  ;;  %vm4478_vm10 = vcmp.eq.f32.partialorder %v2112_v34, 8.507059e+37  ;;  %v2115_v52 = vor.u32 1.1754944e-38, %v2114_v44  ;;  %vm1643_vm11 = vweird.f32 %v4442_v54  ;;  %v982_v24 = vpop.f32.mrf.mxu1  ;;  %v893_v4 = vpop.f32.mrf.mxu2 }
 0x173   : > { %3152 = vrcp.f32 %v4466_v43  ;;  %v2092_v41 = vadd.f32 %v3141_v59, %v2091_v8  ;;  %v1625_v21 = vsub.f32 1.0, %v1624_v18  ;;  %v1647_v19 = vand.u32 2147483647, %v4442_v54 }
 0x174   : > { %v1649_v31 = vand.u32 2147483648, %v4442_v54  ;;  %v3149_v3 = vpop.eup %3148  ;;  %v2105_v36 = vsub.f32 1.0, %v2104_v47  ;;  %3154 = vpow2.f32 %v2849_v29  ;;  %v2818_v27 = vmul.f32 -1.442695, %v978_v12 }
 0x175   : > { %v889_v32 = vadd.f32 %v4447_v1, %v4420_v14  ;;  %v2096_v50 = vsel %vm2095_vm12, %v3141_v59, %v2092_v41  ;;  %v1626_v63 = vmul.f32 %v3145_v30, %v1625_v21  ;;  %vm1629_vm13 = vweird.f32 %v3145_v30 }
 0x176   : > { %v1639_v6 = vmul.f32 %v3149_v3, %v4442_v54  ;;  %v3151_v39 = vpop.eup %3150  ;;  %v2101_v22 = vsel %vm4454_vm5, %v2100_v60, %v2096_v50  ;;  %v2106_v28 = vmul.f32 %v3147_v48, %v2105_v36  ;;  %vm2109_vm14 = vweird.f32 %v3147_v48  ;;  %vm1630_vm15 = vmor %vm1628_vm6, %vm1629_vm13 }
 0x177   : > { %v811_v9 = vadd.f32 %v4447_v1, %v4410_v46  ;;  %2348 = vst [vmem:[%s3537_s7 + $0x190] sm:$0xff] %v2101_v22  ;;  %v1627_v35 = vadd.f32 %v3145_v30, %v1626_v63  ;;  %v4497_v58 = vadd.f32 1.0, %v3151_v39  ;;  %3156 = vpow2.f32 %v2818_v27  ;;  %vm2110_vm1 = vmor %vm2108_vm7, %vm2109_vm14 }
 0x178   : > { %v1640_v53 = vsub.f32 1.0, %v1639_v6  ;;  %v2107_v45 = vadd.f32 %v3147_v48, %v2106_v28  ;;  %vm4501_vm0 = vcmp.eq.f32.partialorder %v1647_v19, 8.507059e+37  ;;  %v1058_v16 = vadd.f32 %v4451_v25, %v889_v32  ;;  %v1062_v49 = vpop.f32.mrf.mxu3 }
 0x179   : > { %v3153_v14 = vpop.eup %3152  ;;  %v891_v46 = vadd.f32 %v4447_v1, %v890_v38  ;;  %v1631_v10 = vsel %vm1630_vm15, %v3145_v30, %v1627_v35  ;;  %vm1644_vm2 = vweird.f32 %v3149_v3  ;;  %v2129_v59 = vand.u32 2147483648, %v4466_v43  ;;  %v818_v21 = vpop.f32.mrf.mxu0 }
 0x17a   : > { %v1641_v51 = vmul.f32 %v3149_v3, %v1640_v53  ;;  %v2119_v13 = vmul.f32 %v3153_v14, %v4466_v43  ;;  %v3155_v0 = vpop.eup %3154  ;;  %v1636_v56 = vsel %vm4473_vm9, %v1635_v57, %v1631_v10  ;;  %v2111_v42 = vsel %vm2110_vm1, %v3147_v48, %v2107_v45  ;;  %vm1645_vm3 = vmor %vm1643_vm11, %vm1644_vm2  ;;  %v984_v27 = vpop.f32.mrf.mxu1 }
 0x17b   : > { %3158 = vrcp.f32 %v4497_v58  ;;  %2317 = vst [vmem:[%s3537_s7 + $0x98] sm:$0xff] %v1636_v56  ;;  %v2116_v17 = vsel %vm4478_vm10, %v2115_v52, %v2111_v42  ;;  %v980_v2 = vadd.f32 %v979_v15, %v811_v9  ;;  %v1650_v61 = vor.u32 1.1754944e-38, %v1649_v31  ;;  %v895_v6 = vpop.f32.mrf.mxu2 }
 0x17c   : > { %v1642_v37 = vadd.f32 %v3149_v3, %v1641_v51  ;;  %v2120_v25 = vsub.f32 1.0, %v2119_v13  ;;  %2349 = vst [vmem:[%s3537_s7 + $0x198] sm:$0xff] %v2116_v17  ;;  %v4524_v62 = vadd.f32 1.0, %v3155_v0  ;;  %v2850_v23 = vmul.f32 -1.442695, %v1058_v16 }
 0x17d   : > { %v1060_v5 = vadd.f32 %v1059_v40, %v891_v46  ;;  %v3157_v20 = vpop.eup %3156  ;;  %vm2124_vm4 = vweird.f32 %v3153_v14  ;;  %v2127_v7 = vand.u32 2147483647, %v4466_v43  ;;  %vm2123_vm5 = vweird.f32 %v4466_v43 }
 0x17e   : > { %v1646_v34 = vsel %vm1645_vm3, %v3149_v3, %v1642_v37  ;;  %v2121_v44 = vmul.f32 %v3153_v14, %v2120_v25  ;;  %v2130_v29 = vor.u32 1.1754944e-38, %v2129_v59  ;;  %3160 = vrcp.f32 %v4524_v62  ;;  %vm2125_vm6 = vmor %vm2123_vm5, %vm2124_vm4 }
 0x17f   : > { %v1651_v60 = vsel %vm4501_vm0, %v1650_v61, %v1646_v34  ;;  %v1662_v30 = vand.u32 2147483647, %v4497_v58  ;;  %v4533_v12 = vadd.f32 1.0, %v3157_v20  ;;  %v2819_v15 = vmul.f32 -1.442695, %v980_v2 }
 0x180   : > { %2318 = vst [vmem:[%s3537_s7 + $0xa0] sm:$0xff] %v1651_v60  ;;  %v2122_v54 = vadd.f32 %v3153_v14, %v2121_v44  ;;  %3162 = vpow2.f32 %v2850_v23  ;;  %v2851_v8 = vmul.f32 -1.442695, %v1060_v5  ;;  %v814_v18 = vadd.f32 %v4447_v1, %v4468_v11  ;;  %v1064_v42 = vpop.f32.mrf.mxu3 }
 0x181   : > { %v3159_v48 = vpop.eup %3158  ;;  %v894_v43 = vadd.f32 %v4447_v1, %v893_v4  ;;  %vm2128_vm7 = vcmp.eq.f32.partialorder %v2127_v7, 8.507059e+37  ;;  %v1664_v47 = vand.u32 2147483648, %v4497_v58  ;;  %v2142_v52 = vand.u32 2147483647, %v4524_v62  ;;  %v820_v5 = vpop.f32.mrf.mxu0 }
 0x182   : > { %v2126_v57 = vsel %vm2125_vm6, %v3153_v14, %v2122_v54  ;;  %v1654_v38 = vmul.f32 %v3159_v48, %v4497_v58  ;;  %3164 = vrcp.f32 %v4533_v12  ;;  %vm1658_vm8 = vweird.f32 %v4497_v58 }
 0x183   : > { %v2131_v26 = vsel %vm2128_vm7, %v2130_v29, %v2126_v57  ;;  %v2144_v11 = vand.u32 2147483648, %v4524_v62  ;;  %3166 = vpow2.f32 %v2819_v15  ;;  %vm4545_vm9 = vcmp.eq.f32.partialorder %v1662_v30, 8.507059e+37 }
 0x184   : > { %2350 = vst [vmem:[%s3537_s7 + $0x1a0] sm:$0xff] %v2131_v26  ;;  %v1655_v41 = vsub.f32 1.0, %v1654_v38  ;;  %v3161_v19 = vpop.eup %3160  ;;  %3168 = vpow2.f32 %v2851_v8  ;;  %v983_v3 = vadd.f32 %v982_v24, %v814_v18  ;;  %v1063_v36 = vadd.f32 %v1062_v49, %v894_v43 }
 0x185   : > { %vm1659_vm10 = vweird.f32 %v3159_v48  ;;  %v1665_v50 = vor.u32 1.1754944e-38, %v1664_v47  ;;  %v2134_v63 = vmul.f32 %v3161_v19, %v4524_v62  ;;  %vm2138_vm11 = vweird.f32 %v4524_v62 }
 0x186   : > { %v1656_v32 = vmul.f32 %v3159_v48, %v1655_v41  ;;  %v3163_v39 = vpop.eup %3162  ;;  %vm4551_vm12 = vcmp.eq.f32.partialorder %v2142_v52, 8.507059e+37  ;;  %v2820_v28 = vmul.f32 -1.442695, %v983_v3  ;;  %v816_v9 = vadd.f32 %v4447_v1, %v4511_v55  ;;  %vm1660_vm13 = vmor %vm1658_vm8, %vm1659_vm10 }
 0x187   : > { %v2135_v35 = vsub.f32 1.0, %v2134_v63  ;;  %v2145_v53 = vor.u32 1.1754944e-38, %v2144_v11  ;;  %v4557_v14 = vadd.f32 1.0, %v3163_v39  ;;  %vm1673_vm14 = vweird.f32 %v4533_v12 }
 0x188   : > { %v1657_v40 = vadd.f32 %v3159_v48, %v1656_v32  ;;  %v3165_v45 = vpop.eup %3164  ;;  %v1677_v33 = vand.u32 2147483647, %v4533_v12  ;;  %3170 = vpow2.f32 %v2820_v28  ;;  %v2852_v16 = vmul.f32 -1.442695, %v1063_v36 }
 0x189   : > { %v3167_v46 = vpop.eup %3166  ;;  %v2136_v51 = vmul.f32 %v3161_v19, %v2135_v35  ;;  %vm2139_vm15 = vweird.f32 %v3161_v19  ;;  %v1669_v13 = vmul.f32 %v3165_v45, %v4533_v12  ;;  %v1679_v58 = vand.u32 2147483648, %v4533_v12 }
 0x18a   : > { %v1661_v10 = vsel %vm1660_vm13, %v3159_v48, %v1657_v40  ;;  %v3169_v55 = vpop.eup %3168  ;;  %3172 = vrcp.f32 %v4557_v14  ;;  %v985_v56 = vadd.f32 %v984_v27, %v816_v9  ;;  %v4569_v17 = vadd.f32 1.0, %v3167_v46  ;;  %vm2140_vm0 = vmor %vm2138_vm11, %vm2139_vm15 }
 0x18b   : > { %v1666_v0 = vsel %vm4545_vm9, %v1665_v50, %v1661_v10  ;;  %v2137_v59 = vadd.f32 %v3161_v19, %v2136_v51  ;;  %v1670_v24 = vsub.f32 1.0, %v1669_v13  ;;  %v896_v37 = vadd.f32 %v4447_v1, %v895_v6  ;;  %v987_v7 = vpop.f32.mrf.mxu1 }
 0x18c   : > { %2319 = vst [vmem:[%s3537_s7 + $0xa8] sm:$0xff] %v1666_v0  ;;  %vm1674_vm1 = vweird.f32 %v3165_v45  ;;  %v2157_v25 = vand.u32 2147483647, %v4557_v14  ;;  %v4575_v2 = vadd.f32 1.0, %v3169_v55  ;;  %3174 = vpow2.f32 %v2852_v16 }
 0x18d   : > { %v2141_v4 = vsel %vm2140_vm0, %v3161_v19, %v2137_v59  ;;  %v1671_v61 = vmul.f32 %v3165_v45, %v1670_v24  ;;  %v2159_v23 = vand.u32 2147483648, %v4557_v14  ;;  %3176 = vrcp.f32 %v4569_v17  ;;  %vm1675_vm3 = vmor %vm1673_vm14, %vm1674_vm1 }
 0x18e   : > { %v3171_v20 = vpop.eup %3170  ;;  %v2146_v34 = vsel %vm4551_vm12, %v2145_v53, %v2141_v4  ;;  %vm4581_vm2 = vcmp.eq.f32.partialorder %v1677_v33, 8.507059e+37  ;;  %v1680_v44 = vor.u32 1.1754944e-38, %v1679_v58  ;;  %3178 = vrcp.f32 %v4575_v2 }
 0x18f   : > { %2351 = vst [vmem:[%s3537_s7 + $0x1a8] sm:$0xff] %v2146_v34  ;;  %v1672_v60 = vadd.f32 %v3165_v45, %v1671_v61  ;;  %v2821_v29 = vmul.f32 -1.442695, %v985_v56  ;;  %v819_v54 = vadd.f32 %v4447_v1, %v818_v21  ;;  %vm2153_vm4 = vweird.f32 %v4557_v14 }
 0x190   : > { %v898_v30 = vpop.f32.mrf.mxu2  ;;  %v3173_v15 = vpop.eup %3172  ;;  %v4592_v48 = vadd.f32 1.0, %v3171_v20  ;;  %v1065_v8 = vadd.f32 %v1064_v42, %v896_v37  ;;  %v4595_v18 = vadd.f32 %v4447_v1, %v820_v5  ;;  %vm4598_vm5 = vcmp.eq.f32.partialorder %v2157_v25, 8.507059e+37 }
 0x191   : > { %v1676_v43 = vsel %vm1675_vm3, %v3165_v45, %v1672_v60  ;;  %v2149_v49 = vmul.f32 %v3173_v15, %v4557_v14  ;;  %v2160_v38 = vor.u32 1.1754944e-38, %v2159_v23  ;;  %v1692_v12 = vand.u32 2147483647, %v4569_v17 }
 0x192   : > { %v3175_v47 = vpop.eup %3174  ;;  %v1681_v26 = vsel %vm4581_vm2, %v1680_v44, %v1676_v43  ;;  %v1694_v52 = vand.u32 2147483648, %v4569_v17  ;;  %v2172_v41 = vand.u32 2147483647, %v4575_v2  ;;  %3180 = vrcp.f32 %v4592_v48 }
 0x193   : > { %v3177_v11 = vpop.eup %3176  ;;  %2320 = vst [vmem:[%s3537_s7 + $0xb0] sm:$0xff] %v1681_v26  ;;  %v2150_v21 = vsub.f32 1.0, %v2149_v49  ;;  %vm1688_vm6 = vweird.f32 %v4569_v17  ;;  %v2174_v19 = vand.u32 2147483648, %v4575_v2  ;;  %v4611_v31 = vadd.f32 1.0, %v3175_v47  ;;  %v989_v10 = vpop.f32.mrf.mxu1 }
 0x194   : > { %v1684_v3 = vmul.f32 %v3177_v11, %v4569_v17  ;;  %vm2168_vm7 = vweird.f32 %v4575_v2  ;;  %3182 = vpow2.f32 %v2821_v29  ;;  %v2853_v36 = vmul.f32 -1.442695, %v1065_v8  ;;  %v3179_v32 = vpop.eup %3178 }
 0x195   : > { %v1067_v27 = vpop.f32.mrf.mxu3  ;;  %v2151_v50 = vmul.f32 %v3173_v15, %v2150_v21  ;;  %vm2154_vm8 = vweird.f32 %v3173_v15  ;;  %vm4615_vm9 = vcmp.eq.f32.partialorder %v1692_v12, 8.507059e+37  ;;  %3184 = vrcp.f32 %v4611_v31 }
 0x196   : > { %v1685_v6 = vsub.f32 1.0, %v1684_v3  ;;  %v1695_v39 = vor.u32 1.1754944e-38, %v1694_v52  ;;  %v2164_v22 = vmul.f32 %v3179_v32, %v4575_v2  ;;  %vm4621_vm10 = vcmp.eq.f32.partialorder %v2172_v41, 8.507059e+37  ;;  %vm2155_vm12 = vmor %vm2153_vm4, %vm2154_vm8 }
 0x197   : > { %v2152_v9 = vadd.f32 %v3173_v15, %v2151_v50  ;;  %vm1689_vm11 = vweird.f32 %v3177_v11  ;;  %v2175_v40 = vor.u32 1.1754944e-38, %v2174_v19  ;;  %3186 = vpow2.f32 %v2853_v36  ;;  %v4625_v35 = vpop.f32.mrf.mxu0 }
 0x198   : > { %v3181_v53 = vpop.eup %3180  ;;  %v1686_v45 = vmul.f32 %v3177_v11, %v1685_v6  ;;  %v2165_v33 = vsub.f32 1.0, %v2164_v22  ;;  %v988_v16 = vadd.f32 %v987_v7, %v819_v54  ;;  %v899_v46 = vadd.f32 %v4447_v1, %v898_v30  ;;  %v900_v58 = vpop.f32.mrf.mxu2  ;;  %vm1690_vm14 = vmor %vm1688_vm6, %vm1689_vm11 }
 0x199   : > { %v2156_v51 = vsel %vm2155_vm12, %v3173_v15, %v2152_v9  ;;  %v1699_v13 = vmul.f32 %v3181_v53, %v4592_v48  ;;  %v1707_v55 = vand.u32 2147483647, %v4592_v48  ;;  %v1709_v0 = vand.u32 2147483648, %v4592_v48 }
 0x19a   : > { %v3183_v56 = vpop.eup %3182  ;;  %v2161_v14 = vsel %vm4598_vm5, %v2160_v38, %v2156_v51  ;;  %v1687_v42 = vadd.f32 %v3177_v11, %v1686_v45  ;;  %v2166_v59 = vmul.f32 %v3179_v32, %v2165_v33  ;;  %vm2169_vm13 = vweird.f32 %v3179_v32 }
 0x19b   : > { %v3185_v24 = vpop.eup %3184  ;;  %2352 = vst [vmem:[%s3537_s7 + $0x1b0] sm:$0xff] %v2161_v14  ;;  %v1700_v37 = vsub.f32 1.0, %v1699_v13  ;;  %vm1703_vm15 = vweird.f32 %v4592_v48  ;;  %v4640_v25 = vadd.f32 1.0, %v3183_v56  ;;  %v2822_v4 = vmul.f32 -1.442695, %v988_v16  ;;  %vm2170_vm0 = vmor %vm2168_vm7, %vm2169_vm13  ;;  %v992_v26 = vpop.f32.mrf.mxu1 }
 0x19c   : > { %v1691_v61 = vsel %vm1690_vm14, %v3177_v11, %v1687_v42  ;;  %v2167_v23 = vadd.f32 %v3179_v32, %v2166_v59  ;;  %v2179_v5 = vmul.f32 %v3185_v24, %v4611_v31  ;;  %v1068_v20 = vadd.f32 %v1067_v27, %v899_v46 }
 0x19d   : > { %v3187_v34 = vpop.eup %3186  ;;  %v1696_v62 = vsel %vm4615_vm9, %v1695_v39, %v1691_v61  ;;  %v1701_v17 = vmul.f32 %v3181_v53, %v1700_v37  ;;  %vm1704_vm1 = vweird.f32 %v3181_v53  ;;  %3188 = vrcp.f32 %v4640_v25  ;;  %v1069_v54 = vpop.f32.mrf.mxu3 }
 0x19e   : > { %2321 = vst [vmem:[%s3537_s7 + $0xb8] sm:$0xff] %v1696_v62  ;;  %v2171_v44 = vsel %vm2170_vm0, %v3179_v32, %v2167_v23  ;;  %v1710_v7 = vor.u32 1.1754944e-38, %v1709_v0  ;;  %v2180_v60 = vsub.f32 1.0, %v2179_v5  ;;  %v2189_v29 = vand.u32 2147483648, %v4611_v31  ;;  %vm1705_vm2 = vmor %vm1703_vm15, %vm1704_vm1 }
 0x19f   : > { %v2176_v30 = vsel %vm4621_vm10, %v2175_v40, %v2171_v44  ;;  %v1702_v15 = vadd.f32 %v3181_v53, %v1701_v17  ;;  %v4652_v8 = vadd.f32 1.0, %v3187_v34  ;;  %3190 = vpow2.f32 %v2822_v4  ;;  %v825_v38 = vpop.f32.mrf.mxu0 }
 0x1a0   : > { %2353 = vst [vmem:[%s3537_s7 + $0x1b8] sm:$0xff] %v2176_v30  ;;  %v2181_v2 = vmul.f32 %v3185_v24, %v2180_v60  ;;  %vm2184_vm3 = vweird.f32 %v3185_v24  ;;  %v2187_v43 = vand.u32 2147483647, %v4611_v31  ;;  %v2854_v49 = vmul.f32 -1.442695, %v1068_v20  ;;  %v903_v19 = vpop.f32.mrf.mxu2 }
 0x1a1   : > { %v1706_v57 = vsel %vm1705_vm2, %v3181_v53, %v1702_v15  ;;  %vm1708_vm4 = vcmp.eq.f32.partialorder %v1707_v55, 8.507059e+37  ;;  %3192 = vrcp.f32 %v4652_v8  ;;  %vm2183_vm5 = vweird.f32 %v4611_v31 }
 0x1a2   : > { %v1711_v12 = vsel %vm1708_vm4, %v1710_v7, %v1706_v57  ;;  %v2182_v47 = vadd.f32 %v3185_v24, %v2181_v2  ;;  %3194 = vpow2.f32 %v2854_v49  ;;  %vm2185_vm6 = vmor %vm2183_vm5, %vm2184_vm3  ;;  %v2190_v48 = vor.u32 1.1754944e-38, %v2189_v29 }
 0x1a3   : > { %v3189_v52 = vpop.eup %3188  ;;  %2322 = vst [vmem:[%s3537_s7 + $0xc0] sm:$0xff] %v1711_v12  ;;  %v990_v41 = vadd.f32 %v989_v10, %v4595_v18  ;;  %v901_v11 = vadd.f32 %v4447_v1, %v900_v58  ;;  %v824_v21 = vadd.f32 %v4447_v1, %v4625_v35  ;;  %vm2188_vm7 = vcmp.eq.f32.partialorder %v2187_v43, 8.507059e+37  ;;  %v994_v37 = vpop.f32.mrf.mxu1 }
 0x1a4   : > { %v2186_v3 = vsel %vm2185_vm6, %v3185_v24, %v2182_v47  ;;  %v1714_v36 = vmul.f32 %v3189_v52, %v4640_v25  ;;  %vm1718_vm8 = vweird.f32 %v4640_v25  ;;  %v1722_v18 = vand.u32 2147483647, %v4640_v25 }
 0x1a5   : > { %v3191_v31 = vpop.eup %3190  ;;  %v2191_v27 = vsel %vm2188_vm7, %v2190_v48, %v2186_v3  ;;  %v2823_v32 = vmul.f32 -1.442695, %v990_v41  ;;  %v1070_v50 = vadd.f32 %v1069_v54, %v901_v11  ;;  %v993_v63 = vadd.f32 %v992_v26, %v824_v21  ;;  %v1072_v16 = vpop.f32.mrf.mxu3 }
 0x1a6   : > { %2354 = vst [vmem:[%s3537_s7 + $0x1c0] sm:$0xff] %v2191_v27  ;;  %v1715_v6 = vsub.f32 1.0, %v1714_v36  ;;  %v4669_v39 = vadd.f32 1.0, %v3191_v31  ;;  %v904_v22 = vadd.f32 %v4447_v1, %v903_v19  ;;  %v1724_v9 = vand.u32 2147483648, %v4640_v25 }
 0x1a7   : > { %v3193_v28 = vpop.eup %3192  ;;  %v2202_v40 = vand.u32 2147483647, %v4652_v8  ;;  %3196 = vpow2.f32 %v2823_v32  ;;  %v2855_v35 = vmul.f32 -1.442695, %v1070_v50  ;;  %vm1719_vm9 = vweird.f32 %v3189_v52  ;;  %v828_v14 = vpop.f32.mrf.mxu0 }
 0x1a8   : > { %v3195_v53 = vpop.eup %3194  ;;  %v1716_v45 = vmul.f32 %v3189_v52, %v1715_v6  ;;  %v2194_v33 = vmul.f32 %v3193_v28, %v4652_v8  ;;  %3198 = vrcp.f32 %v4669_v39  ;;  %v2204_v46 = vand.u32 2147483648, %v4652_v8  ;;  %vm1720_vm10 = vmor %vm1718_vm8, %vm1719_vm9  ;;  %v905_v17 = vpop.f32.mrf.mxu2 }
 0x1a9   : > { %v4677_v10 = vadd.f32 1.0, %v3195_v53  ;;  %v2824_v51 = vmul.f32 -1.442695, %v993_v63  ;;  %v826_v13 = vadd.f32 %v4447_v1, %v825_v38  ;;  %3200 = vpow2.f32 %v2855_v35 }
 0x1aa   : > { %v1717_v55 = vadd.f32 %v3189_v52, %v1716_v45  ;;  %v2195_v0 = vsub.f32 1.0, %v2194_v33  ;;  %v1073_v58 = vadd.f32 %v1072_v16, %v904_v22  ;;  %vm1723_vm11 = vcmp.eq.f32.partialorder %v1722_v18, 8.507059e+37 }
 0x1ab   : > { %v1725_v56 = vor.u32 1.1754944e-38, %v1724_v9  ;;  %vm2198_vm12 = vweird.f32 %v4652_v8  ;;  %3202 = vrcp.f32 %v4677_v10  ;;  %vm2199_vm13 = vweird.f32 %v3193_v28 }
 0x1ac   : > { %v1721_v42 = vsel %vm1720_vm10, %v3189_v52, %v1717_v55  ;;  %v2196_v59 = vmul.f32 %v3193_v28, %v2195_v0  ;;  %vm4684_vm14 = vcmp.eq.f32.partialorder %v2202_v40, 8.507059e+37  ;;  %3204 = vpow2.f32 %v2824_v51  ;;  %vm2200_vm15 = vmor %vm2198_vm12, %vm2199_vm13 }
 0x1ad   : > { %v3197_v4 = vpop.eup %3196  ;;  %v1726_v61 = vsel %vm1723_vm11, %v1725_v56, %v1721_v42  ;;  %v2856_v25 = vmul.f32 -1.442695, %v1073_v58  ;;  %v995_v23 = vadd.f32 %v994_v37, %v826_v13  ;;  %v2205_v34 = vor.u32 1.1754944e-38, %v2204_v46  ;;  %v1074_v47 = vpop.f32.mrf.mxu3 }
 0x1ae   : > { %v3199_v5 = vpop.eup %3198  ;;  %2323 = vst [vmem:[%s3537_s7 + $0xc8] sm:$0xff] %v1726_v61  ;;  %v2197_v20 = vadd.f32 %v3193_v28, %v2196_v59  ;;  %v4689_v62 = vadd.f32 1.0, %v3197_v4  ;;  %v4692_v44 = vadd.f32 %v4447_v1, %v828_v14  ;;  %v1737_v60 = vand.u32 2147483647, %v4669_v39  ;;  %v997_v42 = vpop.f32.mrf.mxu1 }
 0x1af   : > { %v1729_v7 = vmul.f32 %v3199_v5, %v4669_v39  ;;  %3206 = vpow2.f32 %v2856_v25  ;;  %v2825_v29 = vmul.f32 -1.442695, %v995_v23  ;;  %v3201_v54 = vpop.eup %3200  ;;  %v1739_v15 = vand.u32 2147483648, %v4669_v39 }
 0x1b0   : > { %v2201_v30 = vsel %vm2200_vm15, %v3193_v28, %v2197_v20  ;;  %v2217_v2 = vand.u32 2147483647, %v4677_v10  ;;  %3208 = vrcp.f32 %v4689_v62  ;;  %v2219_v57 = vand.u32 2147483648, %v4677_v10  ;;  %v908_v45 = vpop.f32.mrf.mxu2 }
 0x1b1   : > { %v3203_v43 = vpop.eup %3202  ;;  %v2206_v8 = vsel %vm4684_vm14, %v2205_v34, %v2201_v30  ;;  %v1730_v49 = vsub.f32 1.0, %v1729_v7  ;;  %v4705_v38 = vadd.f32 1.0, %v3201_v54  ;;  %vm1733_vm0 = vweird.f32 %v4669_v39 }
 0x1b2   : > { %2355 = vst [vmem:[%s3537_s7 + $0x1c8] sm:$0xff] %v2206_v8  ;;  %vm1734_vm1 = vweird.f32 %v3199_v5  ;;  %v2209_v12 = vmul.f32 %v3203_v43, %v4677_v10  ;;  %3210 = vpow2.f32 %v2825_v29  ;;  %v3205_v26 = vpop.eup %3204  ;;  %v1752_v48 = vand.u32 2147483647, %v4689_v62 }
 0x1b3   : > { %v1731_v52 = vmul.f32 %v3199_v5, %v1730_v49  ;;  %v1754_v41 = vand.u32 2147483648, %v4689_v62  ;;  %3212 = vrcp.f32 %v4705_v38  ;;  %vm4713_vm2 = vcmp.eq.f32.partialorder %v1737_v60, 8.507059e+37  ;;  %vm1735_vm5 = vmor %vm1733_vm0, %vm1734_vm1  ;;  %v830_v49 = vpop.f32.mrf.mxu0 }
 0x1b4   : > { %v1740_v21 = vor.u32 1.1754944e-38, %v1739_v15  ;;  %v2210_v19 = vsub.f32 1.0, %v2209_v12  ;;  %v4717_v3 = vadd.f32 1.0, %v3205_v26  ;;  %vm2213_vm3 = vweird.f32 %v4677_v10 }
 0x1b5   : > { %v3207_v36 = vpop.eup %3206  ;;  %v1732_v31 = vadd.f32 %v3199_v5, %v1731_v52  ;;  %vm4720_vm4 = vcmp.eq.f32.partialorder %v2217_v2, 8.507059e+37  ;;  %v2220_v32 = vor.u32 1.1754944e-38, %v2219_v57  ;;  %vm2214_vm6 = vweird.f32 %v3203_v43  ;;  %v1077_v25 = vpop.f32.mrf.mxu3 }
 0x1b6   : > { %v3209_v50 = vpop.eup %3208  ;;  %v2211_v63 = vmul.f32 %v3203_v43, %v2210_v19  ;;  %vm1748_vm7 = vweird.f32 %v4689_v62  ;;  %3214 = vrcp.f32 %v4717_v3  ;;  %vm4730_vm8 = vcmp.eq.f32.partialorder %v1752_v48, 8.507059e+37  ;;  %vm2215_vm10 = vmor %vm2213_vm3, %vm2214_vm6  ;;  %v999_v27 = vpop.f32.mrf.mxu1 }
 0x1b7   : > { %v1736_v6 = vsel %vm1735_vm5, %v3199_v5, %v1732_v31  ;;  %v1744_v18 = vmul.f32 %v3209_v50, %v4689_v62  ;;  %v1755_v28 = vor.u32 1.1754944e-38, %v1754_v41  ;;  %vm2228_vm9 = vweird.f32 %v4705_v38 }
 0x1b8   : > { %v3211_v9 = vpop.eup %3210  ;;  %v1741_v39 = vsel %vm4713_vm2, %v1740_v21, %v1736_v6  ;;  %v2212_v40 = vadd.f32 %v3203_v43, %v2211_v63  ;;  %v2232_v35 = vand.u32 2147483647, %v4705_v38  ;;  %v906_v53 = vadd.f32 %v4447_v1, %v905_v17  ;;  %v910_v26 = vpop.f32.mrf.mxu2 }
 0x1b9   : > { %v3213_v33 = vpop.eup %3212  ;;  %2324 = vst [vmem:[%s3537_s7 + $0xd0] sm:$0xff] %v1741_v39  ;;  %v1745_v16 = vsub.f32 1.0, %v1744_v18  ;;  %v2234_v46 = vand.u32 2147483648, %v4705_v38  ;;  %v4744_v51 = vadd.f32 1.0, %v3207_v36  ;;  %v4746_v13 = vadd.f32 1.0, %v3211_v9 }
 0x1ba   : > { %v2216_v55 = vsel %vm2215_vm10, %v3203_v43, %v2212_v40  ;;  %vm1749_vm11 = vweird.f32 %v3209_v50  ;;  %v2224_v0 = vmul.f32 %v3213_v33, %v4705_v38  ;;  %v1767_v58 = vand.u32 2147483647, %v4717_v3 }
 0x1bb   : > { %v2221_v56 = vsel %vm4720_vm4, %v2220_v32, %v2216_v55  ;;  %v1746_v14 = vmul.f32 %v3209_v50, %v1745_v16  ;;  %v1769_v10 = vand.u32 2147483648, %v4717_v3  ;;  %3216 = vrcp.f32 %v4744_v51  ;;  %vm1750_vm13 = vmor %vm1748_vm7, %vm1749_vm11 }
 0x1bc   : > { %v3215_v59 = vpop.eup %3214  ;;  %2356 = vst [vmem:[%s3537_s7 + $0x1d0] sm:$0xff] %v2221_v56  ;;  %v2225_v24 = vsub.f32 1.0, %v2224_v0  ;;  %v1075_v37 = vadd.f32 %v1074_v47, %v906_v53  ;;  %v998_v4 = vadd.f32 %v997_v42, %v4692_v44  ;;  %v909_v61 = vadd.f32 %v4447_v1, %v908_v45 }
 0x1bd   : > { %v1747_v23 = vadd.f32 %v3209_v50, %v1746_v14  ;;  %vm4757_vm12 = vcmp.eq.f32.partialorder %v2232_v35, 8.507059e+37  ;;  %v1759_v20 = vmul.f32 %v3215_v59, %v4717_v3  ;;  %3218 = vrcp.f32 %v4746_v13  ;;  %v1079_v18 = vpop.f32.mrf.mxu3 }
 0x1be   : > { %v2226_v34 = vmul.f32 %v3213_v33, %v2225_v24  ;;  %vm2229_vm14 = vweird.f32 %v3213_v33  ;;  %v2235_v17 = vor.u32 1.1754944e-38, %v2234_v46  ;;  %vm1763_vm15 = vweird.f32 %v4717_v3 }
 0x1bf   : > { %v1751_v44 = vsel %vm1750_vm13, %v3209_v50, %v1747_v23  ;;  %v1760_v7 = vsub.f32 1.0, %v1759_v20  ;;  %vm4767_vm0 = vcmp.eq.f32.partialorder %v1767_v58, 8.507059e+37  ;;  %v1770_v29 = vor.u32 1.1754944e-38, %v1769_v10  ;;  %vm2230_vm1 = vmor %vm2228_vm9, %vm2229_vm14 }
 0x1c0   : > { %v1756_v54 = vsel %vm4730_vm8, %v1755_v28, %v1751_v44  ;;  %v2227_v30 = vadd.f32 %v3213_v33, %v2226_v34  ;;  %v2857_v15 = vmul.f32 -1.442695, %v1075_v37  ;;  %v2826_v2 = vmul.f32 -1.442695, %v998_v4 }
 0x1c1   : > { %v3217_v62 = vpop.eup %3216  ;;  %2325 = vst [vmem:[%s3537_s7 + $0xd8] sm:$0xff] %v1756_v54  ;;  %v1761_v43 = vmul.f32 %v3215_v59, %v1760_v7  ;;  %vm1764_vm2 = vweird.f32 %v3215_v59  ;;  %vm2243_vm3 = vweird.f32 %v4744_v51  ;;  %v1078_v8 = vadd.f32 %v1077_v25, %v909_v61 }
 0x1c2   : > { %v2231_v57 = vsel %vm2230_vm1, %v3213_v33, %v2227_v30  ;;  %v2239_v12 = vmul.f32 %v3217_v62, %v4744_v51  ;;  %v2247_v47 = vand.u32 2147483647, %v4744_v51  ;;  %3220 = vpow2.f32 %v2857_v15  ;;  %vm1765_vm4 = vmor %vm1763_vm15, %vm1764_vm2 }
 0x1c3   : > { %v3219_v52 = vpop.eup %3218  ;;  %v2236_v48 = vsel %vm4757_vm12, %v2235_v17, %v2231_v57  ;;  %v1762_v38 = vadd.f32 %v3215_v59, %v1761_v43  ;;  %3222 = vpow2.f32 %v2826_v2  ;;  %v2858_v41 = vmul.f32 -1.442695, %v1078_v8 }
 0x1c4   : > { %2357 = vst [vmem:[%s3537_s7 + $0x1d8] sm:$0xff] %v2236_v48  ;;  %v2240_v11 = vsub.f32 1.0, %v2239_v12  ;;  %v2249_v21 = vand.u32 2147483648, %v4744_v51  ;;  %v1774_v19 = vmul.f32 %v3219_v52, %v4746_v13  ;;  %v831_v36 = vadd.f32 %v4447_v1, %v830_v49 }
 0x1c5   : > { %v1766_v31 = vsel %vm1765_vm4, %v3215_v59, %v1762_v38  ;;  %vm2244_vm5 = vweird.f32 %v3217_v62  ;;  %3224 = vpow2.f32 %v2858_v41  ;;  %v911_v32 = vadd.f32 %v4447_v1, %v910_v26 }
 0x1c6   : > { %v1771_v50 = vsel %vm4767_vm0, %v1770_v29, %v1766_v31  ;;  %v2241_v63 = vmul.f32 %v3217_v62, %v2240_v11  ;;  %v1775_v3 = vsub.f32 1.0, %v1774_v19  ;;  %v1000_v6 = vadd.f32 %v999_v27, %v831_v36  ;;  %vm2245_vm8 = vmor %vm2243_vm3, %vm2244_vm5 }
 0x1c7   : > { %2326 = vst [vmem:[%s3537_s7 + $0xe0] sm:$0xff] %v1771_v50  ;;  %vm4792_vm6 = vcmp.eq.f32.partialorder %v2247_v47, 8.507059e+37  ;;  %v1782_v28 = vand.u32 2147483647, %v4746_v13  ;;  %v1784_v9 = vand.u32 2147483648, %v4746_v13  ;;  %v1080_v39 = vadd.f32 %v1079_v18, %v911_v32 }
 0x1c8   : > { %v3221_v40 = vpop.eup %3220  ;;  %v2242_v35 = vadd.f32 %v3217_v62, %v2241_v63  ;;  %v1776_v1 = vmul.f32 %v3219_v52, %v1775_v3  ;;  %vm1779_vm7 = vweird.f32 %v3219_v52  ;;  %v2827_v53 = vmul.f32 -1.442695, %v1000_v6 }
 0x1c9   : > { %v3223_v45 = vpop.eup %3222  ;;  %v2250_v33 = vor.u32 1.1754944e-38, %v2249_v21  ;;  %vm1778_vm9 = vweird.f32 %v4746_v13  ;;  %v1335_v16 = vadd.f32 1.0, %v3221_v40  ;;  %v2859_v46 = vmul.f32 -1.442695, %v1080_v39 }
 0x1ca   : > { %v2246_v55 = vsel %vm2245_vm8, %v3217_v62, %v2242_v35  ;;  %v1777_v0 = vadd.f32 %v3219_v52, %v1776_v1  ;;  %v1304_v58 = vadd.f32 1.0, %v3223_v45  ;;  %3226 = vpow2.f32 %v2827_v53  ;;  %vm1780_vm10 = vmor %vm1778_vm9, %vm1779_vm7 }
 0x1cb   : > { %v3225_v56 = vpop.eup %3224  ;;  %v2251_v14 = vsel %vm4792_vm6, %v2250_v33, %v2246_v55  ;;  %v1785_v10 = vor.u32 1.1754944e-38, %v1784_v9  ;;  %3228 = vrcp.f32 %v1335_v16  ;;  %vm1783_vm11 = vcmp.eq.f32.partialorder %v1782_v28, 8.507059e+37 }
 0x1cc   : > { %2358 = vst [vmem:[%s3537_s7 + $0x1e0] sm:$0xff] %v2251_v14  ;;  %v1781_v51 = vsel %vm1780_vm10, %v3219_v52, %v1777_v0  ;;  %3230 = vrcp.f32 %v1304_v58  ;;  %v1336_v13 = vadd.f32 1.0, %v3225_v56  ;;  %v2262_v20 = vand.u32 2147483647, %v1335_v16 }
 0x1cd   : > { %v1786_v42 = vsel %vm1783_vm11, %v1785_v10, %v1781_v51  ;;  %3232 = vpow2.f32 %v2859_v46  ;;  %v2264_v34 = vand.u32 2147483648, %v1335_v16  ;;  %v1797_v44 = vand.u32 2147483647, %v1304_v58 }
 0x1ce   : > { %2327 = vst [vmem:[%s3537_s7 + $0xe8] sm:$0xff] %v1786_v42  ;;  %3234 = vrcp.f32 %v1336_v13  ;;  %v1799_v7 = vand.u32 2147483648, %v1304_v58  ;;  %vm1793_vm13 = vweird.f32 %v1304_v58  ;;  %vm2258_vm15 = vweird.f32 %v1335_v16 }
 0x1cf   : > { %vm2263_vm0 = vcmp.eq.f32.partialorder %v2262_v20, 8.507059e+37  ;;  %v2265_v62 = vor.u32 1.1754944e-38, %v2264_v34  ;;  %vm1798_vm2 = vcmp.eq.f32.partialorder %v1797_v44, 8.507059e+37  ;;  %v2277_v47 = vand.u32 2147483647, %v1336_v13 }
 0x1d0   : > { %v3227_v59 = vpop.eup %3226  ;;  %v1800_v49 = vor.u32 1.1754944e-38, %v1799_v7  ;;  %v2279_v26 = vand.u32 2147483648, %v1336_v13  ;;  %vm2273_vm5 = vweird.f32 %v1336_v13 }
 0x1d1   : > { %v3229_v24 = vpop.eup %3228  ;;  %v4806_v37 = vadd.f32 1.0, %v3227_v59  ;;  %vm2278_vm8 = vcmp.eq.f32.partialorder %v2277_v47, 8.507059e+37 }
 0x1d2   : > { %v3231_v4 = vpop.eup %3230  ;;  %v2254_v61 = vmul.f32 %v3229_v24, %v1335_v16  ;;  %vm2259_vm12 = vweird.f32 %v3229_v24  ;;  %v2280_v32 = vor.u32 1.1754944e-38, %v2279_v26 }
 0x1d3   : > { %v1789_v25 = vmul.f32 %v3231_v4, %v1304_v58  ;;  %3236 = vrcp.f32 %v4806_v37  ;;  %v3233_v23 = vpop.eup %3232  ;;  %vm1794_vm14 = vweird.f32 %v3231_v4  ;;  %vm2260_vm1 = vmor %vm2258_vm15, %vm2259_vm12  ;;  %v1812_v31 = vand.u32 2147483647, %v4806_v37 }
 0x1d4   : > { %v2255_v5 = vsub.f32 1.0, %v2254_v61  ;;  %v4809_v60 = vadd.f32 1.0, %v3233_v23  ;;  %v3235_v29 = vpop.eup %3234  ;;  %vm1795_vm3 = vmor %vm1793_vm13, %vm1794_vm14  ;;  %v1814_v27 = vand.u32 2147483648, %v4806_v37  ;;  %vm1808_vm9 = vweird.f32 %v4806_v37 }
 0x1d5   : > { %v1790_v17 = vsub.f32 1.0, %v1789_v25  ;;  %v2269_v15 = vmul.f32 %v3235_v29, %v1336_v13  ;;  %vm2274_vm4 = vweird.f32 %v3235_v29  ;;  %vm1813_vm11 = vcmp.eq.f32.partialorder %v1812_v31, 8.507059e+37 }
 0x1d6   : > { %v2256_v54 = vmul.f32 %v3229_v24, %v2255_v5  ;;  %3238 = vrcp.f32 %v4809_v60  ;;  %vm2275_vm6 = vmor %vm2273_vm5, %vm2274_vm4  ;;  %v1815_v28 = vor.u32 1.1754944e-38, %v1814_v27  ;;  %v2294_v9 = vand.u32 2147483648, %v4809_v60 }
 0x1d7   : > { %v1791_v30 = vmul.f32 %v3231_v4, %v1790_v17  ;;  %v2270_v57 = vsub.f32 1.0, %v2269_v15  ;;  %v2292_v35 = vand.u32 2147483647, %v4809_v60  ;;  %vm2288_vm13 = vweird.f32 %v4809_v60 }
 0x1d8   : > { %v2257_v2 = vadd.f32 %v3229_v24, %v2256_v54  ;;  %v2295_v45 = vor.u32 1.1754944e-38, %v2294_v9 }
 0x1d9   : > { %v3237_v43 = vpop.eup %3236  ;;  %v1792_v8 = vadd.f32 %v3231_v4, %v1791_v30  ;;  %v2271_v41 = vmul.f32 %v3235_v29, %v2270_v57  ;;  %vm2293_vm15 = vcmp.eq.f32.partialorder %v2292_v35, 8.507059e+37 }
 0x1da   : > { %v2261_v12 = vsel %vm2260_vm1, %v3229_v24, %v2257_v2  ;;  %v1804_v52 = vmul.f32 %v3237_v43, %v4806_v37  ;;  %vm1809_vm7 = vweird.f32 %v3237_v43 }
 0x1db   : > { %v2266_v48 = vsel %vm2263_vm0, %v2265_v62, %v2261_v12  ;;  %v1796_v38 = vsel %vm1795_vm3, %v3231_v4, %v1792_v8  ;;  %v2272_v36 = vadd.f32 %v3235_v29, %v2271_v41  ;;  %vm1810_vm10 = vmor %vm1808_vm9, %vm1809_vm7 }
 0x1dc   : > { %2359 = vst [vmem:[%s3537_s7 + $0x1e8] sm:$0xff] %v2266_v48  ;;  %v1801_v11 = vsel %vm1798_vm2, %v1800_v49, %v1796_v38  ;;  %v1805_v21 = vsub.f32 1.0, %v1804_v52  ;;  %v3239_v19 = vpop.eup %3238 }
 0x1dd   : > { %2328 = vst [vmem:[%s3537_s7 + $0xf0] sm:$0xff] %v1801_v11  ;;  %v2284_v63 = vmul.f32 %v3239_v19, %v4809_v60  ;;  %v2276_v3 = vsel %vm2275_vm6, %v3235_v29, %v2272_v36  ;;  %vm2289_vm12 = vweird.f32 %v3239_v19 }
 0x1de   : > { %v1806_v50 = vmul.f32 %v3237_v43, %v1805_v21  ;;  %v2281_v6 = vsel %vm2278_vm8, %v2280_v32, %v2276_v3  ;;  %vm2290_vm14 = vmor %vm2288_vm13, %vm2289_vm12 }
 0x1df   : > { %v2285_v22 = vsub.f32 1.0, %v2284_v63  ;;  %2360 = vst [vmem:[%s3537_s7 + $0x1f0] sm:$0xff] %v2281_v6 }
 0x1e0   : > { %v1807_v18 = vadd.f32 %v3237_v43, %v1806_v50 }
 0x1e1   : > { %v2286_v40 = vmul.f32 %v3239_v19, %v2285_v22 }
 0x1e2   : > { %v1811_v39 = vsel %vm1810_vm10, %v3237_v43, %v1807_v18 }
 0x1e3   : > { %v1816_v1 = vsel %vm1813_vm11, %v1815_v28, %v1811_v39  ;;  %v2287_v53 = vadd.f32 %v3239_v19, %v2286_v40 }
 0x1e4   : > { %2329 = vst [vmem:[%s3537_s7 + $0xf8] sm:$0xff] %v1816_v1 }
 0x1e5   : > { %v2291_v33 = vsel %vm2290_vm14, %v3239_v19, %v2287_v53 }
 0x1e6   : > { %v2296_v16 = vsel %vm2293_vm15, %v2295_v45, %v2291_v33 }
 0x1e7   : > { %2361 = vst [vmem:[%s3537_s7 + $0x1f8] sm:$0xff] %v2296_v16 }
 0x1e8 PF: > { %s13_s14 = sadd.s32 1, %s3264_s14   ;;  %s4943_s12 = smov %s3260_s13 }
 0x1e9   : > { %p10_p5 = scmp.ge.s32.totalorder %s13_s14, 6   ;;  %s4944_s13 = smov %s4946_s15 }
 0x1eb   :  { %12 = sbr.rel (!%p10_p5) target bundleno = 2 (0x2), region = 68 }

</bundles_post_ra>
